<compile_context>
chip_gen: v5e
topology: v5e:2x2
jax: 0.10.0
libtpu: 0.0.40
codegen_flags: <defaults>
</compile_context>

<pallas_src>
import functools

import jax
import jax.numpy as jnp
from jax.experimental import pallas as pl
from jax.experimental.pallas import tpu as pltpu


def _round_up(x, m):
    return (x + m - 1) // m * m


# ----------------------------------------------------------------------------
# Tile-size selection
# ----------------------------------------------------------------------------
def _pick_tm(M, tm_max=256):
    """M tile (multiple of 8) minimizing padding, preferring larger tiles."""
    if M <= tm_max:
        return _round_up(M, 8)
    cands = range(tm_max, 63, -8)
    return min(cands, key=lambda c: ((-M) % c, -c))


def _pick_tk(K):
    """K tile, multiple of 256 (full-depth MXU passes on v6e/v7x).

    Single reduction step up to 3072 so conv2 (K=1600) and conv4 (K=2304)
    keep their weights VMEM-resident across all M/N tiles."""
    kp = _round_up(K, 256)
    if kp <= 3072:
        return kp
    return min((2048, 1792, 1536, 1280, 1024, 768, 512),
               key=lambda c: ((-K) % c, -c))


def _pick_tn(N, m_blocks):
    """N tile: lane-dense (multiple of 128); split when there is only one M
    tile so the 'parallel' axes still feed v7x's second TensorCore."""
    if N % 128 != 0 or N < 256:
        return N
    if m_blocks == 1:
        return 256 if (N % 256 == 0 and N > 256) else N // 2
    return 256 if (N % 256 == 0 and N > 256) else N


# ----------------------------------------------------------------------------
# Kernel 1: (M,N,K)-tiled fused matmul + bias + optional ReLU
# ----------------------------------------------------------------------------
def _matmul_bias_kernel(a_ref, b_ref, bias_ref, o_ref, acc_ref, *, relu):
    @pl.when(pl.program_id(2) == 0)
    def _():
        acc_ref[...] = jnp.zeros_like(acc_ref)

    acc_ref[...] += jnp.dot(a_ref[...], b_ref[...],
                            preferred_element_type=jnp.float32)

    @pl.when(pl.program_id(2) == pl.num_programs(2) - 1)
    def _():
        out = acc_ref[...] + bias_ref[...]
        if relu:
            out = jnp.maximum(out, 0.0)
        o_ref[...] = out.astype(o_ref.dtype)


def fused_matmul(a, b, bias, *, relu, out_dtype=jnp.bfloat16, tm_max=256):
    """relu?( a @ b + bias ).  a:(M,K), b:(K,N), bias:(N,).  bf16 MXU, f32 acc."""
    M, K = a.shape
    K2, N = b.shape
    assert K == K2, (K, K2)
    a = a.astype(jnp.bfloat16)
    b = b.astype(jnp.bfloat16)
    bias = bias.astype(jnp.float32).reshape(1, N)

    tm = _pick_tm(M, tm_max)
    Mp = _round_up(M, tm)
    tk = _pick_tk(K)
    Kp = _round_up(K, tk)
    tn = _pick_tn(N, Mp // tm)

    if (Mp, Kp) != (M, K):
        a = jnp.pad(a, ((0, Mp - M), (0, Kp - K)))
    if Kp != K:
        b = jnp.pad(b, ((0, Kp - K), (0, 0)))

    # TODO(synk): conv1's 64-wide output (< 128 lanes) still uses masked
    # stores; packing two M rows per 128-lane output row needs an in-kernel
    # relayout and was left out for lowering safety.
    kernel = functools.partial(_matmul_bias_kernel, relu=relu)
    out = pl.pallas_call(
        kernel,
        out_shape=jax.ShapeDtypeStruct((Mp, N), out_dtype),
        grid_spec=pltpu.PrefetchScalarGridSpec(
            num_scalar_prefetch=0,
            grid=(Mp // tm, N // tn, Kp // tk),
            in_specs=[
                pl.BlockSpec((tm, tk), lambda i, j, k: (i, k)),
                pl.BlockSpec((tk, tn), lambda i, j, k: (k, j)),
                pl.BlockSpec((1, tn), lambda i, j, k: (0, j)),
            ],
            out_specs=pl.BlockSpec((tm, tn), lambda i, j, k: (i, j)),
            scratch_shapes=[pltpu.VMEM((tm, tn), jnp.float32)],
        ),
        compiler_params=pltpu.CompilerParams(
            dimension_semantics=("parallel", "parallel", "arbitrary"),
            vmem_limit_bytes=48 * 1024 * 1024),
    )(a, b, bias)
    return out[:M] if Mp != M else out


# ----------------------------------------------------------------------------
# Kernel 2: max-reduce over pooling-window positions (kk leading, M-tiled)
# ----------------------------------------------------------------------------
def _max_reduce_kernel(p_ref, o_ref, *, kk):
    acc = p_ref[0]
    for k in range(1, kk):
        acc = jnp.maximum(acc, p_ref[k])
    o_ref[...] = acc.astype(o_ref.dtype)


def maxpool2d(x, k, stride, pad):
    """MaxPool2d(kernel=k, stride=stride, padding=pad) on NHWC (bf16 in/out)."""
    B, H, W, C = x.shape
    Ho = (H + 2 * pad - k) // stride + 1
    Wo = (W + 2 * pad - k) // stride + 1
    xp = jnp.pad(x, ((0, 0), (pad, pad), (pad, pad), (0, 0)),
                 constant_values=-jnp.inf)
    # TODO(synk): the window stack below still duplicates the (bf16) feature
    # map k*k times in HBM; an in-kernel halo-DMA pool (or fusing the pool
    # into the preceding conv's epilogue) would remove that traffic.
    windows = []
    for ki in range(k):
        for kj in range(k):
            windows.append(xp[:,
                              ki:ki + (Ho - 1) * stride + 1:stride,
                              kj:kj + (Wo - 1) * stride + 1:stride,
                              :])
    kk = k * k
    M = B * Ho * Wo
    patches = jnp.stack(windows, axis=0).reshape(kk, M, C)

    tm = _pick_tm(M)
    Mp = _round_up(M, tm)
    if Mp != M:
        patches = jnp.pad(patches, ((0, 0), (0, Mp - M), (0, 0)))

    kernel = functools.partial(_max_reduce_kernel, kk=kk)
    y = pl.pallas_call(
        kernel,
        out_shape=jax.ShapeDtypeStruct((Mp, C), x.dtype),
        grid=(Mp // tm,),
        in_specs=[pl.BlockSpec((kk, tm, C), lambda i: (0, i, 0))],
        out_specs=pl.BlockSpec((tm, C), lambda i: (i, 0)),
        compiler_params=pltpu.CompilerParams(
            dimension_semantics=("parallel",)),
    )(patches)
    y = y[:M] if Mp != M else y
    return y.reshape(B, Ho, Wo, C)


# ----------------------------------------------------------------------------
# Kernel 3: fused fc1 -> ReLU -> fc2 -> ReLU -> fc3 (one pallas_call)
# ----------------------------------------------------------------------------
def _fc_chain_kernel(x_ref, w1_ref, b1_ref, w2_ref, b2_ref, w3_ref, b3_ref,
                     o_ref, h1_acc):
    k = pl.program_id(0)

    @pl.when(k == 0)
    def _():
        h1_acc[...] = jnp.zeros_like(h1_acc)

    h1_acc[...] += jnp.dot(x_ref[...], w1_ref[...],
                           preferred_element_type=jnp.float32)

    @pl.when(k == pl.num_programs(0) - 1)
    def _():
        h1 = jnp.maximum(h1_acc[...] + b1_ref[...], 0.0)
        # TODO(synk): Dropout(0.5) is identity here (eval/inference semantics).
        h2 = jnp.dot(h1.astype(jnp.bfloat16), w2_ref[...],
                     preferred_element_type=jnp.float32)
        h2 = jnp.maximum(h2 + b2_ref[...], 0.0)
        # TODO(synk): Dropout(0.3) is identity here (eval/inference semantics).
        h3 = jnp.dot(h2.astype(jnp.bfloat16), w3_ref[...],
                     preferred_element_type=jnp.float32)
        o_ref[...] = (h3 + b3_ref[...]).astype(o_ref.dtype)


def fc_chain(x_flat, fc1, fc2, fc3):
    B, K1 = x_flat.shape
    w1, b1 = fc1
    w2, b2 = fc2
    w3, b3 = fc3
    N1, N2, N3 = w1.shape[1], w2.shape[1], w3.shape[1]

    x = x_flat.astype(jnp.bfloat16)
    w1 = w1.astype(jnp.bfloat16)
    w2 = w2.astype(jnp.bfloat16)
    w3 = w3.astype(jnp.bfloat16)

    Bp = _round_up(B, 8)
    tk1 = _pick_tk(K1)
    K1p = _round_up(K1, tk1)
    if (Bp, K1p) != (B, K1):
        x = jnp.pad(x, ((0, Bp - B), (0, K1p - K1)))
    if K1p != K1:
        w1 = jnp.pad(w1, ((0, K1p - K1), (0, 0)))

    # TODO(synk): splitting N1 across a "parallel" grid axis (v7x second core)
    # would require a cross-core reduction of h1 before fc2; kept single-core.
    out = pl.pallas_call(
        _fc_chain_kernel,
        out_shape=jax.ShapeDtypeStruct((Bp, N3), jnp.float32),
        grid_spec=pltpu.PrefetchScalarGridSpec(
            num_scalar_prefetch=0,
            grid=(K1p // tk1,),
            in_specs=[
                pl.BlockSpec((Bp, tk1), lambda k: (0, k)),
                pl.BlockSpec((tk1, N1), lambda k: (k, 0)),
                pl.BlockSpec((1, N1), lambda k: (0, 0)),
                pl.BlockSpec((N1, N2), lambda k: (0, 0)),
                pl.BlockSpec((1, N2), lambda k: (0, 0)),
                pl.BlockSpec((N2, N3), lambda k: (0, 0)),
                pl.BlockSpec((1, N3), lambda k: (0, 0)),
            ],
            out_specs=pl.BlockSpec((Bp, N3), lambda k: (0, 0)),
            scratch_shapes=[pltpu.VMEM((Bp, N1), jnp.float32)],
        ),
        compiler_params=pltpu.CompilerParams(
            dimension_semantics=("arbitrary",),
            vmem_limit_bytes=48 * 1024 * 1024),
    )(x, w1, b1.astype(jnp.float32).reshape(1, N1),
      w2, b2.astype(jnp.float32).reshape(1, N2),
      w3, b3.astype(jnp.float32).reshape(1, N3))
    return out[:B]


# ----------------------------------------------------------------------------
# JAX glue: conv as im2col matmul with BN folded (eval semantics)
# ----------------------------------------------------------------------------
def conv_bn_relu(x, conv_p, k, stride, pad, eps=1e-5):
    """Fused Conv2d + BatchNorm2d(running stats) + ReLU; compute in Pallas."""
    w, b, gamma, beta, mean, var = conv_p
    B, H, W, Cin = x.shape
    Cout = w.shape[0]
    # Fold BN (running stats) into weight/bias in f32, then cast to bf16.
    scale = gamma / jnp.sqrt(var + eps)
    shift = beta - mean * scale
    w_mat = jnp.transpose(w, (2, 3, 1, 0)).reshape(k * k * Cin, Cout)
    w_mat = w_mat * scale[None, :]
    b_vec = b * scale + shift

    # TODO(synk): im2col still duplicates the (bf16) input ~k*k/stride^2 times
    # in HBM; an in-kernel shift-and-accumulate conv with halo DMA would
    # remove that traffic but needs overlapping-window block indexing.
    Ho = (H + 2 * pad - k) // stride + 1
    Wo = (W + 2 * pad - k) // stride + 1
    xp = jnp.pad(x, ((0, 0), (pad, pad), (pad, pad), (0, 0)))
    windows = []
    for ki in range(k):
        for kj in range(k):
            windows.append(xp[:,
                              ki:ki + (Ho - 1) * stride + 1:stride,
                              kj:kj + (Wo - 1) * stride + 1:stride,
                              :])
    patches = jnp.stack(windows, axis=3)            # (B, Ho, Wo, kk, Cin)
    a = patches.reshape(B * Ho * Wo, k * k * Cin)   # bf16 (x is bf16)
    y = fused_matmul(a, w_mat, b_vec, relu=True, out_dtype=jnp.bfloat16)
    return y.reshape(B, Ho, Wo, Cout)


# ----------------------------------------------------------------------------
# Parameter construction (deterministic, synthetic)
# ----------------------------------------------------------------------------
def _conv_hw(h, w):
    def o(x, k, s, p):
        return (x + 2 * p - k) // s + 1
    h, w = o(h, 7, 2, 3), o(w, 7, 2, 3)   # conv1
    h, w = o(h, 3, 2, 1), o(w, 3, 2, 1)   # pool1
    h, w = o(h, 5, 2, 2), o(w, 5, 2, 2)   # conv2
    h, w = o(h, 3, 2, 1), o(w, 3, 2, 1)   # pool2
    h, w = o(h, 3, 1, 1), o(w, 3, 1, 1)   # conv3
    h, w = o(h, 3, 1, 1), o(w, 3, 1, 1)   # conv4
    h, w = o(h, 2, 2, 0), o(w, 2, 2, 0)   # pool3
    return h, w


def init_params(key, input_height, input_width, output_dim):
    conv_cfg = [(4, 64, 7), (64, 128, 5), (128, 256, 3), (256, 512, 3)]
    params = {}
    keys = jax.random.split(key, 4 * len(conv_cfg) + 6)
    ki = 0
    for idx, (cin, cout, k) in enumerate(conv_cfg, start=1):
        w = 0.05 * jax.random.normal(keys[ki], (cout, cin, k, k), jnp.float32)
        b = 0.01 * jax.random.normal(keys[ki + 1], (cout,), jnp.float32)
        gamma = 1.0 + 0.1 * jax.random.normal(keys[ki + 2], (cout,), jnp.float32)
        beta = 0.05 * jax.random.normal(keys[ki + 3], (cout,), jnp.float32)
        mean = jnp.zeros((cout,), jnp.float32)     # running_mean
        var = jnp.ones((cout,), jnp.float32)       # running_var
        params[f"conv{idx}"] = (w, b, gamma, beta, mean, var)
        ki += 4

    h, w = _conv_hw(input_height, input_width)
    conv_output_size = 512 * h * w
    fc_cfg = [(conv_output_size, 1024), (1024, 512), (512, output_dim)]
    for idx, (fin, fout) in enumerate(fc_cfg, start=1):
        wf = 0.05 * jax.random.normal(keys[ki], (fin, fout), jnp.float32)
        bf = 0.01 * jax.random.normal(keys[ki + 1], (fout,), jnp.float32)
        params[f"fc{idx}"] = (wf, bf)
        ki += 2
    return params, conv_output_size


# ----------------------------------------------------------------------------
# Full forward pass (matches RGBDNetwork.forward, eval semantics)
# ----------------------------------------------------------------------------
def rgbd_forward(params, x_nchw):
    # NCHW (PyTorch) -> NHWC (kernel layout), bf16 activations.
    x = jnp.transpose(x_nchw, (0, 2, 3, 1)).astype(jnp.bfloat16)

    x = conv_bn_relu(x, params["conv1"], k=7, stride=2, pad=3)
    x = maxpool2d(x, 3, 2, 1)
    x = conv_bn_relu(x, params["conv2"], k=5, stride=2, pad=2)
    x = maxpool2d(x, 3, 2, 1)
    x = conv_bn_relu(x, params["conv3"], k=3, stride=1, pad=1)
    x = conv_bn_relu(x, params["conv4"], k=3, stride=1, pad=1)
    x = maxpool2d(x, 2, 2, 0)

    # PyTorch flattens in (C, H, W) order; instead of transposing the NHWC
    # activation, fold that permutation into fc1's weight rows (done once).
    B, h, w, C = x.shape
    w1, b1 = params["fc1"]
    w1 = w1.reshape(C, h, w, -1).transpose(1, 2, 0, 3).reshape(h * w * C, -1)
    x_flat = x.reshape(B, h * w * C)

    # fc1 -> ReLU -> (dropout: identity) -> fc2 -> ReLU -> (dropout) -> fc3,
    # all fused into a single Pallas kernel.
    return fc_chain(x_flat, (w1, b1), params["fc2"], params["fc3"])


# ----------------------------------------------------------------------------
if __name__ == "__main__":
    # Small shapes: RGBDNetwork(input_height=32, input_width=32, output_dim=64)
    INPUT_H, INPUT_W, OUTPUT_DIM = 32, 32, 64
    BATCH = 2

    key = jax.random.PRNGKey(0)
    pkey, xkey = jax.random.split(key)
    params, conv_output_size = init_params(pkey, INPUT_H, INPUT_W, OUTPUT_DIM)

    x = jax.random.uniform(xkey, (BATCH, 4, INPUT_H, INPUT_W), jnp.float32)

    fwd = jax.jit(rgbd_forward)
    out = fwd(params, x)
    out = jax.block_until_ready(out)

    assert out.shape == (BATCH, OUTPUT_DIM), out.shape
    assert out.dtype == jnp.float32
    assert bool(jnp.all(jnp.isfinite(out)))
    print("KERNEL_OK")
</pallas_src>

<mosaic_0001>
module attributes {stable_mosaic.version = 11 : i64} {
  func.func @_matmul_bias_kernel(%arg0: i32, %arg1: i32, %arg2: i32, %arg3: memref<256x256xbf16, #tpu.memory_space<vmem>>, %arg4: memref<256x64xbf16, #tpu.memory_space<vmem>>, %arg5: memref<1x64xf32, #tpu.memory_space<vmem>>, %arg6: memref<256x64xbf16, #tpu.memory_space<vmem>>, %arg7: memref<256x64xf32, #tpu.memory_space<vmem>>) attributes {dimension_semantics = [#tpu.dimension_semantics<parallel>, #tpu.dimension_semantics<parallel>, #tpu.dimension_semantics<arbitrary>], iteration_bounds = array<i64: 2, 1, 1>, scalar_prefetch = 0 : i64, scratch_operands = 1 : i64, tpu.core_type = #tpu.core_type<tc>, window_params = [{transform_indices = @transform_0, window_bounds = array<i64: 256, 256>}, {transform_indices = @transform_1, window_bounds = array<i64: 256, 64>}, {transform_indices = @transform_2, window_bounds = array<i64: 1, 64>}, {transform_indices = @transform_3, window_bounds = array<i64: 256, 64>}]} {
    %c0_i32 = arith.constant 0 : i32
    %0 = arith.cmpi eq, %arg2, %c0_i32 : i32
    %1 = arith.extui %0 : i1 to i32
    %c0_i32_0 = arith.constant 0 : i32
    %2 = arith.cmpi ne, %1, %c0_i32_0 : i32
    scf.if %2 {
      %cst_10 = arith.constant 0.000000e+00 : f32
      %12 = vector.broadcast %cst_10 : f32 to vector<256x64xf32>
      %c0_11 = arith.constant 0 : index
      %c0_12 = arith.constant 0 : index
      %13 = vector.load %arg7[%c0_11, %c0_12] : memref<256x64xf32, #tpu.memory_space<vmem>>, vector<256x64xf32>
      tpu.vector_store %arg7[%c0_11, %c0_12], %12 {strides = array<i32>} : memref<256x64xf32, #tpu.memory_space<vmem>>, vector<256x64xf32>,
    } else {
    }
    %c0 = arith.constant 0 : index
    %c0_1 = arith.constant 0 : index
    %3 = vector.load %arg7[%c0, %c0_1] : memref<256x64xf32, #tpu.memory_space<vmem>>, vector<256x64xf32>
    %c0_2 = arith.constant 0 : index
    %c0_3 = arith.constant 0 : index
    %4 = vector.load %arg3[%c0_2, %c0_3] : memref<256x256xbf16, #tpu.memory_space<vmem>>, vector<256x256xbf16>
    %c0_4 = arith.constant 0 : index
    %c0_5 = arith.constant 0 : index
    %5 = vector.load %arg4[%c0_4, %c0_5] : memref<256x64xbf16, #tpu.memory_space<vmem>>, vector<256x64xbf16>
    %cst = arith.constant dense<0.000000e+00> : vector<256x64xf32>
    %6 = tpu.matmul %4, %5, %cst {dimension_numbers = #tpu.dot_dimension_numbers<[1], [0], [0], [1], [0, 0, 1, 1], [], []>} : vector<256x256xbf16>, vector<256x64xbf16>, vector<256x64xf32> -> vector<256x64xf32>
    %7 = arith.addf %3, %6 : vector<256x64xf32>
    %c0_6 = arith.constant 0 : index
    %c0_7 = arith.constant 0 : index
    %8 = vector.load %arg7[%c0_6, %c0_7] : memref<256x64xf32, #tpu.memory_space<vmem>>, vector<256x64xf32>
    tpu.vector_store %arg7[%c0_6, %c0_7], %7 {strides = array<i32>} : memref<256x64xf32, #tpu.memory_space<vmem>>, vector<256x64xf32>,
    %c0_i32_8 = arith.constant 0 : i32
    %9 = arith.cmpi eq, %arg2, %c0_i32_8 : i32
    %10 = arith.extui %9 : i1 to i32
    %c0_i32_9 = arith.constant 0 : i32
    %11 = arith.cmpi ne, %10, %c0_i32_9 : i32
    scf.if %11 {
      %c0_10 = arith.constant 0 : index
      %c0_11 = arith.constant 0 : index
      %12 = vector.load %arg7[%c0_10, %c0_11] : memref<256x64xf32, #tpu.memory_space<vmem>>, vector<256x64xf32>
      %c0_12 = arith.constant 0 : index
      %c0_13 = arith.constant 0 : index
      %13 = vector.load %arg5[%c0_12, %c0_13] : memref<1x64xf32, #tpu.memory_space<vmem>>, vector<1x64xf32>
      %14 = vector.broadcast %13 : vector<1x64xf32> to vector<256x64xf32>
      %15 = arith.addf %12, %14 : vector<256x64xf32>
      %cst_14 = arith.constant 0.000000e+00 : f32
      %16 = vector.broadcast %cst_14 : f32 to vector<256x64xf32>
      %17 = arith.maximumf %15, %16 : vector<256x64xf32>
      %18 = arith.truncf %17 : vector<256x64xf32> to vector<256x64xbf16>
      %c0_15 = arith.constant 0 : index
      %c0_16 = arith.constant 0 : index
      %19 = vector.load %arg6[%c0_15, %c0_16] : memref<256x64xbf16, #tpu.memory_space<vmem>>, vector<256x64xbf16>
      tpu.vector_store %arg6[%c0_15, %c0_16], %18 {strides = array<i32>} : memref<256x64xbf16, #tpu.memory_space<vmem>>, vector<256x64xbf16>,
    } else {
    }
    return
  }
  func.func @transform_0(%arg0: i32, %arg1: i32, %arg2: i32) -> (i32, i32) {
    %c0_i32 = arith.constant 0 : i32
    return %arg0, %arg2 : i32, i32
  }
  func.func @transform_1(%arg0: i32, %arg1: i32, %arg2: i32) -> (i32, i32) {
    %c0_i32 = arith.constant 0 : i32
    return %arg2, %arg1 : i32, i32
  }
  func.func @transform_2(%arg0: i32, %arg1: i32, %arg2: i32) -> (i32, i32) {
    %c0_i32 = arith.constant 0 : i32
    %c0_i32_0 = arith.constant 0 : i32
    return %c0_i32, %arg1 : i32, i32
  }
  func.func @transform_3(%arg0: i32, %arg1: i32, %arg2: i32) -> (i32, i32) {
    %c0_i32 = arith.constant 0 : i32
    return %arg0, %arg1 : i32, i32
  }
}

module attributes {stable_mosaic.version = 11 : i64} {
  func.func @_max_reduce_kernel(%arg0: i32, %arg1: memref<9x128x64xbf16, #tpu.memory_space<vmem>>, %arg2: memref<128x64xbf16, #tpu.memory_space<vmem>>) attributes {dimension_semantics = [#tpu.dimension_semantics<parallel>], iteration_bounds = array<i64: 1>, scalar_prefetch = 0 : i64, scratch_operands = 0 : i64, tpu.core_type = #tpu.core_type<tc>, window_params = [{transform_indices = @transform_0, window_bounds = array<i64: 9, 128, 64>}, {transform_indices = @transform_1, window_bounds = array<i64: 128, 64>}]} {
    %c0 = arith.constant 0 : index
    %c0_0 = arith.constant 0 : index
    %c0_1 = arith.constant 0 : index
    %0 = vector.load %arg1[%c0, %c0_0, %c0_1] : memref<9x128x64xbf16, #tpu.memory_space<vmem>>, vector<1x128x64xbf16>
    %1 = vector.shape_cast %0 : vector<1x128x64xbf16> to vector<128x64xbf16>
    %c1 = arith.constant 1 : index
    %c0_2 = arith.constant 0 : index
    %c0_3 = arith.constant 0 : index
    %2 = vector.load %arg1[%c1, %c0_2, %c0_3] : memref<9x128x64xbf16, #tpu.memory_space<vmem>>, vector<1x128x64xbf16>
    %3 = vector.shape_cast %2 : vector<1x128x64xbf16> to vector<128x64xbf16>
    %4 = arith.maximumf %1, %3 : vector<128x64xbf16>
    %c2 = arith.constant 2 : index
    %c0_4 = arith.constant 0 : index
    %c0_5 = arith.constant 0 : index
    %5 = vector.load %arg1[%c2, %c0_4, %c0_5] : memref<9x128x64xbf16, #tpu.memory_space<vmem>>, vector<1x128x64xbf16>
    %6 = vector.shape_cast %5 : vector<1x128x64xbf16> to vector<128x64xbf16>
    %7 = arith.maximumf %4, %6 : vector<128x64xbf16>
    %c3 = arith.constant 3 : index
    %c0_6 = arith.constant 0 : index
    %c0_7 = arith.constant 0 : index
    %8 = vector.load %arg1[%c3, %c0_6, %c0_7] : memref<9x128x64xbf16, #tpu.memory_space<vmem>>, vector<1x128x64xbf16>
    %9 = vector.shape_cast %8 : vector<1x128x64xbf16> to vector<128x64xbf16>
    %10 = arith.maximumf %7, %9 : vector<128x64xbf16>
    %c4 = arith.constant 4 : index
    %c0_8 = arith.constant 0 : index
    %c0_9 = arith.constant 0 : index
    %11 = vector.load %arg1[%c4, %c0_8, %c0_9] : memref<9x128x64xbf16, #tpu.memory_space<vmem>>, vector<1x128x64xbf16>
    %12 = vector.shape_cast %11 : vector<1x128x64xbf16> to vector<128x64xbf16>
    %13 = arith.maximumf %10, %12 : vector<128x64xbf16>
    %c5 = arith.constant 5 : index
    %c0_10 = arith.constant 0 : index
    %c0_11 = arith.constant 0 : index
    %14 = vector.load %arg1[%c5, %c0_10, %c0_11] : memref<9x128x64xbf16, #tpu.memory_space<vmem>>, vector<1x128x64xbf16>
    %15 = vector.shape_cast %14 : vector<1x128x64xbf16> to vector<128x64xbf16>
    %16 = arith.maximumf %13, %15 : vector<128x64xbf16>
    %c6 = arith.constant 6 : index
    %c0_12 = arith.constant 0 : index
    %c0_13 = arith.constant 0 : index
    %17 = vector.load %arg1[%c6, %c0_12, %c0_13] : memref<9x128x64xbf16, #tpu.memory_space<vmem>>, vector<1x128x64xbf16>
    %18 = vector.shape_cast %17 : vector<1x128x64xbf16> to vector<128x64xbf16>
    %19 = arith.maximumf %16, %18 : vector<128x64xbf16>
    %c7 = arith.constant 7 : index
    %c0_14 = arith.constant 0 : index
    %c0_15 = arith.constant 0 : index
    %20 = vector.load %arg1[%c7, %c0_14, %c0_15] : memref<9x128x64xbf16, #tpu.memory_space<vmem>>, vector<1x128x64xbf16>
    %21 = vector.shape_cast %20 : vector<1x128x64xbf16> to vector<128x64xbf16>
    %22 = arith.maximumf %19, %21 : vector<128x64xbf16>
    %c8 = arith.constant 8 : index
    %c0_16 = arith.constant 0 : index
    %c0_17 = arith.constant 0 : index
    %23 = vector.load %arg1[%c8, %c0_16, %c0_17] : memref<9x128x64xbf16, #tpu.memory_space<vmem>>, vector<1x128x64xbf16>
    %24 = vector.shape_cast %23 : vector<1x128x64xbf16> to vector<128x64xbf16>
    %25 = arith.maximumf %22, %24 : vector<128x64xbf16>
    %c0_18 = arith.constant 0 : index
    %c0_19 = arith.constant 0 : index
    %26 = vector.load %arg2[%c0_18, %c0_19] : memref<128x64xbf16, #tpu.memory_space<vmem>>, vector<128x64xbf16>
    tpu.vector_store %arg2[%c0_18, %c0_19], %25 {strides = array<i32>} : memref<128x64xbf16, #tpu.memory_space<vmem>>, vector<128x64xbf16>,
    return
  }
  func.func @transform_0(%arg0: i32) -> (i32, i32, i32) {
    %c0_i32 = arith.constant 0 : i32
    %c0_i32_0 = arith.constant 0 : i32
    %c0_i32_1 = arith.constant 0 : i32
    return %c0_i32, %arg0, %c0_i32_0 : i32, i32, i32
  }
  func.func @transform_1(%arg0: i32) -> (i32, i32) {
    %c0_i32 = arith.constant 0 : i32
    %c0_i32_0 = arith.constant 0 : i32
    return %arg0, %c0_i32 : i32, i32
  }
}

module attributes {stable_mosaic.version = 11 : i64} {
  func.func @_matmul_bias_kernel(%arg0: i32, %arg1: i32, %arg2: i32, %arg3: memref<32x1792xbf16, #tpu.memory_space<vmem>>, %arg4: memref<1792x128xbf16, #tpu.memory_space<vmem>>, %arg5: memref<1x128xf32, #tpu.memory_space<vmem>>, %arg6: memref<32x128xbf16, #tpu.memory_space<vmem>>, %arg7: memref<32x128xf32, #tpu.memory_space<vmem>>) attributes {dimension_semantics = [#tpu.dimension_semantics<parallel>, #tpu.dimension_semantics<parallel>, #tpu.dimension_semantics<arbitrary>], iteration_bounds = array<i64: 1, 1, 1>, scalar_prefetch = 0 : i64, scratch_operands = 1 : i64, tpu.core_type = #tpu.core_type<tc>, window_params = [{transform_indices = @transform_0, window_bounds = array<i64: 32, 1792>}, {transform_indices = @transform_1, window_bounds = array<i64: 1792, 128>}, {transform_indices = @transform_2, window_bounds = array<i64: 1, 128>}, {transform_indices = @transform_3, window_bounds = array<i64: 32, 128>}]} {
    %c0_i32 = arith.constant 0 : i32
    %0 = arith.cmpi eq, %arg2, %c0_i32 : i32
    %1 = arith.extui %0 : i1 to i32
    %c0_i32_0 = arith.constant 0 : i32
    %2 = arith.cmpi ne, %1, %c0_i32_0 : i32
    scf.if %2 {
      %cst_10 = arith.constant 0.000000e+00 : f32
      %12 = vector.broadcast %cst_10 : f32 to vector<32x128xf32>
      %c0_11 = arith.constant 0 : index
      %c0_12 = arith.constant 0 : index
      %13 = vector.load %arg7[%c0_11, %c0_12] : memref<32x128xf32, #tpu.memory_space<vmem>>, vector<32x128xf32>
      tpu.vector_store %arg7[%c0_11, %c0_12], %12 {strides = array<i32>} : memref<32x128xf32, #tpu.memory_space<vmem>>, vector<32x128xf32>,
    } else {
    }
    %c0 = arith.constant 0 : index
    %c0_1 = arith.constant 0 : index
    %3 = vector.load %arg7[%c0, %c0_1] : memref<32x128xf32, #tpu.memory_space<vmem>>, vector<32x128xf32>
    %c0_2 = arith.constant 0 : index
    %c0_3 = arith.constant 0 : index
    %4 = vector.load %arg3[%c0_2, %c0_3] : memref<32x1792xbf16, #tpu.memory_space<vmem>>, vector<32x1792xbf16>
    %c0_4 = arith.constant 0 : index
    %c0_5 = arith.constant 0 : index
    %5 = vector.load %arg4[%c0_4, %c0_5] : memref<1792x128xbf16, #tpu.memory_space<vmem>>, vector<1792x128xbf16>
    %cst = arith.constant dense<0.000000e+00> : vector<32x128xf32>
    %6 = tpu.matmul %4, %5, %cst {dimension_numbers = #tpu.dot_dimension_numbers<[1], [0], [0], [1], [0, 0, 1, 1], [], []>} : vector<32x1792xbf16>, vector<1792x128xbf16>, vector<32x128xf32> -> vector<32x128xf32>
    %7 = arith.addf %3, %6 : vector<32x128xf32>
    %c0_6 = arith.constant 0 : index
    %c0_7 = arith.constant 0 : index
    %8 = vector.load %arg7[%c0_6, %c0_7] : memref<32x128xf32, #tpu.memory_space<vmem>>, vector<32x128xf32>
    tpu.vector_store %arg7[%c0_6, %c0_7], %7 {strides = array<i32>} : memref<32x128xf32, #tpu.memory_space<vmem>>, vector<32x128xf32>,
    %c0_i32_8 = arith.constant 0 : i32
    %9 = arith.cmpi eq, %arg2, %c0_i32_8 : i32
    %10 = arith.extui %9 : i1 to i32
    %c0_i32_9 = arith.constant 0 : i32
    %11 = arith.cmpi ne, %10, %c0_i32_9 : i32
    scf.if %11 {
      %c0_10 = arith.constant 0 : index
      %c0_11 = arith.constant 0 : index
      %12 = vector.load %arg7[%c0_10, %c0_11] : memref<32x128xf32, #tpu.memory_space<vmem>>, vector<32x128xf32>
      %c0_12 = arith.constant 0 : index
      %c0_13 = arith.constant 0 : index
      %13 = vector.load %arg5[%c0_12, %c0_13] : memref<1x128xf32, #tpu.memory_space<vmem>>, vector<1x128xf32>
      %14 = vector.broadcast %13 : vector<1x128xf32> to vector<32x128xf32>
      %15 = arith.addf %12, %14 : vector<32x128xf32>
      %cst_14 = arith.constant 0.000000e+00 : f32
      %16 = vector.broadcast %cst_14 : f32 to vector<32x128xf32>
      %17 = arith.maximumf %15, %16 : vector<32x128xf32>
      %18 = arith.truncf %17 : vector<32x128xf32> to vector<32x128xbf16>
      %c0_15 = arith.constant 0 : index
      %c0_16 = arith.constant 0 : index
      %19 = vector.load %arg6[%c0_15, %c0_16] : memref<32x128xbf16, #tpu.memory_space<vmem>>, vector<32x128xbf16>
      tpu.vector_store %arg6[%c0_15, %c0_16], %18 {strides = array<i32>} : memref<32x128xbf16, #tpu.memory_space<vmem>>, vector<32x128xbf16>,
    } else {
    }
    return
  }
  func.func @transform_0(%arg0: i32, %arg1: i32, %arg2: i32) -> (i32, i32) {
    %c0_i32 = arith.constant 0 : i32
    return %arg0, %arg2 : i32, i32
  }
  func.func @transform_1(%arg0: i32, %arg1: i32, %arg2: i32) -> (i32, i32) {
    %c0_i32 = arith.constant 0 : i32
    return %arg2, %arg1 : i32, i32
  }
  func.func @transform_2(%arg0: i32, %arg1: i32, %arg2: i32) -> (i32, i32) {
    %c0_i32 = arith.constant 0 : i32
    %c0_i32_0 = arith.constant 0 : i32
    return %c0_i32, %arg1 : i32, i32
  }
  func.func @transform_3(%arg0: i32, %arg1: i32, %arg2: i32) -> (i32, i32) {
    %c0_i32 = arith.constant 0 : i32
    return %arg0, %arg1 : i32, i32
  }
}

module attributes {stable_mosaic.version = 11 : i64} {
  func.func @_max_reduce_kernel(%arg0: i32, %arg1: memref<9x8x128xbf16, #tpu.memory_space<vmem>>, %arg2: memref<8x128xbf16, #tpu.memory_space<vmem>>) attributes {dimension_semantics = [#tpu.dimension_semantics<parallel>], iteration_bounds = array<i64: 1>, scalar_prefetch = 0 : i64, scratch_operands = 0 : i64, tpu.core_type = #tpu.core_type<tc>, window_params = [{transform_indices = @transform_0, window_bounds = array<i64: 9, 8, 128>}, {transform_indices = @transform_1, window_bounds = array<i64: 8, 128>}]} {
    %c0 = arith.constant 0 : index
    %c0_0 = arith.constant 0 : index
    %c0_1 = arith.constant 0 : index
    %0 = vector.load %arg1[%c0, %c0_0, %c0_1] : memref<9x8x128xbf16, #tpu.memory_space<vmem>>, vector<1x8x128xbf16>
    %1 = vector.shape_cast %0 : vector<1x8x128xbf16> to vector<8x128xbf16>
    %c1 = arith.constant 1 : index
    %c0_2 = arith.constant 0 : index
    %c0_3 = arith.constant 0 : index
    %2 = vector.load %arg1[%c1, %c0_2, %c0_3] : memref<9x8x128xbf16, #tpu.memory_space<vmem>>, vector<1x8x128xbf16>
    %3 = vector.shape_cast %2 : vector<1x8x128xbf16> to vector<8x128xbf16>
    %4 = arith.maximumf %1, %3 : vector<8x128xbf16>
    %c2 = arith.constant 2 : index
    %c0_4 = arith.constant 0 : index
    %c0_5 = arith.constant 0 : index
    %5 = vector.load %arg1[%c2, %c0_4, %c0_5] : memref<9x8x128xbf16, #tpu.memory_space<vmem>>, vector<1x8x128xbf16>
    %6 = vector.shape_cast %5 : vector<1x8x128xbf16> to vector<8x128xbf16>
    %7 = arith.maximumf %4, %6 : vector<8x128xbf16>
    %c3 = arith.constant 3 : index
    %c0_6 = arith.constant 0 : index
    %c0_7 = arith.constant 0 : index
    %8 = vector.load %arg1[%c3, %c0_6, %c0_7] : memref<9x8x128xbf16, #tpu.memory_space<vmem>>, vector<1x8x128xbf16>
    %9 = vector.shape_cast %8 : vector<1x8x128xbf16> to vector<8x128xbf16>
    %10 = arith.maximumf %7, %9 : vector<8x128xbf16>
    %c4 = arith.constant 4 : index
    %c0_8 = arith.constant 0 : index
    %c0_9 = arith.constant 0 : index
    %11 = vector.load %arg1[%c4, %c0_8, %c0_9] : memref<9x8x128xbf16, #tpu.memory_space<vmem>>, vector<1x8x128xbf16>
    %12 = vector.shape_cast %11 : vector<1x8x128xbf16> to vector<8x128xbf16>
    %13 = arith.maximumf %10, %12 : vector<8x128xbf16>
    %c5 = arith.constant 5 : index
    %c0_10 = arith.constant 0 : index
    %c0_11 = arith.constant 0 : index
    %14 = vector.load %arg1[%c5, %c0_10, %c0_11] : memref<9x8x128xbf16, #tpu.memory_space<vmem>>, vector<1x8x128xbf16>
    %15 = vector.shape_cast %14 : vector<1x8x128xbf16> to vector<8x128xbf16>
    %16 = arith.maximumf %13, %15 : vector<8x128xbf16>
    %c6 = arith.constant 6 : index
    %c0_12 = arith.constant 0 : index
    %c0_13 = arith.constant 0 : index
    %17 = vector.load %arg1[%c6, %c0_12, %c0_13] : memref<9x8x128xbf16, #tpu.memory_space<vmem>>, vector<1x8x128xbf16>
    %18 = vector.shape_cast %17 : vector<1x8x128xbf16> to vector<8x128xbf16>
    %19 = arith.maximumf %16, %18 : vector<8x128xbf16>
    %c7 = arith.constant 7 : index
    %c0_14 = arith.constant 0 : index
    %c0_15 = arith.constant 0 : index
    %20 = vector.load %arg1[%c7, %c0_14, %c0_15] : memref<9x8x128xbf16, #tpu.memory_space<vmem>>, vector<1x8x128xbf16>
    %21 = vector.shape_cast %20 : vector<1x8x128xbf16> to vector<8x128xbf16>
    %22 = arith.maximumf %19, %21 : vector<8x128xbf16>
    %c8 = arith.constant 8 : index
    %c0_16 = arith.constant 0 : index
    %c0_17 = arith.constant 0 : index
    %23 = vector.load %arg1[%c8, %c0_16, %c0_17] : memref<9x8x128xbf16, #tpu.memory_space<vmem>>, vector<1x8x128xbf16>
    %24 = vector.shape_cast %23 : vector<1x8x128xbf16> to vector<8x128xbf16>
    %25 = arith.maximumf %22, %24 : vector<8x128xbf16>
    %c0_18 = arith.constant 0 : index
    %c0_19 = arith.constant 0 : index
    %26 = vector.load %arg2[%c0_18, %c0_19] : memref<8x128xbf16, #tpu.memory_space<vmem>>, vector<8x128xbf16>
    tpu.vector_store %arg2[%c0_18, %c0_19], %25 {strides = array<i32>} : memref<8x128xbf16, #tpu.memory_space<vmem>>, vector<8x128xbf16>,
    return
  }
  func.func @transform_0(%arg0: i32) -> (i32, i32, i32) {
    %c0_i32 = arith.constant 0 : i32
    %c0_i32_0 = arith.constant 0 : i32
    %c0_i32_1 = arith.constant 0 : i32
    return %c0_i32, %arg0, %c0_i32_0 : i32, i32, i32
  }
  func.func @transform_1(%arg0: i32) -> (i32, i32) {
    %c0_i32 = arith.constant 0 : i32
    %c0_i32_0 = arith.constant 0 : i32
    return %arg0, %c0_i32 : i32, i32
  }
}

module attributes {stable_mosaic.version = 11 : i64} {
  func.func @_matmul_bias_kernel(%arg0: i32, %arg1: i32, %arg2: i32, %arg3: memref<8x1280xbf16, #tpu.memory_space<vmem>>, %arg4: memref<1280x128xbf16, #tpu.memory_space<vmem>>, %arg5: memref<1x128xf32, #tpu.memory_space<vmem>>, %arg6: memref<8x128xbf16, #tpu.memory_space<vmem>>, %arg7: memref<8x128xf32, #tpu.memory_space<vmem>>) attributes {dimension_semantics = [#tpu.dimension_semantics<parallel>, #tpu.dimension_semantics<parallel>, #tpu.dimension_semantics<arbitrary>], iteration_bounds = array<i64: 1, 2, 1>, scalar_prefetch = 0 : i64, scratch_operands = 1 : i64, tpu.core_type = #tpu.core_type<tc>, window_params = [{transform_indices = @transform_0, window_bounds = array<i64: 8, 1280>}, {transform_indices = @transform_1, window_bounds = array<i64: 1280, 128>}, {transform_indices = @transform_2, window_bounds = array<i64: 1, 128>}, {transform_indices = @transform_3, window_bounds = array<i64: 8, 128>}]} {
    %c0_i32 = arith.constant 0 : i32
    %0 = arith.cmpi eq, %arg2, %c0_i32 : i32
    %1 = arith.extui %0 : i1 to i32
    %c0_i32_0 = arith.constant 0 : i32
    %2 = arith.cmpi ne, %1, %c0_i32_0 : i32
    scf.if %2 {
      %cst_10 = arith.constant 0.000000e+00 : f32
      %12 = vector.broadcast %cst_10 : f32 to vector<8x128xf32>
      %c0_11 = arith.constant 0 : index
      %c0_12 = arith.constant 0 : index
      %13 = vector.load %arg7[%c0_11, %c0_12] : memref<8x128xf32, #tpu.memory_space<vmem>>, vector<8x128xf32>
      tpu.vector_store %arg7[%c0_11, %c0_12], %12 {strides = array<i32>} : memref<8x128xf32, #tpu.memory_space<vmem>>, vector<8x128xf32>,
    } else {
    }
    %c0 = arith.constant 0 : index
    %c0_1 = arith.constant 0 : index
    %3 = vector.load %arg7[%c0, %c0_1] : memref<8x128xf32, #tpu.memory_space<vmem>>, vector<8x128xf32>
    %c0_2 = arith.constant 0 : index
    %c0_3 = arith.constant 0 : index
    %4 = vector.load %arg3[%c0_2, %c0_3] : memref<8x1280xbf16, #tpu.memory_space<vmem>>, vector<8x1280xbf16>
    %c0_4 = arith.constant 0 : index
    %c0_5 = arith.constant 0 : index
    %5 = vector.load %arg4[%c0_4, %c0_5] : memref<1280x128xbf16, #tpu.memory_space<vmem>>, vector<1280x128xbf16>
    %cst = arith.constant dense<0.000000e+00> : vector<8x128xf32>
    %6 = tpu.matmul %4, %5, %cst {dimension_numbers = #tpu.dot_dimension_numbers<[1], [0], [0], [1], [0, 0, 1, 1], [], []>} : vector<8x1280xbf16>, vector<1280x128xbf16>, vector<8x128xf32> -> vector<8x128xf32>
    %7 = arith.addf %3, %6 : vector<8x128xf32>
    %c0_6 = arith.constant 0 : index
    %c0_7 = arith.constant 0 : index
    %8 = vector.load %arg7[%c0_6, %c0_7] : memref<8x128xf32, #tpu.memory_space<vmem>>, vector<8x128xf32>
    tpu.vector_store %arg7[%c0_6, %c0_7], %7 {strides = array<i32>} : memref<8x128xf32, #tpu.memory_space<vmem>>, vector<8x128xf32>,
    %c0_i32_8 = arith.constant 0 : i32
    %9 = arith.cmpi eq, %arg2, %c0_i32_8 : i32
    %10 = arith.extui %9 : i1 to i32
    %c0_i32_9 = arith.constant 0 : i32
    %11 = arith.cmpi ne, %10, %c0_i32_9 : i32
    scf.if %11 {
      %c0_10 = arith.constant 0 : index
      %c0_11 = arith.constant 0 : index
      %12 = vector.load %arg7[%c0_10, %c0_11] : memref<8x128xf32, #tpu.memory_space<vmem>>, vector<8x128xf32>
      %c0_12 = arith.constant 0 : index
      %c0_13 = arith.constant 0 : index
      %13 = vector.load %arg5[%c0_12, %c0_13] : memref<1x128xf32, #tpu.memory_space<vmem>>, vector<1x128xf32>
      %14 = vector.broadcast %13 : vector<1x128xf32> to vector<8x128xf32>
      %15 = arith.addf %12, %14 : vector<8x128xf32>
      %cst_14 = arith.constant 0.000000e+00 : f32
      %16 = vector.broadcast %cst_14 : f32 to vector<8x128xf32>
      %17 = arith.maximumf %15, %16 : vector<8x128xf32>
      %18 = arith.truncf %17 : vector<8x128xf32> to vector<8x128xbf16>
      %c0_15 = arith.constant 0 : index
      %c0_16 = arith.constant 0 : index
      %19 = vector.load %arg6[%c0_15, %c0_16] : memref<8x128xbf16, #tpu.memory_space<vmem>>, vector<8x128xbf16>
      tpu.vector_store %arg6[%c0_15, %c0_16], %18 {strides = array<i32>} : memref<8x128xbf16, #tpu.memory_space<vmem>>, vector<8x128xbf16>,
    } else {
    }
    return
  }
  func.func @transform_0(%arg0: i32, %arg1: i32, %arg2: i32) -> (i32, i32) {
    %c0_i32 = arith.constant 0 : i32
    return %arg0, %arg2 : i32, i32
  }
  func.func @transform_1(%arg0: i32, %arg1: i32, %arg2: i32) -> (i32, i32) {
    %c0_i32 = arith.constant 0 : i32
    return %arg2, %arg1 : i32, i32
  }
  func.func @transform_2(%arg0: i32, %arg1: i32, %arg2: i32) -> (i32, i32) {
    %c0_i32 = arith.constant 0 : i32
    %c0_i32_0 = arith.constant 0 : i32
    return %c0_i32, %arg1 : i32, i32
  }
  func.func @transform_3(%arg0: i32, %arg1: i32, %arg2: i32) -> (i32, i32) {
    %c0_i32 = arith.constant 0 : i32
    return %arg0, %arg1 : i32, i32
  }
}

module attributes {stable_mosaic.version = 11 : i64} {
  func.func @_matmul_bias_kernel(%arg0: i32, %arg1: i32, %arg2: i32, %arg3: memref<8x2304xbf16, #tpu.memory_space<vmem>>, %arg4: memref<2304x256xbf16, #tpu.memory_space<vmem>>, %arg5: memref<1x256xf32, #tpu.memory_space<vmem>>, %arg6: memref<8x256xbf16, #tpu.memory_space<vmem>>, %arg7: memref<8x256xf32, #tpu.memory_space<vmem>>) attributes {dimension_semantics = [#tpu.dimension_semantics<parallel>, #tpu.dimension_semantics<parallel>, #tpu.dimension_semantics<arbitrary>], iteration_bounds = array<i64: 1, 2, 1>, scalar_prefetch = 0 : i64, scratch_operands = 1 : i64, tpu.core_type = #tpu.core_type<tc>, window_params = [{transform_indices = @transform_0, window_bounds = array<i64: 8, 2304>}, {transform_indices = @transform_1, window_bounds = array<i64: 2304, 256>}, {transform_indices = @transform_2, window_bounds = array<i64: 1, 256>}, {transform_indices = @transform_3, window_bounds = array<i64: 8, 256>}]} {
    %c0_i32 = arith.constant 0 : i32
    %0 = arith.cmpi eq, %arg2, %c0_i32 : i32
    %1 = arith.extui %0 : i1 to i32
    %c0_i32_0 = arith.constant 0 : i32
    %2 = arith.cmpi ne, %1, %c0_i32_0 : i32
    scf.if %2 {
      %cst_10 = arith.constant 0.000000e+00 : f32
      %12 = vector.broadcast %cst_10 : f32 to vector<8x256xf32>
      %c0_11 = arith.constant 0 : index
      %c0_12 = arith.constant 0 : index
      %13 = vector.load %arg7[%c0_11, %c0_12] : memref<8x256xf32, #tpu.memory_space<vmem>>, vector<8x256xf32>
      tpu.vector_store %arg7[%c0_11, %c0_12], %12 {strides = array<i32>} : memref<8x256xf32, #tpu.memory_space<vmem>>, vector<8x256xf32>,
    } else {
    }
    %c0 = arith.constant 0 : index
    %c0_1 = arith.constant 0 : index
    %3 = vector.load %arg7[%c0, %c0_1] : memref<8x256xf32, #tpu.memory_space<vmem>>, vector<8x256xf32>
    %c0_2 = arith.constant 0 : index
    %c0_3 = arith.constant 0 : index
    %4 = vector.load %arg3[%c0_2, %c0_3] : memref<8x2304xbf16, #tpu.memory_space<vmem>>, vector<8x2304xbf16>
    %c0_4 = arith.constant 0 : index
    %c0_5 = arith.constant 0 : index
    %5 = vector.load %arg4[%c0_4, %c0_5] : memref<2304x256xbf16, #tpu.memory_space<vmem>>, vector<2304x256xbf16>
    %cst = arith.constant dense<0.000000e+00> : vector<8x256xf32>
    %6 = tpu.matmul %4, %5, %cst {dimension_numbers = #tpu.dot_dimension_numbers<[1], [0], [0], [1], [0, 0, 1, 1], [], []>} : vector<8x2304xbf16>, vector<2304x256xbf16>, vector<8x256xf32> -> vector<8x256xf32>
    %7 = arith.addf %3, %6 : vector<8x256xf32>
    %c0_6 = arith.constant 0 : index
    %c0_7 = arith.constant 0 : index
    %8 = vector.load %arg7[%c0_6, %c0_7] : memref<8x256xf32, #tpu.memory_space<vmem>>, vector<8x256xf32>
    tpu.vector_store %arg7[%c0_6, %c0_7], %7 {strides = array<i32>} : memref<8x256xf32, #tpu.memory_space<vmem>>, vector<8x256xf32>,
    %c0_i32_8 = arith.constant 0 : i32
    %9 = arith.cmpi eq, %arg2, %c0_i32_8 : i32
    %10 = arith.extui %9 : i1 to i32
    %c0_i32_9 = arith.constant 0 : i32
    %11 = arith.cmpi ne, %10, %c0_i32_9 : i32
    scf.if %11 {
      %c0_10 = arith.constant 0 : index
      %c0_11 = arith.constant 0 : index
      %12 = vector.load %arg7[%c0_10, %c0_11] : memref<8x256xf32, #tpu.memory_space<vmem>>, vector<8x256xf32>
      %c0_12 = arith.constant 0 : index
      %c0_13 = arith.constant 0 : index
      %13 = vector.load %arg5[%c0_12, %c0_13] : memref<1x256xf32, #tpu.memory_space<vmem>>, vector<1x256xf32>
      %14 = vector.broadcast %13 : vector<1x256xf32> to vector<8x256xf32>
      %15 = arith.addf %12, %14 : vector<8x256xf32>
      %cst_14 = arith.constant 0.000000e+00 : f32
      %16 = vector.broadcast %cst_14 : f32 to vector<8x256xf32>
      %17 = arith.maximumf %15, %16 : vector<8x256xf32>
      %18 = arith.truncf %17 : vector<8x256xf32> to vector<8x256xbf16>
      %c0_15 = arith.constant 0 : index
      %c0_16 = arith.constant 0 : index
      %19 = vector.load %arg6[%c0_15, %c0_16] : memref<8x256xbf16, #tpu.memory_space<vmem>>, vector<8x256xbf16>
      tpu.vector_store %arg6[%c0_15, %c0_16], %18 {strides = array<i32>} : memref<8x256xbf16, #tpu.memory_space<vmem>>, vector<8x256xbf16>,
    } else {
    }
    return
  }
  func.func @transform_0(%arg0: i32, %arg1: i32, %arg2: i32) -> (i32, i32) {
    %c0_i32 = arith.constant 0 : i32
    return %arg0, %arg2 : i32, i32
  }
  func.func @transform_1(%arg0: i32, %arg1: i32, %arg2: i32) -> (i32, i32) {
    %c0_i32 = arith.constant 0 : i32
    return %arg2, %arg1 : i32, i32
  }
  func.func @transform_2(%arg0: i32, %arg1: i32, %arg2: i32) -> (i32, i32) {
    %c0_i32 = arith.constant 0 : i32
    %c0_i32_0 = arith.constant 0 : i32
    return %c0_i32, %arg1 : i32, i32
  }
  func.func @transform_3(%arg0: i32, %arg1: i32, %arg2: i32) -> (i32, i32) {
    %c0_i32 = arith.constant 0 : i32
    return %arg0, %arg1 : i32, i32
  }
}

module attributes {stable_mosaic.version = 11 : i64} {
  func.func @_max_reduce_kernel(%arg0: i32, %arg1: memref<4x8x512xbf16, #tpu.memory_space<vmem>>, %arg2: memref<8x512xbf16, #tpu.memory_space<vmem>>) attributes {dimension_semantics = [#tpu.dimension_semantics<parallel>], iteration_bounds = array<i64: 1>, scalar_prefetch = 0 : i64, scratch_operands = 0 : i64, tpu.core_type = #tpu.core_type<tc>, window_params = [{transform_indices = @transform_0, window_bounds = array<i64: 4, 8, 512>}, {transform_indices = @transform_1, window_bounds = array<i64: 8, 512>}]} {
    %c0 = arith.constant 0 : index
    %c0_0 = arith.constant 0 : index
    %c0_1 = arith.constant 0 : index
    %0 = vector.load %arg1[%c0, %c0_0, %c0_1] : memref<4x8x512xbf16, #tpu.memory_space<vmem>>, vector<1x8x512xbf16>
    %1 = vector.shape_cast %0 : vector<1x8x512xbf16> to vector<8x512xbf16>
    %c1 = arith.constant 1 : index
    %c0_2 = arith.constant 0 : index
    %c0_3 = arith.constant 0 : index
    %2 = vector.load %arg1[%c1, %c0_2, %c0_3] : memref<4x8x512xbf16, #tpu.memory_space<vmem>>, vector<1x8x512xbf16>
    %3 = vector.shape_cast %2 : vector<1x8x512xbf16> to vector<8x512xbf16>
    %4 = arith.maximumf %1, %3 : vector<8x512xbf16>
    %c2 = arith.constant 2 : index
    %c0_4 = arith.constant 0 : index
    %c0_5 = arith.constant 0 : index
    %5 = vector.load %arg1[%c2, %c0_4, %c0_5] : memref<4x8x512xbf16, #tpu.memory_space<vmem>>, vector<1x8x512xbf16>
    %6 = vector.shape_cast %5 : vector<1x8x512xbf16> to vector<8x512xbf16>
    %7 = arith.maximumf %4, %6 : vector<8x512xbf16>
    %c3 = arith.constant 3 : index
    %c0_6 = arith.constant 0 : index
    %c0_7 = arith.constant 0 : index
    %8 = vector.load %arg1[%c3, %c0_6, %c0_7] : memref<4x8x512xbf16, #tpu.memory_space<vmem>>, vector<1x8x512xbf16>
    %9 = vector.shape_cast %8 : vector<1x8x512xbf16> to vector<8x512xbf16>
    %10 = arith.maximumf %7, %9 : vector<8x512xbf16>
    %c0_8 = arith.constant 0 : index
    %c0_9 = arith.constant 0 : index
    %11 = vector.load %arg2[%c0_8, %c0_9] : memref<8x512xbf16, #tpu.memory_space<vmem>>, vector<8x512xbf16>
    tpu.vector_store %arg2[%c0_8, %c0_9], %10 {strides = array<i32>} : memref<8x512xbf16, #tpu.memory_space<vmem>>, vector<8x512xbf16>,
    return
  }
  func.func @transform_0(%arg0: i32) -> (i32, i32, i32) {
    %c0_i32 = arith.constant 0 : i32
    %c0_i32_0 = arith.constant 0 : i32
    %c0_i32_1 = arith.constant 0 : i32
    return %c0_i32, %arg0, %c0_i32_0 : i32, i32, i32
  }
  func.func @transform_1(%arg0: i32) -> (i32, i32) {
    %c0_i32 = arith.constant 0 : i32
    %c0_i32_0 = arith.constant 0 : i32
    return %arg0, %c0_i32 : i32, i32
  }
}

module attributes {stable_mosaic.version = 11 : i64} {
  func.func @_fc_chain_kernel(%arg0: i32, %arg1: memref<8x512xbf16, #tpu.memory_space<vmem>>, %arg2: memref<512x1024xbf16, #tpu.memory_space<vmem>>, %arg3: memref<1x1024xf32, #tpu.memory_space<vmem>>, %arg4: memref<1024x512xbf16, #tpu.memory_space<vmem>>, %arg5: memref<1x512xf32, #tpu.memory_space<vmem>>, %arg6: memref<512x64xbf16, #tpu.memory_space<vmem>>, %arg7: memref<1x64xf32, #tpu.memory_space<vmem>>, %arg8: memref<8x64xf32, #tpu.memory_space<vmem>>, %arg9: memref<8x1024xf32, #tpu.memory_space<vmem>>) attributes {dimension_semantics = [#tpu.dimension_semantics<arbitrary>], iteration_bounds = array<i64: 1>, scalar_prefetch = 0 : i64, scratch_operands = 1 : i64, tpu.core_type = #tpu.core_type<tc>, window_params = [{transform_indices = @transform_0, window_bounds = array<i64: 8, 512>}, {transform_indices = @transform_1, window_bounds = array<i64: 512, 1024>}, {pipeline_mode = #tpu.pipeline_mode<synchronous>, transform_indices = @transform_2, window_bounds = array<i64: 1, 1024>}, {pipeline_mode = #tpu.pipeline_mode<synchronous>, transform_indices = @transform_3, window_bounds = array<i64: 1024, 512>}, {pipeline_mode = #tpu.pipeline_mode<synchronous>, transform_indices = @transform_4, window_bounds = array<i64: 1, 512>}, {pipeline_mode = #tpu.pipeline_mode<synchronous>, transform_indices = @transform_5, window_bounds = array<i64: 512, 64>}, {pipeline_mode = #tpu.pipeline_mode<synchronous>, transform_indices = @transform_6, window_bounds = array<i64: 1, 64>}, {pipeline_mode = #tpu.pipeline_mode<synchronous>, transform_indices = @transform_7, window_bounds = array<i64: 8, 64>}]} {
    %c0_i32 = arith.constant 0 : i32
    %0 = arith.cmpi eq, %arg0, %c0_i32 : i32
    %1 = arith.extui %0 : i1 to i32
    %c0_i32_0 = arith.constant 0 : i32
    %2 = arith.cmpi ne, %1, %c0_i32_0 : i32
    scf.if %2 {
      %cst_10 = arith.constant 0.000000e+00 : f32
      %12 = vector.broadcast %cst_10 : f32 to vector<8x1024xf32>
      %c0_11 = arith.constant 0 : index
      %c0_12 = arith.constant 0 : index
      %13 = vector.load %arg9[%c0_11, %c0_12] : memref<8x1024xf32, #tpu.memory_space<vmem>>, vector<8x1024xf32>
      tpu.vector_store %arg9[%c0_11, %c0_12], %12 {strides = array<i32>} : memref<8x1024xf32, #tpu.memory_space<vmem>>, vector<8x1024xf32>,
    } else {
    }
    %c0 = arith.constant 0 : index
    %c0_1 = arith.constant 0 : index
    %3 = vector.load %arg9[%c0, %c0_1] : memref<8x1024xf32, #tpu.memory_space<vmem>>, vector<8x1024xf32>
    %c0_2 = arith.constant 0 : index
    %c0_3 = arith.constant 0 : index
    %4 = vector.load %arg1[%c0_2, %c0_3] : memref<8x512xbf16, #tpu.memory_space<vmem>>, vector<8x512xbf16>
    %c0_4 = arith.constant 0 : index
    %c0_5 = arith.constant 0 : index
    %5 = vector.load %arg2[%c0_4, %c0_5] : memref<512x1024xbf16, #tpu.memory_space<vmem>>, vector<512x1024xbf16>
    %cst = arith.constant dense<0.000000e+00> : vector<8x1024xf32>
    %6 = tpu.matmul %4, %5, %cst {dimension_numbers = #tpu.dot_dimension_numbers<[1], [0], [0], [1], [0, 0, 1, 1], [], []>} : vector<8x512xbf16>, vector<512x1024xbf16>, vector<8x1024xf32> -> vector<8x1024xf32>
    %7 = arith.addf %3, %6 : vector<8x1024xf32>
    %c0_6 = arith.constant 0 : index
    %c0_7 = arith.constant 0 : index
    %8 = vector.load %arg9[%c0_6, %c0_7] : memref<8x1024xf32, #tpu.memory_space<vmem>>, vector<8x1024xf32>
    tpu.vector_store %arg9[%c0_6, %c0_7], %7 {strides = array<i32>} : memref<8x1024xf32, #tpu.memory_space<vmem>>, vector<8x1024xf32>,
    %c0_i32_8 = arith.constant 0 : i32
    %9 = arith.cmpi eq, %arg0, %c0_i32_8 : i32
    %10 = arith.extui %9 : i1 to i32
    %c0_i32_9 = arith.constant 0 : i32
    %11 = arith.cmpi ne, %10, %c0_i32_9 : i32
    scf.if %11 {
      %c0_10 = arith.constant 0 : index
      %c0_11 = arith.constant 0 : index
      %12 = vector.load %arg9[%c0_10, %c0_11] : memref<8x1024xf32, #tpu.memory_space<vmem>>, vector<8x1024xf32>
      %c0_12 = arith.constant 0 : index
      %c0_13 = arith.constant 0 : index
      %13 = vector.load %arg3[%c0_12, %c0_13] : memref<1x1024xf32, #tpu.memory_space<vmem>>, vector<1x1024xf32>
      %14 = vector.broadcast %13 : vector<1x1024xf32> to vector<8x1024xf32>
      %15 = arith.addf %12, %14 : vector<8x1024xf32>
      %cst_14 = arith.constant 0.000000e+00 : f32
      %16 = vector.broadcast %cst_14 : f32 to vector<8x1024xf32>
      %17 = arith.maximumf %15, %16 : vector<8x1024xf32>
      %18 = arith.truncf %17 : vector<8x1024xf32> to vector<8x1024xbf16>
      %c0_15 = arith.constant 0 : index
      %c0_16 = arith.constant 0 : index
      %19 = vector.load %arg4[%c0_15, %c0_16] : memref<1024x512xbf16, #tpu.memory_space<vmem>>, vector<1024x512xbf16>
      %cst_17 = arith.constant dense<0.000000e+00> : vector<8x512xf32>
      %20 = tpu.matmul %18, %19, %cst_17 {dimension_numbers = #tpu.dot_dimension_numbers<[1], [0], [0], [1], [0, 0, 1, 1], [], []>} : vector<8x1024xbf16>, vector<1024x512xbf16>, vector<8x512xf32> -> vector<8x512xf32>
      %c0_18 = arith.constant 0 : index
      %c0_19 = arith.constant 0 : index
      %21 = vector.load %arg5[%c0_18, %c0_19] : memref<1x512xf32, #tpu.memory_space<vmem>>, vector<1x512xf32>
      %22 = vector.broadcast %21 : vector<1x512xf32> to vector<8x512xf32>
      %23 = arith.addf %20, %22 : vector<8x512xf32>
      %cst_20 = arith.constant 0.000000e+00 : f32
      %24 = vector.broadcast %cst_20 : f32 to vector<8x512xf32>
      %25 = arith.maximumf %23, %24 : vector<8x512xf32>
      %26 = arith.truncf %25 : vector<8x512xf32> to vector<8x512xbf16>
      %c0_21 = arith.constant 0 : index
      %c0_22 = arith.constant 0 : index
      %27 = vector.load %arg6[%c0_21, %c0_22] : memref<512x64xbf16, #tpu.memory_space<vmem>>, vector<512x64xbf16>
      %cst_23 = arith.constant dense<0.000000e+00> : vector<8x64xf32>
      %28 = tpu.matmul %26, %27, %cst_23 {dimension_numbers = #tpu.dot_dimension_numbers<[1], [0], [0], [1], [0, 0, 1, 1], [], []>} : vector<8x512xbf16>, vector<512x64xbf16>, vector<8x64xf32> -> vector<8x64xf32>
      %c0_24 = arith.constant 0 : index
      %c0_25 = arith.constant 0 : index
      %29 = vector.load %arg7[%c0_24, %c0_25] : memref<1x64xf32, #tpu.memory_space<vmem>>, vector<1x64xf32>
      %30 = vector.broadcast %29 : vector<1x64xf32> to vector<8x64xf32>
      %31 = arith.addf %28, %30 : vector<8x64xf32>
      %c0_26 = arith.constant 0 : index
      %c0_27 = arith.constant 0 : index
      %32 = vector.load %arg8[%c0_26, %c0_27] : memref<8x64xf32, #tpu.memory_space<vmem>>, vector<8x64xf32>
      tpu.vector_store %arg8[%c0_26, %c0_27], %31 {strides = array<i32>} : memref<8x64xf32, #tpu.memory_space<vmem>>, vector<8x64xf32>,
    } else {
    }
    return
  }
  func.func @transform_0(%arg0: i32) -> (i32, i32) {
    %c0_i32 = arith.constant 0 : i32
    %c0_i32_0 = arith.constant 0 : i32
    return %c0_i32, %arg0 : i32, i32
  }
  func.func @transform_1(%arg0: i32) -> (i32, i32) {
    %c0_i32 = arith.constant 0 : i32
    %c0_i32_0 = arith.constant 0 : i32
    return %arg0, %c0_i32 : i32, i32
  }
  func.func @transform_2(%arg0: i32) -> (i32, i32) {
    %c0_i32 = arith.constant 0 : i32
    %c0_i32_0 = arith.constant 0 : i32
    %c0_i32_1 = arith.constant 0 : i32
    return %c0_i32, %c0_i32_0 : i32, i32
  }
  func.func @transform_3(%arg0: i32) -> (i32, i32) {
    %c0_i32 = arith.constant 0 : i32
    %c0_i32_0 = arith.constant 0 : i32
    %c0_i32_1 = arith.constant 0 : i32
    return %c0_i32, %c0_i32_0 : i32, i32
  }
  func.func @transform_4(%arg0: i32) -> (i32, i32) {
    %c0_i32 = arith.constant 0 : i32
    %c0_i32_0 = arith.constant 0 : i32
    %c0_i32_1 = arith.constant 0 : i32
    return %c0_i32, %c0_i32_0 : i32, i32
  }
  func.func @transform_5(%arg0: i32) -> (i32, i32) {
    %c0_i32 = arith.constant 0 : i32
    %c0_i32_0 = arith.constant 0 : i32
    %c0_i32_1 = arith.constant 0 : i32
    return %c0_i32, %c0_i32_0 : i32, i32
  }
  func.func @transform_6(%arg0: i32) -> (i32, i32) {
    %c0_i32 = arith.constant 0 : i32
    %c0_i32_0 = arith.constant 0 : i32
    %c0_i32_1 = arith.constant 0 : i32
    return %c0_i32, %c0_i32_0 : i32, i32
  }
  func.func @transform_7(%arg0: i32) -> (i32, i32) {
    %c0_i32 = arith.constant 0 : i32
    %c0_i32_0 = arith.constant 0 : i32
    %c0_i32_1 = arith.constant 0 : i32
    return %c0_i32, %c0_i32_0 : i32, i32
  }
}

</mosaic_0001>

<bundles_post_ra>
// kernel: rgbd_forward.8
= control target key start
LH: loop header
LB: loop body
LE: loop exit
PB: predicated region body
PF: predicated region fallthrough
CT: control target
= control target key end

     0   :  { %s1523_s12 = smov 0   ;;  %s1525_s13 = smov 0   ;;  %s1844_s0 = inlined_call_operand.vmem [shape: bf16[512,256], index: 0, kind: input, shape index: {}]   ;;  %s1845_s1 = inlined_call_operand.vmem [shape: bf16[256,64], index: 1, kind: input, shape index: {}]   ;;  %s1846_s2 = inlined_call_operand.vmem [shape: f32[1,64], index: 2, kind: input, shape index: {}]   ;;  %s1847_s3 = inlined_call_operand.vmem [shape: bf16[512,64], index: 3, kind: output, shape index: {}]  }
   0x1   :  { %s1527_s14 = smov 0  }
   0x2 LB: > { %s32_s15 = sadd.s32 1, %s1496_s13  ;;  %p1187_p0 = scmp.ge.s32.totalorder %s1500_s14, 1  ;;  %s1500_s14 = sphi %s1527_s14, %s13_s14   ;;  %s1496_s13 = sphi %s1525_s13, %s1849_s13   ;;  %s1492_s12 = sphi %s1523_s12, %s1848_s12  }
   0x3   : > { %p34_p1 = scmp.ge.s32.totalorder %s32_s15, 2  ;;  %p191_p2 = scmp.lt.s32.totalorder %s1500_s14, 3 }
   0x5   : > { %s1851_s15 = smov (%p34_p1, %s32_s15), 0  ;;  %p192_p3 = pnand %p1187_p0, %p191_p2 }
   0x6   : > { %s1188_s28 = sshll.u32 (!%p192_p3), %s1492_s12, 5 }
   0x7   : > { %195 = sbr.rel (%p192_p3) target bundleno = 317 (0x13d), region = 32  ;;  %p236_p4 = scmp.lt.s32.totalorder (!%p192_p3), %s1188_s28, 63 }
   0xc   : > { %v1427_v0 = vld [vmem:[%s1845_s1 + $0x38] sm:$0xff]  ;;  %v1426_v2 = vld [vmem:[%s1845_s1 + $0x30] sm:$0xff]  ;;  %v1425_v4 = vld [vmem:[%s1845_s1 + $0x28] sm:$0xff]  ;;  %s1853_s28 = smov (!%p236_p4, %s1188_s28), 63  ;;  %vm271_vm0 = vcmask 523264   ;;  %vm1034_vm1 = vcmask 519168  }
   0xd   : > { %v1435_v1 = vld [vmem:[%s1845_s1 + $0x78] sm:$0xff]  ;;  %656 = vmatpush.bf16.msra.mxu0 %v1427_v0  ;;  %1436 = vmatpush.bf16.msra.mxu2 %v1427_v0  ;;  %v1434_v3 = vld [vmem:[%s1845_s1 + $0x70] sm:$0xff]  ;;  %v1433_v5 = vld [vmem:[%s1845_s1 + $0x68] sm:$0xff]  ;;  %s1387_s17 = sshll.u32 %s1853_s28, 3  ;;  %s1192_s5 = sshll.u32 %s1853_s28, 2 }
   0xe   : > { %745 = vmatpush.bf16.msra.mxu1 %v1435_v1  ;;  %1444 = vmatpush.bf16.msra.mxu3 %v1435_v1  ;;  %v1424_v6 = vld [vmem:[%s1845_s1 + $0x20] sm:$0xff]  ;;  %v1423_v8 = vld [vmem:[%s1845_s1 + $0x18] sm:$0xff]  ;;  %v1422_v10 = vld [vmem:[%s1845_s1 + $0x10] sm:$0xff]  ;;  %s1589_s22 = scalar_lea.vmem %s1844_s0, %s1387_s17  ;;  %s1709_s8 = scalar_lea.vmem %s1847_s3, %s1192_s5 }
   0xf   : > { %v1432_v7 = vld [vmem:[%s1845_s1 + $0x60] sm:$0xff]  ;;  %v1431_v9 = vld [vmem:[%s1845_s1 + $0x58] sm:$0xff]  ;;  %v1430_v11 = vld [vmem:[%s1845_s1 + $0x50] sm:$0xff] }
  0x10   : > { %v1421_v12 = vld [vmem:[%s1845_s1 + $0x8] sm:$0xff]  ;;  %v1420_v14 = vld [vmem:[%s1845_s1] sm:$0xff]  ;;  %v1203_v28 = vld [vmem:[%s1589_s22 + $0x10] sm:$0xf] }
  0x11   : > { %657 = vmatpush.bf16.msra.mxu0 %v1426_v2  ;;  %1437 = vmatpush.bf16.msra.mxu2 %v1426_v2  ;;  %v1429_v13 = vld [vmem:[%s1845_s1 + $0x48] sm:$0xff]  ;;  %v1428_v15 = vld [vmem:[%s1845_s1 + $0x40] sm:$0xff]  ;;  %v1391_v29 = vld [vmem:[%s1589_s22 + $0x14] sm:$0xf0] }
  0x12   : > { %746 = vmatpush.bf16.msra.mxu1 %v1434_v3  ;;  %1445 = vmatpush.bf16.msra.mxu3 %v1434_v3  ;;  %v1195_v16 = vld [vmem:[%s1589_s22] sm:$0xf]  ;;  %v1389_v17 = vld [vmem:[%s1589_s22 + $0x4] sm:$0xf0]  ;;  %v1388_v20 = vld [vmem:[%s1589_s22 + $0x4] sm:$0xf]  ;;  %v1204_v36 = vor.u32 %v1391_v29, %v1203_v28 }
  0x13   : > { %v1259_v18 = vld [vmem:[%s1589_s22 + $0x80] sm:$0xf]  ;;  %v1405_v19 = vld [vmem:[%s1589_s22 + $0x84] sm:$0xf0]  ;;  %v1197_v21 = vld [vmem:[%s1589_s22 + $0x8] sm:$0xf0]  ;;  %v1196_v24 = vor.u32 %v1389_v17, %v1195_v16 }
  0x14   : > { %v1404_v22 = vld [vmem:[%s1589_s22 + $0x84] sm:$0xf]  ;;  %v1261_v23 = vld [vmem:[%s1589_s22 + $0x88] sm:$0xf0]  ;;  %v1260_v25 = vor.u32 %v1405_v19, %v1259_v18  ;;  %v1200_v26 = vor.u32 %v1388_v20, %v1197_v21  ;;  %v1267_v30 = vld [vmem:[%s1589_s22 + $0x90] sm:$0xf] }
  0x15   : > { %658 = vmatpush.bf16.msra.mxu0 %v1425_v4  ;;  %1438 = vmatpush.bf16.msra.mxu2 %v1425_v4  ;;  %v1264_v27 = vor.u32 %v1404_v22, %v1261_v23  ;;  %v1407_v31 = vld [vmem:[%s1589_s22 + $0x94] sm:$0xf0]  ;;  %v1390_v32 = vld [vmem:[%s1589_s22 + $0x14] sm:$0xf]  ;;  %v1205_v33 = vld [vmem:[%s1589_s22 + $0x18] sm:$0xf0] }
  0x16   : > { %747 = vmatpush.bf16.msra.mxu1 %v1433_v5  ;;  %1446 = vmatpush.bf16.msra.mxu3 %v1433_v5  ;;  %v1406_v34 = vld [vmem:[%s1589_s22 + $0x94] sm:$0xf]  ;;  %v1269_v35 = vld [vmem:[%s1589_s22 + $0x98] sm:$0xf0]  ;;  %v1268_v37 = vor.u32 %v1407_v31, %v1267_v30  ;;  %v1208_v38 = vor.u32 %v1390_v32, %v1205_v33  ;;  %v1211_v40 = vld [vmem:[%s1589_s22 + $0x20] sm:$0xf] }
  0x17   : > { %v1272_v39 = vor.u32 %v1406_v34, %v1269_v35  ;;  %v1393_v41 = vld [vmem:[%s1589_s22 + $0x24] sm:$0xf0]  ;;  %v1275_v42 = vld [vmem:[%s1589_s22 + $0xa0] sm:$0xf]  ;;  %v1392_v44 = vld [vmem:[%s1589_s22 + $0x24] sm:$0xf] }
  0x18   : > { %v1409_v43 = vld [vmem:[%s1589_s22 + $0xa4] sm:$0xf0]  ;;  %v1213_v45 = vld [vmem:[%s1589_s22 + $0x28] sm:$0xf0]  ;;  %v1408_v46 = vld [vmem:[%s1589_s22 + $0xa4] sm:$0xf]  ;;  %v1212_v48 = vor.u32 %v1393_v41, %v1211_v40 }
  0x19   : > { %659 = vmatpush.bf16.msra.mxu0 %v1424_v6  ;;  %1439 = vmatpush.bf16.msra.mxu2 %v1424_v6  ;;  %v1277_v47 = vld [vmem:[%s1589_s22 + $0xa8] sm:$0xf0]  ;;  %v1276_v49 = vor.u32 %v1409_v43, %v1275_v42  ;;  %v1216_v50 = vor.u32 %v1392_v44, %v1213_v45  ;;  %v1219_v52 = vld [vmem:[%s1589_s22 + $0x30] sm:$0xf]  ;;  %v1395_v53 = vld [vmem:[%s1589_s22 + $0x34] sm:$0xf0] }
  0x1a   : > { %748 = vmatpush.bf16.msra.mxu1 %v1432_v7  ;;  %1447 = vmatpush.bf16.msra.mxu3 %v1432_v7  ;;  %v1280_v51 = vor.u32 %v1408_v46, %v1277_v47  ;;  %v1283_v54 = vld [vmem:[%s1589_s22 + $0xb0] sm:$0xf]  ;;  %v1411_v55 = vld [vmem:[%s1589_s22 + $0xb4] sm:$0xf0]  ;;  %v1394_v56 = vld [vmem:[%s1589_s22 + $0x34] sm:$0xf]  ;;  %v1220_v60 = vor.u32 %v1395_v53, %v1219_v52 }
  0x1b   : > { %v1221_v57 = vld [vmem:[%s1589_s22 + $0x38] sm:$0xf0]  ;;  %v1410_v58 = vld [vmem:[%s1589_s22 + $0xb4] sm:$0xf]  ;;  %v1284_v61 = vor.u32 %v1411_v55, %v1283_v54  ;;  %v1227_v0 = vld [vmem:[%s1589_s22 + $0x40] sm:$0xf] }
  0x1c   : > { %v1285_v59 = vld [vmem:[%s1589_s22 + $0xb8] sm:$0xf0]  ;;  %v1224_v62 = vor.u32 %v1394_v56, %v1221_v57  ;;  %v1397_v1 = vld [vmem:[%s1589_s22 + $0x44] sm:$0xf0]  ;;  %v1291_v2 = vld [vmem:[%s1589_s22 + $0xc0] sm:$0xf] }
  0x1d   : > { %660 = vmatpush.bf16.msra.mxu0 %v1423_v8  ;;  %1440 = vmatpush.bf16.msra.mxu2 %v1423_v8  ;;  %v1288_v63 = vor.u32 %v1410_v58, %v1285_v59  ;;  %v1413_v3 = vld [vmem:[%s1589_s22 + $0xc4] sm:$0xf0]  ;;  %v1396_v4 = vld [vmem:[%s1589_s22 + $0x44] sm:$0xf]  ;;  %v1229_v5 = vld [vmem:[%s1589_s22 + $0x48] sm:$0xf0]  ;;  %v1228_v8 = vor.u32 %v1397_v1, %v1227_v0 }
  0x1e   : > { %749 = vmatpush.bf16.msra.mxu1 %v1431_v9  ;;  %1448 = vmatpush.bf16.msra.mxu3 %v1431_v9  ;;  %v1412_v6 = vld [vmem:[%s1589_s22 + $0xc4] sm:$0xf]  ;;  %v1293_v7 = vld [vmem:[%s1589_s22 + $0xc8] sm:$0xf0]  ;;  %v1292_v9 = vor.u32 %v1413_v3, %v1291_v2  ;;  %v1398_v16 = vld [vmem:[%s1589_s22 + $0x54] sm:$0xf] }
  0x1f   : > { %v1237_v17 = vld [vmem:[%s1589_s22 + $0x58] sm:$0xf0]  ;;  %v1414_v18 = vld [vmem:[%s1589_s22 + $0xd4] sm:$0xf]  ;;  %v1400_v28 = vld [vmem:[%s1589_s22 + $0x64] sm:$0xf] }
  0x20   : > { %v1301_v19 = vld [vmem:[%s1589_s22 + $0xd8] sm:$0xf0]  ;;  %v1240_v22 = vor.u32 %v1398_v16, %v1237_v17  ;;  %v1245_v29 = vld [vmem:[%s1589_s22 + $0x68] sm:$0xf0]  ;;  %v1416_v30 = vld [vmem:[%s1589_s22 + $0xe4] sm:$0xf] }
  0x21   : > { %661 = vmatpush.bf16.msra.mxu0 %v1422_v10  ;;  %1441 = vmatpush.bf16.msra.mxu2 %v1422_v10  ;;  %v1232_v10 = vor.u32 %v1396_v4, %v1229_v5  ;;  %v1304_v23 = vor.u32 %v1414_v18, %v1301_v19  ;;  %v1309_v31 = vld [vmem:[%s1589_s22 + $0xe8] sm:$0xf0]  ;;  %v1248_v34 = vor.u32 %v1400_v28, %v1245_v29  ;;  %v1419_v40 = vld [vmem:[%s1589_s22 + $0xf4] sm:$0xf0]  ;;  %v1402_v41 = vld [vmem:[%s1589_s22 + $0x74] sm:$0xf] }
  0x22   : > { %750 = vmatpush.bf16.msra.mxu1 %v1430_v11  ;;  %1449 = vmatpush.bf16.msra.mxu3 %v1430_v11  ;;  %v1296_v11 = vor.u32 %v1412_v6, %v1293_v7  ;;  %v1312_v35 = vor.u32 %v1416_v30, %v1309_v31  ;;  %v1253_v42 = vld [vmem:[%s1589_s22 + $0x78] sm:$0xf0]  ;;  %v1418_v43 = vld [vmem:[%s1589_s22 + $0xf4] sm:$0xf] }
  0x23   : > { %v1317_v44 = vld [vmem:[%s1589_s22 + $0xf8] sm:$0xf0]  ;;  %v1256_v47 = vor.u32 %v1402_v41, %v1253_v42 }
  0x25   : > { %662 = vmatpush.bf16.msra.mxu0 %v1421_v12  ;;  %1442 = vmatpush.bf16.msra.mxu2 %v1421_v12  ;;  %v1235_v12 = vld [vmem:[%s1589_s22 + $0x50] sm:$0xf] }
  0x26   : > { %751 = vmatpush.bf16.msra.mxu1 %v1429_v13  ;;  %1450 = vmatpush.bf16.msra.mxu3 %v1429_v13  ;;  %v1399_v13 = vld [vmem:[%s1589_s22 + $0x54] sm:$0xf0] }
  0x27   : > { %v1236_v20 = vor.u32 %v1399_v13, %v1235_v12 }
  0x29   : > { %663 = vmatpush.bf16.msra.mxu0 %v1420_v14  ;;  %1443 = vmatpush.bf16.msra.mxu2 %v1420_v14  ;;  %v1299_v14 = vld [vmem:[%s1589_s22 + $0xd0] sm:$0xf] }
  0x2a   : > { %752 = vmatpush.bf16.msra.mxu1 %v1428_v15  ;;  %1451 = vmatpush.bf16.msra.mxu3 %v1428_v15  ;;  %v1415_v15 = vld [vmem:[%s1589_s22 + $0xd4] sm:$0xf0] }
  0x2b   : > { %v1300_v21 = vor.u32 %v1415_v15, %v1299_v14 }
  0x2c   : > { %664 = vmatmul.bf16.vlgmr.msra.gmra.mxu0 %v1196_v24  ;;  %704 = vmatmul.bf16.vlgmr.msra.gmra.mxu2 %v1260_v25  ;;  %v1243_v24 = vld [vmem:[%s1589_s22 + $0x60] sm:$0xf]  ;;  %v1401_v25 = vld [vmem:[%s1589_s22 + $0x64] sm:$0xf0] }
  0x2d   : > { %753 = vmatmul.bf16.vlgmr.msra.gmra.mxu1 %v1200_v26  ;;  %793 = vmatmul.bf16.vlgmr.msra.gmra.mxu3 %v1264_v27  ;;  %v1307_v26 = vld [vmem:[%s1589_s22 + $0xe0] sm:$0xf]  ;;  %v1417_v27 = vld [vmem:[%s1589_s22 + $0xe4] sm:$0xf0]  ;;  %v1244_v32 = vor.u32 %v1401_v25, %v1243_v24 }
  0x2e   : > { %v1308_v33 = vor.u32 %v1417_v27, %v1307_v26 }
  0x3c   : > { %669 = vmatmul.bf16.gmra.mxu0 %v1204_v36  ;;  %709 = vmatmul.bf16.gmra.mxu2 %v1268_v37  ;;  %v1502_v36 = vmov 0.0   ;;  %v1251_v37 = vld [vmem:[%s1589_s22 + $0x70] sm:$0xf] }
  0x3d   : > { %758 = vmatmul.bf16.gmra.mxu1 %v1208_v38  ;;  %798 = vmatmul.bf16.gmra.mxu3 %v1272_v39  ;;  %272 = vst.msk [vmem:[#allocation2] sm:$0xff] %vm271_vm0, %v1502_v36  ;;  %v1403_v38 = vld [vmem:[%s1589_s22 + $0x74] sm:$0xf0]  ;;  %v1315_v39 = vld [vmem:[%s1589_s22 + $0xf0] sm:$0xf] }
  0x3e   : > { %273 = vst.msk [vmem:[#allocation2 + $0x8] sm:$0xff] %vm271_vm0, %v1502_v36  ;;  %v1252_v45 = vor.u32 %v1403_v38, %v1251_v37  ;;  %v1316_v46 = vor.u32 %v1419_v40, %v1315_v39 }
  0x3f   : > { %274 = vst.msk [vmem:[#allocation2 + $0x10] sm:$0xff] %vm271_vm0, %v1502_v36 }
  0x40   : > { %275 = vst.msk [vmem:[#allocation2 + $0x18] sm:$0xff] %vm271_vm0, %v1502_v36 }
  0x41   : > { %276 = vst.msk [vmem:[#allocation2 + $0x20] sm:$0xff] %vm271_vm0, %v1502_v36 }
  0x42   : > { %277 = vst.msk [vmem:[#allocation2 + $0x28] sm:$0xff] %vm271_vm0, %v1502_v36 }
  0x43   : > { %278 = vst.msk [vmem:[#allocation2 + $0x30] sm:$0xff] %vm271_vm0, %v1502_v36 }
  0x44   : > { %279 = vst.msk [vmem:[#allocation2 + $0x38] sm:$0xff] %vm271_vm0, %v1502_v36 }
  0x45   : > { %280 = vst.msk [vmem:[#allocation2 + $0x40] sm:$0xff] %vm271_vm0, %v1502_v36  ;;  %v305_v59 = vld [vmem:[#allocation2 + $0x8] sm:$0xff] }
  0x46   : > { %281 = vst.msk [vmem:[#allocation2 + $0x48] sm:$0xff] %vm271_vm0, %v1502_v36 }
  0x47   : > { %282 = vst.msk [vmem:[#allocation2 + $0x50] sm:$0xff] %vm271_vm0, %v1502_v36  ;;  %v307_v27 = vld [vmem:[#allocation2 + $0x18] sm:$0xff] }
  0x48   : > { %283 = vst.msk [vmem:[#allocation2 + $0x58] sm:$0xff] %vm271_vm0, %v1502_v36 }
  0x49   : > { %284 = vst.msk [vmem:[#allocation2 + $0x60] sm:$0xff] %vm271_vm0, %v1502_v36 }
  0x4a   : > { %285 = vst.msk [vmem:[#allocation2 + $0x68] sm:$0xff] %vm271_vm0, %v1502_v36 }
  0x4b   : > { %286 = vst.msk [vmem:[#allocation2 + $0x70] sm:$0xff] %vm271_vm0, %v1502_v36 }
  0x4c   : > { %674 = vmatmul.bf16.gmra.mxu0 %v1212_v48  ;;  %714 = vmatmul.bf16.gmra.mxu2 %v1276_v49  ;;  %v1320_v48 = vor.u32 %v1418_v43, %v1317_v44  ;;  %287 = vst.msk [vmem:[#allocation2 + $0x78] sm:$0xff] %vm271_vm0, %v1502_v36 }
  0x4d   : > { %763 = vmatmul.bf16.gmra.mxu1 %v1216_v50  ;;  %803 = vmatmul.bf16.gmra.mxu3 %v1280_v51  ;;  %288 = vst.msk [vmem:[#allocation2 + $0x80] sm:$0xff] %vm271_vm0, %v1502_v36  ;;  %v304_v50 = vld [vmem:[#allocation2] sm:$0xff] }
  0x4e   : > { %289 = vst.msk [vmem:[#allocation2 + $0x88] sm:$0xff] %vm271_vm0, %v1502_v36 }
  0x4f   : > { %290 = vst.msk [vmem:[#allocation2 + $0x90] sm:$0xff] %vm271_vm0, %v1502_v36 }
  0x50   : > { %291 = vst.msk [vmem:[#allocation2 + $0x98] sm:$0xff] %vm271_vm0, %v1502_v36 }
  0x51   : > { %292 = vst.msk [vmem:[#allocation2 + $0xa0] sm:$0xff] %vm271_vm0, %v1502_v36 }
  0x52   : > { %293 = vst.msk [vmem:[#allocation2 + $0xa8] sm:$0xff] %vm271_vm0, %v1502_v36 }
  0x53   : > { %294 = vst.msk [vmem:[#allocation2 + $0xb0] sm:$0xff] %vm271_vm0, %v1502_v36 }
  0x54   : > { %295 = vst.msk [vmem:[#allocation2 + $0xb8] sm:$0xff] %vm271_vm0, %v1502_v36  ;;  %v320_v55 = vld [vmem:[#allocation2 + $0x80] sm:$0xff] }
  0x55   : > { %296 = vst.msk [vmem:[#allocation2 + $0xc0] sm:$0xff] %vm271_vm0, %v1502_v36  ;;  %v321_v4 = vld [vmem:[#allocation2 + $0x88] sm:$0xff] }
  0x56   : > { %297 = vst.msk [vmem:[#allocation2 + $0xc8] sm:$0xff] %vm271_vm0, %v1502_v36 }
  0x57   : > { %298 = vst.msk [vmem:[#allocation2 + $0xd0] sm:$0xff] %vm271_vm0, %v1502_v36  ;;  %v323_v39 = vld [vmem:[#allocation2 + $0x98] sm:$0xff] }
  0x58   : > { %299 = vst.msk [vmem:[#allocation2 + $0xd8] sm:$0xff] %vm271_vm0, %v1502_v36 }
  0x59   : > { %300 = vst.msk [vmem:[#allocation2 + $0xe0] sm:$0xff] %vm271_vm0, %v1502_v36 }
  0x5a   : > { %301 = vst.msk [vmem:[#allocation2 + $0xe8] sm:$0xff] %vm271_vm0, %v1502_v36 }
  0x5b   : > { %302 = vst.msk [vmem:[#allocation2 + $0xf0] sm:$0xff] %vm271_vm0, %v1502_v36 }
  0x5c   : > { %679 = vmatmul.bf16.gmra.mxu0 %v1220_v60  ;;  %719 = vmatmul.bf16.gmra.mxu2 %v1284_v61  ;;  %303 = vst.msk [vmem:[#allocation2 + $0xf8] sm:$0xff] %vm271_vm0, %v1502_v36  ;;  %v1700_v61 = vld [vmem:[%s1846_s2] ss:$0 sm:$0xff] }
  0x5d   : > { %768 = vmatmul.bf16.gmra.mxu1 %v1224_v62  ;;  %808 = vmatmul.bf16.gmra.mxu3 %v1288_v63 }
  0x6c   : > { %684 = vmatmul.bf16.gmra.mxu0 %v1228_v8  ;;  %724 = vmatmul.bf16.gmra.mxu2 %v1292_v9  ;;  %v306_v9 = vld [vmem:[#allocation2 + $0x10] sm:$0xff] }
  0x6d   : > { %773 = vmatmul.bf16.gmra.mxu1 %v1232_v10  ;;  %813 = vmatmul.bf16.gmra.mxu3 %v1296_v11 }
  0x7c   : > { %689 = vmatmul.bf16.gmra.mxu0 %v1236_v20  ;;  %729 = vmatmul.bf16.gmra.mxu2 %v1300_v21  ;;  %v322_v21 = vld [vmem:[#allocation2 + $0x90] sm:$0xff] }
  0x7d   : > { %778 = vmatmul.bf16.gmra.mxu1 %v1240_v22  ;;  %818 = vmatmul.bf16.gmra.mxu3 %v1304_v23 }
  0x8c   : > { %694 = vmatmul.bf16.gmra.mxu0 %v1244_v32  ;;  %734 = vmatmul.bf16.gmra.mxu2 %v1308_v33 }
  0x8d   : > { %783 = vmatmul.bf16.gmra.mxu1 %v1248_v34  ;;  %823 = vmatmul.bf16.gmra.mxu3 %v1312_v35 }
  0x9c   : > { %699 = vmatmul.bf16.gmra.mxu0 %v1252_v45  ;;  %739 = vmatmul.bf16.gmra.mxu2 %v1316_v46  ;;  %v308_v45 = vld [vmem:[#allocation2 + $0x20] sm:$0xff] }
  0x9d   : > { %788 = vmatmul.bf16.gmra.mxu1 %v1256_v47  ;;  %828 = vmatmul.bf16.gmra.mxu3 %v1320_v48 }
  0xa9   : > { %v665_v49 = vpop.f32.mrf.mxu0 }
  0xaa   : > { %v754_v51 = vpop.f32.mrf.mxu1 }
  0xab   : > { %v755_v52 = vadd.f32 %v754_v51, %v665_v49 }
  0xad   : > { %v834_v53 = vadd.f32 %v755_v52, %v304_v50 }
  0xaf   : > { %867 = vst.msk [vmem:[#allocation2] sm:$0xff] %vm271_vm0, %v834_v53  ;;  %v705_v54 = vpop.f32.mrf.mxu2 }
  0xb0   : > { %v794_v56 = vpop.f32.mrf.mxu3 }
  0xb1   : > { %v795_v57 = vadd.f32 %v794_v56, %v705_v54  ;;  %v667_v58 = vpop.f32.mrf.mxu0 }
  0xb2   : > { %v756_v60 = vpop.f32.mrf.mxu1 }
  0xb3   : > { %v850_v62 = vadd.f32 %v795_v57, %v320_v55  ;;  %v757_v63 = vadd.f32 %v756_v60, %v667_v58  ;;  %v324_v57 = vld [vmem:[#allocation2 + $0xa0] sm:$0xff] }
  0xb5   : > { %883 = vst.msk [vmem:[#allocation2 + $0x80] sm:$0xff] %vm271_vm0, %v850_v62  ;;  %v835_v0 = vadd.f32 %v757_v63, %v305_v59 }
  0xb6   : > { %v902_v1 = vld [vmem:[#allocation2] sm:$0xff] }
  0xb7   : > { %v938_v2 = vadd.f32 %v1700_v61, %v902_v1  ;;  %868 = vst.msk [vmem:[#allocation2 + $0x8] sm:$0xff] %vm271_vm0, %v835_v0  ;;  %v707_v3 = vpop.f32.mrf.mxu2  ;;  %v309_v0 = vld [vmem:[#allocation2 + $0x28] sm:$0xff] }
  0xb8   : > { %v796_v5 = vpop.f32.mrf.mxu3 }
  0xb9   : > { %v970_v6 = vmax.f32 %v938_v2, 0.0  ;;  %v797_v7 = vadd.f32 %v796_v5, %v707_v3  ;;  %v670_v8 = vpop.f32.mrf.mxu0 }
  0xba   : > { %v759_v10 = vpop.f32.mrf.mxu1 }
  0xbb   : > { %v1002_v11 = vpack.c.bf16 %v970_v6, %v970_v6  ;;  %v851_v12 = vadd.f32 %v797_v7, %v321_v4  ;;  %v760_v13 = vadd.f32 %v759_v10, %v670_v8 }
  0xbc   : > { %v918_v14 = vld [vmem:[#allocation2 + $0x80] sm:$0xff] }
  0xbd   : > { %1035 = vst.msk [vmem:[%s1709_s8] sm:$0xf] %vm1034_vm1, %v1002_v11  ;;  %v954_v15 = vadd.f32 %v1700_v61, %v918_v14  ;;  %v836_v16 = vadd.f32 %v760_v13, %v306_v9 }
  0xbe   : > { %v903_v17 = vld [vmem:[#allocation2 + $0x8] sm:$0xff]  ;;  %884 = vst.msk [vmem:[#allocation2 + $0x88] sm:$0xff] %vm271_vm0, %v851_v12 }
  0xbf   : > { %v986_v18 = vmax.f32 %v954_v15, 0.0  ;;  %v939_v19 = vadd.f32 %v1700_v61, %v903_v17  ;;  %869 = vst.msk [vmem:[#allocation2 + $0x10] sm:$0xff] %vm271_vm0, %v836_v16  ;;  %v710_v20 = vpop.f32.mrf.mxu2  ;;  %v325_v12 = vld [vmem:[#allocation2 + $0xa8] sm:$0xff] }
  0xc0   : > { %v799_v22 = vpop.f32.mrf.mxu3 }
  0xc1   : > { %v1018_v23 = vpack.c.bf16 %v986_v18, %v986_v18  ;;  %v971_v24 = vmax.f32 %v939_v19, 0.0  ;;  %v800_v25 = vadd.f32 %v799_v22, %v710_v20  ;;  %v672_v26 = vpop.f32.mrf.mxu0  ;;  %v310_v18 = vld [vmem:[#allocation2 + $0x30] sm:$0xff] }
  0xc2   : > { %v761_v28 = vpop.f32.mrf.mxu1 }
  0xc3   : > { %1051 = vst.msk [vmem:[%s1709_s8 + $0x40] sm:$0xf] %vm1034_vm1, %v1018_v23  ;;  %v1003_v29 = vpack.c.bf16 %v971_v24, %v971_v24  ;;  %v852_v30 = vadd.f32 %v800_v25, %v322_v21  ;;  %v762_v31 = vadd.f32 %v761_v28, %v672_v26 }
  0xc5   : > { %1036 = vst.msk [vmem:[%s1709_s8 + $0x4] sm:$0xf] %vm1034_vm1, %v1003_v29  ;;  %v919_v32 = vld [vmem:[#allocation2 + $0x88] sm:$0xff]  ;;  %v837_v33 = vadd.f32 %v762_v31, %v307_v27 }
  0xc6   : > { %v955_v34 = vadd.f32 %v1700_v61, %v919_v32  ;;  %v904_v35 = vld [vmem:[#allocation2 + $0x10] sm:$0xff]  ;;  %885 = vst.msk [vmem:[#allocation2 + $0x90] sm:$0xff] %vm271_vm0, %v852_v30 }
  0xc7   : > { %v940_v36 = vadd.f32 %v1700_v61, %v904_v35  ;;  %870 = vst.msk [vmem:[#allocation2 + $0x18] sm:$0xff] %vm271_vm0, %v837_v33  ;;  %v712_v37 = vpop.f32.mrf.mxu2  ;;  %v326_v30 = vld [vmem:[#allocation2 + $0xb0] sm:$0xff] }
  0xc8   : > { %v987_v38 = vmax.f32 %v955_v34, 0.0  ;;  %v801_v40 = vpop.f32.mrf.mxu3 }
  0xc9   : > { %v972_v41 = vmax.f32 %v940_v36, 0.0  ;;  %v802_v42 = vadd.f32 %v801_v40, %v712_v37  ;;  %v675_v43 = vpop.f32.mrf.mxu0  ;;  %v311_v36 = vld [vmem:[#allocation2 + $0x38] sm:$0xff] }
  0xca   : > { %v1019_v44 = vpack.c.bf16 %v987_v38, %v987_v38  ;;  %v764_v46 = vpop.f32.mrf.mxu1 }
  0xcb   : > { %v1004_v47 = vpack.c.bf16 %v972_v41, %v972_v41  ;;  %v853_v48 = vadd.f32 %v802_v42, %v323_v39  ;;  %v765_v49 = vadd.f32 %v764_v46, %v675_v43 }
  0xcc   : > { %1052 = vst.msk [vmem:[%s1709_s8 + $0x44] sm:$0xf] %vm1034_vm1, %v1019_v44 }
  0xcd   : > { %1037 = vst.msk [vmem:[%s1709_s8 + $0x8] sm:$0xf] %vm1034_vm1, %v1004_v47  ;;  %v920_v50 = vld [vmem:[#allocation2 + $0x90] sm:$0xff]  ;;  %v838_v51 = vadd.f32 %v765_v49, %v308_v45 }
  0xce   : > { %v956_v52 = vadd.f32 %v1700_v61, %v920_v50  ;;  %v905_v53 = vld [vmem:[#allocation2 + $0x18] sm:$0xff]  ;;  %886 = vst.msk [vmem:[#allocation2 + $0x98] sm:$0xff] %vm271_vm0, %v853_v48 }
  0xcf   : > { %v941_v54 = vadd.f32 %v1700_v61, %v905_v53  ;;  %871 = vst.msk [vmem:[#allocation2 + $0x20] sm:$0xff] %vm271_vm0, %v838_v51  ;;  %v715_v55 = vpop.f32.mrf.mxu2  ;;  %v327_v48 = vld [vmem:[#allocation2 + $0xb8] sm:$0xff] }
  0xd0   : > { %v988_v56 = vmax.f32 %v956_v52, 0.0  ;;  %v804_v58 = vpop.f32.mrf.mxu3 }
  0xd1   : > { %v973_v59 = vmax.f32 %v941_v54, 0.0  ;;  %v805_v60 = vadd.f32 %v804_v58, %v715_v55  ;;  %v677_v62 = vpop.f32.mrf.mxu0  ;;  %v312_v54 = vld [vmem:[#allocation2 + $0x40] sm:$0xff] }
  0xd2   : > { %v1020_v63 = vpack.c.bf16 %v988_v56, %v988_v56  ;;  %v766_v1 = vpop.f32.mrf.mxu1 }
  0xd3   : > { %v1005_v2 = vpack.c.bf16 %v973_v59, %v973_v59  ;;  %v854_v3 = vadd.f32 %v805_v60, %v324_v57  ;;  %v767_v4 = vadd.f32 %v766_v1, %v677_v62 }
  0xd4   : > { %1053 = vst.msk [vmem:[%s1709_s8 + $0x48] sm:$0xf] %vm1034_vm1, %v1020_v63 }
  0xd5   : > { %1038 = vst.msk [vmem:[%s1709_s8 + $0xc] sm:$0xf] %vm1034_vm1, %v1005_v2  ;;  %v921_v5 = vld [vmem:[#allocation2 + $0x98] sm:$0xff]  ;;  %v839_v6 = vadd.f32 %v767_v4, %v309_v0 }
  0xd6   : > { %v957_v7 = vadd.f32 %v1700_v61, %v921_v5  ;;  %v906_v8 = vld [vmem:[#allocation2 + $0x20] sm:$0xff]  ;;  %887 = vst.msk [vmem:[#allocation2 + $0xa0] sm:$0xff] %vm271_vm0, %v854_v3 }
  0xd7   : > { %v942_v9 = vadd.f32 %v1700_v61, %v906_v8  ;;  %872 = vst.msk [vmem:[#allocation2 + $0x28] sm:$0xff] %vm271_vm0, %v839_v6  ;;  %v717_v10 = vpop.f32.mrf.mxu2  ;;  %v328_v3 = vld [vmem:[#allocation2 + $0xc0] sm:$0xff] }
  0xd8   : > { %v989_v11 = vmax.f32 %v957_v7, 0.0  ;;  %v806_v13 = vpop.f32.mrf.mxu3 }
  0xd9   : > { %v974_v14 = vmax.f32 %v942_v9, 0.0  ;;  %v807_v15 = vadd.f32 %v806_v13, %v717_v10  ;;  %v680_v16 = vpop.f32.mrf.mxu0  ;;  %v313_v9 = vld [vmem:[#allocation2 + $0x48] sm:$0xff] }
  0xda   : > { %v1021_v17 = vpack.c.bf16 %v989_v11, %v989_v11  ;;  %v769_v19 = vpop.f32.mrf.mxu1 }
  0xdb   : > { %v1006_v20 = vpack.c.bf16 %v974_v14, %v974_v14  ;;  %v855_v21 = vadd.f32 %v807_v15, %v325_v12  ;;  %v770_v22 = vadd.f32 %v769_v19, %v680_v16 }
  0xdc   : > { %1054 = vst.msk [vmem:[%s1709_s8 + $0x4c] sm:$0xf] %vm1034_vm1, %v1021_v17 }
  0xdd   : > { %1039 = vst.msk [vmem:[%s1709_s8 + $0x10] sm:$0xf] %vm1034_vm1, %v1006_v20  ;;  %v922_v23 = vld [vmem:[#allocation2 + $0xa0] sm:$0xff]  ;;  %v840_v24 = vadd.f32 %v770_v22, %v310_v18 }
  0xde   : > { %v958_v25 = vadd.f32 %v1700_v61, %v922_v23  ;;  %v907_v26 = vld [vmem:[#allocation2 + $0x28] sm:$0xff]  ;;  %888 = vst.msk [vmem:[#allocation2 + $0xa8] sm:$0xff] %vm271_vm0, %v855_v21 }
  0xdf   : > { %v943_v27 = vadd.f32 %v1700_v61, %v907_v26  ;;  %873 = vst.msk [vmem:[#allocation2 + $0x30] sm:$0xff] %vm271_vm0, %v840_v24  ;;  %v720_v28 = vpop.f32.mrf.mxu2  ;;  %v329_v21 = vld [vmem:[#allocation2 + $0xc8] sm:$0xff] }
  0xe0   : > { %v990_v29 = vmax.f32 %v958_v25, 0.0  ;;  %v809_v31 = vpop.f32.mrf.mxu3 }
  0xe1   : > { %v975_v32 = vmax.f32 %v943_v27, 0.0  ;;  %v810_v33 = vadd.f32 %v809_v31, %v720_v28  ;;  %v682_v34 = vpop.f32.mrf.mxu0  ;;  %v314_v27 = vld [vmem:[#allocation2 + $0x50] sm:$0xff] }
  0xe2   : > { %v1022_v35 = vpack.c.bf16 %v990_v29, %v990_v29  ;;  %v771_v37 = vpop.f32.mrf.mxu1 }
  0xe3   : > { %v1007_v38 = vpack.c.bf16 %v975_v32, %v975_v32  ;;  %v856_v39 = vadd.f32 %v810_v33, %v326_v30  ;;  %v772_v40 = vadd.f32 %v771_v37, %v682_v34 }
  0xe4   : > { %1055 = vst.msk [vmem:[%s1709_s8 + $0x50] sm:$0xf] %vm1034_vm1, %v1022_v35 }
  0xe5   : > { %1040 = vst.msk [vmem:[%s1709_s8 + $0x14] sm:$0xf] %vm1034_vm1, %v1007_v38  ;;  %v923_v41 = vld [vmem:[#allocation2 + $0xa8] sm:$0xff]  ;;  %v841_v42 = vadd.f32 %v772_v40, %v311_v36 }
  0xe6   : > { %v959_v43 = vadd.f32 %v1700_v61, %v923_v41  ;;  %v908_v44 = vld [vmem:[#allocation2 + $0x30] sm:$0xff]  ;;  %889 = vst.msk [vmem:[#allocation2 + $0xb0] sm:$0xff] %vm271_vm0, %v856_v39 }
  0xe7   : > { %v944_v45 = vadd.f32 %v1700_v61, %v908_v44  ;;  %874 = vst.msk [vmem:[#allocation2 + $0x38] sm:$0xff] %vm271_vm0, %v841_v42  ;;  %v722_v46 = vpop.f32.mrf.mxu2  ;;  %v330_v39 = vld [vmem:[#allocation2 + $0xd0] sm:$0xff] }
  0xe8   : > { %v991_v47 = vmax.f32 %v959_v43, 0.0  ;;  %v811_v49 = vpop.f32.mrf.mxu3 }
  0xe9   : > { %v976_v50 = vmax.f32 %v944_v45, 0.0  ;;  %v812_v51 = vadd.f32 %v811_v49, %v722_v46  ;;  %v685_v52 = vpop.f32.mrf.mxu0  ;;  %v315_v45 = vld [vmem:[#allocation2 + $0x58] sm:$0xff] }
  0xea   : > { %v1023_v53 = vpack.c.bf16 %v991_v47, %v991_v47  ;;  %v774_v55 = vpop.f32.mrf.mxu1 }
  0xeb   : > { %v1008_v56 = vpack.c.bf16 %v976_v50, %v976_v50  ;;  %v857_v57 = vadd.f32 %v812_v51, %v327_v48  ;;  %v775_v58 = vadd.f32 %v774_v55, %v685_v52 }
  0xec   : > { %1056 = vst.msk [vmem:[%s1709_s8 + $0x54] sm:$0xf] %vm1034_vm1, %v1023_v53 }
  0xed   : > { %1041 = vst.msk [vmem:[%s1709_s8 + $0x18] sm:$0xf] %vm1034_vm1, %v1008_v56  ;;  %v924_v59 = vld [vmem:[#allocation2 + $0xb0] sm:$0xff]  ;;  %v842_v60 = vadd.f32 %v775_v58, %v312_v54 }
  0xee   : > { %v960_v62 = vadd.f32 %v1700_v61, %v924_v59  ;;  %v909_v63 = vld [vmem:[#allocation2 + $0x38] sm:$0xff]  ;;  %890 = vst.msk [vmem:[#allocation2 + $0xb8] sm:$0xff] %vm271_vm0, %v857_v57 }
  0xef   : > { %v945_v0 = vadd.f32 %v1700_v61, %v909_v63  ;;  %875 = vst.msk [vmem:[#allocation2 + $0x40] sm:$0xff] %vm271_vm0, %v842_v60  ;;  %v725_v1 = vpop.f32.mrf.mxu2  ;;  %v331_v57 = vld [vmem:[#allocation2 + $0xd8] sm:$0xff] }
  0xf0   : > { %v992_v2 = vmax.f32 %v960_v62, 0.0  ;;  %v814_v4 = vpop.f32.mrf.mxu3 }
  0xf1   : > { %v977_v5 = vmax.f32 %v945_v0, 0.0  ;;  %v815_v6 = vadd.f32 %v814_v4, %v725_v1  ;;  %v687_v7 = vpop.f32.mrf.mxu0  ;;  %v316_v0 = vld [vmem:[#allocation2 + $0x60] sm:$0xff] }
  0xf2   : > { %v1024_v8 = vpack.c.bf16 %v992_v2, %v992_v2  ;;  %v776_v10 = vpop.f32.mrf.mxu1 }
  0xf3   : > { %v1009_v11 = vpack.c.bf16 %v977_v5, %v977_v5  ;;  %v858_v12 = vadd.f32 %v815_v6, %v328_v3  ;;  %v777_v13 = vadd.f32 %v776_v10, %v687_v7 }
  0xf4   : > { %1057 = vst.msk [vmem:[%s1709_s8 + $0x58] sm:$0xf] %vm1034_vm1, %v1024_v8 }
  0xf5   : > { %1042 = vst.msk [vmem:[%s1709_s8 + $0x1c] sm:$0xf] %vm1034_vm1, %v1009_v11  ;;  %v925_v14 = vld [vmem:[#allocation2 + $0xb8] sm:$0xff]  ;;  %v843_v15 = vadd.f32 %v777_v13, %v313_v9 }
  0xf6   : > { %v961_v16 = vadd.f32 %v1700_v61, %v925_v14  ;;  %v910_v17 = vld [vmem:[#allocation2 + $0x40] sm:$0xff]  ;;  %891 = vst.msk [vmem:[#allocation2 + $0xc0] sm:$0xff] %vm271_vm0, %v858_v12 }
  0xf7   : > { %v946_v18 = vadd.f32 %v1700_v61, %v910_v17  ;;  %876 = vst.msk [vmem:[#allocation2 + $0x48] sm:$0xff] %vm271_vm0, %v843_v15  ;;  %v727_v19 = vpop.f32.mrf.mxu2  ;;  %v332_v12 = vld [vmem:[#allocation2 + $0xe0] sm:$0xff] }
  0xf8   : > { %v993_v20 = vmax.f32 %v961_v16, 0.0  ;;  %v816_v22 = vpop.f32.mrf.mxu3 }
  0xf9   : > { %v978_v23 = vmax.f32 %v946_v18, 0.0  ;;  %v817_v24 = vadd.f32 %v816_v22, %v727_v19  ;;  %v690_v25 = vpop.f32.mrf.mxu0  ;;  %v317_v18 = vld [vmem:[#allocation2 + $0x68] sm:$0xff] }
  0xfa   : > { %v1025_v26 = vpack.c.bf16 %v993_v20, %v993_v20  ;;  %v779_v28 = vpop.f32.mrf.mxu1 }
  0xfb   : > { %v1010_v29 = vpack.c.bf16 %v978_v23, %v978_v23  ;;  %v859_v30 = vadd.f32 %v817_v24, %v329_v21  ;;  %v780_v31 = vadd.f32 %v779_v28, %v690_v25 }
  0xfc   : > { %1058 = vst.msk [vmem:[%s1709_s8 + $0x5c] sm:$0xf] %vm1034_vm1, %v1025_v26 }
  0xfd   : > { %1043 = vst.msk [vmem:[%s1709_s8 + $0x20] sm:$0xf] %vm1034_vm1, %v1010_v29  ;;  %v926_v32 = vld [vmem:[#allocation2 + $0xc0] sm:$0xff]  ;;  %v844_v33 = vadd.f32 %v780_v31, %v314_v27 }
  0xfe   : > { %v962_v34 = vadd.f32 %v1700_v61, %v926_v32  ;;  %v911_v35 = vld [vmem:[#allocation2 + $0x48] sm:$0xff]  ;;  %892 = vst.msk [vmem:[#allocation2 + $0xc8] sm:$0xff] %vm271_vm0, %v859_v30 }
  0xff   : > { %v947_v36 = vadd.f32 %v1700_v61, %v911_v35  ;;  %877 = vst.msk [vmem:[#allocation2 + $0x50] sm:$0xff] %vm271_vm0, %v844_v33  ;;  %v730_v37 = vpop.f32.mrf.mxu2  ;;  %v333_v30 = vld [vmem:[#allocation2 + $0xe8] sm:$0xff] }
 0x100   : > { %v994_v38 = vmax.f32 %v962_v34, 0.0  ;;  %v819_v40 = vpop.f32.mrf.mxu3 }
 0x101   : > { %v979_v41 = vmax.f32 %v947_v36, 0.0  ;;  %v820_v42 = vadd.f32 %v819_v40, %v730_v37  ;;  %v692_v43 = vpop.f32.mrf.mxu0  ;;  %v318_v36 = vld [vmem:[#allocation2 + $0x70] sm:$0xff] }
 0x102   : > { %v1026_v44 = vpack.c.bf16 %v994_v38, %v994_v38  ;;  %v781_v46 = vpop.f32.mrf.mxu1 }
 0x103   : > { %v1011_v47 = vpack.c.bf16 %v979_v41, %v979_v41  ;;  %v860_v48 = vadd.f32 %v820_v42, %v330_v39  ;;  %v782_v49 = vadd.f32 %v781_v46, %v692_v43 }
 0x104   : > { %1059 = vst.msk [vmem:[%s1709_s8 + $0x60] sm:$0xf] %vm1034_vm1, %v1026_v44 }
 0x105   : > { %1044 = vst.msk [vmem:[%s1709_s8 + $0x24] sm:$0xf] %vm1034_vm1, %v1011_v47  ;;  %v927_v50 = vld [vmem:[#allocation2 + $0xc8] sm:$0xff]  ;;  %v845_v51 = vadd.f32 %v782_v49, %v315_v45 }
 0x106   : > { %v963_v52 = vadd.f32 %v1700_v61, %v927_v50  ;;  %v912_v53 = vld [vmem:[#allocation2 + $0x50] sm:$0xff]  ;;  %893 = vst.msk [vmem:[#allocation2 + $0xd0] sm:$0xff] %vm271_vm0, %v860_v48 }
 0x107   : > { %v948_v54 = vadd.f32 %v1700_v61, %v912_v53  ;;  %878 = vst.msk [vmem:[#allocation2 + $0x58] sm:$0xff] %vm271_vm0, %v845_v51  ;;  %v732_v55 = vpop.f32.mrf.mxu2  ;;  %v334_v48 = vld [vmem:[#allocation2 + $0xf0] sm:$0xff] }
 0x108   : > { %v995_v56 = vmax.f32 %v963_v52, 0.0  ;;  %v821_v58 = vpop.f32.mrf.mxu3 }
 0x109   : > { %v980_v59 = vmax.f32 %v948_v54, 0.0  ;;  %v822_v60 = vadd.f32 %v821_v58, %v732_v55  ;;  %v695_v62 = vpop.f32.mrf.mxu0  ;;  %v319_v54 = vld [vmem:[#allocation2 + $0x78] sm:$0xff] }
 0x10a   : > { %v1027_v63 = vpack.c.bf16 %v995_v56, %v995_v56  ;;  %v784_v1 = vpop.f32.mrf.mxu1 }
 0x10b   : > { %v1012_v2 = vpack.c.bf16 %v980_v59, %v980_v59  ;;  %v861_v3 = vadd.f32 %v822_v60, %v331_v57  ;;  %v785_v4 = vadd.f32 %v784_v1, %v695_v62 }
 0x10c   : > { %1060 = vst.msk [vmem:[%s1709_s8 + $0x64] sm:$0xf] %vm1034_vm1, %v1027_v63 }
 0x10d   : > { %1045 = vst.msk [vmem:[%s1709_s8 + $0x28] sm:$0xf] %vm1034_vm1, %v1012_v2  ;;  %v928_v5 = vld [vmem:[#allocation2 + $0xd0] sm:$0xff]  ;;  %v846_v6 = vadd.f32 %v785_v4, %v316_v0 }
 0x10e   : > { %v964_v7 = vadd.f32 %v1700_v61, %v928_v5  ;;  %v913_v8 = vld [vmem:[#allocation2 + $0x58] sm:$0xff]  ;;  %894 = vst.msk [vmem:[#allocation2 + $0xd8] sm:$0xff] %vm271_vm0, %v861_v3 }
 0x10f   : > { %v949_v9 = vadd.f32 %v1700_v61, %v913_v8  ;;  %879 = vst.msk [vmem:[#allocation2 + $0x60] sm:$0xff] %vm271_vm0, %v846_v6  ;;  %v735_v10 = vpop.f32.mrf.mxu2  ;;  %v335_v3 = vld [vmem:[#allocation2 + $0xf8] sm:$0xff] }
 0x110   : > { %v996_v11 = vmax.f32 %v964_v7, 0.0  ;;  %v824_v13 = vpop.f32.mrf.mxu3 }
 0x111   : > { %v981_v14 = vmax.f32 %v949_v9, 0.0  ;;  %v825_v15 = vadd.f32 %v824_v13, %v735_v10  ;;  %v697_v16 = vpop.f32.mrf.mxu0 }
 0x112   : > { %v1028_v17 = vpack.c.bf16 %v996_v11, %v996_v11  ;;  %v786_v19 = vpop.f32.mrf.mxu1 }
 0x113   : > { %v1013_v20 = vpack.c.bf16 %v981_v14, %v981_v14  ;;  %v862_v21 = vadd.f32 %v825_v15, %v332_v12  ;;  %v787_v22 = vadd.f32 %v786_v19, %v697_v16 }
 0x114   : > { %1061 = vst.msk [vmem:[%s1709_s8 + $0x68] sm:$0xf] %vm1034_vm1, %v1028_v17 }
 0x115   : > { %1046 = vst.msk [vmem:[%s1709_s8 + $0x2c] sm:$0xf] %vm1034_vm1, %v1013_v20  ;;  %v929_v23 = vld [vmem:[#allocation2 + $0xd8] sm:$0xff]  ;;  %v847_v24 = vadd.f32 %v787_v22, %v317_v18 }
 0x116   : > { %v965_v25 = vadd.f32 %v1700_v61, %v929_v23  ;;  %v914_v26 = vld [vmem:[#allocation2 + $0x60] sm:$0xff]  ;;  %895 = vst.msk [vmem:[#allocation2 + $0xe0] sm:$0xff] %vm271_vm0, %v862_v21 }
 0x117   : > { %v950_v27 = vadd.f32 %v1700_v61, %v914_v26  ;;  %880 = vst.msk [vmem:[#allocation2 + $0x68] sm:$0xff] %vm271_vm0, %v847_v24  ;;  %v737_v28 = vpop.f32.mrf.mxu2 }
 0x118   : > { %v997_v29 = vmax.f32 %v965_v25, 0.0  ;;  %v826_v31 = vpop.f32.mrf.mxu3 }
 0x119   : > { %v982_v32 = vmax.f32 %v950_v27, 0.0  ;;  %v827_v33 = vadd.f32 %v826_v31, %v737_v28  ;;  %v700_v34 = vpop.f32.mrf.mxu0 }
 0x11a   : > { %v1029_v35 = vpack.c.bf16 %v997_v29, %v997_v29  ;;  %v789_v37 = vpop.f32.mrf.mxu1 }
 0x11b   : > { %v1014_v38 = vpack.c.bf16 %v982_v32, %v982_v32  ;;  %v863_v39 = vadd.f32 %v827_v33, %v333_v30  ;;  %v790_v40 = vadd.f32 %v789_v37, %v700_v34 }
 0x11c   : > { %1062 = vst.msk [vmem:[%s1709_s8 + $0x6c] sm:$0xf] %vm1034_vm1, %v1029_v35 }
 0x11d   : > { %1047 = vst.msk [vmem:[%s1709_s8 + $0x30] sm:$0xf] %vm1034_vm1, %v1014_v38  ;;  %v930_v41 = vld [vmem:[#allocation2 + $0xe0] sm:$0xff]  ;;  %v848_v42 = vadd.f32 %v790_v40, %v318_v36 }
 0x11e   : > { %v966_v43 = vadd.f32 %v1700_v61, %v930_v41  ;;  %v915_v44 = vld [vmem:[#allocation2 + $0x68] sm:$0xff]  ;;  %896 = vst.msk [vmem:[#allocation2 + $0xe8] sm:$0xff] %vm271_vm0, %v863_v39 }
 0x11f   : > { %v951_v45 = vadd.f32 %v1700_v61, %v915_v44  ;;  %881 = vst.msk [vmem:[#allocation2 + $0x70] sm:$0xff] %vm271_vm0, %v848_v42  ;;  %v740_v46 = vpop.f32.mrf.mxu2 }
 0x120   : > { %v998_v47 = vmax.f32 %v966_v43, 0.0  ;;  %v829_v49 = vpop.f32.mrf.mxu3 }
 0x121   : > { %v983_v50 = vmax.f32 %v951_v45, 0.0  ;;  %v830_v51 = vadd.f32 %v829_v49, %v740_v46  ;;  %v702_v52 = vpop.f32.mrf.mxu0 }
 0x122   : > { %v1030_v53 = vpack.c.bf16 %v998_v47, %v998_v47  ;;  %v791_v55 = vpop.f32.mrf.mxu1 }
 0x123   : > { %v1015_v56 = vpack.c.bf16 %v983_v50, %v983_v50  ;;  %v864_v57 = vadd.f32 %v830_v51, %v334_v48  ;;  %v792_v58 = vadd.f32 %v791_v55, %v702_v52 }
 0x124   : > { %1063 = vst.msk [vmem:[%s1709_s8 + $0x70] sm:$0xf] %vm1034_vm1, %v1030_v53 }
 0x125   : > { %1048 = vst.msk [vmem:[%s1709_s8 + $0x34] sm:$0xf] %vm1034_vm1, %v1015_v56  ;;  %v931_v59 = vld [vmem:[#allocation2 + $0xe8] sm:$0xff]  ;;  %v849_v60 = vadd.f32 %v792_v58, %v319_v54 }
 0x126   : > { %v967_v62 = vadd.f32 %v1700_v61, %v931_v59  ;;  %v916_v63 = vld [vmem:[#allocation2 + $0x70] sm:$0xff]  ;;  %897 = vst.msk [vmem:[#allocation2 + $0xf0] sm:$0xff] %vm271_vm0, %v864_v57 }
 0x127   : > { %v952_v0 = vadd.f32 %v1700_v61, %v916_v63  ;;  %882 = vst.msk [vmem:[#allocation2 + $0x78] sm:$0xff] %vm271_vm0, %v849_v60  ;;  %v742_v1 = vpop.f32.mrf.mxu2 }
 0x128   : > { %v999_v2 = vmax.f32 %v967_v62, 0.0  ;;  %v831_v4 = vpop.f32.mrf.mxu3 }
 0x129   : > { %v984_v5 = vmax.f32 %v952_v0, 0.0  ;;  %v832_v6 = vadd.f32 %v831_v4, %v742_v1 }
 0x12a   : > { %v1031_v7 = vpack.c.bf16 %v999_v2, %v999_v2 }
 0x12b   : > { %v1016_v8 = vpack.c.bf16 %v984_v5, %v984_v5  ;;  %v865_v9 = vadd.f32 %v832_v6, %v335_v3 }
 0x12c   : > { %1064 = vst.msk [vmem:[%s1709_s8 + $0x74] sm:$0xf] %vm1034_vm1, %v1031_v7 }
 0x12d   : > { %1049 = vst.msk [vmem:[%s1709_s8 + $0x38] sm:$0xf] %vm1034_vm1, %v1016_v8  ;;  %v932_v10 = vld [vmem:[#allocation2 + $0xf0] sm:$0xff] }
 0x12e   : > { %v968_v11 = vadd.f32 %v1700_v61, %v932_v10  ;;  %v917_v12 = vld [vmem:[#allocation2 + $0x78] sm:$0xff]  ;;  %898 = vst.msk [vmem:[#allocation2 + $0xf8] sm:$0xff] %vm271_vm0, %v865_v9 }
 0x12f   : > { %v953_v13 = vadd.f32 %v1700_v61, %v917_v12 }
 0x130   : > { %v1000_v14 = vmax.f32 %v968_v11, 0.0 }
 0x131   : > { %v985_v15 = vmax.f32 %v953_v13, 0.0 }
 0x132   : > { %v1032_v16 = vpack.c.bf16 %v1000_v14, %v1000_v14 }
 0x133   : > { %v1017_v17 = vpack.c.bf16 %v985_v15, %v985_v15 }
 0x134   : > { %1065 = vst.msk [vmem:[%s1709_s8 + $0x78] sm:$0xf] %vm1034_vm1, %v1032_v16 }
 0x135   : > { %1050 = vst.msk [vmem:[%s1709_s8 + $0x3c] sm:$0xf] %vm1034_vm1, %v1017_v17  ;;  %v933_v18 = vld [vmem:[#allocation2 + $0xf8] sm:$0xff] }
 0x136   : > { %v969_v19 = vadd.f32 %v1700_v61, %v933_v18 }
 0x138   : > { %v1001_v20 = vmax.f32 %v969_v19, 0.0 }
 0x13a   : > { %v1033_v21 = vpack.c.bf16 %v1001_v20, %v1001_v20 }
 0x13c   : > { %1066 = vst.msk [vmem:[%s1709_s8 + $0x7c] sm:$0xf] %vm1034_vm1, %v1033_v21 }
 0x13d PF: > { %s13_s14 = sadd.s32 1, %s1500_s14   ;;  %s1848_s12 = smov %s1496_s13 }
 0x13e   : > { %p10_p5 = scmp.ge.s32.totalorder %s13_s14, 4   ;;  %s1849_s13 = smov %s1851_s15 }
 0x140   :  { %12 = sbr.rel (!%p10_p5) target bundleno = 2 (0x2), region = 76 }

// kernel: rgbd_forward.9
= control target key start
LH: loop header
LB: loop body
LE: loop exit
PB: predicated region body
PF: predicated region fallthrough
CT: control target
= control target key end

     0   :  { %vm672_vm0 = vcmask 519168   ;;  %s1546_s0 = inlined_call_operand.vmem [shape: bf16[9,128,64], index: 0, kind: input, shape index: {}]   ;;  %s1547_s1 = inlined_call_operand.vmem [shape: bf16[128,64], index: 1, kind: output, shape index: {}]  }
   0x1   :  { %v822_v0 = vld [vmem:[%s1546_s0] sm:$0xff]   ;;  %v1109_v17 = vld [vmem:[%s1546_s0 + $0x8] sm:$0xff]   ;;  %v1110_v54 = vld [vmem:[%s1546_s0 + $0x10] sm:$0xff]  }
   0x2   :  { %v1116_v1 = vld [vmem:[%s1546_s0 + $0x40] sm:$0xff]   ;;  %v823_v3 = vunpack.c.l.bf16 %v822_v0  ;;  %v824_v9 = vunpack.c.h.bf16 %v822_v0  ;;  %v1117_v18 = vld [vmem:[%s1546_s0 + $0x48] sm:$0xff]   ;;  %v827_v31 = vunpack.c.l.bf16 %v1109_v17  ;;  %v828_v48 = vunpack.c.h.bf16 %v1109_v17  ;;  %v1118_v59 = vld [vmem:[%s1546_s0 + $0x50] sm:$0xff]  }
   0x3   :  { %v1124_v2 = vld [vmem:[%s1546_s0 + $0x80] sm:$0xff]   ;;  %v855_v4 = vunpack.c.l.bf16 %v1116_v1  ;;  %v856_v13 = vunpack.c.h.bf16 %v1116_v1  ;;  %v1125_v23 = vld [vmem:[%s1546_s0 + $0x88] sm:$0xff]   ;;  %v859_v32 = vunpack.c.l.bf16 %v1117_v18  ;;  %v860_v52 = vunpack.c.h.bf16 %v1117_v18  ;;  %v1126_v0 = vld [vmem:[%s1546_s0 + $0x90] sm:$0xff]  }
   0x4   :  { %v887_v5 = vunpack.c.l.bf16 %v1124_v2  ;;  %v1132_v6 = vld [vmem:[%s1546_s0 + $0xc0] sm:$0xff]   ;;  %v888_v21 = vunpack.c.h.bf16 %v1124_v2  ;;  %v1133_v28 = vld [vmem:[%s1546_s0 + $0xc8] sm:$0xff]   ;;  %v891_v37 = vunpack.c.l.bf16 %v1125_v23  ;;  %v892_v53 = vunpack.c.h.bf16 %v1125_v23  ;;  %v1134_v1 = vld [vmem:[%s1546_s0 + $0xd0] sm:$0xff]  }
   0x5   :  { %v1140_v7 = vld [vmem:[%s1546_s0 + $0x100] sm:$0xff]   ;;  %v73_v14 = vmax.f32 %v823_v3, %v855_v4  ;;  %v919_v15 = vunpack.c.l.bf16 %v1132_v6  ;;  %v74_v20 = vmax.f32 %v824_v9, %v856_v13  ;;  %v920_v22 = vunpack.c.h.bf16 %v1132_v6  ;;  %v1141_v33 = vld [vmem:[%s1546_s0 + $0x108] sm:$0xff]  }
   0x6   :  { %v1148_v8 = vld [vmem:[%s1546_s0 + $0x140] sm:$0xff]   ;;  %v951_v16 = vunpack.c.l.bf16 %v1140_v7  ;;  %v952_v30 = vunpack.c.h.bf16 %v1140_v7  ;;  %v75_v40 = vmax.f32 %v827_v31, %v859_v32  ;;  %v923_v41 = vunpack.c.l.bf16 %v1133_v28  ;;  %v1149_v42 = vld [vmem:[%s1546_s0 + $0x148] sm:$0xff]   ;;  %v1287_v31 = vld [vmem:[%s1546_s0 + $0x190] sm:$0xff]  }
   0x7   :  { %v1156_v10 = vld [vmem:[%s1546_s0 + $0x180] sm:$0xff]   ;;  %v983_v19 = vunpack.c.l.bf16 %v1148_v8  ;;  %v154_v24 = vmax.f32 %v73_v14, %v887_v5  ;;  %v155_v29 = vmax.f32 %v74_v20, %v888_v21  ;;  %v984_v35 = vunpack.c.h.bf16 %v1148_v8  ;;  %v1245_v43 = vld [vmem:[%s1546_s0 + $0x188] sm:$0xff]  }
   0x8   :  { %v1214_v11 = vld [vmem:[%s1546_s0 + $0x1c0] sm:$0xff]   ;;  %v1015_v25 = vunpack.c.l.bf16 %v1156_v10  ;;  %v1016_v36 = vunpack.c.h.bf16 %v1156_v10  ;;  %v1250_v44 = vld [vmem:[%s1546_s0 + $0x1c8] sm:$0xff]   ;;  %v955_v47 = vunpack.c.l.bf16 %v1141_v33  ;;  %v156_v50 = vmax.f32 %v75_v40, %v891_v37  ;;  %v1142_v10 = vld [vmem:[%s1546_s0 + $0x110] sm:$0xff]  }
   0x9   :  { %v1219_v12 = vld [vmem:[%s1546_s0 + $0x200] sm:$0xff]   ;;  %v1047_v26 = vunpack.c.l.bf16 %v1214_v11  ;;  %v235_v34 = vmax.f32 %v154_v24, %v919_v15  ;;  %v236_v38 = vmax.f32 %v155_v29, %v920_v22  ;;  %v1048_v39 = vunpack.c.h.bf16 %v1214_v11  ;;  %v1256_v51 = vld [vmem:[%s1546_s0 + $0x208] sm:$0xff]   ;;  %v1292_v37 = vld [vmem:[%s1546_s0 + $0x1d0] sm:$0xff]  }
   0xa   :  { %v1079_v27 = vunpack.c.l.bf16 %v1219_v12  ;;  %v1080_v46 = vunpack.c.h.bf16 %v1219_v12  ;;  %v987_v56 = vunpack.c.l.bf16 %v1149_v42  ;;  %v1019_v57 = vunpack.c.l.bf16 %v1245_v43 }
   0xb   :  { %v316_v45 = vmax.f32 %v235_v34, %v951_v16  ;;  %v317_v49 = vmax.f32 %v236_v38, %v952_v30  ;;  %v1051_v58 = vunpack.c.l.bf16 %v1250_v44  ;;  %v237_v61 = vmax.f32 %v156_v50, %v923_v41  ;;  %v1174_v50 = vld [vmem:[%s1546_s0 + $0x210] sm:$0xff]  }
   0xc   :  { %v76_v62 = vmax.f32 %v828_v48, %v860_v52  ;;  %v924_v63 = vunpack.c.h.bf16 %v1133_v28  ;;  %v1083_v3 = vunpack.c.l.bf16 %v1256_v51  ;;  %v956_v4 = vunpack.c.h.bf16 %v1141_v33  ;;  %v1127_v48 = vld [vmem:[%s1546_s0 + $0x98] sm:$0xff]  }
   0xd   :  { %v397_v55 = vmax.f32 %v316_v45, %v983_v19  ;;  %v398_v60 = vmax.f32 %v317_v49, %v984_v35  ;;  %v831_v5 = vunpack.c.l.bf16 %v1110_v54  ;;  %v318_v7 = vmax.f32 %v237_v61, %v955_v47  ;;  %v1279_v19 = vld [vmem:[%s1546_s0 + $0x150] sm:$0xff]   ;;  %v1119_v47 = vld [vmem:[%s1546_s0 + $0x58] sm:$0xff]  }
   0xe   :  { %v157_v8 = vmax.f32 %v76_v62, %v892_v53  ;;  %v863_v9 = vunpack.c.l.bf16 %v1118_v59  ;;  %v988_v12 = vunpack.c.h.bf16 %v1149_v42  ;;  %v895_v13 = vunpack.c.l.bf16 %v1126_v0  ;;  %v1111_v42 = vld [vmem:[%s1546_s0 + $0x18] sm:$0xff]  }
   0xf   :  { %v478_v2 = vmax.f32 %v397_v55, %v1015_v25  ;;  %v479_v6 = vmax.f32 %v398_v60, %v1016_v36  ;;  %v927_v14 = vunpack.c.l.bf16 %v1134_v1  ;;  %v399_v16 = vmax.f32 %v318_v7, %v987_v56  ;;  %v1143_v62 = vld [vmem:[%s1546_s0 + $0x118] sm:$0xff]  }
  0x10   :  { %v238_v17 = vmax.f32 %v157_v8, %v924_v63  ;;  %v77_v18 = vmax.f32 %v831_v5, %v863_v9  ;;  %v1020_v21 = vunpack.c.h.bf16 %v1245_v43  ;;  %v1052_v22 = vunpack.c.h.bf16 %v1250_v44  ;;  %v1333_v7 = vld [vmem:[%s1546_s0 + $0x158] sm:$0xff]  }
  0x11   :  { %v559_v11 = vmax.f32 %v478_v2, %v1047_v26  ;;  %v560_v15 = vmax.f32 %v479_v6, %v1048_v39  ;;  %v959_v23 = vunpack.c.l.bf16 %v1142_v10  ;;  %v480_v25 = vmax.f32 %v399_v16, %v1019_v57  ;;  %v1135_v57 = vld [vmem:[%s1546_s0 + $0xd8] sm:$0xff]  }
  0x12   :  { %v319_v26 = vmax.f32 %v238_v17, %v956_v4  ;;  %v158_v28 = vmax.f32 %v77_v18, %v895_v13  ;;  %v991_v30 = vunpack.c.l.bf16 %v1279_v19  ;;  %v832_v32 = vunpack.c.h.bf16 %v1110_v54  ;;  %v1338_v8 = vld [vmem:[%s1546_s0 + $0x198] sm:$0xff]   ;;  %v1112_v18 = vld [vmem:[%s1546_s0 + $0x20] sm:$0xff]  }
  0x13   :  { %v640_v20 = vmax.f32 %v559_v11, %v1079_v27  ;;  %v641_v24 = vmax.f32 %v560_v15, %v1080_v46  ;;  %v864_v33 = vunpack.c.h.bf16 %v1118_v59  ;;  %v561_v34 = vmax.f32 %v480_v25, %v1051_v58  ;;  %v1343_v15 = vld [vmem:[%s1546_s0 + $0x1d8] sm:$0xff]  }
  0x14   :  { %v400_v35 = vmax.f32 %v319_v26, %v988_v12  ;;  %v239_v36 = vmax.f32 %v158_v28, %v927_v14  ;;  %v1084_v38 = vunpack.c.h.bf16 %v1256_v51  ;;  %v896_v40 = vunpack.c.h.bf16 %v1126_v0  ;;  %v1360_v26 = vld [vmem:[%s1546_s0 + $0x218] sm:$0xff]  }
  0x15   :  { %v656_v29 = vpack.c.bf16 %v640_v20, %v640_v20  ;;  %v657_v27 = vpack.c.bf16 %v641_v24, %v641_v24  ;;  %v78_v39 = vmax.f32 %v832_v32, %v864_v33  ;;  %v928_v41 = vunpack.c.h.bf16 %v1134_v1 }
  0x16   :  { %v642_v43 = vmax.f32 %v561_v34, %v1083_v3  ;;  %v481_v44 = vmax.f32 %v400_v35, %v1020_v21  ;;  %v320_v45 = vmax.f32 %v239_v36, %v959_v23  ;;  %v1023_v46 = vunpack.c.l.bf16 %v1287_v31  ;;  %v1120_v23 = vld [vmem:[%s1546_s0 + $0x60] sm:$0xff]  }
  0x17   :  { %673 = vst.msk [vmem:[%s1547_s1] sm:$0xf] %vm672_vm0, %v656_v29  ;;  %v1055_v49 = vunpack.c.l.bf16 %v1292_v37  ;;  %v159_v51 = vmax.f32 %v78_v39, %v896_v40  ;;  %v960_v52 = vunpack.c.h.bf16 %v1142_v10  ;;  %v835_v56 = vunpack.c.l.bf16 %v1111_v42  ;;  %v1372_v39 = vld [vmem:[%s1546_s0 + $0x120] sm:$0xff]  }
  0x18   :  { %674 = vst.msk [vmem:[%s1547_s1 + $0x4] sm:$0xf] %vm672_vm0, %v657_v27  ;;  %v658_v53 = vpack.c.bf16 %v642_v43, %v642_v43  ;;  %v562_v54 = vmax.f32 %v481_v44, %v1052_v22  ;;  %v401_v55 = vmax.f32 %v320_v45, %v991_v30  ;;  %v992_v59 = vunpack.c.h.bf16 %v1279_v19  ;;  %v1128_v30 = vld [vmem:[%s1546_s0 + $0xa0] sm:$0xff]  }
  0x19   :  { %v240_v58 = vmax.f32 %v159_v51, %v928_v41  ;;  %v867_v60 = vunpack.c.l.bf16 %v1119_v47  ;;  %v899_v61 = vunpack.c.l.bf16 %v1127_v48  ;;  %v1087_v1 = vunpack.c.l.bf16 %v1174_v50 }
  0x1a   :  { %675 = vst.msk [vmem:[%s1547_s1 + $0x8] sm:$0xf] %vm672_vm0, %v658_v53  ;;  %v643_v63 = vmax.f32 %v562_v54, %v1084_v38  ;;  %v482_v0 = vmax.f32 %v401_v55, %v1023_v46  ;;  %v1024_v2 = vunpack.c.h.bf16 %v1287_v31  ;;  %v1056_v4 = vunpack.c.h.bf16 %v1292_v37  ;;  %v1136_v31 = vld [vmem:[%s1546_s0 + $0xe0] sm:$0xff]  }
  0x1b   :  { %v321_v3 = vmax.f32 %v240_v58, %v960_v52  ;;  %v79_v5 = vmax.f32 %v835_v56, %v867_v60  ;;  %v931_v6 = vunpack.c.l.bf16 %v1135_v57  ;;  %v963_v11 = vunpack.c.l.bf16 %v1143_v62  ;;  %v1391_v52 = vld [vmem:[%s1546_s0 + $0x1a0] sm:$0xff]  }
  0x1c   :  { %v659_v9 = vpack.c.bf16 %v643_v63, %v643_v63  ;;  %v563_v10 = vmax.f32 %v482_v0, %v1055_v49  ;;  %v836_v12 = vunpack.c.h.bf16 %v1111_v42  ;;  %v868_v16 = vunpack.c.h.bf16 %v1119_v47  ;;  %v1396_v58 = vld [vmem:[%s1546_s0 + $0x1e0] sm:$0xff]   ;;  %v1113_v0 = vld [vmem:[%s1546_s0 + $0x28] sm:$0xff]  }
  0x1d   :  { %v402_v13 = vmax.f32 %v321_v3, %v992_v59  ;;  %v160_v14 = vmax.f32 %v79_v5, %v899_v61  ;;  %v900_v17 = vunpack.c.h.bf16 %v1127_v48  ;;  %v1088_v20 = vunpack.c.h.bf16 %v1174_v50  ;;  %v1383_v48 = vld [vmem:[%s1546_s0 + $0x160] sm:$0xff]   ;;  %v1121_v5 = vld [vmem:[%s1546_s0 + $0x68] sm:$0xff]  }
  0x1e   :  { %676 = vst.msk [vmem:[%s1547_s1 + $0xc] sm:$0xf] %vm672_vm0, %v659_v9  ;;  %v644_v19 = vmax.f32 %v563_v10, %v1087_v1  ;;  %v995_v21 = vunpack.c.l.bf16 %v1333_v7  ;;  %v1027_v22 = vunpack.c.l.bf16 %v1338_v8  ;;  %v80_v28 = vmax.f32 %v836_v12, %v868_v16  ;;  %v1401_v59 = vld [vmem:[%s1546_s0 + $0x220] sm:$0xff]  }
  0x1f   :  { %v483_v24 = vmax.f32 %v402_v13, %v1024_v2  ;;  %v241_v25 = vmax.f32 %v160_v14, %v931_v6  ;;  %v932_v29 = vunpack.c.h.bf16 %v1135_v57  ;;  %v1059_v33 = vunpack.c.l.bf16 %v1343_v15  ;;  %v1129_v6 = vld [vmem:[%s1546_s0 + $0xa8] sm:$0xff]  }
  0x20   :  { %v660_v32 = vpack.c.bf16 %v644_v19, %v644_v19  ;;  %v964_v27 = vunpack.c.h.bf16 %v1143_v62  ;;  %v839_v34 = vunpack.c.l.bf16 %v1112_v18  ;;  %v161_v37 = vmax.f32 %v80_v28, %v900_v17 }
  0x21   :  { %v564_v35 = vmax.f32 %v483_v24, %v1056_v4  ;;  %v322_v36 = vmax.f32 %v241_v25, %v963_v11  ;;  %v871_v38 = vunpack.c.l.bf16 %v1120_v23  ;;  %v1091_v40 = vunpack.c.l.bf16 %v1360_v26 }
  0x22   :  { %677 = vst.msk [vmem:[%s1547_s1 + $0x10] sm:$0xf] %vm672_vm0, %v660_v32  ;;  %v996_v41 = vunpack.c.h.bf16 %v1333_v7  ;;  %v903_v42 = vunpack.c.l.bf16 %v1128_v30  ;;  %v935_v43 = vunpack.c.l.bf16 %v1136_v31  ;;  %v242_v46 = vmax.f32 %v161_v37, %v932_v29  ;;  %v1446_v37 = vld [vmem:[%s1546_s0 + $0x1e8] sm:$0xff]  }
  0x23   :  { %v645_v44 = vmax.f32 %v564_v35, %v1088_v20  ;;  %v403_v45 = vmax.f32 %v322_v36, %v995_v21  ;;  %v81_v47 = vmax.f32 %v839_v34, %v871_v38  ;;  %v1028_v49 = vunpack.c.h.bf16 %v1338_v8  ;;  %v1145_v20 = vld [vmem:[%s1546_s0 + $0x128] sm:$0xff]  }
  0x24   :  { %v1060_v50 = vunpack.c.h.bf16 %v1343_v15  ;;  %v967_v51 = vunpack.c.l.bf16 %v1372_v39  ;;  %v840_v53 = vunpack.c.h.bf16 %v1112_v18  ;;  %v323_v56 = vmax.f32 %v242_v46, %v964_v27  ;;  %v1137_v15 = vld [vmem:[%s1546_s0 + $0xe8] sm:$0xff]  }
  0x25   :  { %v661_v54 = vpack.c.bf16 %v645_v44, %v645_v44  ;;  %v484_v55 = vmax.f32 %v403_v45, %v1027_v22  ;;  %v162_v57 = vmax.f32 %v81_v47, %v903_v42  ;;  %v1092_v60 = vunpack.c.h.bf16 %v1360_v26  ;;  %v1441_v36 = vld [vmem:[%s1546_s0 + $0x1a8] sm:$0xff]  }
  0x26   :  { %v999_v61 = vunpack.c.l.bf16 %v1383_v48  ;;  %v872_v62 = vunpack.c.h.bf16 %v1120_v23  ;;  %v904_v63 = vunpack.c.h.bf16 %v1128_v30  ;;  %v404_v2 = vmax.f32 %v323_v56, %v996_v41  ;;  %v1153_v30 = vld [vmem:[%s1546_s0 + $0x168] sm:$0xff]  }
  0x27   :  { %678 = vst.msk [vmem:[%s1547_s1 + $0x14] sm:$0xf] %vm672_vm0, %v661_v54  ;;  %v565_v1 = vmax.f32 %v484_v55, %v1059_v33  ;;  %v243_v3 = vmax.f32 %v162_v57, %v935_v43  ;;  %v1031_v4 = vunpack.c.l.bf16 %v1391_v52  ;;  %v1063_v7 = vunpack.c.l.bf16 %v1396_v58  ;;  %v1177_v57 = vld [vmem:[%s1546_s0 + $0x228] sm:$0xff]  }
  0x28   :  { %v1095_v8 = vunpack.c.l.bf16 %v1401_v59  ;;  %v82_v9 = vmax.f32 %v840_v53, %v872_v62  ;;  %v936_v10 = vunpack.c.h.bf16 %v1136_v31  ;;  %v485_v12 = vmax.f32 %v404_v2, %v1028_v49  ;;  %v1122_v49 = vld [vmem:[%s1546_s0 + $0x70] sm:$0xff]  }
  0x29   :  { %v646_v11 = vmax.f32 %v565_v1, %v1091_v40  ;;  %v324_v13 = vmax.f32 %v243_v3, %v967_v51  ;;  %v843_v14 = vunpack.c.l.bf16 %v1113_v0  ;;  %v968_v17 = vunpack.c.h.bf16 %v1372_v39 }
  0x2a   :  { %v163_v16 = vmax.f32 %v82_v9, %v904_v63  ;;  %v875_v18 = vunpack.c.l.bf16 %v1121_v5  ;;  %v907_v19 = vunpack.c.l.bf16 %v1129_v6  ;;  %v566_v22 = vmax.f32 %v485_v12, %v1060_v50  ;;  %v1130_v50 = vld [vmem:[%s1546_s0 + $0xb0] sm:$0xff]  }
  0x2b   :  { %v662_v21 = vpack.c.bf16 %v646_v11, %v646_v11  ;;  %v405_v23 = vmax.f32 %v324_v13, %v999_v61  ;;  %v1000_v24 = vunpack.c.h.bf16 %v1383_v48  ;;  %v1032_v26 = vunpack.c.h.bf16 %v1391_v52  ;;  %v1114_v48 = vld [vmem:[%s1546_s0 + $0x30] sm:$0xff]  }
  0x2c   :  { %v244_v25 = vmax.f32 %v163_v16, %v936_v10  ;;  %v83_v28 = vmax.f32 %v843_v14, %v875_v18  ;;  %v939_v29 = vunpack.c.l.bf16 %v1137_v15  ;;  %v647_v31 = vmax.f32 %v566_v22, %v1092_v60  ;;  %v1138_v61 = vld [vmem:[%s1546_s0 + $0xf0] sm:$0xff]  }
  0x2d   :  { %679 = vst.msk [vmem:[%s1547_s1 + $0x18] sm:$0xf] %vm672_vm0, %v662_v21  ;;  %v486_v32 = vmax.f32 %v405_v23, %v1031_v4  ;;  %v1064_v33 = vunpack.c.h.bf16 %v1396_v58  ;;  %v971_v27 = vunpack.c.l.bf16 %v1145_v20  ;;  %v844_v38 = vunpack.c.h.bf16 %v1113_v0  ;;  %v1154_v14 = vld [vmem:[%s1546_s0 + $0x170] sm:$0xff]  }
  0x2e   :  { %v325_v34 = vmax.f32 %v244_v25, %v968_v17  ;;  %v164_v35 = vmax.f32 %v83_v28, %v907_v19  ;;  %v876_v39 = vunpack.c.h.bf16 %v1121_v5  ;;  %v663_v40 = vpack.c.bf16 %v647_v31, %v647_v31  ;;  %v1146_v5 = vld [vmem:[%s1546_s0 + $0x130] sm:$0xff]   ;;  %v1123_v31 = vld [vmem:[%s1546_s0 + $0x78] sm:$0xff]  }
  0x2f   :  { %v567_v41 = vmax.f32 %v486_v32, %v1063_v7  ;;  %v1003_v42 = vunpack.c.l.bf16 %v1153_v30  ;;  %v908_v43 = vunpack.c.h.bf16 %v1129_v6  ;;  %v940_v47 = vunpack.c.h.bf16 %v1137_v15  ;;  %v1162_v17 = vld [vmem:[%s1546_s0 + $0x1b0] sm:$0xff]  }
  0x30   :  { %v406_v44 = vmax.f32 %v325_v34, %v1000_v24  ;;  %v245_v45 = vmax.f32 %v164_v35, %v939_v29  ;;  %v84_v46 = vmax.f32 %v844_v38, %v876_v39  ;;  %680 = vst.msk [vmem:[%s1547_s1 + $0x1c] sm:$0xf] %vm672_vm0, %v663_v40  ;;  %v1096_v52 = vunpack.c.h.bf16 %v1401_v59  ;;  %v1170_v23 = vld [vmem:[%s1546_s0 + $0x1f0] sm:$0xff]   ;;  %v1131_v35 = vld [vmem:[%s1546_s0 + $0xb8] sm:$0xff]  }
  0x31   :  { %v648_v51 = vmax.f32 %v567_v41, %v1095_v8  ;;  %v1035_v53 = vunpack.c.l.bf16 %v1441_v36  ;;  %v1067_v54 = vunpack.c.l.bf16 %v1446_v37  ;;  %v972_v60 = vunpack.c.h.bf16 %v1145_v20  ;;  %v1178_v38 = vld [vmem:[%s1546_s0 + $0x230] sm:$0xff]   ;;  %v1139_v41 = vld [vmem:[%s1546_s0 + $0xf8] sm:$0xff]  }
  0x32   :  { %v487_v55 = vmax.f32 %v406_v44, %v1032_v26  ;;  %v326_v56 = vmax.f32 %v245_v45, %v971_v27  ;;  %v165_v58 = vmax.f32 %v84_v46, %v908_v43  ;;  %v847_v63 = vunpack.c.l.bf16 %v1114_v48 }
  0x33   :  { %v664_v62 = vpack.c.bf16 %v648_v51, %v648_v51  ;;  %v879_v0 = vunpack.c.l.bf16 %v1122_v49  ;;  %v911_v59 = vunpack.c.l.bf16 %v1130_v50  ;;  %v1004_v4 = vunpack.c.h.bf16 %v1153_v30  ;;  %v1115_v30 = vld [vmem:[%s1546_s0 + $0x38] sm:$0xff]  }
  0x34   :  { %v568_v1 = vmax.f32 %v487_v55, %v1064_v33  ;;  %v407_v2 = vmax.f32 %v326_v56, %v1003_v42  ;;  %v246_v3 = vmax.f32 %v165_v58, %v940_v47  ;;  %v1099_v6 = vunpack.c.l.bf16 %v1177_v57 }
  0x35   :  { %681 = vst.msk [vmem:[%s1547_s1 + $0x20] sm:$0xf] %vm672_vm0, %v664_v62  ;;  %v1036_v7 = vunpack.c.h.bf16 %v1441_v36  ;;  %v85_v8 = vmax.f32 %v847_v63, %v879_v0  ;;  %v943_v9 = vunpack.c.l.bf16 %v1138_v61  ;;  %v1068_v13 = vunpack.c.h.bf16 %v1446_v37 }
  0x36   :  { %v649_v10 = vmax.f32 %v568_v1, %v1096_v52  ;;  %v488_v11 = vmax.f32 %v407_v2, %v1035_v53  ;;  %v327_v12 = vmax.f32 %v246_v3, %v972_v60  ;;  %v975_v16 = vunpack.c.l.bf16 %v1146_v5  ;;  %v1155_v60 = vld [vmem:[%s1546_s0 + $0x178] sm:$0xff]  }
  0x37   :  { %v166_v15 = vmax.f32 %v85_v8, %v911_v59  ;;  %v848_v18 = vunpack.c.h.bf16 %v1114_v48  ;;  %v880_v19 = vunpack.c.h.bf16 %v1122_v49  ;;  %v912_v24 = vunpack.c.h.bf16 %v1130_v50  ;;  %v1147_v50 = vld [vmem:[%s1546_s0 + $0x138] sm:$0xff]  }
  0x38   :  { %v665_v20 = vpack.c.bf16 %v649_v10, %v649_v10  ;;  %v569_v21 = vmax.f32 %v488_v11, %v1067_v54  ;;  %v408_v22 = vmax.f32 %v327_v12, %v1004_v4  ;;  %v1007_v26 = vunpack.c.l.bf16 %v1154_v14  ;;  %v1163_v2 = vld [vmem:[%s1546_s0 + $0x1b8] sm:$0xff]  }
  0x39   :  { %v247_v25 = vmax.f32 %v166_v15, %v943_v9  ;;  %v86_v28 = vmax.f32 %v848_v18, %v880_v19  ;;  %v944_v29 = vunpack.c.h.bf16 %v1138_v61  ;;  %v1100_v27 = vunpack.c.h.bf16 %v1177_v57  ;;  %v1171_v10 = vld [vmem:[%s1546_s0 + $0x1f8] sm:$0xff]  }
  0x3a   :  { %682 = vst.msk [vmem:[%s1547_s1 + $0x24] sm:$0xf] %vm672_vm0, %v665_v20  ;;  %v650_v32 = vmax.f32 %v569_v21, %v1099_v6  ;;  %v489_v33 = vmax.f32 %v408_v22, %v1036_v7  ;;  %v1039_v34 = vunpack.c.l.bf16 %v1162_v17  ;;  %v1071_v37 = vunpack.c.l.bf16 %v1170_v23 }
  0x3b   :  { %v328_v36 = vmax.f32 %v247_v25, %v975_v16  ;;  %v167_v39 = vmax.f32 %v86_v28, %v912_v24  ;;  %v976_v40 = vunpack.c.h.bf16 %v1146_v5  ;;  %v851_v44 = vunpack.c.l.bf16 %v1115_v30 }
  0x3c   :  { %v666_v42 = vpack.c.bf16 %v650_v32, %v650_v32  ;;  %v570_v43 = vmax.f32 %v489_v33, %v1068_v13  ;;  %v883_v45 = vunpack.c.l.bf16 %v1123_v31  ;;  %v1008_v48 = vunpack.c.h.bf16 %v1154_v14 }
  0x3d   :  { %v409_v46 = vmax.f32 %v328_v36, %v1007_v26  ;;  %v248_v47 = vmax.f32 %v167_v39, %v944_v29  ;;  %v915_v49 = vunpack.c.l.bf16 %v1131_v35  ;;  %v1103_v52 = vunpack.c.l.bf16 %v1178_v38 }
  0x3e   :  { %683 = vst.msk [vmem:[%s1547_s1 + $0x28] sm:$0xf] %vm672_vm0, %v666_v42  ;;  %v651_v51 = vmax.f32 %v570_v43, %v1100_v27  ;;  %v87_v53 = vmax.f32 %v851_v44, %v883_v45  ;;  %v947_v54 = vunpack.c.l.bf16 %v1139_v41  ;;  %v1040_v57 = vunpack.c.h.bf16 %v1162_v17  ;;  %v1179_v17 = vld [vmem:[%s1546_s0 + $0x238] sm:$0xff]  }
  0x3f   :  { %v490_v55 = vmax.f32 %v409_v46, %v1039_v34  ;;  %v329_v56 = vmax.f32 %v248_v47, %v976_v40  ;;  %v1072_v58 = vunpack.c.h.bf16 %v1170_v23  ;;  %v979_v63 = vunpack.c.l.bf16 %v1147_v50 }
  0x40   :  { %v667_v61 = vpack.c.bf16 %v651_v51, %v651_v51  ;;  %v168_v62 = vmax.f32 %v87_v53, %v915_v49  ;;  %v852_v0 = vunpack.c.h.bf16 %v1115_v30  ;;  %v884_v3 = vunpack.c.h.bf16 %v1123_v31 }
  0x41   :  { %v571_v59 = vmax.f32 %v490_v55, %v1071_v37  ;;  %v410_v1 = vmax.f32 %v329_v56, %v1008_v48  ;;  %v916_v4 = vunpack.c.h.bf16 %v1131_v35  ;;  %v1104_v5 = vunpack.c.h.bf16 %v1178_v38 }
  0x42   :  { %684 = vst.msk [vmem:[%s1547_s1 + $0x2c] sm:$0xf] %vm672_vm0, %v667_v61  ;;  %v249_v6 = vmax.f32 %v168_v62, %v947_v54  ;;  %v1011_v7 = vunpack.c.l.bf16 %v1155_v60  ;;  %v88_v11 = vmax.f32 %v852_v0, %v884_v3  ;;  %v948_v12 = vunpack.c.h.bf16 %v1139_v41 }
  0x43   :  { %v652_v8 = vmax.f32 %v571_v59, %v1103_v52  ;;  %v491_v9 = vmax.f32 %v410_v1, %v1040_v57  ;;  %v1043_v14 = vunpack.c.l.bf16 %v1163_v2  ;;  %v980_v19 = vunpack.c.h.bf16 %v1147_v50 }
  0x44   :  { %v330_v13 = vmax.f32 %v249_v6, %v979_v63  ;;  %v169_v18 = vmax.f32 %v88_v11, %v916_v4  ;;  %v1075_v21 = vunpack.c.l.bf16 %v1171_v10  ;;  %v1012_v24 = vunpack.c.h.bf16 %v1155_v60 }
  0x45   :  { %v668_v15 = vpack.c.bf16 %v652_v8, %v652_v8  ;;  %v572_v16 = vmax.f32 %v491_v9, %v1072_v58  ;;  %v1107_v26 = vunpack.c.l.bf16 %v1179_v17  ;;  %v1044_v30 = vunpack.c.h.bf16 %v1163_v2 }
  0x46   :  { %v411_v20 = vmax.f32 %v330_v13, %v1011_v7  ;;  %v250_v23 = vmax.f32 %v169_v18, %v948_v12  ;;  %v1076_v33 = vunpack.c.h.bf16 %v1171_v10  ;;  %v1108_v35 = vunpack.c.h.bf16 %v1179_v17 }
  0x47   :  { %685 = vst.msk [vmem:[%s1547_s1 + $0x30] sm:$0xf] %vm672_vm0, %v668_v15  ;;  %v653_v22 = vmax.f32 %v572_v16, %v1104_v5 }
  0x48   :  { %v492_v25 = vmax.f32 %v411_v20, %v1043_v14  ;;  %v331_v29 = vmax.f32 %v250_v23, %v980_v19 }
  0x49   :  { %v669_v28 = vpack.c.bf16 %v653_v22, %v653_v22 }
  0x4a   :  { %v573_v31 = vmax.f32 %v492_v25, %v1075_v21  ;;  %v412_v32 = vmax.f32 %v331_v29, %v1012_v24 }
  0x4b   :  { %686 = vst.msk [vmem:[%s1547_s1 + $0x34] sm:$0xf] %vm672_vm0, %v669_v28 }
  0x4c   :  { %v654_v27 = vmax.f32 %v573_v31, %v1107_v26  ;;  %v493_v34 = vmax.f32 %v412_v32, %v1044_v30 }
  0x4e   :  { %v670_v36 = vpack.c.bf16 %v654_v27, %v654_v27  ;;  %v574_v37 = vmax.f32 %v493_v34, %v1076_v33 }
  0x50   :  { %687 = vst.msk [vmem:[%s1547_s1 + $0x38] sm:$0xf] %vm672_vm0, %v670_v36  ;;  %v655_v38 = vmax.f32 %v574_v37, %v1108_v35 }
  0x52   :  { %v671_v39 = vpack.c.bf16 %v655_v38, %v655_v38 }
  0x54   :  { %688 = vst.msk [vmem:[%s1547_s1 + $0x3c] sm:$0xf] %vm672_vm0, %v671_v39 }

// kernel: rgbd_forward.11
= control target key start
LH: loop header
LB: loop body
LE: loop exit
PB: predicated region body
PF: predicated region fallthrough
CT: control target
= control target key end

     0   :  { %s117_s0 = inlined_call_operand.vmem [shape: bf16[9,8,128], index: 0, kind: input, shape index: {}]   ;;  %s118_s1 = inlined_call_operand.vmem [shape: bf16[8,128], index: 1, kind: output, shape index: {}]  }
   0x1   :  { %v71_v0 = vld [vmem:[%s117_s0] sm:$0xff]   ;;  %v86_v1 = vld [vmem:[%s117_s0 + $0x8] sm:$0xff]   ;;  %v87_v5 = vld [vmem:[%s117_s0 + $0x10] sm:$0xff]  }
   0x2   :  { %v72_v2 = vunpack.c.l.bf16 %v71_v0  ;;  %v73_v3 = vunpack.c.h.bf16 %v71_v0  ;;  %v76_v4 = vunpack.c.l.bf16 %v86_v1  ;;  %v77_v7 = vunpack.c.h.bf16 %v86_v1  ;;  %v88_v10 = vld [vmem:[%s117_s0 + $0x18] sm:$0xff]   ;;  %v69_v15 = vld [vmem:[%s117_s0 + $0x20] sm:$0xf] }
   0x3   :  { %v80_v9 = vunpack.c.l.bf16 %v87_v5  ;;  %v81_v12 = vunpack.c.h.bf16 %v87_v5  ;;  %v84_v14 = vunpack.c.l.bf16 %v88_v10  ;;  %v85_v17 = vunpack.c.h.bf16 %v88_v10 }
   0x4   :  { %v13_v6 = vmax.f32 %v72_v2, %v73_v3  ;;  %v54_v19 = vunpack.c.l.bf16 %v69_v15 }
   0x6   :  { %v19_v8 = vmax.f32 %v13_v6, %v76_v4 }
   0x8   :  { %v25_v11 = vmax.f32 %v19_v8, %v77_v7 }
   0xa   :  { %v31_v13 = vmax.f32 %v25_v11, %v80_v9 }
   0xc   :  { %v37_v16 = vmax.f32 %v31_v13, %v81_v12 }
   0xe   :  { %v43_v18 = vmax.f32 %v37_v16, %v84_v14 }
  0x10   :  { %v49_v20 = vmax.f32 %v43_v18, %v85_v17 }
  0x12   :  { %v55_v21 = vmax.f32 %v49_v20, %v54_v19 }
  0x14   :  { %v56_v22 = vpack.c.bf16 %v55_v21, %v55_v21 }
  0x16   :  { %57 = vst [vmem:[%s118_s1] sm:$0xf] %v56_v22 }

// kernel: rgbd_forward.10
= control target key start
LH: loop header
LB: loop body
LE: loop exit
PB: predicated region body
PF: predicated region fallthrough
CT: control target
= control target key end

     0   :  { %s2656_s1 = inlined_call_operand.vmem [shape: bf16[1792,128], index: 1, kind: input, shape index: {}]   ;;  %s2657_s0 = inlined_call_operand.vmem [shape: bf16[32,1792], index: 0, kind: input, shape index: {}]   ;;  %s2658_s2 = inlined_call_operand.vmem [shape: f32[1,128], index: 2, kind: input, shape index: {}]   ;;  %s2659_s3 = inlined_call_operand.vmem [shape: bf16[32,128], index: 3, kind: output, shape index: {}]  }
   0x1   :  { %v1990_v0 = vld [vmem:[%s2656_s1 + $0x38] sm:$0xff]  ;;  %v1989_v4 = vld [vmem:[%s2656_s1 + $0x30] sm:$0xff]  ;;  %v1988_v8 = vld [vmem:[%s2656_s1 + $0x28] sm:$0xff] }
   0x2   :  { %v1998_v1 = vld [vmem:[%s2656_s1 + $0x78] sm:$0xff]  ;;  %1090 = vmatpush.bf16.msra.mxu0 %v1990_v0  ;;  %v1997_v5 = vld [vmem:[%s2656_s1 + $0x70] sm:$0xff]  ;;  %v1996_v9 = vld [vmem:[%s2656_s1 + $0x68] sm:$0xff] }
   0x3   :  { %v2006_v2 = vld [vmem:[%s2656_s1 + $0xb8] sm:$0xff]  ;;  %1109 = vmatpush.bf16.msra.mxu1 %v1998_v1  ;;  %v2005_v6 = vld [vmem:[%s2656_s1 + $0xb0] sm:$0xff]  ;;  %v2004_v10 = vld [vmem:[%s2656_s1 + $0xa8] sm:$0xff] }
   0x4   :  { %v2014_v3 = vld [vmem:[%s2656_s1 + $0xf8] sm:$0xff]  ;;  %1128 = vmatpush.bf16.msra.mxu2 %v2006_v2  ;;  %v2013_v7 = vld [vmem:[%s2656_s1 + $0xf0] sm:$0xff]  ;;  %v2012_v11 = vld [vmem:[%s2656_s1 + $0xe8] sm:$0xff] }
   0x5   :  { %1147 = vmatpush.bf16.msra.mxu3 %v2014_v3  ;;  %v1987_v12 = vld [vmem:[%s2656_s1 + $0x20] sm:$0xff]  ;;  %v1986_v16 = vld [vmem:[%s2656_s1 + $0x18] sm:$0xff]  ;;  %v1985_v20 = vld [vmem:[%s2656_s1 + $0x10] sm:$0xff] }
   0x6   :  { %1091 = vmatpush.bf16.msra.mxu0 %v1989_v4  ;;  %v1995_v13 = vld [vmem:[%s2656_s1 + $0x60] sm:$0xff]  ;;  %v1994_v17 = vld [vmem:[%s2656_s1 + $0x58] sm:$0xff]  ;;  %v1993_v21 = vld [vmem:[%s2656_s1 + $0x50] sm:$0xff] }
   0x7   :  { %1110 = vmatpush.bf16.msra.mxu1 %v1997_v5  ;;  %v2003_v14 = vld [vmem:[%s2656_s1 + $0xa0] sm:$0xff]  ;;  %v2002_v18 = vld [vmem:[%s2656_s1 + $0x98] sm:$0xff]  ;;  %v2001_v22 = vld [vmem:[%s2656_s1 + $0x90] sm:$0xff] }
   0x8   :  { %1129 = vmatpush.bf16.msra.mxu2 %v2005_v6  ;;  %v2011_v15 = vld [vmem:[%s2656_s1 + $0xe0] sm:$0xff]  ;;  %v2010_v19 = vld [vmem:[%s2656_s1 + $0xd8] sm:$0xff]  ;;  %v2009_v23 = vld [vmem:[%s2656_s1 + $0xd0] sm:$0xff] }
   0x9   :  { %1148 = vmatpush.bf16.msra.mxu3 %v2013_v7  ;;  %v1984_v24 = vld [vmem:[%s2656_s1 + $0x8] sm:$0xff]  ;;  %v1983_v28 = vld [vmem:[%s2656_s1] sm:$0xff]  ;;  %v1962_v33 = vld [vmem:[%s2657_s0 + $0x34] sm:$0xf0] }
   0xa   :  { %1092 = vmatpush.bf16.msra.mxu0 %v1988_v8  ;;  %v1992_v25 = vld [vmem:[%s2656_s1 + $0x48] sm:$0xff]  ;;  %v1991_v29 = vld [vmem:[%s2656_s1 + $0x40] sm:$0xff]  ;;  %v1399_v35 = vld [vmem:[%s2657_s0 + $0x38] sm:$0xf0] }
   0xb   :  { %1111 = vmatpush.bf16.msra.mxu1 %v1996_v9  ;;  %v2000_v26 = vld [vmem:[%s2656_s1 + $0x88] sm:$0xff]  ;;  %v1999_v30 = vld [vmem:[%s2656_s1 + $0x80] sm:$0xff]  ;;  %v2038_v40 = vld [vmem:[%s2656_s1 + $0x1b8] sm:$0xff] }
   0xc   :  { %1130 = vmatpush.bf16.msra.mxu2 %v2004_v10  ;;  %v2008_v27 = vld [vmem:[%s2656_s1 + $0xc8] sm:$0xff]  ;;  %v2007_v31 = vld [vmem:[%s2656_s1 + $0xc0] sm:$0xff]  ;;  %v2022_v41 = vld [vmem:[%s2656_s1 + $0x138] sm:$0xff] }
   0xd   :  { %1149 = vmatpush.bf16.msra.mxu3 %v2012_v11  ;;  %v1397_v32 = vld [vmem:[%s2657_s0] sm:$0xf]  ;;  %v1955_v34 = vld [vmem:[%s2657_s0 + $0x4] sm:$0xf]  ;;  %v1405_v36 = vld [vmem:[%s2657_s0 + $0x8] sm:$0xf] }
   0xe   :  { %1093 = vmatpush.bf16.msra.mxu0 %v1987_v12  ;;  %v1963_v37 = vld [vmem:[%s2657_s0 + $0x3c] sm:$0xf0]  ;;  %v1956_v38 = vld [vmem:[%s2657_s0 + $0xc] sm:$0xf]  ;;  %v1407_v39 = vld [vmem:[%s2657_s0 + $0x40] sm:$0xf0]  ;;  %v1398_v42 = vor.u32 %v1962_v33, %v1397_v32  ;;  %v1402_v43 = vor.u32 %v1955_v34, %v1399_v35 }
   0xf   :  { %1112 = vmatpush.bf16.msra.mxu1 %v1995_v13  ;;  %v1406_v44 = vor.u32 %v1963_v37, %v1405_v36  ;;  %v1410_v45 = vor.u32 %v1956_v38, %v1407_v39  ;;  %v2030_v46 = vld [vmem:[%s2656_s1 + $0x178] sm:$0xff]  ;;  %v2037_v48 = vld [vmem:[%s2656_s1 + $0x1b0] sm:$0xff]  ;;  %v2036_v52 = vld [vmem:[%s2656_s1 + $0x1a8] sm:$0xff] }
  0x10   :  { %1131 = vmatpush.bf16.msra.mxu2 %v2003_v14  ;;  %v2046_v47 = vld [vmem:[%s2656_s1 + $0x1f8] sm:$0xff]  ;;  %v2021_v49 = vld [vmem:[%s2656_s1 + $0x130] sm:$0xff]  ;;  %v2020_v53 = vld [vmem:[%s2656_s1 + $0x128] sm:$0xff] }
  0x11   :  { %1150 = vmatpush.bf16.msra.mxu3 %v2011_v15  ;;  %v2029_v50 = vld [vmem:[%s2656_s1 + $0x170] sm:$0xff]  ;;  %v2028_v54 = vld [vmem:[%s2656_s1 + $0x168] sm:$0xff]  ;;  %v2035_v56 = vld [vmem:[%s2656_s1 + $0x1a0] sm:$0xff] }
  0x12   :  { %1094 = vmatpush.bf16.msra.mxu0 %v1986_v16  ;;  %v2045_v51 = vld [vmem:[%s2656_s1 + $0x1f0] sm:$0xff]  ;;  %v2044_v55 = vld [vmem:[%s2656_s1 + $0x1e8] sm:$0xff]  ;;  %v2019_v57 = vld [vmem:[%s2656_s1 + $0x120] sm:$0xff] }
  0x13   :  { %1113 = vmatpush.bf16.msra.mxu1 %v1994_v17  ;;  %v2027_v58 = vld [vmem:[%s2656_s1 + $0x160] sm:$0xff]  ;;  %v1453_v60 = vld [vmem:[%s2657_s0 + $0x70] sm:$0xf]  ;;  %v1976_v61 = vld [vmem:[%s2657_s0 + $0xa4] sm:$0xf0] }
  0x14   :  { %1132 = vmatpush.bf16.msra.mxu2 %v2002_v18  ;;  %v2043_v59 = vld [vmem:[%s2656_s1 + $0x1e0] sm:$0xff]  ;;  %v1969_v62 = vld [vmem:[%s2657_s0 + $0x74] sm:$0xf]  ;;  %v1455_v63 = vld [vmem:[%s2657_s0 + $0xa8] sm:$0xf0]  ;;  %v1454_v6 = vor.u32 %v1976_v61, %v1453_v60 }
  0x15   :  { %1151 = vmatpush.bf16.msra.mxu3 %v2010_v19  ;;  %v1461_v0 = vld [vmem:[%s2657_s0 + $0x78] sm:$0xf]  ;;  %v1977_v1 = vld [vmem:[%s2657_s0 + $0xac] sm:$0xf0]  ;;  %v1970_v2 = vld [vmem:[%s2657_s0 + $0x7c] sm:$0xf]  ;;  %v1458_v7 = vor.u32 %v1969_v62, %v1455_v63 }
  0x16   :  { %1095 = vmatpush.bf16.msra.mxu0 %v1985_v20  ;;  %v1463_v3 = vld [vmem:[%s2657_s0 + $0xb0] sm:$0xf0]  ;;  %v2034_v4 = vld [vmem:[%s2656_s1 + $0x198] sm:$0xff]  ;;  %v1462_v8 = vor.u32 %v1977_v1, %v1461_v0  ;;  %v2032_v16 = vld [vmem:[%s2656_s1 + $0x188] sm:$0xff] }
  0x17   :  { %1114 = vmatpush.bf16.msra.mxu1 %v1993_v21  ;;  %v2018_v5 = vld [vmem:[%s2656_s1 + $0x118] sm:$0xff]  ;;  %v1466_v9 = vor.u32 %v1970_v2, %v1463_v3  ;;  %v2033_v12 = vld [vmem:[%s2656_s1 + $0x190] sm:$0xff]  ;;  %v2016_v17 = vld [vmem:[%s2656_s1 + $0x108] sm:$0xff] }
  0x18   :  { %1133 = vmatpush.bf16.msra.mxu2 %v2001_v22  ;;  %v2026_v10 = vld [vmem:[%s2656_s1 + $0x158] sm:$0xff]  ;;  %v2017_v13 = vld [vmem:[%s2656_s1 + $0x110] sm:$0xff]  ;;  %v2024_v18 = vld [vmem:[%s2656_s1 + $0x148] sm:$0xff] }
  0x19   :  { %1152 = vmatpush.bf16.msra.mxu3 %v2009_v23  ;;  %v2042_v11 = vld [vmem:[%s2656_s1 + $0x1d8] sm:$0xff]  ;;  %v2025_v14 = vld [vmem:[%s2656_s1 + $0x150] sm:$0xff]  ;;  %v2040_v19 = vld [vmem:[%s2656_s1 + $0x1c8] sm:$0xff] }
  0x1a   :  { %1096 = vmatpush.bf16.msra.mxu0 %v1984_v24  ;;  %v2041_v15 = vld [vmem:[%s2656_s1 + $0x1d0] sm:$0xff]  ;;  %v2031_v20 = vld [vmem:[%s2656_s1 + $0x180] sm:$0xff]  ;;  %v1958_v32 = vld [vmem:[%s2657_s0 + $0x1c] sm:$0xf] }
  0x1b   :  { %1115 = vmatpush.bf16.msra.mxu1 %v1992_v25  ;;  %v2015_v21 = vld [vmem:[%s2656_s1 + $0x100] sm:$0xff]  ;;  %v1413_v24 = vld [vmem:[%s2657_s0 + $0x10] sm:$0xf]  ;;  %v2070_v25 = vld [vmem:[%s2656_s1 + $0x2b8] sm:$0xff] }
  0x1c   :  { %1134 = vmatpush.bf16.msra.mxu2 %v2000_v26  ;;  %v2023_v22 = vld [vmem:[%s2656_s1 + $0x140] sm:$0xff]  ;;  %v2054_v26 = vld [vmem:[%s2656_s1 + $0x238] sm:$0xff]  ;;  %v1423_v33 = vld [vmem:[%s2657_s0 + $0x50] sm:$0xf0] }
  0x1d   :  { %1153 = vmatpush.bf16.msra.mxu3 %v2008_v27  ;;  %v2039_v23 = vld [vmem:[%s2656_s1 + $0x1c0] sm:$0xff]  ;;  %v1964_v27 = vld [vmem:[%s2657_s0 + $0x44] sm:$0xf0]  ;;  %v2062_v34 = vld [vmem:[%s2656_s1 + $0x278] sm:$0xff] }
  0x1e   :  { %1097 = vmatpush.bf16.msra.mxu0 %v1983_v28  ;;  %v1957_v28 = vld [vmem:[%s2657_s0 + $0x14] sm:$0xf]  ;;  %v2078_v35 = vld [vmem:[%s2656_s1 + $0x2f8] sm:$0xff]  ;;  %v1414_v36 = vor.u32 %v1964_v27, %v1413_v24  ;;  %v1479_v61 = vld [vmem:[%s2657_s0 + $0xc0] sm:$0xf0] }
  0x1f   :  { %1116 = vmatpush.bf16.msra.mxu1 %v1991_v29  ;;  %v1415_v29 = vld [vmem:[%s2657_s0 + $0x48] sm:$0xf0]  ;;  %v2069_v37 = vld [vmem:[%s2656_s1 + $0x2b0] sm:$0xff]  ;;  %v2050_v60 = vld [vmem:[%s2656_s1 + $0x218] sm:$0xff] }
  0x20   :  { %1135 = vmatpush.bf16.msra.mxu2 %v1999_v30  ;;  %v1421_v30 = vld [vmem:[%s2657_s0 + $0x18] sm:$0xf]  ;;  %v1418_v38 = vor.u32 %v1957_v28, %v1415_v29  ;;  %v2065_v1 = vld [vmem:[%s2656_s1 + $0x290] sm:$0xff]  ;;  %v1967_v24 = vld [vmem:[%s2657_s0 + $0x5c] sm:$0xf0] }
  0x21   :  { %1154 = vmatpush.bf16.msra.mxu3 %v2007_v31  ;;  %1098 = vmatmul.bf16.vlgmr.msra.gmra.mxu0 %v1398_v42  ;;  %v1965_v31 = vld [vmem:[%s2657_s0 + $0x4c] sm:$0xf0]  ;;  %v2058_v62 = vld [vmem:[%s2656_s1 + $0x258] sm:$0xff] }
  0x22   :  { %1166 = vmatpush.bf16.msrb.mxu0 %v2022_v41  ;;  %1117 = vmatmul.bf16.vlgmr.msra.gmra.mxu1 %v1402_v43  ;;  %v1422_v39 = vor.u32 %v1965_v31, %v1421_v30  ;;  %v2053_v41 = vld [vmem:[%s2656_s1 + $0x230] sm:$0xff]  ;;  %v2074_v63 = vld [vmem:[%s2656_s1 + $0x2d8] sm:$0xff] }
  0x23   :  { %1136 = vmatmul.bf16.vlgmr.msra.gmra.mxu2 %v1406_v44  ;;  %1185 = vmatpush.bf16.msrb.mxu1 %v2030_v46  ;;  %v2061_v42 = vld [vmem:[%s2656_s1 + $0x270] sm:$0xff]  ;;  %v2068_v44 = vld [vmem:[%s2656_s1 + $0x2a8] sm:$0xff] }
  0x24   :  { %1204 = vmatpush.bf16.msrb.mxu2 %v2038_v40  ;;  %1155 = vmatmul.bf16.vlgmr.msra.gmra.mxu3 %v1410_v45  ;;  %v1426_v40 = vor.u32 %v1958_v32, %v1423_v33  ;;  %v2077_v43 = vld [vmem:[%s2656_s1 + $0x2f0] sm:$0xff]  ;;  %v2052_v45 = vld [vmem:[%s2656_s1 + $0x228] sm:$0xff] }
  0x25   :  { %1223 = vmatpush.bf16.msrb.mxu3 %v2046_v47  ;;  %v2060_v46 = vld [vmem:[%s2656_s1 + $0x268] sm:$0xff]  ;;  %v2093_v28 = vld [vmem:[%s2656_s1 + $0x370] sm:$0xff] }
  0x26   :  { %1167 = vmatpush.bf16.msrb.mxu0 %v2021_v49  ;;  %v2076_v47 = vld [vmem:[%s2656_s1 + $0x2e8] sm:$0xff]  ;;  %v2051_v49 = vld [vmem:[%s2656_s1 + $0x220] sm:$0xff] }
  0x27   :  { %1186 = vmatpush.bf16.msrb.mxu1 %v2029_v50  ;;  %v2059_v50 = vld [vmem:[%s2656_s1 + $0x260] sm:$0xff]  ;;  %v2084_v32 = vld [vmem:[%s2656_s1 + $0x328] sm:$0xff] }
  0x28   :  { %1205 = vmatpush.bf16.msrb.mxu2 %v2037_v48  ;;  %v2067_v48 = vld [vmem:[%s2656_s1 + $0x2a0] sm:$0xff]  ;;  %v2092_v33 = vld [vmem:[%s2656_s1 + $0x368] sm:$0xff] }
  0x29   :  { %1224 = vmatpush.bf16.msrb.mxu3 %v2045_v51  ;;  %v2075_v51 = vld [vmem:[%s2656_s1 + $0x2e0] sm:$0xff] }
  0x2a   :  { %1168 = vmatpush.bf16.msrb.mxu0 %v2020_v53  ;;  %v1978_v53 = vld [vmem:[%s2657_s0 + $0xb4] sm:$0xf0] }
  0x2b   :  { %1187 = vmatpush.bf16.msrb.mxu1 %v2028_v54  ;;  %v2066_v54 = vld [vmem:[%s2656_s1 + $0x298] sm:$0xff] }
  0x2c   :  { %1206 = vmatpush.bf16.msrb.mxu2 %v2036_v52  ;;  %v1469_v52 = vld [vmem:[%s2657_s0 + $0x80] sm:$0xf] }
  0x2d   :  { %1225 = vmatpush.bf16.msrb.mxu3 %v2044_v55  ;;  %v1971_v55 = vld [vmem:[%s2657_s0 + $0x84] sm:$0xf]  ;;  %v1470_v0 = vor.u32 %v1978_v53, %v1469_v52  ;;  %v2080_v52 = vld [vmem:[%s2656_s1 + $0x308] sm:$0xff] }
  0x2e   :  { %1169 = vmatpush.bf16.msrb.mxu0 %v2019_v57  ;;  %v1477_v57 = vld [vmem:[%s2657_s0 + $0x88] sm:$0xf] }
  0x2f   :  { %1188 = vmatpush.bf16.msrb.mxu1 %v2027_v58  ;;  %v1979_v58 = vld [vmem:[%s2657_s0 + $0xbc] sm:$0xf0]  ;;  %v2088_v53 = vld [vmem:[%s2656_s1 + $0x348] sm:$0xff] }
  0x30   :  { %1207 = vmatpush.bf16.msrb.mxu2 %v2035_v56  ;;  %v1471_v56 = vld [vmem:[%s2657_s0 + $0xb8] sm:$0xf0]  ;;  %v1478_v3 = vor.u32 %v1979_v58, %v1477_v57  ;;  %v1968_v57 = vld [vmem:[%s2657_s0 + $0x64] sm:$0xf0]  ;;  %v1501_v58 = vld [vmem:[%s2657_s0 + $0xa0] sm:$0xf] }
  0x31   :  { %1226 = vmatpush.bf16.msrb.mxu3 %v2043_v59  ;;  %1103 = vmatmul.bf16.gmra.mxu0 %v1454_v6  ;;  %v1972_v59 = vld [vmem:[%s2657_s0 + $0x8c] sm:$0xf]  ;;  %v1474_v2 = vor.u32 %v1971_v55, %v1471_v56  ;;  %v2057_v6 = vld [vmem:[%s2656_s1 + $0x250] sm:$0xff]  ;;  %v2087_v55 = vld [vmem:[%s2656_s1 + $0x340] sm:$0xff] }
  0x32   :  { %1170 = vmatpush.bf16.msrb.mxu0 %v2018_v5  ;;  %1122 = vmatmul.bf16.gmra.mxu1 %v1458_v7  ;;  %v2049_v5 = vld [vmem:[%s2656_s1 + $0x210] sm:$0xff] }
  0x33   :  { %1141 = vmatmul.bf16.gmra.mxu2 %v1462_v8  ;;  %1189 = vmatpush.bf16.msrb.mxu1 %v2026_v10  ;;  %v2073_v7 = vld [vmem:[%s2656_s1 + $0x2d0] sm:$0xff]  ;;  %v2064_v8 = vld [vmem:[%s2656_s1 + $0x288] sm:$0xff] }
  0x34   :  { %1208 = vmatpush.bf16.msrb.mxu2 %v2034_v4  ;;  %1160 = vmatmul.bf16.gmra.mxu3 %v1466_v9  ;;  %v1482_v4 = vor.u32 %v1972_v59, %v1479_v61  ;;  %v2048_v9 = vld [vmem:[%s2656_s1 + $0x208] sm:$0xff]  ;;  %v1445_v56 = vld [vmem:[%s2657_s0 + $0x30] sm:$0xf]  ;;  %v1982_v59 = vld [vmem:[%s2657_s0 + $0xd4] sm:$0xf0] }
  0x35   :  { %1227 = vmatpush.bf16.msrb.mxu3 %v2042_v11  ;;  %v2056_v10 = vld [vmem:[%s2656_s1 + $0x248] sm:$0xff] }
  0x36   :  { %1171 = vmatpush.bf16.msrb.mxu0 %v2017_v13  ;;  %v2072_v11 = vld [vmem:[%s2656_s1 + $0x2c8] sm:$0xff]  ;;  %v2086_v13 = vld [vmem:[%s2656_s1 + $0x338] sm:$0xff] }
  0x37   :  { %1190 = vmatpush.bf16.msrb.mxu1 %v2025_v14  ;;  %v2047_v14 = vld [vmem:[%s2656_s1 + $0x200] sm:$0xff]  ;;  %v1447_v61 = vld [vmem:[%s2657_s0 + $0x68] sm:$0xf0] }
  0x38   :  { %1209 = vmatpush.bf16.msrb.mxu2 %v2033_v12  ;;  %v2063_v12 = vld [vmem:[%s2656_s1 + $0x280] sm:$0xff] }
  0x39   :  { %1228 = vmatpush.bf16.msrb.mxu3 %v2041_v15  ;;  %v2055_v15 = vld [vmem:[%s2656_s1 + $0x240] sm:$0xff] }
  0x3a   :  { %1172 = vmatpush.bf16.msrb.mxu0 %v2016_v17  ;;  %v1429_v17 = vld [vmem:[%s2657_s0 + $0x20] sm:$0xf] }
  0x3b   :  { %1191 = vmatpush.bf16.msrb.mxu1 %v2024_v18  ;;  %v2094_v18 = vld [vmem:[%s2656_s1 + $0x378] sm:$0xff] }
  0x3c   :  { %1210 = vmatpush.bf16.msrb.mxu2 %v2032_v16  ;;  %v2071_v16 = vld [vmem:[%s2656_s1 + $0x2c0] sm:$0xff] }
  0x3d   :  { %1229 = vmatpush.bf16.msrb.mxu3 %v2040_v19  ;;  %v1966_v19 = vld [vmem:[%s2657_s0 + $0x54] sm:$0xf0] }
  0x3e   :  { %1173 = vmatpush.bf16.msrb.mxu0 %v2015_v21  ;;  %v2085_v21 = vld [vmem:[%s2656_s1 + $0x330] sm:$0xff]  ;;  %v1430_v27 = vor.u32 %v1966_v19, %v1429_v17 }
  0x3f   :  { %1192 = vmatpush.bf16.msrb.mxu1 %v2023_v22  ;;  %v1431_v22 = vld [vmem:[%s2657_s0 + $0x58] sm:$0xf0] }
  0x40   :  { %1211 = vmatpush.bf16.msrb.mxu2 %v2031_v20  ;;  %v1959_v20 = vld [vmem:[%s2657_s0 + $0x24] sm:$0xf] }
  0x41   :  { %1230 = vmatpush.bf16.msrb.mxu3 %v2039_v23  ;;  %1174 = vmatmul.bf16.vlgmr.msrb.gmra.mxu0 %v1414_v36  ;;  %v1437_v23 = vld [vmem:[%s2657_s0 + $0x28] sm:$0xf]  ;;  %v1434_v29 = vor.u32 %v1959_v20, %v1431_v22  ;;  %v2082_v36 = vld [vmem:[%s2656_s1 + $0x318] sm:$0xff] }
  0x42   :  { %1242 = vmatpush.bf16.msra.mxu0 %v2054_v26  ;;  %1193 = vmatmul.bf16.vlgmr.msrb.gmra.mxu1 %v1418_v38  ;;  %v1439_v26 = vld [vmem:[%s2657_s0 + $0x60] sm:$0xf0]  ;;  %v1438_v30 = vor.u32 %v1967_v24, %v1437_v23  ;;  %v1485_v38 = vld [vmem:[%s2657_s0 + $0x90] sm:$0xf] }
  0x43   :  { %1261 = vmatpush.bf16.msra.mxu1 %v2062_v34  ;;  %1212 = vmatmul.bf16.vlgmr.msrb.gmra.mxu2 %v1422_v39  ;;  %v2083_v34 = vld [vmem:[%s2656_s1 + $0x320] sm:$0xff]  ;;  %v1980_v39 = vld [vmem:[%s2657_s0 + $0xc4] sm:$0xf0] }
  0x44   :  { %1280 = vmatpush.bf16.msra.mxu2 %v2070_v25  ;;  %1231 = vmatmul.bf16.vlgmr.msrb.gmra.mxu3 %v1426_v40  ;;  %v1960_v25 = vld [vmem:[%s2657_s0 + $0x2c] sm:$0xf]  ;;  %v1973_v40 = vld [vmem:[%s2657_s0 + $0x94] sm:$0xf] }
  0x45   :  { %1299 = vmatpush.bf16.msra.mxu3 %v2078_v35  ;;  %v1442_v31 = vor.u32 %v1960_v25, %v1439_v26  ;;  %v2091_v35 = vld [vmem:[%s2656_s1 + $0x360] sm:$0xff] }
  0x46   :  { %1243 = vmatpush.bf16.msra.mxu0 %v2053_v41  ;;  %v1487_v41 = vld [vmem:[%s2657_s0 + $0xc8] sm:$0xf0] }
  0x47   :  { %1262 = vmatpush.bf16.msra.mxu1 %v2061_v42  ;;  %v1493_v42 = vld [vmem:[%s2657_s0 + $0x98] sm:$0xf] }
  0x48   :  { %1281 = vmatpush.bf16.msra.mxu2 %v2069_v37  ;;  %v2090_v37 = vld [vmem:[%s2656_s1 + $0x358] sm:$0xff] }
  0x49   :  { %1300 = vmatpush.bf16.msra.mxu3 %v2077_v43  ;;  %v1981_v43 = vld [vmem:[%s2657_s0 + $0xcc] sm:$0xf0] }
  0x4a   :  { %1244 = vmatpush.bf16.msra.mxu0 %v2052_v45  ;;  %v1495_v45 = vld [vmem:[%s2657_s0 + $0xd0] sm:$0xf0] }
  0x4b   :  { %1263 = vmatpush.bf16.msra.mxu1 %v2060_v46  ;;  %v2081_v46 = vld [vmem:[%s2656_s1 + $0x310] sm:$0xff] }
  0x4c   :  { %1282 = vmatpush.bf16.msra.mxu2 %v2068_v44  ;;  %v1974_v44 = vld [vmem:[%s2657_s0 + $0x9c] sm:$0xf] }
  0x4d   :  { %1301 = vmatpush.bf16.msra.mxu3 %v2076_v47  ;;  %v1486_v47 = vor.u32 %v1980_v39, %v1485_v38 }
  0x4e   :  { %1245 = vmatpush.bf16.msra.mxu0 %v2051_v49  ;;  %v1490_v49 = vor.u32 %v1973_v40, %v1487_v41 }
  0x4f   :  { %1264 = vmatpush.bf16.msra.mxu1 %v2059_v50  ;;  %v1494_v50 = vor.u32 %v1981_v43, %v1493_v42 }
  0x50   :  { %1283 = vmatpush.bf16.msra.mxu2 %v2067_v48  ;;  %v2089_v48 = vld [vmem:[%s2656_s1 + $0x350] sm:$0xff] }
  0x51   :  { %1302 = vmatpush.bf16.msra.mxu3 %v2075_v51  ;;  %1179 = vmatmul.bf16.gmra.mxu0 %v1470_v0  ;;  %v1498_v51 = vor.u32 %v1974_v44, %v1495_v45  ;;  %v1446_v0 = vor.u32 %v1968_v57, %v1445_v56 }
  0x52   :  { %1246 = vmatpush.bf16.msra.mxu0 %v2050_v60  ;;  %1198 = vmatmul.bf16.gmra.mxu1 %v1474_v2  ;;  %v1961_v60 = vld [vmem:[%s2657_s0 + $0x34] sm:$0xf] }
  0x53   :  { %1265 = vmatpush.bf16.msra.mxu1 %v2058_v62  ;;  %1217 = vmatmul.bf16.gmra.mxu2 %v1478_v3  ;;  %v1975_v62 = vld [vmem:[%s2657_s0 + $0xa4] sm:$0xf]  ;;  %v1450_v2 = vor.u32 %v1961_v60, %v1447_v61 }
  0x54   :  { %1284 = vmatpush.bf16.msra.mxu2 %v2066_v54  ;;  %1236 = vmatmul.bf16.gmra.mxu3 %v1482_v4  ;;  %v2079_v54 = vld [vmem:[%s2656_s1 + $0x300] sm:$0xff] }
  0x55   :  { %1303 = vmatpush.bf16.msra.mxu3 %v2074_v63  ;;  %v1503_v63 = vld [vmem:[%s2657_s0 + $0xd8] sm:$0xf0] }
  0x56   :  { %1247 = vmatpush.bf16.msra.mxu0 %v2049_v5  ;;  %v1506_v3 = vor.u32 %v1975_v62, %v1503_v63 }
  0x57   :  { %1266 = vmatpush.bf16.msra.mxu1 %v2057_v6 }
  0x58   :  { %1285 = vmatpush.bf16.msra.mxu2 %v2065_v1  ;;  %v1502_v1 = vor.u32 %v1982_v59, %v1501_v58 }
  0x59   :  { %1304 = vmatpush.bf16.msra.mxu3 %v2073_v7 }
  0x5a   :  { %1248 = vmatpush.bf16.msra.mxu0 %v2048_v9 }
  0x5b   :  { %1267 = vmatpush.bf16.msra.mxu1 %v2056_v10 }
  0x5c   :  { %1286 = vmatpush.bf16.msra.mxu2 %v2064_v8 }
  0x5d   :  { %1305 = vmatpush.bf16.msra.mxu3 %v2072_v11 }
  0x5e   :  { %1249 = vmatpush.bf16.msra.mxu0 %v2047_v14 }
  0x5f   :  { %1268 = vmatpush.bf16.msra.mxu1 %v2055_v15 }
  0x60   :  { %1287 = vmatpush.bf16.msra.mxu2 %v2063_v12 }
  0x61   :  { %1306 = vmatpush.bf16.msra.mxu3 %v2071_v16  ;;  %1250 = vmatmul.bf16.vlgmr.msra.gmra.mxu0 %v1430_v27 }
  0x62   :  { %1318 = vmatpush.bf16.msrb.mxu0 %v2086_v13  ;;  %1269 = vmatmul.bf16.vlgmr.msra.gmra.mxu1 %v1434_v29 }
  0x63   :  { %1337 = vmatpush.bf16.msrb.mxu1 %v2094_v18  ;;  %1288 = vmatmul.bf16.vlgmr.msra.gmra.mxu2 %v1438_v30 }
  0x64   :  { %2106 = vmatpush.bf16.msrb.mxu2 %v2086_v13  ;;  %1307 = vmatmul.bf16.vlgmr.msra.gmra.mxu3 %v1442_v31 }
  0x65   :  { %2114 = vmatpush.bf16.msrb.mxu3 %v2094_v18 }
  0x66   :  { %1319 = vmatpush.bf16.msrb.mxu0 %v2085_v21 }
  0x67   :  { %1338 = vmatpush.bf16.msrb.mxu1 %v2093_v28 }
  0x68   :  { %2107 = vmatpush.bf16.msrb.mxu2 %v2085_v21 }
  0x69   :  { %2115 = vmatpush.bf16.msrb.mxu3 %v2093_v28 }
  0x6a   :  { %1320 = vmatpush.bf16.msrb.mxu0 %v2084_v32 }
  0x6b   :  { %1339 = vmatpush.bf16.msrb.mxu1 %v2092_v33 }
  0x6c   :  { %2108 = vmatpush.bf16.msrb.mxu2 %v2084_v32 }
  0x6d   :  { %2116 = vmatpush.bf16.msrb.mxu3 %v2092_v33 }
  0x6e   :  { %1321 = vmatpush.bf16.msrb.mxu0 %v2083_v34 }
  0x6f   :  { %1340 = vmatpush.bf16.msrb.mxu1 %v2091_v35 }
  0x70   :  { %2109 = vmatpush.bf16.msrb.mxu2 %v2083_v34 }
  0x71   :  { %2117 = vmatpush.bf16.msrb.mxu3 %v2091_v35  ;;  %1255 = vmatmul.bf16.gmra.mxu0 %v1486_v47 }
  0x72   :  { %1322 = vmatpush.bf16.msrb.mxu0 %v2082_v36  ;;  %1274 = vmatmul.bf16.gmra.mxu1 %v1490_v49 }
  0x73   :  { %1341 = vmatpush.bf16.msrb.mxu1 %v2090_v37  ;;  %1293 = vmatmul.bf16.gmra.mxu2 %v1494_v50 }
  0x74   :  { %2110 = vmatpush.bf16.msrb.mxu2 %v2082_v36  ;;  %1312 = vmatmul.bf16.gmra.mxu3 %v1498_v51 }
  0x75   :  { %2118 = vmatpush.bf16.msrb.mxu3 %v2090_v37 }
  0x76   :  { %1323 = vmatpush.bf16.msrb.mxu0 %v2081_v46 }
  0x77   :  { %1342 = vmatpush.bf16.msrb.mxu1 %v2089_v48 }
  0x78   :  { %2111 = vmatpush.bf16.msrb.mxu2 %v2081_v46 }
  0x79   :  { %2119 = vmatpush.bf16.msrb.mxu3 %v2089_v48 }
  0x7a   :  { %1324 = vmatpush.bf16.msrb.mxu0 %v2080_v52 }
  0x7b   :  { %1343 = vmatpush.bf16.msrb.mxu1 %v2088_v53 }
  0x7c   :  { %2112 = vmatpush.bf16.msrb.mxu2 %v2080_v52 }
  0x7d   :  { %2120 = vmatpush.bf16.msrb.mxu3 %v2088_v53 }
  0x7e   :  { %1325 = vmatpush.bf16.msrb.mxu0 %v2079_v54 }
  0x7f   :  { %1344 = vmatpush.bf16.msrb.mxu1 %v2087_v55 }
  0x80   :  { %2113 = vmatpush.bf16.msrb.mxu2 %v2079_v54 }
  0x81   :  { %2121 = vmatpush.bf16.msrb.mxu3 %v2087_v55  ;;  %1326 = vmatmul.bf16.vlgmr.msrb.gmra.mxu0 %v1446_v0 }
  0x82   :  { %1345 = vmatmul.bf16.vlgmr.msrb.gmra.mxu1 %v1450_v2 }
  0x83   :  { %1331 = vmatmul.bf16.vlgmr.msrb.gmra.mxu2 %v1502_v1 }
  0x84   :  { %1350 = vmatmul.bf16.vlgmr.msrb.gmra.mxu3 %v1506_v3 }
  0x9e   :  { %v1099_v4 = vpop.f32.mrf.mxu0 }
  0x9f   :  { %v1118_v5 = vpop.f32.mrf.mxu1 }
  0xa0   :  { %v1119_v6 = vadd.f32 %v1118_v5, %v1099_v4 }
  0xa6   :  { %v1137_v7 = vpop.f32.mrf.mxu2  ;;  %v1101_v10 = vpop.f32.mrf.mxu0 }
  0xa7   :  { %v1156_v8 = vpop.f32.mrf.mxu3  ;;  %v1138_v9 = vadd.f32 %v1137_v7, %v1119_v6  ;;  %v1120_v11 = vpop.f32.mrf.mxu1 }
  0xa8   :  { %v1121_v12 = vadd.f32 %v1120_v11, %v1101_v10 }
  0xa9   :  { %v1157_v13 = vadd.f32 %v1156_v8, %v1138_v9 }
  0xae   :  { %v1139_v14 = vpop.f32.mrf.mxu2  ;;  %v1104_v17 = vpop.f32.mrf.mxu0 }
  0xaf   :  { %v1158_v15 = vpop.f32.mrf.mxu3  ;;  %v1140_v16 = vadd.f32 %v1139_v14, %v1121_v12  ;;  %v1123_v18 = vpop.f32.mrf.mxu1 }
  0xb0   :  { %v1124_v19 = vadd.f32 %v1123_v18, %v1104_v17 }
  0xb1   :  { %v1159_v20 = vadd.f32 %v1158_v15, %v1140_v16 }
  0xb6   :  { %v1142_v21 = vpop.f32.mrf.mxu2  ;;  %v1106_v24 = vpop.f32.mrf.mxu0 }
  0xb7   :  { %v1161_v22 = vpop.f32.mrf.mxu3  ;;  %v1143_v23 = vadd.f32 %v1142_v21, %v1124_v19  ;;  %v1125_v25 = vpop.f32.mrf.mxu1 }
  0xb8   :  { %v1126_v54 = vadd.f32 %v1125_v25, %v1106_v24 }
  0xb9   :  { %v1162_v26 = vadd.f32 %v1161_v22, %v1143_v23 }
  0xbe   :  { %v1144_v27 = vpop.f32.mrf.mxu2  ;;  %v1175_v29 = vpop.f32.mrf.mxu0 }
  0xbf   :  { %v1163_v28 = vpop.f32.mrf.mxu3  ;;  %v1194_v30 = vpop.f32.mrf.mxu1  ;;  %v1176_v51 = vadd.f32 %v1175_v29, %v1157_v13  ;;  %v1145_v60 = vadd.f32 %v1144_v27, %v1126_v54 }
  0xc1   :  { %v1195_v52 = vadd.f32 %v1194_v30, %v1176_v51  ;;  %v1164_v0 = vadd.f32 %v1163_v28, %v1145_v60 }
  0xc6   :  { %v1213_v31 = vpop.f32.mrf.mxu2  ;;  %v1177_v33 = vpop.f32.mrf.mxu0 }
  0xc7   :  { %v1232_v32 = vpop.f32.mrf.mxu3  ;;  %v1196_v34 = vpop.f32.mrf.mxu1  ;;  %v1214_v57 = vadd.f32 %v1213_v31, %v1195_v52  ;;  %v1178_v58 = vadd.f32 %v1177_v33, %v1159_v20 }
  0xc9   :  { %v1233_v62 = vadd.f32 %v1232_v32, %v1214_v57  ;;  %v1197_v63 = vadd.f32 %v1196_v34, %v1178_v58  ;;  %v2122_v32 = vld [vmem:[%s2658_s2] ss:$0 sm:$0xff] }
  0xce   :  { %v1215_v35 = vpop.f32.mrf.mxu2  ;;  %v1180_v37 = vpop.f32.mrf.mxu0 }
  0xcf   :  { %v1234_v36 = vpop.f32.mrf.mxu3  ;;  %v1199_v38 = vpop.f32.mrf.mxu1  ;;  %v1181_v61 = vadd.f32 %v1180_v37, %v1162_v26  ;;  %v1216_v2 = vadd.f32 %v1215_v35, %v1197_v63 }
  0xd1   :  { %v1200_v1 = vadd.f32 %v1199_v38, %v1181_v61  ;;  %v1235_v10 = vadd.f32 %v1234_v36, %v1216_v2 }
  0xd6   :  { %v1218_v39 = vpop.f32.mrf.mxu2  ;;  %v1182_v41 = vpop.f32.mrf.mxu0 }
  0xd7   :  { %v1237_v40 = vpop.f32.mrf.mxu3  ;;  %v1201_v42 = vpop.f32.mrf.mxu1  ;;  %v1219_v5 = vadd.f32 %v1218_v39, %v1200_v1  ;;  %v1183_v6 = vadd.f32 %v1182_v41, %v1164_v0 }
  0xd9   :  { %v1238_v12 = vadd.f32 %v1237_v40, %v1219_v5  ;;  %v1202_v13 = vadd.f32 %v1201_v42, %v1183_v6 }
  0xde   :  { %v1220_v43 = vpop.f32.mrf.mxu2  ;;  %v1251_v45 = vpop.f32.mrf.mxu0 }
  0xdf   :  { %v1239_v44 = vpop.f32.mrf.mxu3  ;;  %v1270_v46 = vpop.f32.mrf.mxu1  ;;  %v1252_v3 = vadd.f32 %v1251_v45, %v1233_v62  ;;  %v1221_v16 = vadd.f32 %v1220_v43, %v1202_v13 }
  0xe1   :  { %v1271_v11 = vadd.f32 %v1270_v46, %v1252_v3  ;;  %v1240_v24 = vadd.f32 %v1239_v44, %v1221_v16 }
  0xe6   :  { %v1289_v47 = vpop.f32.mrf.mxu2  ;;  %v1253_v49 = vpop.f32.mrf.mxu0 }
  0xe7   :  { %v1308_v48 = vpop.f32.mrf.mxu3  ;;  %v1272_v50 = vpop.f32.mrf.mxu1  ;;  %v1290_v14 = vadd.f32 %v1289_v47, %v1271_v11  ;;  %v1254_v15 = vadd.f32 %v1253_v49, %v1235_v10 }
  0xe9   :  { %v1309_v21 = vadd.f32 %v1308_v48, %v1290_v14  ;;  %v1273_v22 = vadd.f32 %v1272_v50, %v1254_v15 }
  0xee   :  { %v1291_v53 = vpop.f32.mrf.mxu2  ;;  %v1256_v56 = vpop.f32.mrf.mxu0 }
  0xef   :  { %v1310_v55 = vpop.f32.mrf.mxu3  ;;  %v1275_v59 = vpop.f32.mrf.mxu1  ;;  %v1257_v17 = vadd.f32 %v1256_v56, %v1238_v12  ;;  %v1292_v26 = vadd.f32 %v1291_v53, %v1273_v22 }
  0xf1   :  { %v1276_v25 = vadd.f32 %v1275_v59, %v1257_v17  ;;  %v1311_v30 = vadd.f32 %v1310_v55, %v1292_v26 }
  0xf6   :  { %v1294_v4 = vpop.f32.mrf.mxu2  ;;  %v1258_v8 = vpop.f32.mrf.mxu0 }
  0xf7   :  { %v1313_v7 = vpop.f32.mrf.mxu3  ;;  %v1277_v9 = vpop.f32.mrf.mxu1  ;;  %v1295_v28 = vadd.f32 %v1294_v4, %v1276_v25  ;;  %v1259_v29 = vadd.f32 %v1258_v8, %v1240_v24 }
  0xf9   :  { %v1314_v34 = vadd.f32 %v1313_v7, %v1295_v28  ;;  %v1278_v35 = vadd.f32 %v1277_v9, %v1259_v29 }
  0xfe   :  { %v1296_v18 = vpop.f32.mrf.mxu2  ;;  %v1327_v20 = vpop.f32.mrf.mxu0 }
  0xff   :  { %v1315_v19 = vpop.f32.mrf.mxu3  ;;  %v1346_v23 = vpop.f32.mrf.mxu1  ;;  %v1328_v27 = vadd.f32 %v1327_v20, %v1309_v21  ;;  %v1297_v39 = vadd.f32 %v1296_v18, %v1278_v35 }
 0x101   :  { %v1347_v31 = vadd.f32 %v1346_v23, %v1328_v27  ;;  %v1316_v45 = vadd.f32 %v1315_v19, %v1297_v39 }
 0x103   :  { %v1375_v42 = vadd.f32 %v2122_v32, %v1347_v31 }
 0x105   :  { %v1379_v47 = vmax.f32 %v1375_v42, 0.0 }
 0x106   :  { %v1332_v33 = vpop.f32.mrf.mxu2  ;;  %v1329_v37 = vpop.f32.mrf.mxu0 }
 0x107   :  { %v1351_v36 = vpop.f32.mrf.mxu3  ;;  %v1330_v38 = vadd.f32 %v1329_v37, %v1311_v30  ;;  %v1333_v40 = vadd.f32 %v1332_v33, %v1314_v34  ;;  %v1348_v41 = vpop.f32.mrf.mxu1 }
 0x109   :  { %v1349_v43 = vadd.f32 %v1348_v41, %v1330_v38  ;;  %v1352_v46 = vadd.f32 %v1351_v36, %v1333_v40 }
 0x10b   :  { %v1376_v44 = vadd.f32 %v2122_v32, %v1349_v43  ;;  %v1377_v53 = vadd.f32 %v2122_v32, %v1352_v46 }
 0x10d   :  { %v1380_v48 = vmax.f32 %v1376_v44, 0.0  ;;  %v1381_v56 = vmax.f32 %v1377_v53, 0.0 }
 0x10e   :  { %v1334_v49 = vpop.f32.mrf.mxu2 }
 0x10f   :  { %v1335_v50 = vadd.f32 %v1334_v49, %v1316_v45  ;;  %v2098_v51 = vpack.c.bf16 %v1380_v48, %v1379_v47  ;;  %v1353_v52 = vpop.f32.mrf.mxu3 }
 0x111   :  { %v1354_v54 = vadd.f32 %v1353_v52, %v1335_v50  ;;  %2099 = vst [vmem:[%s2659_s3] sm:$0xff] %v2098_v51  }
 0x113   :  { %v1378_v55 = vadd.f32 %v2122_v32, %v1354_v54 }
 0x115   :  { %v1382_v57 = vmax.f32 %v1378_v55, 0.0 }
 0x117   :  { %v2103_v58 = vpack.c.bf16 %v1382_v57, %v1381_v56 }
 0x119   :  { %2105 = vst [vmem:[%s2659_s3 + $0x8] sm:$0xff] %v2103_v58  }

// kernel: rgbd_forward.12
= control target key start
LH: loop header
LB: loop body
LE: loop exit
PB: predicated region body
PF: predicated region fallthrough
CT: control target
= control target key end

     0   :  { %s2395_s12 = smov 0   ;;  %s2397_s13 = smov 0   ;;  %s2889_s0 = inlined_call_operand.vmem [shape: bf16[8,1280], index: 0, kind: input, shape index: {}]   ;;  %s2890_s1 = inlined_call_operand.vmem [shape: bf16[1280,256], index: 1, kind: input, shape index: {}]   ;;  %s2891_s2 = inlined_call_operand.vmem [shape: f32[1,256], index: 2, kind: input, shape index: {}]   ;;  %s2892_s3 = inlined_call_operand.vmem [shape: bf16[8,256], index: 3, kind: output, shape index: {}]  }
   0x1   :  { %s2399_s14 = smov 0   ;;  %s2401_s15 = smov 0  }
   0x2   :  { %s2403_s16 = smov 0  }
   0x3 LB: > { %s28_s17 = sadd.s32 1, %s2369_s15  ;;  %p76_p1 = scmp.ne.s32.totalorder %s2361_s13, %s2357_s12  ;;  %s2373_s16 = sphi %s2403_s16, %s13_s16   ;;  %s2369_s15 = sphi %s2401_s15, %s2896_s15   ;;  %s2365_s14 = sphi %s2399_s14, %s2895_s14   ;;  %s2361_s13 = sphi %s2397_s13, %s2894_s13   ;;  %s2357_s12 = sphi %s2395_s12, %s2893_s12  }
   0x4   : > { %p30_p0 = scmp.ge.s32.totalorder %s28_s17, 2  ;;  %p77_p2 = scmp.eq.s32.totalorder %s2373_s16, 0 }
   0x5   : > { %s69_s19 = sadd.s32 1, %s2361_s13  ;;  %p1886_p5 = scmp.ge.s32.totalorder %s2373_s16, 2 }
   0x6   : > { %s2898_s17 = smov (%p30_p0, %s28_s17), 0  ;;  %p78_p3 = por %p77_p2, %p76_p1 }
   0x7   : > { %s65_s18 = ssub.s32 %s2369_s15, %s2898_s17  ;;  %169 = sbr.rel (%p1886_p5) target bundleno = 177 (0xb1), region = 20 }
   0x8   : > { %p67_p4 = scmp.eq.s32.totalorder %s65_s18, 0 }
   0xa   : > { %s2430_s20 = scalar_select %p67_p4, %s2361_s13, %s69_s19  }
   0xc   : > { %172 = sbr.rel (!%p78_p3) target bundleno = 177 (0xb1), region = 24  ;;  %s174_s21 = sand.u32 (%p78_p3), 1, %s2361_s13  }
   0xd   : > { %s1887_s22 = sshll.u32 (%p78_p3), %s2369_s15, 2  ;;  %s2292_s23 = smul.u32 (%p78_p3), 640, %s174_s21 }
   0xe   : > { %s2438_s26 = scalar_lea.vmem (%p78_p3), %s2890_s1, %s1887_s22 }
   0xf   : > { %v198_v0 = vld [vmem:[%s2438_s26] sm:$0xf] (%p78_p3)  ;;  %v200_v1 = vld [vmem:[%s2438_s26 + $0x8] sm:$0xf] (%p78_p3)  ;;  %v202_v2 = vld [vmem:[%s2438_s26 + $0x10] sm:$0xf] (%p78_p3) }
  0x10   : > { %s2443_s27 = scalar_lea.vmem (%p78_p3), [#allocation3], %s2292_s23  ;;  %v204_v3 = vld [vmem:[%s2438_s26 + $0x18] sm:$0xf] (%p78_p3)  ;;  %v206_v4 = vld [vmem:[%s2438_s26 + $0x20] sm:$0xf] (%p78_p3) }
  0x11   : > { %199 = vst [vmem:[%s2443_s27] sm:$0xf] %v198_v0  ;;  %v208_v5 = vld [vmem:[%s2438_s26 + $0x28] sm:$0xf]  ;;  %v210_v6 = vld [vmem:[%s2438_s26 + $0x30] sm:$0xf] }
  0x12   : > { %201 = vst [vmem:[%s2443_s27 + $0x4] sm:$0xf] %v200_v1  ;;  %v212_v7 = vld [vmem:[%s2438_s26 + $0x38] sm:$0xf]  ;;  %v214_v8 = vld [vmem:[%s2438_s26 + $0x40] sm:$0xf] }
  0x13   : > { %203 = vst [vmem:[%s2443_s27 + $0x8] sm:$0xf] %v202_v2  ;;  %v216_v9 = vld [vmem:[%s2438_s26 + $0x48] sm:$0xf]  ;;  %v218_v10 = vld [vmem:[%s2438_s26 + $0x50] sm:$0xf] }
  0x14   : > { %205 = vst [vmem:[%s2443_s27 + $0xc] sm:$0xf] %v204_v3  ;;  %v220_v11 = vld [vmem:[%s2438_s26 + $0x58] sm:$0xf]  ;;  %v222_v12 = vld [vmem:[%s2438_s26 + $0x60] sm:$0xf] }
  0x15   : > { %207 = vst [vmem:[%s2443_s27 + $0x10] sm:$0xf] %v206_v4  ;;  %v224_v13 = vld [vmem:[%s2438_s26 + $0x68] sm:$0xf]  ;;  %v226_v14 = vld [vmem:[%s2438_s26 + $0x70] sm:$0xf] }
  0x16   : > { %209 = vst [vmem:[%s2443_s27 + $0x14] sm:$0xf] %v208_v5  ;;  %v228_v15 = vld [vmem:[%s2438_s26 + $0x78] sm:$0xf]  ;;  %v230_v16 = vld [vmem:[%s2438_s26 + $0x80] sm:$0xf] }
  0x17   : > { %211 = vst [vmem:[%s2443_s27 + $0x18] sm:$0xf] %v210_v6  ;;  %v232_v17 = vld [vmem:[%s2438_s26 + $0x88] sm:$0xf]  ;;  %v234_v18 = vld [vmem:[%s2438_s26 + $0x90] sm:$0xf] }
  0x18   : > { %213 = vst [vmem:[%s2443_s27 + $0x1c] sm:$0xf] %v212_v7  ;;  %v236_v19 = vld [vmem:[%s2438_s26 + $0x98] sm:$0xf]  ;;  %v238_v20 = vld [vmem:[%s2438_s26 + $0xa0] sm:$0xf] }
  0x19   : > { %215 = vst [vmem:[%s2443_s27 + $0x20] sm:$0xf] %v214_v8  ;;  %v240_v21 = vld [vmem:[%s2438_s26 + $0xa8] sm:$0xf]  ;;  %v242_v22 = vld [vmem:[%s2438_s26 + $0xb0] sm:$0xf] }
  0x1a   : > { %217 = vst [vmem:[%s2443_s27 + $0x24] sm:$0xf] %v216_v9  ;;  %v244_v23 = vld [vmem:[%s2438_s26 + $0xb8] sm:$0xf]  ;;  %v246_v24 = vld [vmem:[%s2438_s26 + $0xc0] sm:$0xf] }
  0x1b   : > { %219 = vst [vmem:[%s2443_s27 + $0x28] sm:$0xf] %v218_v10  ;;  %v248_v25 = vld [vmem:[%s2438_s26 + $0xc8] sm:$0xf]  ;;  %v250_v26 = vld [vmem:[%s2438_s26 + $0xd0] sm:$0xf] }
  0x1c   : > { %221 = vst [vmem:[%s2443_s27 + $0x2c] sm:$0xf] %v220_v11  ;;  %v252_v27 = vld [vmem:[%s2438_s26 + $0xd8] sm:$0xf]  ;;  %v254_v28 = vld [vmem:[%s2438_s26 + $0xe0] sm:$0xf] }
  0x1d   : > { %223 = vst [vmem:[%s2443_s27 + $0x30] sm:$0xf] %v222_v12  ;;  %v256_v29 = vld [vmem:[%s2438_s26 + $0xe8] sm:$0xf]  ;;  %v258_v30 = vld [vmem:[%s2438_s26 + $0xf0] sm:$0xf] }
  0x1e   : > { %225 = vst [vmem:[%s2443_s27 + $0x34] sm:$0xf] %v224_v13  ;;  %v260_v31 = vld [vmem:[%s2438_s26 + $0xf8] sm:$0xf]  ;;  %v262_v32 = vld [vmem:[%s2438_s26 + $0x100] sm:$0xf] }
  0x1f   : > { %227 = vst [vmem:[%s2443_s27 + $0x38] sm:$0xf] %v226_v14  ;;  %v264_v33 = vld [vmem:[%s2438_s26 + $0x108] sm:$0xf]  ;;  %v266_v34 = vld [vmem:[%s2438_s26 + $0x110] sm:$0xf] }
  0x20   : > { %229 = vst [vmem:[%s2443_s27 + $0x3c] sm:$0xf] %v228_v15  ;;  %v268_v35 = vld [vmem:[%s2438_s26 + $0x118] sm:$0xf]  ;;  %v270_v36 = vld [vmem:[%s2438_s26 + $0x120] sm:$0xf] }
  0x21   : > { %231 = vst [vmem:[%s2443_s27 + $0x40] sm:$0xf] %v230_v16  ;;  %v272_v37 = vld [vmem:[%s2438_s26 + $0x128] sm:$0xf]  ;;  %v274_v38 = vld [vmem:[%s2438_s26 + $0x130] sm:$0xf] }
  0x22   : > { %233 = vst [vmem:[%s2443_s27 + $0x44] sm:$0xf] %v232_v17  ;;  %v276_v39 = vld [vmem:[%s2438_s26 + $0x138] sm:$0xf]  ;;  %v278_v40 = vld [vmem:[%s2438_s26 + $0x140] sm:$0xf] }
  0x23   : > { %235 = vst [vmem:[%s2443_s27 + $0x48] sm:$0xf] %v234_v18  ;;  %v280_v41 = vld [vmem:[%s2438_s26 + $0x148] sm:$0xf]  ;;  %v282_v42 = vld [vmem:[%s2438_s26 + $0x150] sm:$0xf] }
  0x24   : > { %237 = vst [vmem:[%s2443_s27 + $0x4c] sm:$0xf] %v236_v19  ;;  %v284_v43 = vld [vmem:[%s2438_s26 + $0x158] sm:$0xf]  ;;  %v286_v44 = vld [vmem:[%s2438_s26 + $0x160] sm:$0xf] }
  0x25   : > { %239 = vst [vmem:[%s2443_s27 + $0x50] sm:$0xf] %v238_v20  ;;  %v288_v45 = vld [vmem:[%s2438_s26 + $0x168] sm:$0xf]  ;;  %v290_v46 = vld [vmem:[%s2438_s26 + $0x170] sm:$0xf] }
  0x26   : > { %241 = vst [vmem:[%s2443_s27 + $0x54] sm:$0xf] %v240_v21  ;;  %v292_v47 = vld [vmem:[%s2438_s26 + $0x178] sm:$0xf]  ;;  %v294_v48 = vld [vmem:[%s2438_s26 + $0x180] sm:$0xf] }
  0x27   : > { %243 = vst [vmem:[%s2443_s27 + $0x58] sm:$0xf] %v242_v22  ;;  %v296_v49 = vld [vmem:[%s2438_s26 + $0x188] sm:$0xf]  ;;  %v298_v50 = vld [vmem:[%s2438_s26 + $0x190] sm:$0xf] }
  0x28   : > { %245 = vst [vmem:[%s2443_s27 + $0x5c] sm:$0xf] %v244_v23  ;;  %v300_v51 = vld [vmem:[%s2438_s26 + $0x198] sm:$0xf]  ;;  %v302_v52 = vld [vmem:[%s2438_s26 + $0x1a0] sm:$0xf] }
  0x29   : > { %247 = vst [vmem:[%s2443_s27 + $0x60] sm:$0xf] %v246_v24  ;;  %v304_v53 = vld [vmem:[%s2438_s26 + $0x1a8] sm:$0xf]  ;;  %v306_v54 = vld [vmem:[%s2438_s26 + $0x1b0] sm:$0xf] }
  0x2a   : > { %249 = vst [vmem:[%s2443_s27 + $0x64] sm:$0xf] %v248_v25  ;;  %v308_v55 = vld [vmem:[%s2438_s26 + $0x1b8] sm:$0xf]  ;;  %v310_v56 = vld [vmem:[%s2438_s26 + $0x1c0] sm:$0xf] }
  0x2b   : > { %251 = vst [vmem:[%s2443_s27 + $0x68] sm:$0xf] %v250_v26  ;;  %v312_v57 = vld [vmem:[%s2438_s26 + $0x1c8] sm:$0xf]  ;;  %v314_v58 = vld [vmem:[%s2438_s26 + $0x1d0] sm:$0xf] }
  0x2c   : > { %253 = vst [vmem:[%s2443_s27 + $0x6c] sm:$0xf] %v252_v27  ;;  %v316_v59 = vld [vmem:[%s2438_s26 + $0x1d8] sm:$0xf]  ;;  %v318_v60 = vld [vmem:[%s2438_s26 + $0x1e0] sm:$0xf] }
  0x2d   : > { %255 = vst [vmem:[%s2443_s27 + $0x70] sm:$0xf] %v254_v28  ;;  %v320_v61 = vld [vmem:[%s2438_s26 + $0x1e8] sm:$0xf]  ;;  %v322_v62 = vld [vmem:[%s2438_s26 + $0x1f0] sm:$0xf] }
  0x2e   : > { %257 = vst [vmem:[%s2443_s27 + $0x74] sm:$0xf] %v256_v29  ;;  %v324_v63 = vld [vmem:[%s2438_s26 + $0x1f8] sm:$0xf]  ;;  %v326_v0 = vld [vmem:[%s2438_s26 + $0x200] sm:$0xf] }
  0x2f   : > { %259 = vst [vmem:[%s2443_s27 + $0x78] sm:$0xf] %v258_v30  ;;  %v328_v1 = vld [vmem:[%s2438_s26 + $0x208] sm:$0xf]  ;;  %v330_v2 = vld [vmem:[%s2438_s26 + $0x210] sm:$0xf] }
  0x30   : > { %261 = vst [vmem:[%s2443_s27 + $0x7c] sm:$0xf] %v260_v31  ;;  %v332_v3 = vld [vmem:[%s2438_s26 + $0x218] sm:$0xf]  ;;  %v334_v4 = vld [vmem:[%s2438_s26 + $0x220] sm:$0xf] }
  0x31   : > { %263 = vst [vmem:[%s2443_s27 + $0x80] sm:$0xf] %v262_v32  ;;  %v336_v5 = vld [vmem:[%s2438_s26 + $0x228] sm:$0xf]  ;;  %v338_v6 = vld [vmem:[%s2438_s26 + $0x230] sm:$0xf] }
  0x32   : > { %265 = vst [vmem:[%s2443_s27 + $0x84] sm:$0xf] %v264_v33  ;;  %v340_v7 = vld [vmem:[%s2438_s26 + $0x238] sm:$0xf]  ;;  %v342_v8 = vld [vmem:[%s2438_s26 + $0x240] sm:$0xf] }
  0x33   : > { %267 = vst [vmem:[%s2443_s27 + $0x88] sm:$0xf] %v266_v34  ;;  %v344_v9 = vld [vmem:[%s2438_s26 + $0x248] sm:$0xf]  ;;  %v346_v10 = vld [vmem:[%s2438_s26 + $0x250] sm:$0xf] }
  0x34   : > { %269 = vst [vmem:[%s2443_s27 + $0x8c] sm:$0xf] %v268_v35  ;;  %v348_v11 = vld [vmem:[%s2438_s26 + $0x258] sm:$0xf]  ;;  %v350_v12 = vld [vmem:[%s2438_s26 + $0x260] sm:$0xf] }
  0x35   : > { %271 = vst [vmem:[%s2443_s27 + $0x90] sm:$0xf] %v270_v36  ;;  %v352_v13 = vld [vmem:[%s2438_s26 + $0x268] sm:$0xf]  ;;  %v354_v14 = vld [vmem:[%s2438_s26 + $0x270] sm:$0xf] }
  0x36   : > { %273 = vst [vmem:[%s2443_s27 + $0x94] sm:$0xf] %v272_v37  ;;  %v356_v15 = vld [vmem:[%s2438_s26 + $0x278] sm:$0xf]  ;;  %v358_v16 = vld [vmem:[%s2438_s26 + $0x280] sm:$0xf] }
  0x37   : > { %275 = vst [vmem:[%s2443_s27 + $0x98] sm:$0xf] %v274_v38  ;;  %v360_v17 = vld [vmem:[%s2438_s26 + $0x288] sm:$0xf]  ;;  %v362_v18 = vld [vmem:[%s2438_s26 + $0x290] sm:$0xf] }
  0x38   : > { %277 = vst [vmem:[%s2443_s27 + $0x9c] sm:$0xf] %v276_v39  ;;  %v364_v19 = vld [vmem:[%s2438_s26 + $0x298] sm:$0xf]  ;;  %v366_v20 = vld [vmem:[%s2438_s26 + $0x2a0] sm:$0xf] }
  0x39   : > { %279 = vst [vmem:[%s2443_s27 + $0xa0] sm:$0xf] %v278_v40  ;;  %v368_v21 = vld [vmem:[%s2438_s26 + $0x2a8] sm:$0xf]  ;;  %v370_v22 = vld [vmem:[%s2438_s26 + $0x2b0] sm:$0xf] }
  0x3a   : > { %281 = vst [vmem:[%s2443_s27 + $0xa4] sm:$0xf] %v280_v41  ;;  %v372_v23 = vld [vmem:[%s2438_s26 + $0x2b8] sm:$0xf]  ;;  %v374_v24 = vld [vmem:[%s2438_s26 + $0x2c0] sm:$0xf] }
  0x3b   : > { %283 = vst [vmem:[%s2443_s27 + $0xa8] sm:$0xf] %v282_v42  ;;  %v376_v25 = vld [vmem:[%s2438_s26 + $0x2c8] sm:$0xf]  ;;  %v378_v26 = vld [vmem:[%s2438_s26 + $0x2d0] sm:$0xf] }
  0x3c   : > { %285 = vst [vmem:[%s2443_s27 + $0xac] sm:$0xf] %v284_v43  ;;  %v380_v27 = vld [vmem:[%s2438_s26 + $0x2d8] sm:$0xf]  ;;  %v382_v28 = vld [vmem:[%s2438_s26 + $0x2e0] sm:$0xf] }
  0x3d   : > { %287 = vst [vmem:[%s2443_s27 + $0xb0] sm:$0xf] %v286_v44  ;;  %v384_v29 = vld [vmem:[%s2438_s26 + $0x2e8] sm:$0xf]  ;;  %v386_v30 = vld [vmem:[%s2438_s26 + $0x2f0] sm:$0xf] }
  0x3e   : > { %289 = vst [vmem:[%s2443_s27 + $0xb4] sm:$0xf] %v288_v45  ;;  %v388_v31 = vld [vmem:[%s2438_s26 + $0x2f8] sm:$0xf]  ;;  %v390_v32 = vld [vmem:[%s2438_s26 + $0x300] sm:$0xf] }
  0x3f   : > { %291 = vst [vmem:[%s2443_s27 + $0xb8] sm:$0xf] %v290_v46  ;;  %v392_v33 = vld [vmem:[%s2438_s26 + $0x308] sm:$0xf]  ;;  %v394_v34 = vld [vmem:[%s2438_s26 + $0x310] sm:$0xf] }
  0x40   : > { %293 = vst [vmem:[%s2443_s27 + $0xbc] sm:$0xf] %v292_v47  ;;  %v396_v35 = vld [vmem:[%s2438_s26 + $0x318] sm:$0xf]  ;;  %v398_v36 = vld [vmem:[%s2438_s26 + $0x320] sm:$0xf] }
  0x41   : > { %295 = vst [vmem:[%s2443_s27 + $0xc0] sm:$0xf] %v294_v48  ;;  %v400_v37 = vld [vmem:[%s2438_s26 + $0x328] sm:$0xf]  ;;  %v402_v38 = vld [vmem:[%s2438_s26 + $0x330] sm:$0xf] }
  0x42   : > { %297 = vst [vmem:[%s2443_s27 + $0xc4] sm:$0xf] %v296_v49  ;;  %v404_v39 = vld [vmem:[%s2438_s26 + $0x338] sm:$0xf]  ;;  %v406_v40 = vld [vmem:[%s2438_s26 + $0x340] sm:$0xf] }
  0x43   : > { %299 = vst [vmem:[%s2443_s27 + $0xc8] sm:$0xf] %v298_v50  ;;  %v408_v41 = vld [vmem:[%s2438_s26 + $0x348] sm:$0xf]  ;;  %v410_v42 = vld [vmem:[%s2438_s26 + $0x350] sm:$0xf] }
  0x44   : > { %301 = vst [vmem:[%s2443_s27 + $0xcc] sm:$0xf] %v300_v51  ;;  %v412_v43 = vld [vmem:[%s2438_s26 + $0x358] sm:$0xf]  ;;  %v414_v44 = vld [vmem:[%s2438_s26 + $0x360] sm:$0xf] }
  0x45   : > { %303 = vst [vmem:[%s2443_s27 + $0xd0] sm:$0xf] %v302_v52  ;;  %v416_v45 = vld [vmem:[%s2438_s26 + $0x368] sm:$0xf]  ;;  %v418_v46 = vld [vmem:[%s2438_s26 + $0x370] sm:$0xf] }
  0x46   : > { %305 = vst [vmem:[%s2443_s27 + $0xd4] sm:$0xf] %v304_v53  ;;  %v420_v47 = vld [vmem:[%s2438_s26 + $0x378] sm:$0xf]  ;;  %v422_v48 = vld [vmem:[%s2438_s26 + $0x380] sm:$0xf] }
  0x47   : > { %307 = vst [vmem:[%s2443_s27 + $0xd8] sm:$0xf] %v306_v54  ;;  %v424_v49 = vld [vmem:[%s2438_s26 + $0x388] sm:$0xf]  ;;  %v426_v50 = vld [vmem:[%s2438_s26 + $0x390] sm:$0xf] }
  0x48   : > { %309 = vst [vmem:[%s2443_s27 + $0xdc] sm:$0xf] %v308_v55  ;;  %v428_v51 = vld [vmem:[%s2438_s26 + $0x398] sm:$0xf]  ;;  %v430_v52 = vld [vmem:[%s2438_s26 + $0x3a0] sm:$0xf] }
  0x49   : > { %311 = vst [vmem:[%s2443_s27 + $0xe0] sm:$0xf] %v310_v56  ;;  %v432_v53 = vld [vmem:[%s2438_s26 + $0x3a8] sm:$0xf]  ;;  %v434_v54 = vld [vmem:[%s2438_s26 + $0x3b0] sm:$0xf] }
  0x4a   : > { %313 = vst [vmem:[%s2443_s27 + $0xe4] sm:$0xf] %v312_v57  ;;  %v436_v55 = vld [vmem:[%s2438_s26 + $0x3b8] sm:$0xf]  ;;  %v438_v56 = vld [vmem:[%s2438_s26 + $0x3c0] sm:$0xf] }
  0x4b   : > { %315 = vst [vmem:[%s2443_s27 + $0xe8] sm:$0xf] %v314_v58  ;;  %v440_v57 = vld [vmem:[%s2438_s26 + $0x3c8] sm:$0xf]  ;;  %v442_v58 = vld [vmem:[%s2438_s26 + $0x3d0] sm:$0xf] }
  0x4c   : > { %317 = vst [vmem:[%s2443_s27 + $0xec] sm:$0xf] %v316_v59  ;;  %v444_v59 = vld [vmem:[%s2438_s26 + $0x3d8] sm:$0xf] }
  0x4d   : > { %319 = vst [vmem:[%s2443_s27 + $0xf0] sm:$0xf] %v318_v60  ;;  %v446_v60 = vld [vmem:[%s2438_s26 + $0x3e0] sm:$0xf] }
  0x4e   : > { %321 = vst [vmem:[%s2443_s27 + $0xf4] sm:$0xf] %v320_v61  ;;  %v448_v61 = vld [vmem:[%s2438_s26 + $0x3e8] sm:$0xf] }
  0x4f   : > { %323 = vst [vmem:[%s2443_s27 + $0xf8] sm:$0xf] %v322_v62  ;;  %v450_v62 = vld [vmem:[%s2438_s26 + $0x3f0] sm:$0xf] }
  0x50   : > { %325 = vst [vmem:[%s2443_s27 + $0xfc] sm:$0xf] %v324_v63  ;;  %v452_v63 = vld [vmem:[%s2438_s26 + $0x3f8] sm:$0xf] }
  0x51   : > { %327 = vst [vmem:[%s2443_s27 + $0x100] sm:$0xf] %v326_v0  ;;  %v454_v0 = vld [vmem:[%s2438_s26 + $0x400] sm:$0xf] }
  0x52   : > { %329 = vst [vmem:[%s2443_s27 + $0x104] sm:$0xf] %v328_v1  ;;  %v456_v1 = vld [vmem:[%s2438_s26 + $0x408] sm:$0xf] }
  0x53   : > { %331 = vst [vmem:[%s2443_s27 + $0x108] sm:$0xf] %v330_v2  ;;  %v458_v2 = vld [vmem:[%s2438_s26 + $0x410] sm:$0xf] }
  0x54   : > { %333 = vst [vmem:[%s2443_s27 + $0x10c] sm:$0xf] %v332_v3  ;;  %v460_v3 = vld [vmem:[%s2438_s26 + $0x418] sm:$0xf] }
  0x55   : > { %335 = vst [vmem:[%s2443_s27 + $0x110] sm:$0xf] %v334_v4  ;;  %v462_v4 = vld [vmem:[%s2438_s26 + $0x420] sm:$0xf] }
  0x56   : > { %337 = vst [vmem:[%s2443_s27 + $0x114] sm:$0xf] %v336_v5  ;;  %v464_v5 = vld [vmem:[%s2438_s26 + $0x428] sm:$0xf] }
  0x57   : > { %339 = vst [vmem:[%s2443_s27 + $0x118] sm:$0xf] %v338_v6  ;;  %v466_v6 = vld [vmem:[%s2438_s26 + $0x430] sm:$0xf] }
  0x58   : > { %341 = vst [vmem:[%s2443_s27 + $0x11c] sm:$0xf] %v340_v7  ;;  %v468_v7 = vld [vmem:[%s2438_s26 + $0x438] sm:$0xf] }
  0x59   : > { %343 = vst [vmem:[%s2443_s27 + $0x120] sm:$0xf] %v342_v8  ;;  %v470_v8 = vld [vmem:[%s2438_s26 + $0x440] sm:$0xf] }
  0x5a   : > { %345 = vst [vmem:[%s2443_s27 + $0x124] sm:$0xf] %v344_v9  ;;  %v472_v9 = vld [vmem:[%s2438_s26 + $0x448] sm:$0xf] }
  0x5b   : > { %347 = vst [vmem:[%s2443_s27 + $0x128] sm:$0xf] %v346_v10  ;;  %v474_v10 = vld [vmem:[%s2438_s26 + $0x450] sm:$0xf] }
  0x5c   : > { %349 = vst [vmem:[%s2443_s27 + $0x12c] sm:$0xf] %v348_v11  ;;  %v476_v11 = vld [vmem:[%s2438_s26 + $0x458] sm:$0xf] }
  0x5d   : > { %351 = vst [vmem:[%s2443_s27 + $0x130] sm:$0xf] %v350_v12  ;;  %v478_v12 = vld [vmem:[%s2438_s26 + $0x460] sm:$0xf] }
  0x5e   : > { %353 = vst [vmem:[%s2443_s27 + $0x134] sm:$0xf] %v352_v13  ;;  %v480_v13 = vld [vmem:[%s2438_s26 + $0x468] sm:$0xf] }
  0x5f   : > { %355 = vst [vmem:[%s2443_s27 + $0x138] sm:$0xf] %v354_v14  ;;  %v482_v14 = vld [vmem:[%s2438_s26 + $0x470] sm:$0xf] }
  0x60   : > { %357 = vst [vmem:[%s2443_s27 + $0x13c] sm:$0xf] %v356_v15  ;;  %v484_v15 = vld [vmem:[%s2438_s26 + $0x478] sm:$0xf] }
  0x61   : > { %359 = vst [vmem:[%s2443_s27 + $0x140] sm:$0xf] %v358_v16  ;;  %v486_v16 = vld [vmem:[%s2438_s26 + $0x480] sm:$0xf] }
  0x62   : > { %361 = vst [vmem:[%s2443_s27 + $0x144] sm:$0xf] %v360_v17  ;;  %v488_v17 = vld [vmem:[%s2438_s26 + $0x488] sm:$0xf] }
  0x63   : > { %363 = vst [vmem:[%s2443_s27 + $0x148] sm:$0xf] %v362_v18  ;;  %v490_v18 = vld [vmem:[%s2438_s26 + $0x490] sm:$0xf] }
  0x64   : > { %365 = vst [vmem:[%s2443_s27 + $0x14c] sm:$0xf] %v364_v19  ;;  %v492_v19 = vld [vmem:[%s2438_s26 + $0x498] sm:$0xf] }
  0x65   : > { %367 = vst [vmem:[%s2443_s27 + $0x150] sm:$0xf] %v366_v20  ;;  %v494_v20 = vld [vmem:[%s2438_s26 + $0x4a0] sm:$0xf] }
  0x66   : > { %369 = vst [vmem:[%s2443_s27 + $0x154] sm:$0xf] %v368_v21  ;;  %v496_v21 = vld [vmem:[%s2438_s26 + $0x4a8] sm:$0xf] }
  0x67   : > { %371 = vst [vmem:[%s2443_s27 + $0x158] sm:$0xf] %v370_v22  ;;  %v498_v22 = vld [vmem:[%s2438_s26 + $0x4b0] sm:$0xf] }
  0x68   : > { %373 = vst [vmem:[%s2443_s27 + $0x15c] sm:$0xf] %v372_v23  ;;  %v500_v23 = vld [vmem:[%s2438_s26 + $0x4b8] sm:$0xf] }
  0x69   : > { %375 = vst [vmem:[%s2443_s27 + $0x160] sm:$0xf] %v374_v24  ;;  %v502_v24 = vld [vmem:[%s2438_s26 + $0x4c0] sm:$0xf] }
  0x6a   : > { %377 = vst [vmem:[%s2443_s27 + $0x164] sm:$0xf] %v376_v25  ;;  %v504_v25 = vld [vmem:[%s2438_s26 + $0x4c8] sm:$0xf] }
  0x6b   : > { %379 = vst [vmem:[%s2443_s27 + $0x168] sm:$0xf] %v378_v26  ;;  %v506_v26 = vld [vmem:[%s2438_s26 + $0x4d0] sm:$0xf] }
  0x6c   : > { %381 = vst [vmem:[%s2443_s27 + $0x16c] sm:$0xf] %v380_v27  ;;  %v508_v27 = vld [vmem:[%s2438_s26 + $0x4d8] sm:$0xf] }
  0x6d   : > { %383 = vst [vmem:[%s2443_s27 + $0x170] sm:$0xf] %v382_v28  ;;  %v510_v28 = vld [vmem:[%s2438_s26 + $0x4e0] sm:$0xf] }
  0x6e   : > { %385 = vst [vmem:[%s2443_s27 + $0x174] sm:$0xf] %v384_v29  ;;  %v512_v29 = vld [vmem:[%s2438_s26 + $0x4e8] sm:$0xf] }
  0x6f   : > { %387 = vst [vmem:[%s2443_s27 + $0x178] sm:$0xf] %v386_v30  ;;  %v514_v30 = vld [vmem:[%s2438_s26 + $0x4f0] sm:$0xf] }
  0x70   : > { %389 = vst [vmem:[%s2443_s27 + $0x17c] sm:$0xf] %v388_v31  ;;  %v516_v31 = vld [vmem:[%s2438_s26 + $0x4f8] sm:$0xf] }
  0x71   : > { %391 = vst [vmem:[%s2443_s27 + $0x180] sm:$0xf] %v390_v32 }
  0x72   : > { %393 = vst [vmem:[%s2443_s27 + $0x184] sm:$0xf] %v392_v33 }
  0x73   : > { %395 = vst [vmem:[%s2443_s27 + $0x188] sm:$0xf] %v394_v34 }
  0x74   : > { %397 = vst [vmem:[%s2443_s27 + $0x18c] sm:$0xf] %v396_v35 }
  0x75   : > { %399 = vst [vmem:[%s2443_s27 + $0x190] sm:$0xf] %v398_v36 }
  0x76   : > { %401 = vst [vmem:[%s2443_s27 + $0x194] sm:$0xf] %v400_v37 }
  0x77   : > { %403 = vst [vmem:[%s2443_s27 + $0x198] sm:$0xf] %v402_v38 }
  0x78   : > { %405 = vst [vmem:[%s2443_s27 + $0x19c] sm:$0xf] %v404_v39 }
  0x79   : > { %407 = vst [vmem:[%s2443_s27 + $0x1a0] sm:$0xf] %v406_v40 }
  0x7a   : > { %409 = vst [vmem:[%s2443_s27 + $0x1a4] sm:$0xf] %v408_v41 }
  0x7b   : > { %411 = vst [vmem:[%s2443_s27 + $0x1a8] sm:$0xf] %v410_v42 }
  0x7c   : > { %413 = vst [vmem:[%s2443_s27 + $0x1ac] sm:$0xf] %v412_v43 }
  0x7d   : > { %415 = vst [vmem:[%s2443_s27 + $0x1b0] sm:$0xf] %v414_v44 }
  0x7e   : > { %417 = vst [vmem:[%s2443_s27 + $0x1b4] sm:$0xf] %v416_v45 }
  0x7f   : > { %419 = vst [vmem:[%s2443_s27 + $0x1b8] sm:$0xf] %v418_v46 }
  0x80   : > { %421 = vst [vmem:[%s2443_s27 + $0x1bc] sm:$0xf] %v420_v47 }
  0x81   : > { %423 = vst [vmem:[%s2443_s27 + $0x1c0] sm:$0xf] %v422_v48 }
  0x82   : > { %425 = vst [vmem:[%s2443_s27 + $0x1c4] sm:$0xf] %v424_v49 }
  0x83   : > { %427 = vst [vmem:[%s2443_s27 + $0x1c8] sm:$0xf] %v426_v50 }
  0x84   : > { %429 = vst [vmem:[%s2443_s27 + $0x1cc] sm:$0xf] %v428_v51 }
  0x85   : > { %431 = vst [vmem:[%s2443_s27 + $0x1d0] sm:$0xf] %v430_v52 }
  0x86   : > { %433 = vst [vmem:[%s2443_s27 + $0x1d4] sm:$0xf] %v432_v53 }
  0x87   : > { %435 = vst [vmem:[%s2443_s27 + $0x1d8] sm:$0xf] %v434_v54 }
  0x88   : > { %437 = vst [vmem:[%s2443_s27 + $0x1dc] sm:$0xf] %v436_v55 }
  0x89   : > { %439 = vst [vmem:[%s2443_s27 + $0x1e0] sm:$0xf] %v438_v56 }
  0x8a   : > { %441 = vst [vmem:[%s2443_s27 + $0x1e4] sm:$0xf] %v440_v57 }
  0x8b   : > { %443 = vst [vmem:[%s2443_s27 + $0x1e8] sm:$0xf] %v442_v58 }
  0x8c   : > { %445 = vst [vmem:[%s2443_s27 + $0x1ec] sm:$0xf] %v444_v59 }
  0x8d   : > { %447 = vst [vmem:[%s2443_s27 + $0x1f0] sm:$0xf] %v446_v60 }
  0x8e   : > { %449 = vst [vmem:[%s2443_s27 + $0x1f4] sm:$0xf] %v448_v61 }
  0x8f   : > { %451 = vst [vmem:[%s2443_s27 + $0x1f8] sm:$0xf] %v450_v62 }
  0x90   : > { %453 = vst [vmem:[%s2443_s27 + $0x1fc] sm:$0xf] %v452_v63 }
  0x91   : > { %455 = vst [vmem:[%s2443_s27 + $0x200] sm:$0xf] %v454_v0 }
  0x92   : > { %457 = vst [vmem:[%s2443_s27 + $0x204] sm:$0xf] %v456_v1 }
  0x93   : > { %459 = vst [vmem:[%s2443_s27 + $0x208] sm:$0xf] %v458_v2 }
  0x94   : > { %461 = vst [vmem:[%s2443_s27 + $0x20c] sm:$0xf] %v460_v3 }
  0x95   : > { %463 = vst [vmem:[%s2443_s27 + $0x210] sm:$0xf] %v462_v4 }
  0x96   : > { %465 = vst [vmem:[%s2443_s27 + $0x214] sm:$0xf] %v464_v5 }
  0x97   : > { %467 = vst [vmem:[%s2443_s27 + $0x218] sm:$0xf] %v466_v6 }
  0x98   : > { %469 = vst [vmem:[%s2443_s27 + $0x21c] sm:$0xf] %v468_v7 }
  0x99   : > { %471 = vst [vmem:[%s2443_s27 + $0x220] sm:$0xf] %v470_v8 }
  0x9a   : > { %473 = vst [vmem:[%s2443_s27 + $0x224] sm:$0xf] %v472_v9 }
  0x9b   : > { %475 = vst [vmem:[%s2443_s27 + $0x228] sm:$0xf] %v474_v10 }
  0x9c   : > { %477 = vst [vmem:[%s2443_s27 + $0x22c] sm:$0xf] %v476_v11 }
  0x9d   : > { %479 = vst [vmem:[%s2443_s27 + $0x230] sm:$0xf] %v478_v12 }
  0x9e   : > { %481 = vst [vmem:[%s2443_s27 + $0x234] sm:$0xf] %v480_v13 }
  0x9f   : > { %483 = vst [vmem:[%s2443_s27 + $0x238] sm:$0xf] %v482_v14 }
  0xa0   : > { %485 = vst [vmem:[%s2443_s27 + $0x23c] sm:$0xf] %v484_v15 }
  0xa1   : > { %487 = vst [vmem:[%s2443_s27 + $0x240] sm:$0xf] %v486_v16 }
  0xa2   : > { %489 = vst [vmem:[%s2443_s27 + $0x244] sm:$0xf] %v488_v17 }
  0xa3   : > { %491 = vst [vmem:[%s2443_s27 + $0x248] sm:$0xf] %v490_v18 }
  0xa4   : > { %493 = vst [vmem:[%s2443_s27 + $0x24c] sm:$0xf] %v492_v19 }
  0xa5   : > { %495 = vst [vmem:[%s2443_s27 + $0x250] sm:$0xf] %v494_v20 }
  0xa6   : > { %497 = vst [vmem:[%s2443_s27 + $0x254] sm:$0xf] %v496_v21 }
  0xa7   : > { %499 = vst [vmem:[%s2443_s27 + $0x258] sm:$0xf] %v498_v22 }
  0xa8   : > { %501 = vst [vmem:[%s2443_s27 + $0x25c] sm:$0xf] %v500_v23 }
  0xa9   : > { %503 = vst [vmem:[%s2443_s27 + $0x260] sm:$0xf] %v502_v24 }
  0xaa   : > { %505 = vst [vmem:[%s2443_s27 + $0x264] sm:$0xf] %v504_v25 }
  0xab   : > { %507 = vst [vmem:[%s2443_s27 + $0x268] sm:$0xf] %v506_v26 }
  0xac   : > { %509 = vst [vmem:[%s2443_s27 + $0x26c] sm:$0xf] %v508_v27 }
  0xad   : > { %511 = vst [vmem:[%s2443_s27 + $0x270] sm:$0xf] %v510_v28 }
  0xae   : > { %513 = vst [vmem:[%s2443_s27 + $0x274] sm:$0xf] %v512_v29 }
  0xaf   : > { %515 = vst [vmem:[%s2443_s27 + $0x278] sm:$0xf] %v514_v30 }
  0xb0   : > { %517 = vst [vmem:[%s2443_s27 + $0x27c] sm:$0xf] %v516_v31 }
  0xb1 PF: > { %p1888_p6 = scmp.ge.s32.totalorder %s2373_s16, 1  ;;  %p866_p7 = scmp.lt.s32.totalorder %s2373_s16, 3 }
  0xb3   : > { %p867_p8 = pnand %p1888_p6, %p866_p7 }
  0xb4   : > { %s873_s28 = sand.u32 (!%p867_p8), 1, %s2357_s12   ;;  %p922_p9 = scmp.lt.s32.totalorder (!%p867_p8), %s2365_s14, 1 }
  0xb5   : > { %870 = sbr.rel (%p867_p8) target bundleno = 419 (0x1a3), region = 69 }
  0xb6   : > { %s2293_s29 = smul.u32 (!%p867_p8), 640, %s873_s28 }
  0xb8   : > { %s2765_s30 = scalar_lea.vmem (!%p867_p8), [#allocation3], %s2293_s29 }
  0xba   : > { %v2219_v32 = vld [vmem:[%s2765_s30 + $0x38] sm:$0xff]  ;;  %v2218_v36 = vld [vmem:[%s2765_s30 + $0x30] sm:$0xff]  ;;  %v2217_v40 = vld [vmem:[%s2765_s30 + $0x28] sm:$0xff]  ;;  %s2900_s14 = smov (!%p922_p9, %s2365_s14), 1 }
  0xbb   : > { %v2227_v33 = vld [vmem:[%s2765_s30 + $0x78] sm:$0xff]  ;;  %1619 = vmatpush.bf16.msra.mxu0 %v2219_v32  ;;  %v2226_v37 = vld [vmem:[%s2765_s30 + $0x70] sm:$0xff]  ;;  %v2225_v41 = vld [vmem:[%s2765_s30 + $0x68] sm:$0xff]  ;;  %s924_s22 = scalar_lea.vmem %s2891_s2, %s2900_s14  ;;  %s1889_s23 = sshll.u32 %s2900_s14, 2 }
  0xbc   : > { %v2235_v34 = vld [vmem:[%s2765_s30 + $0xb8] sm:$0xff]  ;;  %1632 = vmatpush.bf16.msra.mxu1 %v2227_v33  ;;  %v2234_v38 = vld [vmem:[%s2765_s30 + $0xb0] sm:$0xff]  ;;  %v2233_v42 = vld [vmem:[%s2765_s30 + $0xa8] sm:$0xff]  ;;  %s932_s26 = scalar_lea.vmem %s2892_s3, %s1889_s23 }
  0xbd   : > { %v2243_v35 = vld [vmem:[%s2765_s30 + $0xf8] sm:$0xff]  ;;  %1645 = vmatpush.bf16.msra.mxu2 %v2235_v34  ;;  %v2242_v39 = vld [vmem:[%s2765_s30 + $0xf0] sm:$0xff]  ;;  %v2241_v43 = vld [vmem:[%s2765_s30 + $0xe8] sm:$0xff] }
  0xbe   : > { %1658 = vmatpush.bf16.msra.mxu3 %v2243_v35  ;;  %v2216_v44 = vld [vmem:[%s2765_s30 + $0x20] sm:$0xff]  ;;  %v2215_v48 = vld [vmem:[%s2765_s30 + $0x18] sm:$0xff]  ;;  %v2214_v52 = vld [vmem:[%s2765_s30 + $0x10] sm:$0xff] }
  0xbf   : > { %1620 = vmatpush.bf16.msra.mxu0 %v2218_v36  ;;  %v2224_v45 = vld [vmem:[%s2765_s30 + $0x60] sm:$0xff]  ;;  %v2223_v49 = vld [vmem:[%s2765_s30 + $0x58] sm:$0xff]  ;;  %v2222_v53 = vld [vmem:[%s2765_s30 + $0x50] sm:$0xff] }
  0xc0   : > { %1633 = vmatpush.bf16.msra.mxu1 %v2226_v37  ;;  %v2232_v46 = vld [vmem:[%s2765_s30 + $0xa0] sm:$0xff]  ;;  %v2231_v50 = vld [vmem:[%s2765_s30 + $0x98] sm:$0xff]  ;;  %v2230_v54 = vld [vmem:[%s2765_s30 + $0x90] sm:$0xff] }
  0xc1   : > { %1646 = vmatpush.bf16.msra.mxu2 %v2234_v38  ;;  %v2240_v47 = vld [vmem:[%s2765_s30 + $0xe0] sm:$0xff]  ;;  %v2239_v51 = vld [vmem:[%s2765_s30 + $0xd8] sm:$0xff]  ;;  %v2238_v55 = vld [vmem:[%s2765_s30 + $0xd0] sm:$0xff] }
  0xc2   : > { %1659 = vmatpush.bf16.msra.mxu3 %v2242_v39  ;;  %v2213_v56 = vld [vmem:[%s2765_s30 + $0x8] sm:$0xff]  ;;  %v939_v58 = vld [vmem:[%s2889_s0] sm:$0xff]  ;;  %v2251_v3 = vld [vmem:[%s2765_s30 + $0x138] sm:$0xff] }
  0xc3   : > { %1621 = vmatpush.bf16.msra.mxu0 %v2217_v40  ;;  %v2221_v57 = vld [vmem:[%s2765_s30 + $0x48] sm:$0xff]  ;;  %v1109_v62 = vunpack.c.l.b16 %v939_v58  ;;  %v2212_v63 = vld [vmem:[%s2765_s30] sm:$0xff]  ;;  %v1110_v4 = vunpack.c.h.b16 %v939_v58  ;;  %v2259_v5 = vld [vmem:[%s2765_s30 + $0x178] sm:$0xff] }
  0xc4   : > { %1634 = vmatpush.bf16.msra.mxu1 %v2225_v41  ;;  %v2229_v59 = vld [vmem:[%s2765_s30 + $0x88] sm:$0xff]  ;;  %v2220_v0 = vld [vmem:[%s2765_s30 + $0x40] sm:$0xff]  ;;  %v2267_v6 = vld [vmem:[%s2765_s30 + $0x1b8] sm:$0xff] }
  0xc5   : > { %1647 = vmatpush.bf16.msra.mxu2 %v2233_v42  ;;  %v2237_v60 = vld [vmem:[%s2765_s30 + $0xc8] sm:$0xff]  ;;  %v2228_v2 = vld [vmem:[%s2765_s30 + $0x80] sm:$0xff]  ;;  %v1119_v8 = vpack.c.b16 %v1109_v62, %v1109_v62  ;;  %v2275_v10 = vld [vmem:[%s2765_s30 + $0x1f8] sm:$0xff]  ;;  %v1120_v13 = vpack.c.b16 %v1110_v4, %v1110_v4 }
  0xc6   : > { %1660 = vmatpush.bf16.msra.mxu3 %v2241_v43  ;;  %v940_v61 = vld [vmem:[%s2889_s0 + $0x8] sm:$0xff]  ;;  %v2236_v7 = vld [vmem:[%s2765_s30 + $0xc0] sm:$0xff]  ;;  %v2250_v12 = vld [vmem:[%s2765_s30 + $0x130] sm:$0xff] }
  0xc7   : > { %1622 = vmatpush.bf16.msra.mxu0 %v2216_v44  ;;  %v1111_v1 = vunpack.c.l.b16 %v940_v61  ;;  %v1112_v9 = vunpack.c.h.b16 %v940_v61  ;;  %v2258_v14 = vld [vmem:[%s2765_s30 + $0x170] sm:$0xff]  ;;  %v2249_v18 = vld [vmem:[%s2765_s30 + $0x128] sm:$0xff]  ;;  %v2248_v22 = vld [vmem:[%s2765_s30 + $0x120] sm:$0xff] }
  0xc8   : > { %1635 = vmatpush.bf16.msra.mxu1 %v2224_v45  ;;  %v2266_v15 = vld [vmem:[%s2765_s30 + $0x1b0] sm:$0xff]  ;;  %v2257_v19 = vld [vmem:[%s2765_s30 + $0x168] sm:$0xff]  ;;  %v2256_v23 = vld [vmem:[%s2765_s30 + $0x160] sm:$0xff] }
  0xc9   : > { %1648 = vmatpush.bf16.msra.mxu2 %v2232_v46  ;;  %v1121_v11 = vpack.c.b16 %v1111_v1, %v1111_v1  ;;  %v1122_v16 = vpack.c.b16 %v1112_v9, %v1112_v9  ;;  %v2274_v17 = vld [vmem:[%s2765_s30 + $0x1f0] sm:$0xff]  ;;  %v2265_v20 = vld [vmem:[%s2765_s30 + $0x1a8] sm:$0xff]  ;;  %v2264_v24 = vld [vmem:[%s2765_s30 + $0x1a0] sm:$0xff] }
  0xca   : > { %1661 = vmatpush.bf16.msra.mxu3 %v2240_v47  ;;  %v2273_v21 = vld [vmem:[%s2765_s30 + $0x1e8] sm:$0xff]  ;;  %v2272_v25 = vld [vmem:[%s2765_s30 + $0x1e0] sm:$0xff]  ;;  %v2247_v26 = vld [vmem:[%s2765_s30 + $0x118] sm:$0xff] }
  0xcb   : > { %1623 = vmatpush.bf16.msra.mxu0 %v2215_v48  ;;  %v2255_v27 = vld [vmem:[%s2765_s30 + $0x158] sm:$0xff]  ;;  %v2246_v30 = vld [vmem:[%s2765_s30 + $0x110] sm:$0xff]  ;;  %v2245_v34 = vld [vmem:[%s2765_s30 + $0x108] sm:$0xff] }
  0xcc   : > { %1636 = vmatpush.bf16.msra.mxu1 %v2223_v49  ;;  %v2263_v28 = vld [vmem:[%s2765_s30 + $0x198] sm:$0xff]  ;;  %v2254_v31 = vld [vmem:[%s2765_s30 + $0x150] sm:$0xff]  ;;  %v2253_v36 = vld [vmem:[%s2765_s30 + $0x148] sm:$0xff] }
  0xcd   : > { %1649 = vmatpush.bf16.msra.mxu2 %v2231_v50  ;;  %v2271_v29 = vld [vmem:[%s2765_s30 + $0x1d8] sm:$0xff]  ;;  %v2262_v32 = vld [vmem:[%s2765_s30 + $0x190] sm:$0xff]  ;;  %v2261_v37 = vld [vmem:[%s2765_s30 + $0x188] sm:$0xff] }
  0xce   : > { %1662 = vmatpush.bf16.msra.mxu3 %v2239_v51  ;;  %v2270_v33 = vld [vmem:[%s2765_s30 + $0x1d0] sm:$0xff]  ;;  %v942_v38 = vld [vmem:[%s2889_s0 + $0x18] sm:$0xff]  ;;  %v2269_v39 = vld [vmem:[%s2765_s30 + $0x1c8] sm:$0xff] }
  0xcf   : > { %1624 = vmatpush.bf16.msra.mxu0 %v2214_v52  ;;  %v941_v35 = vld [vmem:[%s2889_s0 + $0x10] sm:$0xff]  ;;  %v2244_v41 = vld [vmem:[%s2765_s30 + $0x100] sm:$0xff]  ;;  %v1115_v42 = vunpack.c.l.b16 %v942_v38  ;;  %v2283_v46 = vld [vmem:[%s2765_s30 + $0x238] sm:$0xff]  ;;  %v1116_v50 = vunpack.c.h.b16 %v942_v38 }
  0xd0   : > { %1637 = vmatpush.bf16.msra.mxu1 %v2222_v53  ;;  %v1113_v40 = vunpack.c.l.b16 %v941_v35  ;;  %v1114_v43 = vunpack.c.h.b16 %v941_v35  ;;  %v2252_v44 = vld [vmem:[%s2765_s30 + $0x140] sm:$0xff]  ;;  %v2291_v47 = vld [vmem:[%s2765_s30 + $0x278] sm:$0xff]  ;;  %v2282_v53 = vld [vmem:[%s2765_s30 + $0x230] sm:$0xff] }
  0xd1   : > { %1650 = vmatpush.bf16.msra.mxu2 %v2230_v54  ;;  %v2260_v45 = vld [vmem:[%s2765_s30 + $0x180] sm:$0xff]  ;;  %v1125_v51 = vpack.c.b16 %v1115_v42, %v1115_v42  ;;  %v2290_v54 = vld [vmem:[%s2765_s30 + $0x270] sm:$0xff]  ;;  %v2287_v61 = vld [vmem:[%s2765_s30 + $0x258] sm:$0xff] }
  0xd2   : > { %1663 = vmatpush.bf16.msra.mxu3 %v2238_v55  ;;  %v2268_v48 = vld [vmem:[%s2765_s30 + $0x1c0] sm:$0xff]  ;;  %v1123_v49 = vpack.c.b16 %v1113_v40, %v1113_v40  ;;  %v1124_v52 = vpack.c.b16 %v1114_v43, %v1114_v43  ;;  %v1126_v55 = vpack.c.b16 %v1116_v50, %v1116_v50  ;;  %v2278_v62 = vld [vmem:[%s2765_s30 + $0x210] sm:$0xff]  ;;  %v2285_v1 = vld [vmem:[%s2765_s30 + $0x248] sm:$0xff] }
  0xd3   : > { %1625 = vmatpush.bf16.msra.mxu0 %v2213_v56  ;;  %v2281_v56 = vld [vmem:[%s2765_s30 + $0x228] sm:$0xff]  ;;  %v2280_v58 = vld [vmem:[%s2765_s30 + $0x220] sm:$0xff] }
  0xd4   : > { %1638 = vmatpush.bf16.msra.mxu1 %v2221_v57  ;;  %v2289_v57 = vld [vmem:[%s2765_s30 + $0x268] sm:$0xff]  ;;  %v2334_v35 = vld [vmem:[%s924_s22] ss:$0 sm:$0xff] }
  0xd5   : > { %1651 = vmatpush.bf16.msra.mxu2 %v2229_v59  ;;  %v2288_v59 = vld [vmem:[%s2765_s30 + $0x260] sm:$0xff] }
  0xd6   : > { %1664 = vmatpush.bf16.msra.mxu3 %v2237_v60  ;;  %v2279_v60 = vld [vmem:[%s2765_s30 + $0x218] sm:$0xff] }
  0xd7   : > { %1626 = vmatpush.bf16.msra.mxu0 %v2212_v63  ;;  %v2286_v63 = vld [vmem:[%s2765_s30 + $0x250] sm:$0xff] }
  0xd8   : > { %1639 = vmatpush.bf16.msra.mxu1 %v2220_v0  ;;  %v2277_v0 = vld [vmem:[%s2765_s30 + $0x208] sm:$0xff] }
  0xd9   : > { %1652 = vmatpush.bf16.msra.mxu2 %v2228_v2  ;;  %v943_v2 = vld [vmem:[%s2889_s0 + $0x20] sm:$0xff] }
  0xda   : > { %1665 = vmatpush.bf16.msra.mxu3 %v2236_v7  ;;  %1627 = vmatmul.bf16.vlgmr.msra.gmra.mxu0 %v1119_v8  ;;  %v1118_v4 = vunpack.c.h.b16 %v943_v2 }
  0xdb   : > { %1671 = vmatpush.bf16.msrb.mxu0 %v2251_v3  ;;  %1640 = vmatmul.bf16.vlgmr.msra.gmra.mxu1 %v1120_v13  ;;  %v1117_v3 = vunpack.c.l.b16 %v943_v2 }
  0xdc   : > { %1684 = vmatpush.bf16.msrb.mxu1 %v2259_v5  ;;  %1653 = vmatmul.bf16.vlgmr.msra.gmra.mxu2 %v1121_v11  ;;  %v2276_v5 = vld [vmem:[%s2765_s30 + $0x200] sm:$0xff]  ;;  %v1128_v8 = vpack.c.b16 %v1118_v4, %v1118_v4 }
  0xdd   : > { %1697 = vmatpush.bf16.msrb.mxu2 %v2267_v6  ;;  %1666 = vmatmul.bf16.vlgmr.msra.gmra.mxu3 %v1122_v16  ;;  %v2284_v6 = vld [vmem:[%s2765_s30 + $0x240] sm:$0xff]  ;;  %v1127_v7 = vpack.c.b16 %v1117_v3, %v1117_v3 }
  0xde   : > { %1710 = vmatpush.bf16.msrb.mxu3 %v2275_v10 }
  0xdf   : > { %1672 = vmatpush.bf16.msrb.mxu0 %v2250_v12 }
  0xe0   : > { %1685 = vmatpush.bf16.msrb.mxu1 %v2258_v14 }
  0xe1   : > { %1698 = vmatpush.bf16.msrb.mxu2 %v2266_v15 }
  0xe2   : > { %1711 = vmatpush.bf16.msrb.mxu3 %v2274_v17 }
  0xe3   : > { %1673 = vmatpush.bf16.msrb.mxu0 %v2249_v18 }
  0xe4   : > { %1686 = vmatpush.bf16.msrb.mxu1 %v2257_v19 }
  0xe5   : > { %1699 = vmatpush.bf16.msrb.mxu2 %v2265_v20 }
  0xe6   : > { %1712 = vmatpush.bf16.msrb.mxu3 %v2273_v21 }
  0xe7   : > { %1674 = vmatpush.bf16.msrb.mxu0 %v2248_v22 }
  0xe8   : > { %1687 = vmatpush.bf16.msrb.mxu1 %v2256_v23 }
  0xe9   : > { %1700 = vmatpush.bf16.msrb.mxu2 %v2264_v24 }
  0xea   : > { %1713 = vmatpush.bf16.msrb.mxu3 %v2272_v25 }
  0xeb   : > { %1675 = vmatpush.bf16.msrb.mxu0 %v2247_v26 }
  0xec   : > { %1688 = vmatpush.bf16.msrb.mxu1 %v2255_v27 }
  0xed   : > { %1701 = vmatpush.bf16.msrb.mxu2 %v2263_v28 }
  0xee   : > { %1714 = vmatpush.bf16.msrb.mxu3 %v2271_v29 }
  0xef   : > { %1676 = vmatpush.bf16.msrb.mxu0 %v2246_v30 }
  0xf0   : > { %1689 = vmatpush.bf16.msrb.mxu1 %v2254_v31 }
  0xf1   : > { %1702 = vmatpush.bf16.msrb.mxu2 %v2262_v32 }
  0xf2   : > { %1715 = vmatpush.bf16.msrb.mxu3 %v2270_v33 }
  0xf3   : > { %1677 = vmatpush.bf16.msrb.mxu0 %v2245_v34 }
  0xf4   : > { %1690 = vmatpush.bf16.msrb.mxu1 %v2253_v36 }
  0xf5   : > { %1703 = vmatpush.bf16.msrb.mxu2 %v2261_v37 }
  0xf6   : > { %1716 = vmatpush.bf16.msrb.mxu3 %v2269_v39 }
  0xf7   : > { %1678 = vmatpush.bf16.msrb.mxu0 %v2244_v41 }
  0xf8   : > { %1691 = vmatpush.bf16.msrb.mxu1 %v2252_v44 }
  0xf9   : > { %1704 = vmatpush.bf16.msrb.mxu2 %v2260_v45 }
  0xfa   : > { %1717 = vmatpush.bf16.msrb.mxu3 %v2268_v48  ;;  %1679 = vmatmul.bf16.vlgmr.msrb.gmra.mxu0 %v1123_v49 }
  0xfb   : > { %1723 = vmatpush.bf16.msra.mxu0 %v2283_v46  ;;  %1692 = vmatmul.bf16.vlgmr.msrb.gmra.mxu1 %v1124_v52 }
  0xfc   : > { %1736 = vmatpush.bf16.msra.mxu1 %v2291_v47  ;;  %1705 = vmatmul.bf16.vlgmr.msrb.gmra.mxu2 %v1125_v51 }
  0xfd   : > { %1718 = vmatmul.bf16.vlgmr.msrb.gmra.mxu3 %v1126_v55 }
  0xff   : > { %1724 = vmatpush.bf16.msra.mxu0 %v2282_v53 }
 0x100   : > { %1737 = vmatpush.bf16.msra.mxu1 %v2290_v54 }
 0x103   : > { %1725 = vmatpush.bf16.msra.mxu0 %v2281_v56 }
 0x104   : > { %1738 = vmatpush.bf16.msra.mxu1 %v2289_v57 }
 0x107   : > { %1726 = vmatpush.bf16.msra.mxu0 %v2280_v58 }
 0x108   : > { %1739 = vmatpush.bf16.msra.mxu1 %v2288_v59 }
 0x10b   : > { %1727 = vmatpush.bf16.msra.mxu0 %v2279_v60 }
 0x10c   : > { %1740 = vmatpush.bf16.msra.mxu1 %v2287_v61 }
 0x10f   : > { %1728 = vmatpush.bf16.msra.mxu0 %v2278_v62 }
 0x110   : > { %1741 = vmatpush.bf16.msra.mxu1 %v2286_v63 }
 0x113   : > { %1729 = vmatpush.bf16.msra.mxu0 %v2277_v0 }
 0x114   : > { %1742 = vmatpush.bf16.msra.mxu1 %v2285_v1 }
 0x117   : > { %1730 = vmatpush.bf16.msra.mxu0 %v2276_v5 }
 0x118   : > { %1743 = vmatpush.bf16.msra.mxu1 %v2284_v6 }
 0x11a   : > { %1731 = vmatmul.bf16.vlgmr.msra.gmra.mxu0 %v1127_v7 }
 0x11b   : > { %1744 = vmatmul.bf16.vlgmr.msra.gmra.mxu1 %v1128_v8 }
 0x157   : > { %v1628_v9 = vpop.f32.mrf.mxu0 }
 0x158   : > { %v1641_v10 = vpop.f32.mrf.mxu1 }
 0x159   : > { %v1642_v19 = vadd.f32 %v1641_v10, %v1628_v9 }
 0x15f   : > { %v1654_v11 = vpop.f32.mrf.mxu2  ;;  %v1630_v12 = vpop.f32.mrf.mxu0 }
 0x160   : > { %v1667_v13 = vpop.f32.mrf.mxu3  ;;  %v1643_v14 = vpop.f32.mrf.mxu1  ;;  %v1655_v22 = vadd.f32 %v1654_v11, %v1642_v19 }
 0x162   : > { %v1668_v25 = vadd.f32 %v1667_v13, %v1655_v22 }
 0x167   : > { %v1656_v15 = vpop.f32.mrf.mxu2 }
 0x168   : > { %v1669_v16 = vpop.f32.mrf.mxu3 }
 0x177   : > { %v1680_v17 = vpop.f32.mrf.mxu0 }
 0x178   : > { %v1693_v18 = vpop.f32.mrf.mxu1  ;;  %v1681_v27 = vadd.f32 %v1680_v17, %v1668_v25 }
 0x17a   : > { %v1694_v29 = vadd.f32 %v1693_v18, %v1681_v27 }
 0x17f   : > { %v1706_v20 = vpop.f32.mrf.mxu2  ;;  %v1682_v21 = vpop.f32.mrf.mxu0 }
 0x180   : > { %v1695_v23 = vpop.f32.mrf.mxu1  ;;  %v1719_v24 = vpop.f32.mrf.mxu3  ;;  %v1707_v30 = vadd.f32 %v1706_v20, %v1694_v29 }
 0x182   : > { %v1720_v31 = vadd.f32 %v1719_v24, %v1707_v30 }
 0x187   : > { %v1708_v26 = vpop.f32.mrf.mxu2 }
 0x188   : > { %v1721_v28 = vpop.f32.mrf.mxu3 }
 0x197   : > { %v1732_v32 = vpop.f32.mrf.mxu0 }
 0x198   : > { %v1745_v33 = vpop.f32.mrf.mxu1  ;;  %v1733_v34 = vadd.f32 %v1732_v32, %v1720_v31 }
 0x19a   : > { %v1746_v36 = vadd.f32 %v1745_v33, %v1733_v34 }
 0x19c   : > { %v1759_v37 = vadd.f32 %v2334_v35, %v1746_v36 }
 0x19e   : > { %v1760_v38 = vmax.f32 %v1759_v37, 0.0 }
 0x19f   : > { %v1734_v39 = vpop.f32.mrf.mxu0 }
 0x1a0   : > { %v1747_v40 = vpop.f32.mrf.mxu1  ;;  %v1761_v41 = vpack.c.bf16 %v1760_v38, %v1760_v38 }
 0x1a2   : > { %1762 = vst [vmem:[%s932_s26] sm:$0xf] %v1761_v41 }
 0x1a3 PF: > { %s13_s16 = sadd.s32 1, %s2373_s16   ;;  %s2893_s12 = smov %s2361_s13 }
 0x1a4   : > { %p10_p10 = scmp.ge.s32.totalorder %s13_s16, 4   ;;  %s2894_s13 = smov %s2430_s20 }
 0x1a5   : > { %s2895_s14 = smov %s2369_s15  ;;  %s2896_s15 = smov %s2898_s17 }
 0x1a6   :  { %12 = sbr.rel (!%p10_p10) target bundleno = 3 (0x3), region = 122 }

// kernel: rgbd_forward.13
= control target key start
LH: loop header
LB: loop body
LE: loop exit
PB: predicated region body
PF: predicated region fallthrough
CT: control target
= control target key end

     0   :  { %s6620_s12 = smov 0   ;;  %s6622_s13 = smov 0   ;;  %s7954_s0 = inlined_call_operand.vmem [shape: bf16[8,2304], index: 0, kind: input, shape index: {}]   ;;  %s7955_s1 = inlined_call_operand.vmem [shape: bf16[2304,512], index: 1, kind: input, shape index: {}]   ;;  %s7956_s2 = inlined_call_operand.vmem [shape: f32[1,512], index: 2, kind: input, shape index: {}]   ;;  %s7957_s3 = inlined_call_operand.vmem [shape: bf16[8,512], index: 3, kind: output, shape index: {}]  }
   0x1   :  { %s6624_s14 = smov 0   ;;  %s6626_s15 = smov 0  }
   0x2   :  { %s6628_s16 = smov 0  }
   0x3 LB: > { %s28_s17 = sadd.s32 1, %s6594_s15  ;;  %p76_p1 = scmp.ne.s32.totalorder %s6586_s13, %s6582_s12  ;;  %s6598_s16 = sphi %s6628_s16, %s13_s16   ;;  %s6594_s15 = sphi %s6626_s15, %s7961_s15   ;;  %s6590_s14 = sphi %s6624_s14, %s7960_s14   ;;  %s6586_s13 = sphi %s6622_s13, %s7959_s13   ;;  %s6582_s12 = sphi %s6620_s12, %s7958_s12  }
   0x4   : > { %p30_p0 = scmp.ge.s32.totalorder %s28_s17, 2  ;;  %p77_p2 = scmp.eq.s32.totalorder %s6598_s16, 0 }
   0x5   : > { %s69_s19 = sadd.s32 1, %s6586_s13  ;;  %p5068_p5 = scmp.ge.s32.totalorder %s6598_s16, 2 }
   0x6   : > { %s7963_s17 = smov (%p30_p0, %s28_s17), 0  ;;  %p78_p3 = por %p77_p2, %p76_p1 }
   0x7   : > { %s65_s18 = ssub.s32 %s6594_s15, %s7963_s17  ;;  %169 = sbr.rel (%p5068_p5) target bundleno = 304 (0x130), region = 20 }
   0x8   : > { %p67_p4 = scmp.eq.s32.totalorder %s65_s18, 0 }
   0xa   : > { %s6655_s20 = scalar_select %p67_p4, %s6586_s13, %s69_s19  }
   0xc   : > { %172 = sbr.rel (!%p78_p3) target bundleno = 304 (0x130), region = 24  ;;  %s174_s21 = sand.u32 (%p78_p3), 1, %s6586_s13  }
   0xd   : > { %s6229_s22 = sshll.u32 (%p78_p3), %s6594_s15, 3  ;;  %s6518_s23 = smul.u32 (%p78_p3), 2304, %s174_s21 }
   0xe   : > { %s6663_s26 = scalar_lea.vmem (%p78_p3), %s7955_s1, %s6229_s22 }
   0xf   : > { %v786_v0 = vld [vmem:[%s6663_s26] sm:$0xff] (%p78_p3)  ;;  %v788_v1 = vld [vmem:[%s6663_s26 + $0x10] sm:$0xff] (%p78_p3)  ;;  %s6668_s27 = scalar_lea.vmem (%p78_p3), [#allocation3], %s6518_s23 }
  0x10   : > { %v790_v2 = vld [vmem:[%s6663_s26 + $0x20] sm:$0xff] (%p78_p3)  ;;  %787 = vst [vmem:[%s6668_s27] sm:$0xff] (%p78_p3), %v786_v0  ;;  %v792_v3 = vld [vmem:[%s6663_s26 + $0x30] sm:$0xff] (%p78_p3) }
  0x11   : > { %789 = vst [vmem:[%s6668_s27 + $0x8] sm:$0xff] %v788_v1  ;;  %v794_v4 = vld [vmem:[%s6663_s26 + $0x40] sm:$0xff]  ;;  %v796_v5 = vld [vmem:[%s6663_s26 + $0x50] sm:$0xff] }
  0x12   : > { %791 = vst [vmem:[%s6668_s27 + $0x10] sm:$0xff] %v790_v2  ;;  %v798_v6 = vld [vmem:[%s6663_s26 + $0x60] sm:$0xff]  ;;  %v800_v7 = vld [vmem:[%s6663_s26 + $0x70] sm:$0xff] }
  0x13   : > { %793 = vst [vmem:[%s6668_s27 + $0x18] sm:$0xff] %v792_v3  ;;  %v802_v8 = vld [vmem:[%s6663_s26 + $0x80] sm:$0xff]  ;;  %v804_v9 = vld [vmem:[%s6663_s26 + $0x90] sm:$0xff] }
  0x14   : > { %795 = vst [vmem:[%s6668_s27 + $0x20] sm:$0xff] %v794_v4  ;;  %v806_v10 = vld [vmem:[%s6663_s26 + $0xa0] sm:$0xff]  ;;  %v808_v11 = vld [vmem:[%s6663_s26 + $0xb0] sm:$0xff] }
  0x15   : > { %797 = vst [vmem:[%s6668_s27 + $0x28] sm:$0xff] %v796_v5  ;;  %v810_v12 = vld [vmem:[%s6663_s26 + $0xc0] sm:$0xff]  ;;  %v812_v13 = vld [vmem:[%s6663_s26 + $0xd0] sm:$0xff] }
  0x16   : > { %799 = vst [vmem:[%s6668_s27 + $0x30] sm:$0xff] %v798_v6  ;;  %v814_v14 = vld [vmem:[%s6663_s26 + $0xe0] sm:$0xff]  ;;  %v816_v15 = vld [vmem:[%s6663_s26 + $0xf0] sm:$0xff] }
  0x17   : > { %801 = vst [vmem:[%s6668_s27 + $0x38] sm:$0xff] %v800_v7  ;;  %v818_v16 = vld [vmem:[%s6663_s26 + $0x100] sm:$0xff]  ;;  %v820_v17 = vld [vmem:[%s6663_s26 + $0x110] sm:$0xff] }
  0x18   : > { %803 = vst [vmem:[%s6668_s27 + $0x40] sm:$0xff] %v802_v8  ;;  %v822_v18 = vld [vmem:[%s6663_s26 + $0x120] sm:$0xff]  ;;  %v824_v19 = vld [vmem:[%s6663_s26 + $0x130] sm:$0xff] }
  0x19   : > { %805 = vst [vmem:[%s6668_s27 + $0x48] sm:$0xff] %v804_v9  ;;  %v826_v20 = vld [vmem:[%s6663_s26 + $0x140] sm:$0xff]  ;;  %v828_v21 = vld [vmem:[%s6663_s26 + $0x150] sm:$0xff] }
  0x1a   : > { %807 = vst [vmem:[%s6668_s27 + $0x50] sm:$0xff] %v806_v10  ;;  %v830_v22 = vld [vmem:[%s6663_s26 + $0x160] sm:$0xff]  ;;  %v832_v23 = vld [vmem:[%s6663_s26 + $0x170] sm:$0xff] }
  0x1b   : > { %809 = vst [vmem:[%s6668_s27 + $0x58] sm:$0xff] %v808_v11  ;;  %v834_v24 = vld [vmem:[%s6663_s26 + $0x180] sm:$0xff]  ;;  %v836_v25 = vld [vmem:[%s6663_s26 + $0x190] sm:$0xff] }
  0x1c   : > { %811 = vst [vmem:[%s6668_s27 + $0x60] sm:$0xff] %v810_v12  ;;  %v838_v26 = vld [vmem:[%s6663_s26 + $0x1a0] sm:$0xff]  ;;  %v840_v27 = vld [vmem:[%s6663_s26 + $0x1b0] sm:$0xff] }
  0x1d   : > { %813 = vst [vmem:[%s6668_s27 + $0x68] sm:$0xff] %v812_v13  ;;  %v842_v28 = vld [vmem:[%s6663_s26 + $0x1c0] sm:$0xff]  ;;  %v844_v29 = vld [vmem:[%s6663_s26 + $0x1d0] sm:$0xff] }
  0x1e   : > { %815 = vst [vmem:[%s6668_s27 + $0x70] sm:$0xff] %v814_v14  ;;  %v846_v30 = vld [vmem:[%s6663_s26 + $0x1e0] sm:$0xff]  ;;  %v848_v31 = vld [vmem:[%s6663_s26 + $0x1f0] sm:$0xff] }
  0x1f   : > { %817 = vst [vmem:[%s6668_s27 + $0x78] sm:$0xff] %v816_v15  ;;  %v850_v32 = vld [vmem:[%s6663_s26 + $0x200] sm:$0xff]  ;;  %v852_v33 = vld [vmem:[%s6663_s26 + $0x210] sm:$0xff] }
  0x20   : > { %819 = vst [vmem:[%s6668_s27 + $0x80] sm:$0xff] %v818_v16  ;;  %v854_v34 = vld [vmem:[%s6663_s26 + $0x220] sm:$0xff]  ;;  %v856_v35 = vld [vmem:[%s6663_s26 + $0x230] sm:$0xff] }
  0x21   : > { %821 = vst [vmem:[%s6668_s27 + $0x88] sm:$0xff] %v820_v17  ;;  %v858_v36 = vld [vmem:[%s6663_s26 + $0x240] sm:$0xff]  ;;  %v860_v37 = vld [vmem:[%s6663_s26 + $0x250] sm:$0xff] }
  0x22   : > { %823 = vst [vmem:[%s6668_s27 + $0x90] sm:$0xff] %v822_v18  ;;  %v862_v38 = vld [vmem:[%s6663_s26 + $0x260] sm:$0xff]  ;;  %v864_v39 = vld [vmem:[%s6663_s26 + $0x270] sm:$0xff] }
  0x23   : > { %825 = vst [vmem:[%s6668_s27 + $0x98] sm:$0xff] %v824_v19  ;;  %v866_v40 = vld [vmem:[%s6663_s26 + $0x280] sm:$0xff]  ;;  %v868_v41 = vld [vmem:[%s6663_s26 + $0x290] sm:$0xff] }
  0x24   : > { %827 = vst [vmem:[%s6668_s27 + $0xa0] sm:$0xff] %v826_v20  ;;  %v870_v42 = vld [vmem:[%s6663_s26 + $0x2a0] sm:$0xff]  ;;  %v872_v43 = vld [vmem:[%s6663_s26 + $0x2b0] sm:$0xff] }
  0x25   : > { %829 = vst [vmem:[%s6668_s27 + $0xa8] sm:$0xff] %v828_v21  ;;  %v874_v44 = vld [vmem:[%s6663_s26 + $0x2c0] sm:$0xff]  ;;  %v876_v45 = vld [vmem:[%s6663_s26 + $0x2d0] sm:$0xff] }
  0x26   : > { %831 = vst [vmem:[%s6668_s27 + $0xb0] sm:$0xff] %v830_v22  ;;  %v878_v46 = vld [vmem:[%s6663_s26 + $0x2e0] sm:$0xff]  ;;  %v880_v47 = vld [vmem:[%s6663_s26 + $0x2f0] sm:$0xff] }
  0x27   : > { %833 = vst [vmem:[%s6668_s27 + $0xb8] sm:$0xff] %v832_v23  ;;  %v882_v48 = vld [vmem:[%s6663_s26 + $0x300] sm:$0xff]  ;;  %v884_v49 = vld [vmem:[%s6663_s26 + $0x310] sm:$0xff] }
  0x28   : > { %835 = vst [vmem:[%s6668_s27 + $0xc0] sm:$0xff] %v834_v24  ;;  %v886_v50 = vld [vmem:[%s6663_s26 + $0x320] sm:$0xff]  ;;  %v888_v51 = vld [vmem:[%s6663_s26 + $0x330] sm:$0xff] }
  0x29   : > { %837 = vst [vmem:[%s6668_s27 + $0xc8] sm:$0xff] %v836_v25  ;;  %v890_v52 = vld [vmem:[%s6663_s26 + $0x340] sm:$0xff]  ;;  %v892_v53 = vld [vmem:[%s6663_s26 + $0x350] sm:$0xff] }
  0x2a   : > { %839 = vst [vmem:[%s6668_s27 + $0xd0] sm:$0xff] %v838_v26  ;;  %v894_v54 = vld [vmem:[%s6663_s26 + $0x360] sm:$0xff]  ;;  %v896_v55 = vld [vmem:[%s6663_s26 + $0x370] sm:$0xff] }
  0x2b   : > { %841 = vst [vmem:[%s6668_s27 + $0xd8] sm:$0xff] %v840_v27  ;;  %v898_v56 = vld [vmem:[%s6663_s26 + $0x380] sm:$0xff]  ;;  %v900_v57 = vld [vmem:[%s6663_s26 + $0x390] sm:$0xff] }
  0x2c   : > { %843 = vst [vmem:[%s6668_s27 + $0xe0] sm:$0xff] %v842_v28  ;;  %v902_v58 = vld [vmem:[%s6663_s26 + $0x3a0] sm:$0xff]  ;;  %v904_v59 = vld [vmem:[%s6663_s26 + $0x3b0] sm:$0xff] }
  0x2d   : > { %845 = vst [vmem:[%s6668_s27 + $0xe8] sm:$0xff] %v844_v29  ;;  %v906_v60 = vld [vmem:[%s6663_s26 + $0x3c0] sm:$0xff]  ;;  %v908_v61 = vld [vmem:[%s6663_s26 + $0x3d0] sm:$0xff] }
  0x2e   : > { %847 = vst [vmem:[%s6668_s27 + $0xf0] sm:$0xff] %v846_v30  ;;  %v910_v62 = vld [vmem:[%s6663_s26 + $0x3e0] sm:$0xff]  ;;  %v912_v63 = vld [vmem:[%s6663_s26 + $0x3f0] sm:$0xff] }
  0x2f   : > { %849 = vst [vmem:[%s6668_s27 + $0xf8] sm:$0xff] %v848_v31  ;;  %v914_v0 = vld [vmem:[%s6663_s26 + $0x400] sm:$0xff]  ;;  %v916_v1 = vld [vmem:[%s6663_s26 + $0x410] sm:$0xff] }
  0x30   : > { %851 = vst [vmem:[%s6668_s27 + $0x100] sm:$0xff] %v850_v32  ;;  %v918_v2 = vld [vmem:[%s6663_s26 + $0x420] sm:$0xff]  ;;  %v920_v3 = vld [vmem:[%s6663_s26 + $0x430] sm:$0xff] }
  0x31   : > { %853 = vst [vmem:[%s6668_s27 + $0x108] sm:$0xff] %v852_v33  ;;  %v922_v4 = vld [vmem:[%s6663_s26 + $0x440] sm:$0xff]  ;;  %v924_v5 = vld [vmem:[%s6663_s26 + $0x450] sm:$0xff] }
  0x32   : > { %855 = vst [vmem:[%s6668_s27 + $0x110] sm:$0xff] %v854_v34  ;;  %v926_v6 = vld [vmem:[%s6663_s26 + $0x460] sm:$0xff]  ;;  %v928_v7 = vld [vmem:[%s6663_s26 + $0x470] sm:$0xff] }
  0x33   : > { %857 = vst [vmem:[%s6668_s27 + $0x118] sm:$0xff] %v856_v35  ;;  %v930_v8 = vld [vmem:[%s6663_s26 + $0x480] sm:$0xff]  ;;  %v932_v9 = vld [vmem:[%s6663_s26 + $0x490] sm:$0xff] }
  0x34   : > { %859 = vst [vmem:[%s6668_s27 + $0x120] sm:$0xff] %v858_v36  ;;  %v934_v10 = vld [vmem:[%s6663_s26 + $0x4a0] sm:$0xff]  ;;  %v936_v11 = vld [vmem:[%s6663_s26 + $0x4b0] sm:$0xff] }
  0x35   : > { %861 = vst [vmem:[%s6668_s27 + $0x128] sm:$0xff] %v860_v37  ;;  %v938_v12 = vld [vmem:[%s6663_s26 + $0x4c0] sm:$0xff]  ;;  %v940_v13 = vld [vmem:[%s6663_s26 + $0x4d0] sm:$0xff] }
  0x36   : > { %863 = vst [vmem:[%s6668_s27 + $0x130] sm:$0xff] %v862_v38  ;;  %v942_v14 = vld [vmem:[%s6663_s26 + $0x4e0] sm:$0xff]  ;;  %v944_v15 = vld [vmem:[%s6663_s26 + $0x4f0] sm:$0xff] }
  0x37   : > { %865 = vst [vmem:[%s6668_s27 + $0x138] sm:$0xff] %v864_v39  ;;  %v946_v16 = vld [vmem:[%s6663_s26 + $0x500] sm:$0xff]  ;;  %v948_v17 = vld [vmem:[%s6663_s26 + $0x510] sm:$0xff] }
  0x38   : > { %867 = vst [vmem:[%s6668_s27 + $0x140] sm:$0xff] %v866_v40  ;;  %v950_v18 = vld [vmem:[%s6663_s26 + $0x520] sm:$0xff]  ;;  %v952_v19 = vld [vmem:[%s6663_s26 + $0x530] sm:$0xff] }
  0x39   : > { %869 = vst [vmem:[%s6668_s27 + $0x148] sm:$0xff] %v868_v41  ;;  %v954_v20 = vld [vmem:[%s6663_s26 + $0x540] sm:$0xff]  ;;  %v956_v21 = vld [vmem:[%s6663_s26 + $0x550] sm:$0xff] }
  0x3a   : > { %871 = vst [vmem:[%s6668_s27 + $0x150] sm:$0xff] %v870_v42  ;;  %v958_v22 = vld [vmem:[%s6663_s26 + $0x560] sm:$0xff]  ;;  %v960_v23 = vld [vmem:[%s6663_s26 + $0x570] sm:$0xff] }
  0x3b   : > { %873 = vst [vmem:[%s6668_s27 + $0x158] sm:$0xff] %v872_v43  ;;  %v962_v24 = vld [vmem:[%s6663_s26 + $0x580] sm:$0xff]  ;;  %v964_v25 = vld [vmem:[%s6663_s26 + $0x590] sm:$0xff] }
  0x3c   : > { %875 = vst [vmem:[%s6668_s27 + $0x160] sm:$0xff] %v874_v44  ;;  %v966_v26 = vld [vmem:[%s6663_s26 + $0x5a0] sm:$0xff]  ;;  %v968_v27 = vld [vmem:[%s6663_s26 + $0x5b0] sm:$0xff] }
  0x3d   : > { %877 = vst [vmem:[%s6668_s27 + $0x168] sm:$0xff] %v876_v45  ;;  %v970_v28 = vld [vmem:[%s6663_s26 + $0x5c0] sm:$0xff]  ;;  %v972_v29 = vld [vmem:[%s6663_s26 + $0x5d0] sm:$0xff] }
  0x3e   : > { %879 = vst [vmem:[%s6668_s27 + $0x170] sm:$0xff] %v878_v46  ;;  %v974_v30 = vld [vmem:[%s6663_s26 + $0x5e0] sm:$0xff]  ;;  %v976_v31 = vld [vmem:[%s6663_s26 + $0x5f0] sm:$0xff] }
  0x3f   : > { %881 = vst [vmem:[%s6668_s27 + $0x178] sm:$0xff] %v880_v47  ;;  %v978_v32 = vld [vmem:[%s6663_s26 + $0x600] sm:$0xff]  ;;  %v980_v33 = vld [vmem:[%s6663_s26 + $0x610] sm:$0xff] }
  0x40   : > { %883 = vst [vmem:[%s6668_s27 + $0x180] sm:$0xff] %v882_v48  ;;  %v982_v34 = vld [vmem:[%s6663_s26 + $0x620] sm:$0xff]  ;;  %v984_v35 = vld [vmem:[%s6663_s26 + $0x630] sm:$0xff] }
  0x41   : > { %885 = vst [vmem:[%s6668_s27 + $0x188] sm:$0xff] %v884_v49  ;;  %v986_v36 = vld [vmem:[%s6663_s26 + $0x640] sm:$0xff]  ;;  %v988_v37 = vld [vmem:[%s6663_s26 + $0x650] sm:$0xff] }
  0x42   : > { %887 = vst [vmem:[%s6668_s27 + $0x190] sm:$0xff] %v886_v50  ;;  %v990_v38 = vld [vmem:[%s6663_s26 + $0x660] sm:$0xff]  ;;  %v992_v39 = vld [vmem:[%s6663_s26 + $0x670] sm:$0xff] }
  0x43   : > { %889 = vst [vmem:[%s6668_s27 + $0x198] sm:$0xff] %v888_v51  ;;  %v994_v40 = vld [vmem:[%s6663_s26 + $0x680] sm:$0xff]  ;;  %v996_v41 = vld [vmem:[%s6663_s26 + $0x690] sm:$0xff] }
  0x44   : > { %891 = vst [vmem:[%s6668_s27 + $0x1a0] sm:$0xff] %v890_v52  ;;  %v998_v42 = vld [vmem:[%s6663_s26 + $0x6a0] sm:$0xff]  ;;  %v1000_v43 = vld [vmem:[%s6663_s26 + $0x6b0] sm:$0xff] }
  0x45   : > { %893 = vst [vmem:[%s6668_s27 + $0x1a8] sm:$0xff] %v892_v53  ;;  %v1002_v44 = vld [vmem:[%s6663_s26 + $0x6c0] sm:$0xff]  ;;  %v1004_v45 = vld [vmem:[%s6663_s26 + $0x6d0] sm:$0xff] }
  0x46   : > { %895 = vst [vmem:[%s6668_s27 + $0x1b0] sm:$0xff] %v894_v54  ;;  %v1006_v46 = vld [vmem:[%s6663_s26 + $0x6e0] sm:$0xff]  ;;  %v1008_v47 = vld [vmem:[%s6663_s26 + $0x6f0] sm:$0xff] }
  0x47   : > { %897 = vst [vmem:[%s6668_s27 + $0x1b8] sm:$0xff] %v896_v55  ;;  %v1010_v48 = vld [vmem:[%s6663_s26 + $0x700] sm:$0xff]  ;;  %v1012_v49 = vld [vmem:[%s6663_s26 + $0x710] sm:$0xff] }
  0x48   : > { %899 = vst [vmem:[%s6668_s27 + $0x1c0] sm:$0xff] %v898_v56  ;;  %v1014_v50 = vld [vmem:[%s6663_s26 + $0x720] sm:$0xff]  ;;  %v1016_v51 = vld [vmem:[%s6663_s26 + $0x730] sm:$0xff] }
  0x49   : > { %901 = vst [vmem:[%s6668_s27 + $0x1c8] sm:$0xff] %v900_v57  ;;  %v1018_v52 = vld [vmem:[%s6663_s26 + $0x740] sm:$0xff]  ;;  %v1020_v53 = vld [vmem:[%s6663_s26 + $0x750] sm:$0xff] }
  0x4a   : > { %903 = vst [vmem:[%s6668_s27 + $0x1d0] sm:$0xff] %v902_v58  ;;  %v1022_v54 = vld [vmem:[%s6663_s26 + $0x760] sm:$0xff]  ;;  %v1024_v55 = vld [vmem:[%s6663_s26 + $0x770] sm:$0xff] }
  0x4b   : > { %905 = vst [vmem:[%s6668_s27 + $0x1d8] sm:$0xff] %v904_v59  ;;  %v1026_v56 = vld [vmem:[%s6663_s26 + $0x780] sm:$0xff]  ;;  %v1028_v57 = vld [vmem:[%s6663_s26 + $0x790] sm:$0xff] }
  0x4c   : > { %907 = vst [vmem:[%s6668_s27 + $0x1e0] sm:$0xff] %v906_v60  ;;  %v1030_v58 = vld [vmem:[%s6663_s26 + $0x7a0] sm:$0xff]  ;;  %v1032_v59 = vld [vmem:[%s6663_s26 + $0x7b0] sm:$0xff] }
  0x4d   : > { %909 = vst [vmem:[%s6668_s27 + $0x1e8] sm:$0xff] %v908_v61  ;;  %v1034_v60 = vld [vmem:[%s6663_s26 + $0x7c0] sm:$0xff]  ;;  %v1036_v61 = vld [vmem:[%s6663_s26 + $0x7d0] sm:$0xff] }
  0x4e   : > { %911 = vst [vmem:[%s6668_s27 + $0x1f0] sm:$0xff] %v910_v62  ;;  %v1038_v62 = vld [vmem:[%s6663_s26 + $0x7e0] sm:$0xff] }
  0x4f   : > { %913 = vst [vmem:[%s6668_s27 + $0x1f8] sm:$0xff] %v912_v63  ;;  %v1040_v63 = vld [vmem:[%s6663_s26 + $0x7f0] sm:$0xff] }
  0x50   : > { %915 = vst [vmem:[%s6668_s27 + $0x200] sm:$0xff] %v914_v0  ;;  %v1042_v0 = vld [vmem:[%s6663_s26 + $0x800] sm:$0xff] }
  0x51   : > { %917 = vst [vmem:[%s6668_s27 + $0x208] sm:$0xff] %v916_v1  ;;  %v1044_v1 = vld [vmem:[%s6663_s26 + $0x810] sm:$0xff] }
  0x52   : > { %919 = vst [vmem:[%s6668_s27 + $0x210] sm:$0xff] %v918_v2  ;;  %v1046_v2 = vld [vmem:[%s6663_s26 + $0x820] sm:$0xff] }
  0x53   : > { %921 = vst [vmem:[%s6668_s27 + $0x218] sm:$0xff] %v920_v3  ;;  %v1048_v3 = vld [vmem:[%s6663_s26 + $0x830] sm:$0xff] }
  0x54   : > { %923 = vst [vmem:[%s6668_s27 + $0x220] sm:$0xff] %v922_v4  ;;  %v1050_v4 = vld [vmem:[%s6663_s26 + $0x840] sm:$0xff] }
  0x55   : > { %925 = vst [vmem:[%s6668_s27 + $0x228] sm:$0xff] %v924_v5  ;;  %v1052_v5 = vld [vmem:[%s6663_s26 + $0x850] sm:$0xff] }
  0x56   : > { %927 = vst [vmem:[%s6668_s27 + $0x230] sm:$0xff] %v926_v6  ;;  %v1054_v6 = vld [vmem:[%s6663_s26 + $0x860] sm:$0xff] }
  0x57   : > { %929 = vst [vmem:[%s6668_s27 + $0x238] sm:$0xff] %v928_v7  ;;  %v1056_v7 = vld [vmem:[%s6663_s26 + $0x870] sm:$0xff] }
  0x58   : > { %931 = vst [vmem:[%s6668_s27 + $0x240] sm:$0xff] %v930_v8  ;;  %v1058_v8 = vld [vmem:[%s6663_s26 + $0x880] sm:$0xff] }
  0x59   : > { %933 = vst [vmem:[%s6668_s27 + $0x248] sm:$0xff] %v932_v9  ;;  %v1060_v9 = vld [vmem:[%s6663_s26 + $0x890] sm:$0xff] }
  0x5a   : > { %935 = vst [vmem:[%s6668_s27 + $0x250] sm:$0xff] %v934_v10  ;;  %v1062_v10 = vld [vmem:[%s6663_s26 + $0x8a0] sm:$0xff] }
  0x5b   : > { %937 = vst [vmem:[%s6668_s27 + $0x258] sm:$0xff] %v936_v11  ;;  %v1064_v11 = vld [vmem:[%s6663_s26 + $0x8b0] sm:$0xff] }
  0x5c   : > { %939 = vst [vmem:[%s6668_s27 + $0x260] sm:$0xff] %v938_v12  ;;  %v1066_v12 = vld [vmem:[%s6663_s26 + $0x8c0] sm:$0xff] }
  0x5d   : > { %941 = vst [vmem:[%s6668_s27 + $0x268] sm:$0xff] %v940_v13  ;;  %v1068_v13 = vld [vmem:[%s6663_s26 + $0x8d0] sm:$0xff] }
  0x5e   : > { %943 = vst [vmem:[%s6668_s27 + $0x270] sm:$0xff] %v942_v14  ;;  %v1070_v14 = vld [vmem:[%s6663_s26 + $0x8e0] sm:$0xff] }
  0x5f   : > { %945 = vst [vmem:[%s6668_s27 + $0x278] sm:$0xff] %v944_v15  ;;  %v1072_v15 = vld [vmem:[%s6663_s26 + $0x8f0] sm:$0xff] }
  0x60   : > { %947 = vst [vmem:[%s6668_s27 + $0x280] sm:$0xff] %v946_v16  ;;  %v1074_v16 = vld [vmem:[%s6663_s26 + $0x900] sm:$0xff] }
  0x61   : > { %949 = vst [vmem:[%s6668_s27 + $0x288] sm:$0xff] %v948_v17  ;;  %v1076_v17 = vld [vmem:[%s6663_s26 + $0x910] sm:$0xff] }
  0x62   : > { %951 = vst [vmem:[%s6668_s27 + $0x290] sm:$0xff] %v950_v18  ;;  %v1078_v18 = vld [vmem:[%s6663_s26 + $0x920] sm:$0xff] }
  0x63   : > { %953 = vst [vmem:[%s6668_s27 + $0x298] sm:$0xff] %v952_v19  ;;  %v1080_v19 = vld [vmem:[%s6663_s26 + $0x930] sm:$0xff] }
  0x64   : > { %955 = vst [vmem:[%s6668_s27 + $0x2a0] sm:$0xff] %v954_v20  ;;  %v1082_v20 = vld [vmem:[%s6663_s26 + $0x940] sm:$0xff] }
  0x65   : > { %957 = vst [vmem:[%s6668_s27 + $0x2a8] sm:$0xff] %v956_v21  ;;  %v1084_v21 = vld [vmem:[%s6663_s26 + $0x950] sm:$0xff] }
  0x66   : > { %959 = vst [vmem:[%s6668_s27 + $0x2b0] sm:$0xff] %v958_v22  ;;  %v1086_v22 = vld [vmem:[%s6663_s26 + $0x960] sm:$0xff] }
  0x67   : > { %961 = vst [vmem:[%s6668_s27 + $0x2b8] sm:$0xff] %v960_v23  ;;  %v1088_v23 = vld [vmem:[%s6663_s26 + $0x970] sm:$0xff] }
  0x68   : > { %963 = vst [vmem:[%s6668_s27 + $0x2c0] sm:$0xff] %v962_v24  ;;  %v1090_v24 = vld [vmem:[%s6663_s26 + $0x980] sm:$0xff] }
  0x69   : > { %965 = vst [vmem:[%s6668_s27 + $0x2c8] sm:$0xff] %v964_v25  ;;  %v1092_v25 = vld [vmem:[%s6663_s26 + $0x990] sm:$0xff] }
  0x6a   : > { %967 = vst [vmem:[%s6668_s27 + $0x2d0] sm:$0xff] %v966_v26  ;;  %v1094_v26 = vld [vmem:[%s6663_s26 + $0x9a0] sm:$0xff] }
  0x6b   : > { %969 = vst [vmem:[%s6668_s27 + $0x2d8] sm:$0xff] %v968_v27  ;;  %v1096_v27 = vld [vmem:[%s6663_s26 + $0x9b0] sm:$0xff] }
  0x6c   : > { %971 = vst [vmem:[%s6668_s27 + $0x2e0] sm:$0xff] %v970_v28  ;;  %v1098_v28 = vld [vmem:[%s6663_s26 + $0x9c0] sm:$0xff] }
  0x6d   : > { %973 = vst [vmem:[%s6668_s27 + $0x2e8] sm:$0xff] %v972_v29  ;;  %v1100_v29 = vld [vmem:[%s6663_s26 + $0x9d0] sm:$0xff] }
  0x6e   : > { %975 = vst [vmem:[%s6668_s27 + $0x2f0] sm:$0xff] %v974_v30  ;;  %v1102_v30 = vld [vmem:[%s6663_s26 + $0x9e0] sm:$0xff] }
  0x6f   : > { %977 = vst [vmem:[%s6668_s27 + $0x2f8] sm:$0xff] %v976_v31  ;;  %v1104_v31 = vld [vmem:[%s6663_s26 + $0x9f0] sm:$0xff] }
  0x70   : > { %979 = vst [vmem:[%s6668_s27 + $0x300] sm:$0xff] %v978_v32  ;;  %v1106_v32 = vld [vmem:[%s6663_s26 + $0xa00] sm:$0xff] }
  0x71   : > { %981 = vst [vmem:[%s6668_s27 + $0x308] sm:$0xff] %v980_v33  ;;  %v1108_v33 = vld [vmem:[%s6663_s26 + $0xa10] sm:$0xff] }
  0x72   : > { %983 = vst [vmem:[%s6668_s27 + $0x310] sm:$0xff] %v982_v34  ;;  %v1110_v34 = vld [vmem:[%s6663_s26 + $0xa20] sm:$0xff] }
  0x73   : > { %985 = vst [vmem:[%s6668_s27 + $0x318] sm:$0xff] %v984_v35  ;;  %v1112_v35 = vld [vmem:[%s6663_s26 + $0xa30] sm:$0xff] }
  0x74   : > { %987 = vst [vmem:[%s6668_s27 + $0x320] sm:$0xff] %v986_v36  ;;  %v1114_v36 = vld [vmem:[%s6663_s26 + $0xa40] sm:$0xff] }
  0x75   : > { %989 = vst [vmem:[%s6668_s27 + $0x328] sm:$0xff] %v988_v37  ;;  %v1116_v37 = vld [vmem:[%s6663_s26 + $0xa50] sm:$0xff] }
  0x76   : > { %991 = vst [vmem:[%s6668_s27 + $0x330] sm:$0xff] %v990_v38  ;;  %v1118_v38 = vld [vmem:[%s6663_s26 + $0xa60] sm:$0xff] }
  0x77   : > { %993 = vst [vmem:[%s6668_s27 + $0x338] sm:$0xff] %v992_v39  ;;  %v1120_v39 = vld [vmem:[%s6663_s26 + $0xa70] sm:$0xff] }
  0x78   : > { %995 = vst [vmem:[%s6668_s27 + $0x340] sm:$0xff] %v994_v40  ;;  %v1122_v40 = vld [vmem:[%s6663_s26 + $0xa80] sm:$0xff] }
  0x79   : > { %997 = vst [vmem:[%s6668_s27 + $0x348] sm:$0xff] %v996_v41  ;;  %v1124_v41 = vld [vmem:[%s6663_s26 + $0xa90] sm:$0xff] }
  0x7a   : > { %999 = vst [vmem:[%s6668_s27 + $0x350] sm:$0xff] %v998_v42  ;;  %v1126_v42 = vld [vmem:[%s6663_s26 + $0xaa0] sm:$0xff] }
  0x7b   : > { %1001 = vst [vmem:[%s6668_s27 + $0x358] sm:$0xff] %v1000_v43  ;;  %v1128_v43 = vld [vmem:[%s6663_s26 + $0xab0] sm:$0xff] }
  0x7c   : > { %1003 = vst [vmem:[%s6668_s27 + $0x360] sm:$0xff] %v1002_v44  ;;  %v1130_v44 = vld [vmem:[%s6663_s26 + $0xac0] sm:$0xff] }
  0x7d   : > { %1005 = vst [vmem:[%s6668_s27 + $0x368] sm:$0xff] %v1004_v45  ;;  %v1132_v45 = vld [vmem:[%s6663_s26 + $0xad0] sm:$0xff] }
  0x7e   : > { %1007 = vst [vmem:[%s6668_s27 + $0x370] sm:$0xff] %v1006_v46  ;;  %v1134_v46 = vld [vmem:[%s6663_s26 + $0xae0] sm:$0xff] }
  0x7f   : > { %1009 = vst [vmem:[%s6668_s27 + $0x378] sm:$0xff] %v1008_v47  ;;  %v1136_v47 = vld [vmem:[%s6663_s26 + $0xaf0] sm:$0xff] }
  0x80   : > { %1011 = vst [vmem:[%s6668_s27 + $0x380] sm:$0xff] %v1010_v48  ;;  %v1138_v48 = vld [vmem:[%s6663_s26 + $0xb00] sm:$0xff] }
  0x81   : > { %1013 = vst [vmem:[%s6668_s27 + $0x388] sm:$0xff] %v1012_v49  ;;  %v1140_v49 = vld [vmem:[%s6663_s26 + $0xb10] sm:$0xff] }
  0x82   : > { %1015 = vst [vmem:[%s6668_s27 + $0x390] sm:$0xff] %v1014_v50  ;;  %v1142_v50 = vld [vmem:[%s6663_s26 + $0xb20] sm:$0xff] }
  0x83   : > { %1017 = vst [vmem:[%s6668_s27 + $0x398] sm:$0xff] %v1016_v51  ;;  %v1144_v51 = vld [vmem:[%s6663_s26 + $0xb30] sm:$0xff] }
  0x84   : > { %1019 = vst [vmem:[%s6668_s27 + $0x3a0] sm:$0xff] %v1018_v52  ;;  %v1146_v52 = vld [vmem:[%s6663_s26 + $0xb40] sm:$0xff] }
  0x85   : > { %1021 = vst [vmem:[%s6668_s27 + $0x3a8] sm:$0xff] %v1020_v53  ;;  %v1148_v53 = vld [vmem:[%s6663_s26 + $0xb50] sm:$0xff] }
  0x86   : > { %1023 = vst [vmem:[%s6668_s27 + $0x3b0] sm:$0xff] %v1022_v54  ;;  %v1150_v54 = vld [vmem:[%s6663_s26 + $0xb60] sm:$0xff] }
  0x87   : > { %1025 = vst [vmem:[%s6668_s27 + $0x3b8] sm:$0xff] %v1024_v55  ;;  %v1152_v55 = vld [vmem:[%s6663_s26 + $0xb70] sm:$0xff] }
  0x88   : > { %1027 = vst [vmem:[%s6668_s27 + $0x3c0] sm:$0xff] %v1026_v56  ;;  %v1154_v56 = vld [vmem:[%s6663_s26 + $0xb80] sm:$0xff] }
  0x89   : > { %1029 = vst [vmem:[%s6668_s27 + $0x3c8] sm:$0xff] %v1028_v57  ;;  %v1156_v57 = vld [vmem:[%s6663_s26 + $0xb90] sm:$0xff] }
  0x8a   : > { %1031 = vst [vmem:[%s6668_s27 + $0x3d0] sm:$0xff] %v1030_v58  ;;  %v1158_v58 = vld [vmem:[%s6663_s26 + $0xba0] sm:$0xff] }
  0x8b   : > { %1033 = vst [vmem:[%s6668_s27 + $0x3d8] sm:$0xff] %v1032_v59  ;;  %v1160_v59 = vld [vmem:[%s6663_s26 + $0xbb0] sm:$0xff] }
  0x8c   : > { %1035 = vst [vmem:[%s6668_s27 + $0x3e0] sm:$0xff] %v1034_v60  ;;  %v1162_v60 = vld [vmem:[%s6663_s26 + $0xbc0] sm:$0xff] }
  0x8d   : > { %1037 = vst [vmem:[%s6668_s27 + $0x3e8] sm:$0xff] %v1036_v61  ;;  %v1164_v61 = vld [vmem:[%s6663_s26 + $0xbd0] sm:$0xff] }
  0x8e   : > { %1039 = vst [vmem:[%s6668_s27 + $0x3f0] sm:$0xff] %v1038_v62  ;;  %v1166_v62 = vld [vmem:[%s6663_s26 + $0xbe0] sm:$0xff] }
  0x8f   : > { %1041 = vst [vmem:[%s6668_s27 + $0x3f8] sm:$0xff] %v1040_v63  ;;  %v1168_v63 = vld [vmem:[%s6663_s26 + $0xbf0] sm:$0xff] }
  0x90   : > { %1043 = vst [vmem:[%s6668_s27 + $0x400] sm:$0xff] %v1042_v0  ;;  %v1170_v0 = vld [vmem:[%s6663_s26 + $0xc00] sm:$0xff] }
  0x91   : > { %1045 = vst [vmem:[%s6668_s27 + $0x408] sm:$0xff] %v1044_v1  ;;  %v1172_v1 = vld [vmem:[%s6663_s26 + $0xc10] sm:$0xff] }
  0x92   : > { %1047 = vst [vmem:[%s6668_s27 + $0x410] sm:$0xff] %v1046_v2  ;;  %v1174_v2 = vld [vmem:[%s6663_s26 + $0xc20] sm:$0xff] }
  0x93   : > { %1049 = vst [vmem:[%s6668_s27 + $0x418] sm:$0xff] %v1048_v3  ;;  %v1176_v3 = vld [vmem:[%s6663_s26 + $0xc30] sm:$0xff] }
  0x94   : > { %1051 = vst [vmem:[%s6668_s27 + $0x420] sm:$0xff] %v1050_v4  ;;  %v1178_v4 = vld [vmem:[%s6663_s26 + $0xc40] sm:$0xff] }
  0x95   : > { %1053 = vst [vmem:[%s6668_s27 + $0x428] sm:$0xff] %v1052_v5  ;;  %v1180_v5 = vld [vmem:[%s6663_s26 + $0xc50] sm:$0xff] }
  0x96   : > { %1055 = vst [vmem:[%s6668_s27 + $0x430] sm:$0xff] %v1054_v6  ;;  %v1182_v6 = vld [vmem:[%s6663_s26 + $0xc60] sm:$0xff] }
  0x97   : > { %1057 = vst [vmem:[%s6668_s27 + $0x438] sm:$0xff] %v1056_v7  ;;  %v1184_v7 = vld [vmem:[%s6663_s26 + $0xc70] sm:$0xff] }
  0x98   : > { %1059 = vst [vmem:[%s6668_s27 + $0x440] sm:$0xff] %v1058_v8  ;;  %v1186_v8 = vld [vmem:[%s6663_s26 + $0xc80] sm:$0xff] }
  0x99   : > { %1061 = vst [vmem:[%s6668_s27 + $0x448] sm:$0xff] %v1060_v9  ;;  %v1188_v9 = vld [vmem:[%s6663_s26 + $0xc90] sm:$0xff] }
  0x9a   : > { %1063 = vst [vmem:[%s6668_s27 + $0x450] sm:$0xff] %v1062_v10  ;;  %v1190_v10 = vld [vmem:[%s6663_s26 + $0xca0] sm:$0xff] }
  0x9b   : > { %1065 = vst [vmem:[%s6668_s27 + $0x458] sm:$0xff] %v1064_v11  ;;  %v1192_v11 = vld [vmem:[%s6663_s26 + $0xcb0] sm:$0xff] }
  0x9c   : > { %1067 = vst [vmem:[%s6668_s27 + $0x460] sm:$0xff] %v1066_v12  ;;  %v1194_v12 = vld [vmem:[%s6663_s26 + $0xcc0] sm:$0xff] }
  0x9d   : > { %1069 = vst [vmem:[%s6668_s27 + $0x468] sm:$0xff] %v1068_v13  ;;  %v1196_v13 = vld [vmem:[%s6663_s26 + $0xcd0] sm:$0xff] }
  0x9e   : > { %1071 = vst [vmem:[%s6668_s27 + $0x470] sm:$0xff] %v1070_v14  ;;  %v1198_v14 = vld [vmem:[%s6663_s26 + $0xce0] sm:$0xff] }
  0x9f   : > { %1073 = vst [vmem:[%s6668_s27 + $0x478] sm:$0xff] %v1072_v15  ;;  %v1200_v15 = vld [vmem:[%s6663_s26 + $0xcf0] sm:$0xff] }
  0xa0   : > { %1075 = vst [vmem:[%s6668_s27 + $0x480] sm:$0xff] %v1074_v16  ;;  %v1202_v16 = vld [vmem:[%s6663_s26 + $0xd00] sm:$0xff] }
  0xa1   : > { %1077 = vst [vmem:[%s6668_s27 + $0x488] sm:$0xff] %v1076_v17  ;;  %v1204_v17 = vld [vmem:[%s6663_s26 + $0xd10] sm:$0xff] }
  0xa2   : > { %1079 = vst [vmem:[%s6668_s27 + $0x490] sm:$0xff] %v1078_v18  ;;  %v1206_v18 = vld [vmem:[%s6663_s26 + $0xd20] sm:$0xff] }
  0xa3   : > { %1081 = vst [vmem:[%s6668_s27 + $0x498] sm:$0xff] %v1080_v19  ;;  %v1208_v19 = vld [vmem:[%s6663_s26 + $0xd30] sm:$0xff] }
  0xa4   : > { %1083 = vst [vmem:[%s6668_s27 + $0x4a0] sm:$0xff] %v1082_v20  ;;  %v1210_v20 = vld [vmem:[%s6663_s26 + $0xd40] sm:$0xff] }
  0xa5   : > { %1085 = vst [vmem:[%s6668_s27 + $0x4a8] sm:$0xff] %v1084_v21  ;;  %v1212_v21 = vld [vmem:[%s6663_s26 + $0xd50] sm:$0xff] }
  0xa6   : > { %1087 = vst [vmem:[%s6668_s27 + $0x4b0] sm:$0xff] %v1086_v22  ;;  %v1214_v22 = vld [vmem:[%s6663_s26 + $0xd60] sm:$0xff] }
  0xa7   : > { %1089 = vst [vmem:[%s6668_s27 + $0x4b8] sm:$0xff] %v1088_v23  ;;  %v1216_v23 = vld [vmem:[%s6663_s26 + $0xd70] sm:$0xff] }
  0xa8   : > { %1091 = vst [vmem:[%s6668_s27 + $0x4c0] sm:$0xff] %v1090_v24  ;;  %v1218_v24 = vld [vmem:[%s6663_s26 + $0xd80] sm:$0xff] }
  0xa9   : > { %1093 = vst [vmem:[%s6668_s27 + $0x4c8] sm:$0xff] %v1092_v25  ;;  %v1220_v25 = vld [vmem:[%s6663_s26 + $0xd90] sm:$0xff] }
  0xaa   : > { %1095 = vst [vmem:[%s6668_s27 + $0x4d0] sm:$0xff] %v1094_v26  ;;  %v1222_v26 = vld [vmem:[%s6663_s26 + $0xda0] sm:$0xff] }
  0xab   : > { %1097 = vst [vmem:[%s6668_s27 + $0x4d8] sm:$0xff] %v1096_v27  ;;  %v1224_v27 = vld [vmem:[%s6663_s26 + $0xdb0] sm:$0xff] }
  0xac   : > { %1099 = vst [vmem:[%s6668_s27 + $0x4e0] sm:$0xff] %v1098_v28  ;;  %v1226_v28 = vld [vmem:[%s6663_s26 + $0xdc0] sm:$0xff] }
  0xad   : > { %1101 = vst [vmem:[%s6668_s27 + $0x4e8] sm:$0xff] %v1100_v29  ;;  %v1228_v29 = vld [vmem:[%s6663_s26 + $0xdd0] sm:$0xff] }
  0xae   : > { %1103 = vst [vmem:[%s6668_s27 + $0x4f0] sm:$0xff] %v1102_v30  ;;  %v1230_v30 = vld [vmem:[%s6663_s26 + $0xde0] sm:$0xff] }
  0xaf   : > { %1105 = vst [vmem:[%s6668_s27 + $0x4f8] sm:$0xff] %v1104_v31  ;;  %v1232_v31 = vld [vmem:[%s6663_s26 + $0xdf0] sm:$0xff] }
  0xb0   : > { %1107 = vst [vmem:[%s6668_s27 + $0x500] sm:$0xff] %v1106_v32  ;;  %v1234_v32 = vld [vmem:[%s6663_s26 + $0xe00] sm:$0xff] }
  0xb1   : > { %1109 = vst [vmem:[%s6668_s27 + $0x508] sm:$0xff] %v1108_v33  ;;  %v1236_v33 = vld [vmem:[%s6663_s26 + $0xe10] sm:$0xff] }
  0xb2   : > { %1111 = vst [vmem:[%s6668_s27 + $0x510] sm:$0xff] %v1110_v34  ;;  %v1238_v34 = vld [vmem:[%s6663_s26 + $0xe20] sm:$0xff] }
  0xb3   : > { %1113 = vst [vmem:[%s6668_s27 + $0x518] sm:$0xff] %v1112_v35  ;;  %v1240_v35 = vld [vmem:[%s6663_s26 + $0xe30] sm:$0xff] }
  0xb4   : > { %1115 = vst [vmem:[%s6668_s27 + $0x520] sm:$0xff] %v1114_v36  ;;  %v1242_v36 = vld [vmem:[%s6663_s26 + $0xe40] sm:$0xff] }
  0xb5   : > { %1117 = vst [vmem:[%s6668_s27 + $0x528] sm:$0xff] %v1116_v37  ;;  %v1244_v37 = vld [vmem:[%s6663_s26 + $0xe50] sm:$0xff] }
  0xb6   : > { %1119 = vst [vmem:[%s6668_s27 + $0x530] sm:$0xff] %v1118_v38  ;;  %v1246_v38 = vld [vmem:[%s6663_s26 + $0xe60] sm:$0xff] }
  0xb7   : > { %1121 = vst [vmem:[%s6668_s27 + $0x538] sm:$0xff] %v1120_v39  ;;  %v1248_v39 = vld [vmem:[%s6663_s26 + $0xe70] sm:$0xff] }
  0xb8   : > { %1123 = vst [vmem:[%s6668_s27 + $0x540] sm:$0xff] %v1122_v40  ;;  %v1250_v40 = vld [vmem:[%s6663_s26 + $0xe80] sm:$0xff] }
  0xb9   : > { %1125 = vst [vmem:[%s6668_s27 + $0x548] sm:$0xff] %v1124_v41  ;;  %v1252_v41 = vld [vmem:[%s6663_s26 + $0xe90] sm:$0xff] }
  0xba   : > { %1127 = vst [vmem:[%s6668_s27 + $0x550] sm:$0xff] %v1126_v42  ;;  %v1254_v42 = vld [vmem:[%s6663_s26 + $0xea0] sm:$0xff] }
  0xbb   : > { %1129 = vst [vmem:[%s6668_s27 + $0x558] sm:$0xff] %v1128_v43  ;;  %v1256_v43 = vld [vmem:[%s6663_s26 + $0xeb0] sm:$0xff] }
  0xbc   : > { %1131 = vst [vmem:[%s6668_s27 + $0x560] sm:$0xff] %v1130_v44  ;;  %v1258_v44 = vld [vmem:[%s6663_s26 + $0xec0] sm:$0xff] }
  0xbd   : > { %1133 = vst [vmem:[%s6668_s27 + $0x568] sm:$0xff] %v1132_v45  ;;  %v1260_v45 = vld [vmem:[%s6663_s26 + $0xed0] sm:$0xff] }
  0xbe   : > { %1135 = vst [vmem:[%s6668_s27 + $0x570] sm:$0xff] %v1134_v46  ;;  %v1262_v46 = vld [vmem:[%s6663_s26 + $0xee0] sm:$0xff] }
  0xbf   : > { %1137 = vst [vmem:[%s6668_s27 + $0x578] sm:$0xff] %v1136_v47  ;;  %v1264_v47 = vld [vmem:[%s6663_s26 + $0xef0] sm:$0xff] }
  0xc0   : > { %1139 = vst [vmem:[%s6668_s27 + $0x580] sm:$0xff] %v1138_v48  ;;  %v1266_v48 = vld [vmem:[%s6663_s26 + $0xf00] sm:$0xff] }
  0xc1   : > { %1141 = vst [vmem:[%s6668_s27 + $0x588] sm:$0xff] %v1140_v49  ;;  %v1268_v49 = vld [vmem:[%s6663_s26 + $0xf10] sm:$0xff] }
  0xc2   : > { %1143 = vst [vmem:[%s6668_s27 + $0x590] sm:$0xff] %v1142_v50  ;;  %v1270_v50 = vld [vmem:[%s6663_s26 + $0xf20] sm:$0xff] }
  0xc3   : > { %1145 = vst [vmem:[%s6668_s27 + $0x598] sm:$0xff] %v1144_v51  ;;  %v1272_v51 = vld [vmem:[%s6663_s26 + $0xf30] sm:$0xff] }
  0xc4   : > { %1147 = vst [vmem:[%s6668_s27 + $0x5a0] sm:$0xff] %v1146_v52  ;;  %v1274_v52 = vld [vmem:[%s6663_s26 + $0xf40] sm:$0xff] }
  0xc5   : > { %1149 = vst [vmem:[%s6668_s27 + $0x5a8] sm:$0xff] %v1148_v53  ;;  %v1276_v53 = vld [vmem:[%s6663_s26 + $0xf50] sm:$0xff] }
  0xc6   : > { %1151 = vst [vmem:[%s6668_s27 + $0x5b0] sm:$0xff] %v1150_v54  ;;  %v1278_v54 = vld [vmem:[%s6663_s26 + $0xf60] sm:$0xff] }
  0xc7   : > { %1153 = vst [vmem:[%s6668_s27 + $0x5b8] sm:$0xff] %v1152_v55  ;;  %v1280_v55 = vld [vmem:[%s6663_s26 + $0xf70] sm:$0xff] }
  0xc8   : > { %1155 = vst [vmem:[%s6668_s27 + $0x5c0] sm:$0xff] %v1154_v56  ;;  %v1282_v56 = vld [vmem:[%s6663_s26 + $0xf80] sm:$0xff] }
  0xc9   : > { %1157 = vst [vmem:[%s6668_s27 + $0x5c8] sm:$0xff] %v1156_v57  ;;  %v1284_v57 = vld [vmem:[%s6663_s26 + $0xf90] sm:$0xff] }
  0xca   : > { %1159 = vst [vmem:[%s6668_s27 + $0x5d0] sm:$0xff] %v1158_v58  ;;  %v1286_v58 = vld [vmem:[%s6663_s26 + $0xfa0] sm:$0xff] }
  0xcb   : > { %1161 = vst [vmem:[%s6668_s27 + $0x5d8] sm:$0xff] %v1160_v59  ;;  %v1288_v59 = vld [vmem:[%s6663_s26 + $0xfb0] sm:$0xff] }
  0xcc   : > { %1163 = vst [vmem:[%s6668_s27 + $0x5e0] sm:$0xff] %v1162_v60  ;;  %v1290_v60 = vld [vmem:[%s6663_s26 + $0xfc0] sm:$0xff] }
  0xcd   : > { %1165 = vst [vmem:[%s6668_s27 + $0x5e8] sm:$0xff] %v1164_v61  ;;  %v1292_v61 = vld [vmem:[%s6663_s26 + $0xfd0] sm:$0xff] }
  0xce   : > { %1167 = vst [vmem:[%s6668_s27 + $0x5f0] sm:$0xff] %v1166_v62  ;;  %v1294_v62 = vld [vmem:[%s6663_s26 + $0xfe0] sm:$0xff] }
  0xcf   : > { %1169 = vst [vmem:[%s6668_s27 + $0x5f8] sm:$0xff] %v1168_v63  ;;  %v1296_v63 = vld [vmem:[%s6663_s26 + $0xff0] sm:$0xff] }
  0xd0   : > { %1171 = vst [vmem:[%s6668_s27 + $0x600] sm:$0xff] %v1170_v0  ;;  %v1298_v0 = vld [vmem:[%s6663_s26 + $0x1000] sm:$0xff] }
  0xd1   : > { %1173 = vst [vmem:[%s6668_s27 + $0x608] sm:$0xff] %v1172_v1  ;;  %v1300_v1 = vld [vmem:[%s6663_s26 + $0x1010] sm:$0xff] }
  0xd2   : > { %1175 = vst [vmem:[%s6668_s27 + $0x610] sm:$0xff] %v1174_v2  ;;  %v1302_v2 = vld [vmem:[%s6663_s26 + $0x1020] sm:$0xff] }
  0xd3   : > { %1177 = vst [vmem:[%s6668_s27 + $0x618] sm:$0xff] %v1176_v3  ;;  %v1304_v3 = vld [vmem:[%s6663_s26 + $0x1030] sm:$0xff] }
  0xd4   : > { %1179 = vst [vmem:[%s6668_s27 + $0x620] sm:$0xff] %v1178_v4  ;;  %v1306_v4 = vld [vmem:[%s6663_s26 + $0x1040] sm:$0xff] }
  0xd5   : > { %1181 = vst [vmem:[%s6668_s27 + $0x628] sm:$0xff] %v1180_v5  ;;  %v1308_v5 = vld [vmem:[%s6663_s26 + $0x1050] sm:$0xff] }
  0xd6   : > { %1183 = vst [vmem:[%s6668_s27 + $0x630] sm:$0xff] %v1182_v6  ;;  %v1310_v6 = vld [vmem:[%s6663_s26 + $0x1060] sm:$0xff] }
  0xd7   : > { %1185 = vst [vmem:[%s6668_s27 + $0x638] sm:$0xff] %v1184_v7  ;;  %v1312_v7 = vld [vmem:[%s6663_s26 + $0x1070] sm:$0xff] }
  0xd8   : > { %1187 = vst [vmem:[%s6668_s27 + $0x640] sm:$0xff] %v1186_v8  ;;  %v1314_v8 = vld [vmem:[%s6663_s26 + $0x1080] sm:$0xff] }
  0xd9   : > { %1189 = vst [vmem:[%s6668_s27 + $0x648] sm:$0xff] %v1188_v9  ;;  %v1316_v9 = vld [vmem:[%s6663_s26 + $0x1090] sm:$0xff] }
  0xda   : > { %1191 = vst [vmem:[%s6668_s27 + $0x650] sm:$0xff] %v1190_v10  ;;  %v1318_v10 = vld [vmem:[%s6663_s26 + $0x10a0] sm:$0xff] }
  0xdb   : > { %1193 = vst [vmem:[%s6668_s27 + $0x658] sm:$0xff] %v1192_v11  ;;  %v1320_v11 = vld [vmem:[%s6663_s26 + $0x10b0] sm:$0xff] }
  0xdc   : > { %1195 = vst [vmem:[%s6668_s27 + $0x660] sm:$0xff] %v1194_v12  ;;  %v1322_v12 = vld [vmem:[%s6663_s26 + $0x10c0] sm:$0xff] }
  0xdd   : > { %1197 = vst [vmem:[%s6668_s27 + $0x668] sm:$0xff] %v1196_v13  ;;  %v1324_v13 = vld [vmem:[%s6663_s26 + $0x10d0] sm:$0xff] }
  0xde   : > { %1199 = vst [vmem:[%s6668_s27 + $0x670] sm:$0xff] %v1198_v14  ;;  %v1326_v14 = vld [vmem:[%s6663_s26 + $0x10e0] sm:$0xff] }
  0xdf   : > { %1201 = vst [vmem:[%s6668_s27 + $0x678] sm:$0xff] %v1200_v15  ;;  %v1328_v15 = vld [vmem:[%s6663_s26 + $0x10f0] sm:$0xff] }
  0xe0   : > { %1203 = vst [vmem:[%s6668_s27 + $0x680] sm:$0xff] %v1202_v16  ;;  %v1330_v16 = vld [vmem:[%s6663_s26 + $0x1100] sm:$0xff] }
  0xe1   : > { %1205 = vst [vmem:[%s6668_s27 + $0x688] sm:$0xff] %v1204_v17  ;;  %v1332_v17 = vld [vmem:[%s6663_s26 + $0x1110] sm:$0xff] }
  0xe2   : > { %1207 = vst [vmem:[%s6668_s27 + $0x690] sm:$0xff] %v1206_v18  ;;  %v1334_v18 = vld [vmem:[%s6663_s26 + $0x1120] sm:$0xff] }
  0xe3   : > { %1209 = vst [vmem:[%s6668_s27 + $0x698] sm:$0xff] %v1208_v19  ;;  %v1336_v19 = vld [vmem:[%s6663_s26 + $0x1130] sm:$0xff] }
  0xe4   : > { %1211 = vst [vmem:[%s6668_s27 + $0x6a0] sm:$0xff] %v1210_v20  ;;  %v1338_v20 = vld [vmem:[%s6663_s26 + $0x1140] sm:$0xff] }
  0xe5   : > { %1213 = vst [vmem:[%s6668_s27 + $0x6a8] sm:$0xff] %v1212_v21  ;;  %v1340_v21 = vld [vmem:[%s6663_s26 + $0x1150] sm:$0xff] }
  0xe6   : > { %1215 = vst [vmem:[%s6668_s27 + $0x6b0] sm:$0xff] %v1214_v22  ;;  %v1342_v22 = vld [vmem:[%s6663_s26 + $0x1160] sm:$0xff] }
  0xe7   : > { %1217 = vst [vmem:[%s6668_s27 + $0x6b8] sm:$0xff] %v1216_v23  ;;  %v1344_v23 = vld [vmem:[%s6663_s26 + $0x1170] sm:$0xff] }
  0xe8   : > { %1219 = vst [vmem:[%s6668_s27 + $0x6c0] sm:$0xff] %v1218_v24  ;;  %v1346_v24 = vld [vmem:[%s6663_s26 + $0x1180] sm:$0xff] }
  0xe9   : > { %1221 = vst [vmem:[%s6668_s27 + $0x6c8] sm:$0xff] %v1220_v25  ;;  %v1348_v25 = vld [vmem:[%s6663_s26 + $0x1190] sm:$0xff] }
  0xea   : > { %1223 = vst [vmem:[%s6668_s27 + $0x6d0] sm:$0xff] %v1222_v26  ;;  %v1350_v26 = vld [vmem:[%s6663_s26 + $0x11a0] sm:$0xff] }
  0xeb   : > { %1225 = vst [vmem:[%s6668_s27 + $0x6d8] sm:$0xff] %v1224_v27  ;;  %v1352_v27 = vld [vmem:[%s6663_s26 + $0x11b0] sm:$0xff] }
  0xec   : > { %1227 = vst [vmem:[%s6668_s27 + $0x6e0] sm:$0xff] %v1226_v28  ;;  %v1354_v28 = vld [vmem:[%s6663_s26 + $0x11c0] sm:$0xff] }
  0xed   : > { %1229 = vst [vmem:[%s6668_s27 + $0x6e8] sm:$0xff] %v1228_v29  ;;  %v1356_v29 = vld [vmem:[%s6663_s26 + $0x11d0] sm:$0xff] }
  0xee   : > { %1231 = vst [vmem:[%s6668_s27 + $0x6f0] sm:$0xff] %v1230_v30  ;;  %v1358_v30 = vld [vmem:[%s6663_s26 + $0x11e0] sm:$0xff] }
  0xef   : > { %1233 = vst [vmem:[%s6668_s27 + $0x6f8] sm:$0xff] %v1232_v31  ;;  %v1360_v31 = vld [vmem:[%s6663_s26 + $0x11f0] sm:$0xff] }
  0xf0   : > { %1235 = vst [vmem:[%s6668_s27 + $0x700] sm:$0xff] %v1234_v32 }
  0xf1   : > { %1237 = vst [vmem:[%s6668_s27 + $0x708] sm:$0xff] %v1236_v33 }
  0xf2   : > { %1239 = vst [vmem:[%s6668_s27 + $0x710] sm:$0xff] %v1238_v34 }
  0xf3   : > { %1241 = vst [vmem:[%s6668_s27 + $0x718] sm:$0xff] %v1240_v35 }
  0xf4   : > { %1243 = vst [vmem:[%s6668_s27 + $0x720] sm:$0xff] %v1242_v36 }
  0xf5   : > { %1245 = vst [vmem:[%s6668_s27 + $0x728] sm:$0xff] %v1244_v37 }
  0xf6   : > { %1247 = vst [vmem:[%s6668_s27 + $0x730] sm:$0xff] %v1246_v38 }
  0xf7   : > { %1249 = vst [vmem:[%s6668_s27 + $0x738] sm:$0xff] %v1248_v39 }
  0xf8   : > { %1251 = vst [vmem:[%s6668_s27 + $0x740] sm:$0xff] %v1250_v40 }
  0xf9   : > { %1253 = vst [vmem:[%s6668_s27 + $0x748] sm:$0xff] %v1252_v41 }
  0xfa   : > { %1255 = vst [vmem:[%s6668_s27 + $0x750] sm:$0xff] %v1254_v42 }
  0xfb   : > { %1257 = vst [vmem:[%s6668_s27 + $0x758] sm:$0xff] %v1256_v43 }
  0xfc   : > { %1259 = vst [vmem:[%s6668_s27 + $0x760] sm:$0xff] %v1258_v44 }
  0xfd   : > { %1261 = vst [vmem:[%s6668_s27 + $0x768] sm:$0xff] %v1260_v45 }
  0xfe   : > { %1263 = vst [vmem:[%s6668_s27 + $0x770] sm:$0xff] %v1262_v46 }
  0xff   : > { %1265 = vst [vmem:[%s6668_s27 + $0x778] sm:$0xff] %v1264_v47 }
 0x100   : > { %1267 = vst [vmem:[%s6668_s27 + $0x780] sm:$0xff] %v1266_v48 }
 0x101   : > { %1269 = vst [vmem:[%s6668_s27 + $0x788] sm:$0xff] %v1268_v49 }
 0x102   : > { %1271 = vst [vmem:[%s6668_s27 + $0x790] sm:$0xff] %v1270_v50 }
 0x103   : > { %1273 = vst [vmem:[%s6668_s27 + $0x798] sm:$0xff] %v1272_v51 }
 0x104   : > { %1275 = vst [vmem:[%s6668_s27 + $0x7a0] sm:$0xff] %v1274_v52 }
 0x105   : > { %1277 = vst [vmem:[%s6668_s27 + $0x7a8] sm:$0xff] %v1276_v53 }
 0x106   : > { %1279 = vst [vmem:[%s6668_s27 + $0x7b0] sm:$0xff] %v1278_v54 }
 0x107   : > { %1281 = vst [vmem:[%s6668_s27 + $0x7b8] sm:$0xff] %v1280_v55 }
 0x108   : > { %1283 = vst [vmem:[%s6668_s27 + $0x7c0] sm:$0xff] %v1282_v56 }
 0x109   : > { %1285 = vst [vmem:[%s6668_s27 + $0x7c8] sm:$0xff] %v1284_v57 }
 0x10a   : > { %1287 = vst [vmem:[%s6668_s27 + $0x7d0] sm:$0xff] %v1286_v58 }
 0x10b   : > { %1289 = vst [vmem:[%s6668_s27 + $0x7d8] sm:$0xff] %v1288_v59 }
 0x10c   : > { %1291 = vst [vmem:[%s6668_s27 + $0x7e0] sm:$0xff] %v1290_v60 }
 0x10d   : > { %1293 = vst [vmem:[%s6668_s27 + $0x7e8] sm:$0xff] %v1292_v61 }
 0x10e   : > { %1295 = vst [vmem:[%s6668_s27 + $0x7f0] sm:$0xff] %v1294_v62 }
 0x10f   : > { %1297 = vst [vmem:[%s6668_s27 + $0x7f8] sm:$0xff] %v1296_v63 }
 0x110   : > { %1299 = vst [vmem:[%s6668_s27 + $0x800] sm:$0xff] %v1298_v0 }
 0x111   : > { %1301 = vst [vmem:[%s6668_s27 + $0x808] sm:$0xff] %v1300_v1 }
 0x112   : > { %1303 = vst [vmem:[%s6668_s27 + $0x810] sm:$0xff] %v1302_v2 }
 0x113   : > { %1305 = vst [vmem:[%s6668_s27 + $0x818] sm:$0xff] %v1304_v3 }
 0x114   : > { %1307 = vst [vmem:[%s6668_s27 + $0x820] sm:$0xff] %v1306_v4 }
 0x115   : > { %1309 = vst [vmem:[%s6668_s27 + $0x828] sm:$0xff] %v1308_v5 }
 0x116   : > { %1311 = vst [vmem:[%s6668_s27 + $0x830] sm:$0xff] %v1310_v6 }
 0x117   : > { %1313 = vst [vmem:[%s6668_s27 + $0x838] sm:$0xff] %v1312_v7 }
 0x118   : > { %1315 = vst [vmem:[%s6668_s27 + $0x840] sm:$0xff] %v1314_v8 }
 0x119   : > { %1317 = vst [vmem:[%s6668_s27 + $0x848] sm:$0xff] %v1316_v9 }
 0x11a   : > { %1319 = vst [vmem:[%s6668_s27 + $0x850] sm:$0xff] %v1318_v10 }
 0x11b   : > { %1321 = vst [vmem:[%s6668_s27 + $0x858] sm:$0xff] %v1320_v11 }
 0x11c   : > { %1323 = vst [vmem:[%s6668_s27 + $0x860] sm:$0xff] %v1322_v12 }
 0x11d   : > { %1325 = vst [vmem:[%s6668_s27 + $0x868] sm:$0xff] %v1324_v13 }
 0x11e   : > { %1327 = vst [vmem:[%s6668_s27 + $0x870] sm:$0xff] %v1326_v14 }
 0x11f   : > { %1329 = vst [vmem:[%s6668_s27 + $0x878] sm:$0xff] %v1328_v15 }
 0x120   : > { %1331 = vst [vmem:[%s6668_s27 + $0x880] sm:$0xff] %v1330_v16 }
 0x121   : > { %1333 = vst [vmem:[%s6668_s27 + $0x888] sm:$0xff] %v1332_v17 }
 0x122   : > { %1335 = vst [vmem:[%s6668_s27 + $0x890] sm:$0xff] %v1334_v18 }
 0x123   : > { %1337 = vst [vmem:[%s6668_s27 + $0x898] sm:$0xff] %v1336_v19 }
 0x124   : > { %1339 = vst [vmem:[%s6668_s27 + $0x8a0] sm:$0xff] %v1338_v20 }
 0x125   : > { %1341 = vst [vmem:[%s6668_s27 + $0x8a8] sm:$0xff] %v1340_v21 }
 0x126   : > { %1343 = vst [vmem:[%s6668_s27 + $0x8b0] sm:$0xff] %v1342_v22 }
 0x127   : > { %1345 = vst [vmem:[%s6668_s27 + $0x8b8] sm:$0xff] %v1344_v23 }
 0x128   : > { %1347 = vst [vmem:[%s6668_s27 + $0x8c0] sm:$0xff] %v1346_v24 }
 0x129   : > { %1349 = vst [vmem:[%s6668_s27 + $0x8c8] sm:$0xff] %v1348_v25 }
 0x12a   : > { %1351 = vst [vmem:[%s6668_s27 + $0x8d0] sm:$0xff] %v1350_v26 }
 0x12b   : > { %1353 = vst [vmem:[%s6668_s27 + $0x8d8] sm:$0xff] %v1352_v27 }
 0x12c   : > { %1355 = vst [vmem:[%s6668_s27 + $0x8e0] sm:$0xff] %v1354_v28 }
 0x12d   : > { %1357 = vst [vmem:[%s6668_s27 + $0x8e8] sm:$0xff] %v1356_v29 }
 0x12e   : > { %1359 = vst [vmem:[%s6668_s27 + $0x8f0] sm:$0xff] %v1358_v30 }
 0x12f   : > { %1361 = vst [vmem:[%s6668_s27 + $0x8f8] sm:$0xff] %v1360_v31 }
 0x130 PF: > { %p5071_p6 = scmp.ge.s32.totalorder %s6598_s16, 1  ;;  %p2561_p7 = scmp.lt.s32.totalorder %s6598_s16, 3 }
 0x132   : > { %p2562_p8 = pnand %p5071_p6, %p2561_p7 }
 0x133   : > { %s2568_s28 = sand.u32 (!%p2562_p8), 1, %s6582_s12  }
 0x134   : > { %2565 = sbr.rel (%p2562_p8) target bundleno = 748 (0x2ec), region = 80 }
 0x135   : > { %s6519_s29 = smul.u32 (!%p2562_p8), 2304, %s2568_s28  ;;  %s5072_s28 = sshll.u32 (!%p2562_p8), %s6590_s14, 1 }
 0x136   : > { %p2621_p9 = scmp.lt.s32.totalorder (!%p2562_p8), %s5072_s28, 3 }
 0x137   : > { %s7246_s30 = scalar_lea.vmem (!%p2562_p8), [#allocation3], %s6519_s29 }
 0x139   : > { %v5133_v32 = vld [vmem:[%s7246_s30 + $0x70] sm:$0xf]  ;;  %v6245_v33 = vld [vmem:[%s7246_s30 + $0x74] sm:$0xf0]  ;;  %v5125_v43 = vld [vmem:[%s7246_s30 + $0x60] sm:$0xf] }
 0x13a   : > { %v5197_v34 = vld [vmem:[%s7246_s30 + $0xf0] sm:$0xf]  ;;  %v5134_v35 = vor.u32 %v6245_v33, %v5133_v32  ;;  %v6261_v36 = vld [vmem:[%s7246_s30 + $0xf4] sm:$0xf0]  ;;  %v6243_v45 = vld [vmem:[%s7246_s30 + $0x64] sm:$0xf0] }
 0x13b   : > { %v5261_v37 = vld [vmem:[%s7246_s30 + $0x170] sm:$0xf]  ;;  %v6277_v38 = vld [vmem:[%s7246_s30 + $0x174] sm:$0xf0]  ;;  %v5198_v39 = vor.u32 %v6261_v36, %v5197_v34  ;;  %v5189_v46 = vld [vmem:[%s7246_s30 + $0xe0] sm:$0xf]  ;;  %v5126_v48 = vor.u32 %v6243_v45, %v5125_v43 }
 0x13c   : > { %v5262_v40 = vor.u32 %v6277_v38, %v5261_v37  ;;  %v5325_v41 = vld [vmem:[%s7246_s30 + $0x1f0] sm:$0xf]  ;;  %v6293_v42 = vld [vmem:[%s7246_s30 + $0x1f4] sm:$0xf0]  ;;  %4443 = vmatpush.bf16.msra.mxu0 %v5134_v35  ;;  %v6259_v47 = vld [vmem:[%s7246_s30 + $0xe4] sm:$0xf0] }
 0x13d   : > { %v5326_v44 = vor.u32 %v6293_v42, %v5325_v41  ;;  %4456 = vmatpush.bf16.msra.mxu1 %v5198_v39  ;;  %v5190_v49 = vor.u32 %v6259_v47, %v5189_v46  ;;  %v5253_v50 = vld [vmem:[%s7246_s30 + $0x160] sm:$0xf]  ;;  %v6275_v51 = vld [vmem:[%s7246_s30 + $0x164] sm:$0xf0]  ;;  %v5117_v55 = vld [vmem:[%s7246_s30 + $0x50] sm:$0xf] }
 0x13e   : > { %4469 = vmatpush.bf16.msra.mxu2 %v5262_v40  ;;  %v5317_v52 = vld [vmem:[%s7246_s30 + $0x1e0] sm:$0xf]  ;;  %v5254_v53 = vor.u32 %v6275_v51, %v5253_v50  ;;  %v6291_v54 = vld [vmem:[%s7246_s30 + $0x1e4] sm:$0xf0]  ;;  %v6241_v56 = vld [vmem:[%s7246_s30 + $0x54] sm:$0xf0] }
 0x13f   : > { %4482 = vmatpush.bf16.msra.mxu3 %v5326_v44  ;;  %v5318_v57 = vor.u32 %v6291_v54, %v5317_v52  ;;  %v5181_v58 = vld [vmem:[%s7246_s30 + $0xd0] sm:$0xf]  ;;  %v6257_v59 = vld [vmem:[%s7246_s30 + $0xd4] sm:$0xf0]  ;;  %v5118_v61 = vor.u32 %v6241_v56, %v5117_v55  ;;  %v5109_v3 = vld [vmem:[%s7246_s30 + $0x40] sm:$0xf] }
 0x140   : > { %v5245_v60 = vld [vmem:[%s7246_s30 + $0x150] sm:$0xf]  ;;  %4444 = vmatpush.bf16.msra.mxu0 %v5126_v48  ;;  %v6273_v62 = vld [vmem:[%s7246_s30 + $0x154] sm:$0xf0]  ;;  %v5182_v1 = vor.u32 %v6257_v59, %v5181_v58  ;;  %v6239_v4 = vld [vmem:[%s7246_s30 + $0x44] sm:$0xf0] }
 0x141   : > { %v5309_v63 = vld [vmem:[%s7246_s30 + $0x1d0] sm:$0xf]  ;;  %v6289_v0 = vld [vmem:[%s7246_s30 + $0x1d4] sm:$0xf0]  ;;  %4457 = vmatpush.bf16.msra.mxu1 %v5190_v49  ;;  %v5246_v2 = vor.u32 %v6273_v62, %v5245_v60  ;;  %v5173_v5 = vld [vmem:[%s7246_s30 + $0xc0] sm:$0xf]  ;;  %v5110_v12 = vor.u32 %v6239_v4, %v5109_v3 }
 0x142   : > { %4470 = vmatpush.bf16.msra.mxu2 %v5254_v53  ;;  %v5310_v6 = vor.u32 %v6289_v0, %v5309_v63  ;;  %v6255_v7 = vld [vmem:[%s7246_s30 + $0xc4] sm:$0xf0]  ;;  %v5237_v8 = vld [vmem:[%s7246_s30 + $0x140] sm:$0xf]  ;;  %v5101_v15 = vld [vmem:[%s7246_s30 + $0x30] sm:$0xf] }
 0x143   : > { %4483 = vmatpush.bf16.msra.mxu3 %v5318_v57  ;;  %v6271_v9 = vld [vmem:[%s7246_s30 + $0x144] sm:$0xf0]  ;;  %v5301_v10 = vld [vmem:[%s7246_s30 + $0x1c0] sm:$0xf]  ;;  %v5174_v13 = vor.u32 %v6255_v7, %v5173_v5  ;;  %v6237_v16 = vld [vmem:[%s7246_s30 + $0x34] sm:$0xf0] }
 0x144   : > { %v6287_v11 = vld [vmem:[%s7246_s30 + $0x1c4] sm:$0xf0]  ;;  %4445 = vmatpush.bf16.msra.mxu0 %v5118_v61  ;;  %v5238_v14 = vor.u32 %v6271_v9, %v5237_v8  ;;  %v5165_v17 = vld [vmem:[%s7246_s30 + $0xb0] sm:$0xf]  ;;  %v6253_v19 = vld [vmem:[%s7246_s30 + $0xb4] sm:$0xf0]  ;;  %v5102_v24 = vor.u32 %v6237_v16, %v5101_v15 }
 0x145   : > { %4458 = vmatpush.bf16.msra.mxu1 %v5182_v1  ;;  %v5302_v18 = vor.u32 %v6287_v11, %v5301_v10  ;;  %v5229_v20 = vld [vmem:[%s7246_s30 + $0x130] sm:$0xf]  ;;  %v6269_v21 = vld [vmem:[%s7246_s30 + $0x134] sm:$0xf0]  ;;  %v5166_v25 = vor.u32 %v6253_v19, %v5165_v17  ;;  %v5093_v27 = vld [vmem:[%s7246_s30 + $0x20] sm:$0xf] }
 0x146   : > { %4471 = vmatpush.bf16.msra.mxu2 %v5246_v2  ;;  %v5293_v22 = vld [vmem:[%s7246_s30 + $0x1b0] sm:$0xf]  ;;  %v6285_v23 = vld [vmem:[%s7246_s30 + $0x1b4] sm:$0xf0]  ;;  %v5230_v26 = vor.u32 %v6269_v21, %v5229_v20  ;;  %v6235_v28 = vld [vmem:[%s7246_s30 + $0x24] sm:$0xf0] }
 0x147   : > { %4484 = vmatpush.bf16.msra.mxu3 %v5310_v6  ;;  %v5157_v29 = vld [vmem:[%s7246_s30 + $0xa0] sm:$0xf]  ;;  %v5294_v30 = vor.u32 %v6285_v23, %v5293_v22  ;;  %v6251_v31 = vld [vmem:[%s7246_s30 + $0xa4] sm:$0xf0]  ;;  %v5094_v36 = vor.u32 %v6235_v28, %v5093_v27  ;;  %v5085_v39 = vld [vmem:[%s7246_s30 + $0x10] sm:$0xf] }
 0x148   : > { %4446 = vmatpush.bf16.msra.mxu0 %v5110_v12  ;;  %v5221_v32 = vld [vmem:[%s7246_s30 + $0x120] sm:$0xf]  ;;  %v6267_v33 = vld [vmem:[%s7246_s30 + $0x124] sm:$0xf0]  ;;  %v5158_v37 = vor.u32 %v6251_v31, %v5157_v29  ;;  %v6233_v40 = vld [vmem:[%s7246_s30 + $0x14] sm:$0xf0] }
 0x149   : > { %4459 = vmatpush.bf16.msra.mxu1 %v5174_v13  ;;  %v5285_v34 = vld [vmem:[%s7246_s30 + $0x1a0] sm:$0xf]  ;;  %v6283_v35 = vld [vmem:[%s7246_s30 + $0x1a4] sm:$0xf0]  ;;  %v5222_v38 = vor.u32 %v6267_v33, %v5221_v32  ;;  %v5149_v41 = vld [vmem:[%s7246_s30 + $0x90] sm:$0xf]  ;;  %v5086_v48 = vor.u32 %v6233_v40, %v5085_v39 }
 0x14a   : > { %4472 = vmatpush.bf16.msra.mxu2 %v5238_v14  ;;  %v5286_v42 = vor.u32 %v6283_v35, %v5285_v34  ;;  %v6249_v43 = vld [vmem:[%s7246_s30 + $0x94] sm:$0xf0]  ;;  %v5213_v44 = vld [vmem:[%s7246_s30 + $0x110] sm:$0xf]  ;;  %v5077_v49 = vld [vmem:[%s7246_s30] sm:$0xf] }
 0x14b   : > { %4485 = vmatpush.bf16.msra.mxu3 %v5302_v18  ;;  %v6265_v45 = vld [vmem:[%s7246_s30 + $0x114] sm:$0xf0]  ;;  %v5277_v46 = vld [vmem:[%s7246_s30 + $0x190] sm:$0xf]  ;;  %v6231_v50 = vld [vmem:[%s7246_s30 + $0x4] sm:$0xf0]  ;;  %v5150_v51 = vor.u32 %v6249_v43, %v5149_v41 }
 0x14c   : > { %4447 = vmatpush.bf16.msra.mxu0 %v5102_v24  ;;  %v6281_v47 = vld [vmem:[%s7246_s30 + $0x194] sm:$0xf0]  ;;  %v5214_v52 = vor.u32 %v6265_v45, %v5213_v44  ;;  %v5141_v53 = vld [vmem:[%s7246_s30 + $0x80] sm:$0xf]  ;;  %v6247_v54 = vld [vmem:[%s7246_s30 + $0x84] sm:$0xf0]  ;;  %v5078_v63 = vor.u32 %v6231_v50, %v5077_v49 }
 0x14d   : > { %4460 = vmatpush.bf16.msra.mxu1 %v5166_v25  ;;  %v5205_v55 = vld [vmem:[%s7246_s30 + $0x100] sm:$0xf]  ;;  %v5278_v56 = vor.u32 %v6281_v47, %v5277_v46  ;;  %v6263_v57 = vld [vmem:[%s7246_s30 + $0x104] sm:$0xf0]  ;;  %v5389_v60 = vld [vmem:[%s7246_s30 + $0x270] sm:$0xf]  ;;  %v5142_v3 = vor.u32 %v6247_v54, %v5141_v53 }
 0x14e   : > { %4473 = vmatpush.bf16.msra.mxu2 %v5230_v26  ;;  %v5269_v58 = vld [vmem:[%s7246_s30 + $0x180] sm:$0xf]  ;;  %v6279_v59 = vld [vmem:[%s7246_s30 + $0x184] sm:$0xf0]  ;;  %v6309_v61 = vld [vmem:[%s7246_s30 + $0x274] sm:$0xf0]  ;;  %v5206_v4 = vor.u32 %v6263_v57, %v5205_v55 }
 0x14f   : > { %4486 = vmatpush.bf16.msra.mxu3 %v5294_v30  ;;  %v5453_v62 = vld [vmem:[%s7246_s30 + $0x2f0] sm:$0xf]  ;;  %v6325_v0 = vld [vmem:[%s7246_s30 + $0x2f4] sm:$0xf0]  ;;  %v5270_v7 = vor.u32 %v6279_v59, %v5269_v58  ;;  %v5390_v8 = vor.u32 %v6309_v61, %v5389_v60  ;;  %v5381_v11 = vld [vmem:[%s7246_s30 + $0x260] sm:$0xf] }
 0x150   : > { %4448 = vmatpush.bf16.msra.mxu0 %v5094_v36  ;;  %v5517_v1 = vld [vmem:[%s7246_s30 + $0x370] sm:$0xf]  ;;  %v6341_v2 = vld [vmem:[%s7246_s30 + $0x374] sm:$0xf0]  ;;  %v5454_v9 = vor.u32 %v6325_v0, %v5453_v62  ;;  %v6307_v12 = vld [vmem:[%s7246_s30 + $0x264] sm:$0xf0] }
 0x151   : > { %4461 = vmatpush.bf16.msra.mxu1 %v5158_v37  ;;  %v5581_v5 = vld [vmem:[%s7246_s30 + $0x3f0] sm:$0xf]  ;;  %v6357_v6 = vld [vmem:[%s7246_s30 + $0x3f4] sm:$0xf0]  ;;  %v5518_v10 = vor.u32 %v6341_v2, %v5517_v1  ;;  %v5445_v13 = vld [vmem:[%s7246_s30 + $0x2e0] sm:$0xf]  ;;  %v5382_v20 = vor.u32 %v6307_v12, %v5381_v11 }
 0x152   : > { %4474 = vmatpush.bf16.msra.mxu2 %v5222_v38  ;;  %v5582_v14 = vor.u32 %v6357_v6, %v5581_v5  ;;  %v6323_v15 = vld [vmem:[%s7246_s30 + $0x2e4] sm:$0xf0]  ;;  %v5509_v16 = vld [vmem:[%s7246_s30 + $0x360] sm:$0xf]  ;;  %v5373_v21 = vld [vmem:[%s7246_s30 + $0x250] sm:$0xf] }
 0x153   : > { %4487 = vmatpush.bf16.msra.mxu3 %v5286_v42  ;;  %v6339_v17 = vld [vmem:[%s7246_s30 + $0x364] sm:$0xf0]  ;;  %v5573_v18 = vld [vmem:[%s7246_s30 + $0x3e0] sm:$0xf]  ;;  %v5446_v22 = vor.u32 %v6323_v15, %v5445_v13  ;;  %v6305_v24 = vld [vmem:[%s7246_s30 + $0x254] sm:$0xf0] }
 0x154   : > { %4449 = vmatpush.bf16.msra.mxu0 %v5086_v48  ;;  %v6355_v19 = vld [vmem:[%s7246_s30 + $0x3e4] sm:$0xf0]  ;;  %v5510_v23 = vor.u32 %v6339_v17, %v5509_v16  ;;  %v5437_v25 = vld [vmem:[%s7246_s30 + $0x2d0] sm:$0xf]  ;;  %v6321_v28 = vld [vmem:[%s7246_s30 + $0x2d4] sm:$0xf0]  ;;  %v5374_v35 = vor.u32 %v6305_v24, %v5373_v21 }
 0x155   : > { %4462 = vmatpush.bf16.msra.mxu1 %v5150_v51  ;;  %v2644_v26 = vld [vmem:[%s7954_s0 + $0x8] sm:$0xff]  ;;  %v5574_v27 = vor.u32 %v6355_v19, %v5573_v18  ;;  %v5501_v29 = vld [vmem:[%s7246_s30 + $0x350] sm:$0xf]  ;;  %v6337_v30 = vld [vmem:[%s7246_s30 + $0x354] sm:$0xf0]  ;;  %v5438_v39 = vor.u32 %v6321_v28, %v5437_v25  ;;  %s7965_s28 = smov (!%p2621_p9, %s5072_s28), 3 }
 0x156   : > { %4475 = vmatpush.bf16.msra.mxu2 %v5214_v52  ;;  %v2951_v31 = vunpack.c.l.b16 %v2644_v26  ;;  %v2952_v32 = vunpack.c.h.b16 %v2644_v26  ;;  %v5565_v33 = vld [vmem:[%s7246_s30 + $0x3d0] sm:$0xf]  ;;  %v6353_v34 = vld [vmem:[%s7246_s30 + $0x3d4] sm:$0xf0]  ;;  %v2643_v37 = vld [vmem:[%s7954_s0] sm:$0xff]  ;;  %v5502_v40 = vor.u32 %v6337_v30, %v5501_v29  ;;  %s2623_s4 = scalar_lea.vmem %s7956_s2, %s7965_s28  ;;  %s5074_s14 = sshll.u32 %s7965_s28, 2 }
 0x157   : > { %4488 = vmatpush.bf16.msra.mxu3 %v5278_v56  ;;  %v5365_v41 = vld [vmem:[%s7246_s30 + $0x240] sm:$0xf]  ;;  %v6303_v42 = vld [vmem:[%s7246_s30 + $0x244] sm:$0xf0]  ;;  %v2949_v44 = vunpack.c.l.b16 %v2643_v37  ;;  %v2950_v45 = vunpack.c.h.b16 %v2643_v37  ;;  %v5566_v46 = vor.u32 %v6353_v34, %v5565_v33  ;;  %v5357_v57 = vld [vmem:[%s7246_s30 + $0x230] sm:$0xf]  ;;  %s2633_s7 = scalar_lea.vmem %s7957_s3, %s5074_s14 }
 0x158   : > { %4450 = vmatpush.bf16.msra.mxu0 %v5078_v63  ;;  %v7339_v36 = vpack.c.b16 %v2951_v31, %v2951_v31  ;;  %v7344_v38 = vpack.c.b16 %v2952_v32, %v2952_v32  ;;  %v5429_v43 = vld [vmem:[%s7246_s30 + $0x2c0] sm:$0xf]  ;;  %v6319_v47 = vld [vmem:[%s7246_s30 + $0x2c4] sm:$0xf0]  ;;  %v5366_v54 = vor.u32 %v6303_v42, %v5365_v41  ;;  %v6301_v58 = vld [vmem:[%s7246_s30 + $0x234] sm:$0xf0] }
 0x159   : > { %4463 = vmatpush.bf16.msra.mxu1 %v5142_v3  ;;  %v5493_v48 = vld [vmem:[%s7246_s30 + $0x340] sm:$0xf]  ;;  %v6335_v49 = vld [vmem:[%s7246_s30 + $0x344] sm:$0xf0]  ;;  %v7355_v52 = vpack.c.b16 %v2949_v44, %v2949_v44  ;;  %v7358_v53 = vpack.c.b16 %v2950_v45, %v2950_v45  ;;  %v5430_v55 = vor.u32 %v6319_v47, %v5429_v43  ;;  %v5421_v59 = vld [vmem:[%s7246_s30 + $0x2b0] sm:$0xf]  ;;  %v5358_v2 = vor.u32 %v6301_v58, %v5357_v57 }
 0x15a   : > { %4476 = vmatpush.bf16.msra.mxu2 %v5206_v4  ;;  %v5557_v50 = vld [vmem:[%s7246_s30 + $0x3c0] sm:$0xf]  ;;  %v6351_v51 = vld [vmem:[%s7246_s30 + $0x3c4] sm:$0xf0]  ;;  %v5494_v56 = vor.u32 %v6335_v49, %v5493_v48  ;;  %v6317_v61 = vld [vmem:[%s7246_s30 + $0x2b4] sm:$0xf0] }
 0x15b   : > { %4489 = vmatpush.bf16.msra.mxu3 %v5270_v7  ;;  %v5558_v60 = vor.u32 %v6351_v51, %v5557_v50  ;;  %v5485_v62 = vld [vmem:[%s7246_s30 + $0x330] sm:$0xf]  ;;  %v6333_v63 = vld [vmem:[%s7246_s30 + $0x334] sm:$0xf0]  ;;  %4451 = vmatmul.bf16.vlgmr.msra.gmra.mxu0 %v7355_v52  ;;  %v5422_v3 = vor.u32 %v6317_v61, %v5421_v59  ;;  %v5349_v5 = vld [vmem:[%s7246_s30 + $0x220] sm:$0xf] }
 0x15c   : > { %4495 = vmatpush.bf16.msrb.mxu0 %v5390_v8  ;;  %v5549_v0 = vld [vmem:[%s7246_s30 + $0x3b0] sm:$0xf]  ;;  %v6349_v1 = vld [vmem:[%s7246_s30 + $0x3b4] sm:$0xf0]  ;;  %4464 = vmatmul.bf16.vlgmr.msra.gmra.mxu1 %v7358_v53  ;;  %v5486_v4 = vor.u32 %v6333_v63, %v5485_v62  ;;  %v6299_v6 = vld [vmem:[%s7246_s30 + $0x224] sm:$0xf0] }
 0x15d   : > { %4508 = vmatpush.bf16.msrb.mxu1 %v5454_v9  ;;  %4477 = vmatmul.bf16.vlgmr.msra.gmra.mxu2 %v7339_v36  ;;  %v5413_v7 = vld [vmem:[%s7246_s30 + $0x2a0] sm:$0xf]  ;;  %v5550_v8 = vor.u32 %v6349_v1, %v5549_v0  ;;  %v6315_v9 = vld [vmem:[%s7246_s30 + $0x2a4] sm:$0xf0]  ;;  %v5341_v17 = vld [vmem:[%s7246_s30 + $0x210] sm:$0xf] }
 0x15e   : > { %4521 = vmatpush.bf16.msrb.mxu2 %v5518_v10  ;;  %4490 = vmatmul.bf16.vlgmr.msra.gmra.mxu3 %v7344_v38  ;;  %v5477_v10 = vld [vmem:[%s7246_s30 + $0x320] sm:$0xf]  ;;  %v6331_v11 = vld [vmem:[%s7246_s30 + $0x324] sm:$0xf0]  ;;  %v5414_v15 = vor.u32 %v6315_v9, %v5413_v7  ;;  %v6297_v18 = vld [vmem:[%s7246_s30 + $0x214] sm:$0xf0] }
 0x15f   : > { %4534 = vmatpush.bf16.msrb.mxu3 %v5582_v14  ;;  %v5541_v12 = vld [vmem:[%s7246_s30 + $0x3a0] sm:$0xf]  ;;  %v6347_v13 = vld [vmem:[%s7246_s30 + $0x3a4] sm:$0xf0]  ;;  %v5350_v14 = vor.u32 %v6299_v6, %v5349_v5  ;;  %v5478_v16 = vor.u32 %v6331_v11, %v5477_v10  ;;  %v5405_v19 = vld [vmem:[%s7246_s30 + $0x290] sm:$0xf] }
 0x160   : > { %4496 = vmatpush.bf16.msrb.mxu0 %v5382_v20  ;;  %v5542_v20 = vor.u32 %v6347_v13, %v5541_v12  ;;  %v6313_v21 = vld [vmem:[%s7246_s30 + $0x294] sm:$0xf0]  ;;  %v5533_v24 = vld [vmem:[%s7246_s30 + $0x390] sm:$0xf]  ;;  %v5333_v26 = vld [vmem:[%s7246_s30 + $0x200] sm:$0xf] }
 0x161   : > { %4509 = vmatpush.bf16.msrb.mxu1 %v5446_v22  ;;  %v5469_v22 = vld [vmem:[%s7246_s30 + $0x310] sm:$0xf]  ;;  %v6345_v25 = vld [vmem:[%s7246_s30 + $0x394] sm:$0xf0]  ;;  %v6295_v28 = vld [vmem:[%s7246_s30 + $0x204] sm:$0xf0]  ;;  %v5406_v31 = vor.u32 %v6313_v21, %v5405_v19 }
 0x162   : > { %4522 = vmatpush.bf16.msrb.mxu2 %v5510_v23  ;;  %v6329_v23 = vld [vmem:[%s7246_s30 + $0x314] sm:$0xf0]  ;;  %v5397_v29 = vld [vmem:[%s7246_s30 + $0x280] sm:$0xf]  ;;  %v6311_v30 = vld [vmem:[%s7246_s30 + $0x284] sm:$0xf0]  ;;  %v5534_v37 = vor.u32 %v6345_v25, %v5533_v24  ;;  %v5334_v45 = vor.u32 %v6295_v28, %v5333_v26 }
 0x163   : > { %4535 = vmatpush.bf16.msrb.mxu3 %v5574_v27  ;;  %v5342_v27 = vor.u32 %v6297_v18, %v5341_v17  ;;  %v5470_v32 = vor.u32 %v6329_v23, %v5469_v22  ;;  %v5461_v33 = vld [vmem:[%s7246_s30 + $0x300] sm:$0xf]  ;;  %v6327_v34 = vld [vmem:[%s7246_s30 + $0x304] sm:$0xf0]  ;;  %v2645_v41 = vld [vmem:[%s7954_s0 + $0x10] sm:$0xff]  ;;  %v5398_v50 = vor.u32 %v6311_v30, %v5397_v29 }
 0x164   : > { %4497 = vmatpush.bf16.msrb.mxu0 %v5374_v35  ;;  %v2646_v35 = vld [vmem:[%s7954_s0 + $0x18] sm:$0xff]  ;;  %v5645_v42 = vld [vmem:[%s7246_s30 + $0x470] sm:$0xf]  ;;  %v5462_v51 = vor.u32 %v6327_v34, %v5461_v33  ;;  %v5637_v63 = vld [vmem:[%s7246_s30 + $0x460] sm:$0xf] }
 0x165   : > { %4510 = vmatpush.bf16.msrb.mxu1 %v5438_v39  ;;  %v5525_v39 = vld [vmem:[%s7246_s30 + $0x380] sm:$0xf]  ;;  %v6373_v43 = vld [vmem:[%s7246_s30 + $0x474] sm:$0xf0]  ;;  %v5709_v44 = vld [vmem:[%s7246_s30 + $0x4f0] sm:$0xf]  ;;  %v2955_v49 = vunpack.c.l.b16 %v2646_v35  ;;  %v2956_v57 = vunpack.c.h.b16 %v2646_v35 }
 0x166   : > { %4523 = vmatpush.bf16.msrb.mxu2 %v5502_v40  ;;  %v6343_v40 = vld [vmem:[%s7246_s30 + $0x384] sm:$0xf0]  ;;  %v5773_v47 = vld [vmem:[%s7246_s30 + $0x570] sm:$0xf]  ;;  %v6405_v48 = vld [vmem:[%s7246_s30 + $0x574] sm:$0xf0]  ;;  %v5646_v59 = vor.u32 %v6373_v43, %v5645_v42 }
 0x167   : > { %4536 = vmatpush.bf16.msrb.mxu3 %v5566_v46  ;;  %v6389_v46 = vld [vmem:[%s7246_s30 + $0x4f4] sm:$0xf0]  ;;  %v5526_v58 = vor.u32 %v6343_v40, %v5525_v39  ;;  %v5774_v62 = vor.u32 %v6405_v48, %v5773_v47  ;;  %v6371_v0 = vld [vmem:[%s7246_s30 + $0x464] sm:$0xf0]  ;;  %v5701_v1 = vld [vmem:[%s7246_s30 + $0x4e0] sm:$0xf]  ;;  %v7414_v6 = vpack.c.b16 %v2955_v49, %v2955_v49  ;;  %v7420_v10 = vpack.c.b16 %v2956_v57, %v2956_v57 }
 0x168   : > { %4498 = vmatpush.bf16.msrb.mxu0 %v5366_v54  ;;  %v5837_v54 = vld [vmem:[%s7246_s30 + $0x5f0] sm:$0xf]  ;;  %v5710_v61 = vor.u32 %v6389_v46, %v5709_v44  ;;  %v6403_v5 = vld [vmem:[%s7246_s30 + $0x564] sm:$0xf0]  ;;  %v5829_v7 = vld [vmem:[%s7246_s30 + $0x5e0] sm:$0xf]  ;;  %v5638_v11 = vor.u32 %v6371_v0, %v5637_v63 }
 0x169   : > { %4511 = vmatpush.bf16.msrb.mxu1 %v5430_v55  ;;  %v6421_v55 = vld [vmem:[%s7246_s30 + $0x5f4] sm:$0xf0]  ;;  %v5693_v17 = vld [vmem:[%s7246_s30 + $0x4d0] sm:$0xf]  ;;  %v6367_v28 = vld [vmem:[%s7246_s30 + $0x444] sm:$0xf0] }
 0x16a   : > { %4524 = vmatpush.bf16.msrb.mxu2 %v5494_v56  ;;  %v2953_v56 = vunpack.c.l.b16 %v2645_v41  ;;  %v6385_v19 = vld [vmem:[%s7246_s30 + $0x4d4] sm:$0xf0]  ;;  %v5821_v22 = vld [vmem:[%s7246_s30 + $0x5d0] sm:$0xf]  ;;  %v5685_v29 = vld [vmem:[%s7246_s30 + $0x4c0] sm:$0xf] }
 0x16b   : > { %4537 = vmatpush.bf16.msrb.mxu3 %v5558_v60  ;;  %v2954_v60 = vunpack.c.h.b16 %v2645_v41  ;;  %v6401_v21 = vld [vmem:[%s7246_s30 + $0x554] sm:$0xf0]  ;;  %v5694_v25 = vor.u32 %v6385_v19, %v5693_v17  ;;  %v6399_v33 = vld [vmem:[%s7246_s30 + $0x544] sm:$0xf0]  ;;  %v5813_v34 = vld [vmem:[%s7246_s30 + $0x5c0] sm:$0xf] }
 0x16c   : > { %4499 = vmatpush.bf16.msrb.mxu0 %v5358_v2  ;;  %v5838_v2 = vor.u32 %v6421_v55, %v5837_v54  ;;  %v7418_v9 = vpack.c.b16 %v2953_v56, %v2953_v56  ;;  %v6417_v23 = vld [vmem:[%s7246_s30 + $0x5d4] sm:$0xf0]  ;;  %v6415_v35 = vld [vmem:[%s7246_s30 + $0x5c4] sm:$0xf0]  ;;  %v5613_v41 = vld [vmem:[%s7246_s30 + $0x430] sm:$0xf] }
 0x16d   : > { %4512 = vmatpush.bf16.msrb.mxu1 %v5422_v3  ;;  %v6387_v3 = vld [vmem:[%s7246_s30 + $0x4e4] sm:$0xf0]  ;;  %v7422_v12 = vpack.c.b16 %v2954_v60, %v2954_v60  ;;  %v5822_v30 = vor.u32 %v6417_v23, %v5821_v22  ;;  %v6365_v42 = vld [vmem:[%s7246_s30 + $0x434] sm:$0xf0]  ;;  %v5677_v43 = vld [vmem:[%s7246_s30 + $0x4b0] sm:$0xf]  ;;  %v5814_v44 = vor.u32 %v6415_v35, %v5813_v34 }
 0x16e   : > { %4525 = vmatpush.bf16.msrb.mxu2 %v5486_v4  ;;  %v5765_v4 = vld [vmem:[%s7246_s30 + $0x560] sm:$0xf]  ;;  %v5702_v13 = vor.u32 %v6387_v3, %v5701_v1  ;;  %v5741_v46 = vld [vmem:[%s7246_s30 + $0x530] sm:$0xf]  ;;  %v6397_v47 = vld [vmem:[%s7246_s30 + $0x534] sm:$0xf0] }
 0x16f   : > { %4538 = vmatpush.bf16.msrb.mxu3 %v5550_v8  ;;  %v6419_v8 = vld [vmem:[%s7246_s30 + $0x5e4] sm:$0xf0]  ;;  %v5805_v48 = vld [vmem:[%s7246_s30 + $0x5b0] sm:$0xf]  ;;  %v6413_v49 = vld [vmem:[%s7246_s30 + $0x5b4] sm:$0xf0]  ;;  %v5742_v54 = vor.u32 %v6397_v47, %v5741_v46 }
 0x170   : > { %4500 = vmatpush.bf16.msrb.mxu0 %v5350_v14  ;;  %v5766_v14 = vor.u32 %v6403_v5, %v5765_v4  ;;  %v5830_v18 = vor.u32 %v6419_v8, %v5829_v7  ;;  %v5605_v55 = vld [vmem:[%s7246_s30 + $0x420] sm:$0xf]  ;;  %v6363_v56 = vld [vmem:[%s7246_s30 + $0x424] sm:$0xf0]  ;;  %v5597_v3 = vld [vmem:[%s7246_s30 + $0x410] sm:$0xf] }
 0x171   : > { %4513 = vmatpush.bf16.msrb.mxu1 %v5414_v15  ;;  %v5629_v15 = vld [vmem:[%s7246_s30 + $0x450] sm:$0xf]  ;;  %v5669_v57 = vld [vmem:[%s7246_s30 + $0x4a0] sm:$0xf]  ;;  %v6411_v63 = vld [vmem:[%s7246_s30 + $0x5a4] sm:$0xf0]  ;;  %v5606_v0 = vor.u32 %v6363_v56, %v5605_v55 }
 0x172   : > { %4526 = vmatpush.bf16.msrb.mxu2 %v5478_v16  ;;  %v6369_v16 = vld [vmem:[%s7246_s30 + $0x454] sm:$0xf0]  ;;  %v5733_v60 = vld [vmem:[%s7246_s30 + $0x520] sm:$0xf]  ;;  %v5661_v5 = vld [vmem:[%s7246_s30 + $0x490] sm:$0xf] }
 0x173   : > { %4539 = vmatpush.bf16.msrb.mxu3 %v5542_v20  ;;  %v5757_v20 = vld [vmem:[%s7246_s30 + $0x550] sm:$0xf]  ;;  %v5630_v24 = vor.u32 %v6369_v16, %v5629_v15  ;;  %v6361_v4 = vld [vmem:[%s7246_s30 + $0x414] sm:$0xf0]  ;;  %v5589_v16 = vld [vmem:[%s7246_s30 + $0x400] sm:$0xf] }
 0x174   : > { %4501 = vmatpush.bf16.msrb.mxu0 %v5342_v27  ;;  %v5758_v26 = vor.u32 %v6401_v21, %v5757_v20  ;;  %v5621_v27 = vld [vmem:[%s7246_s30 + $0x440] sm:$0xf]  ;;  %v6377_v8 = vld [vmem:[%s7246_s30 + $0x494] sm:$0xf0]  ;;  %v5598_v17 = vor.u32 %v6361_v4, %v5597_v3  ;;  %v6375_v20 = vld [vmem:[%s7246_s30 + $0x484] sm:$0xf0] }
 0x175   : > { %4514 = vmatpush.bf16.msrb.mxu1 %v5406_v31  ;;  %v6383_v31 = vld [vmem:[%s7246_s30 + $0x4c4] sm:$0xf0]  ;;  %v6409_v15 = vld [vmem:[%s7246_s30 + $0x594] sm:$0xf0]  ;;  %v5653_v19 = vld [vmem:[%s7246_s30 + $0x480] sm:$0xf]  ;;  %v5662_v21 = vor.u32 %v6377_v8, %v5661_v5 }
 0x176   : > { %4527 = vmatpush.bf16.msrb.mxu2 %v5470_v32  ;;  %v5749_v32 = vld [vmem:[%s7246_s30 + $0x540] sm:$0xf]  ;;  %v5686_v39 = vor.u32 %v6383_v31, %v5685_v29  ;;  %v2648_v29 = vld [vmem:[%s7954_s0 + $0x28] sm:$0xff]  ;;  %v6437_v31 = vld [vmem:[%s7246_s30 + $0x674] sm:$0xf0] }
 0x177   : > { %4540 = vmatpush.bf16.msrb.mxu3 %v5534_v37  ;;  %v5622_v37 = vor.u32 %v6367_v28, %v5621_v27  ;;  %v5750_v40 = vor.u32 %v6399_v33, %v5749_v32  ;;  %v5717_v23 = vld [vmem:[%s7246_s30 + $0x500] sm:$0xf]  ;;  %v6407_v28 = vld [vmem:[%s7246_s30 + $0x584] sm:$0xf0]  ;;  %v5965_v32 = vld [vmem:[%s7246_s30 + $0x6f0] sm:$0xf] }
 0x178   : > { %4502 = vmatpush.bf16.msrb.mxu0 %v5334_v45  ;;  %v6381_v45 = vld [vmem:[%s7246_s30 + $0x4b4] sm:$0xf0]  ;;  %v5781_v27 = vld [vmem:[%s7246_s30 + $0x580] sm:$0xf]  ;;  %v6029_v35 = vld [vmem:[%s7246_s30 + $0x770] sm:$0xf] }
 0x179   : > { %4515 = vmatpush.bf16.msrb.mxu1 %v5398_v50  ;;  %v5614_v50 = vor.u32 %v6365_v42, %v5613_v41  ;;  %v6453_v34 = vld [vmem:[%s7246_s30 + $0x6f4] sm:$0xf0]  ;;  %v6093_v42 = vld [vmem:[%s7246_s30 + $0x7f0] sm:$0xf]  ;;  %v5782_v46 = vor.u32 %v6407_v28, %v5781_v27  ;;  %v5957_v55 = vld [vmem:[%s7246_s30 + $0x6e0] sm:$0xf] }
 0x17a   : > { %4528 = vmatpush.bf16.msrb.mxu2 %v5462_v51  ;;  %v5678_v51 = vor.u32 %v6381_v45, %v5677_v43  ;;  %v6485_v43 = vld [vmem:[%s7246_s30 + $0x7f4] sm:$0xf0]  ;;  %v5885_v5 = vld [vmem:[%s7246_s30 + $0x650] sm:$0xf]  ;;  %v6463_v27 = vld [vmem:[%s7246_s30 + $0x744] sm:$0xf0] }
 0x17b   : > { %4541 = vmatpush.bf16.msrb.mxu3 %v5526_v58  ;;  %4503 = vmatmul.bf16.vlgmr.msrb.gmra.mxu0 %v7418_v9  ;;  %v5806_v58 = vor.u32 %v6413_v49, %v5805_v48  ;;  %v2960_v48 = vunpack.c.h.b16 %v2648_v29  ;;  %v5966_v49 = vor.u32 %v6453_v34, %v5965_v32  ;;  %v6094_v56 = vor.u32 %v6485_v43, %v6093_v42  ;;  %v5949_v8 = vld [vmem:[%s7246_s30 + $0x6d0] sm:$0xf]  ;;  %v6069_v28 = vld [vmem:[%s7246_s30 + $0x7c0] sm:$0xf]  ;;  %v6429_v34 = vld [vmem:[%s7246_s30 + $0x634] sm:$0xf0] }
 0x17c   : > { %4547 = vmatpush.bf16.msra.mxu0 %v5646_v59  ;;  %4516 = vmatmul.bf16.vlgmr.msrb.gmra.mxu1 %v7422_v12  ;;  %v6379_v59 = vld [vmem:[%s7246_s30 + $0x4a4] sm:$0xf0]  ;;  %v6061_v42 = vld [vmem:[%s7246_s30 + $0x7b0] sm:$0xf]  ;;  %v6477_v43 = vld [vmem:[%s7246_s30 + $0x7b4] sm:$0xf0] }
 0x17d   : > { %4560 = vmatpush.bf16.msra.mxu1 %v5710_v61  ;;  %4529 = vmatmul.bf16.vlgmr.msrb.gmra.mxu2 %v7414_v6  ;;  %v6395_v61 = vld [vmem:[%s7246_s30 + $0x524] sm:$0xf0]  ;;  %v5670_v1 = vor.u32 %v6379_v59, %v5669_v57  ;;  %v6021_v59 = vld [vmem:[%s7246_s30 + $0x760] sm:$0xf] }
 0x17e   : > { %4573 = vmatpush.bf16.msra.mxu2 %v5774_v62  ;;  %4542 = vmatmul.bf16.vlgmr.msrb.gmra.mxu3 %v7420_v10  ;;  %v5797_v62 = vld [vmem:[%s7246_s30 + $0x5a0] sm:$0xf] }
 0x17f   : > { %4586 = vmatpush.bf16.msra.mxu3 %v5838_v2  ;;  %v5734_v2 = vor.u32 %v6395_v61, %v5733_v60  ;;  %v5798_v7 = vor.u32 %v6411_v63, %v5797_v62  ;;  %v6467_v60 = vld [vmem:[%s7246_s30 + $0x764] sm:$0xf0]  ;;  %v6085_v63 = vld [vmem:[%s7246_s30 + $0x7e0] sm:$0xf] }
 0x180   : > { %4548 = vmatpush.bf16.msra.mxu0 %v5638_v11  ;;  %v5725_v11 = vld [vmem:[%s7246_s30 + $0x510] sm:$0xf]  ;;  %v6022_v4 = vor.u32 %v6467_v60, %v6021_v59 }
 0x181   : > { %4561 = vmatpush.bf16.msra.mxu1 %v5702_v13  ;;  %v6393_v13 = vld [vmem:[%s7246_s30 + $0x514] sm:$0xf0] }
 0x182   : > { %4574 = vmatpush.bf16.msra.mxu2 %v5766_v14  ;;  %v5789_v14 = vld [vmem:[%s7246_s30 + $0x590] sm:$0xf]  ;;  %v5726_v22 = vor.u32 %v6393_v13, %v5725_v11  ;;  %v6449_v13 = vld [vmem:[%s7246_s30 + $0x6d4] sm:$0xf0] }
 0x183   : > { %4587 = vmatpush.bf16.msra.mxu3 %v5830_v18  ;;  %v6359_v18 = vld [vmem:[%s7246_s30 + $0x404] sm:$0xf0] }
 0x184   : > { %4549 = vmatpush.bf16.msra.mxu0 %v5630_v24  ;;  %v6391_v24 = vld [vmem:[%s7246_s30 + $0x504] sm:$0xf0]  ;;  %v5590_v33 = vor.u32 %v6359_v18, %v5589_v16  ;;  %v6077_v16 = vld [vmem:[%s7246_s30 + $0x7d0] sm:$0xf] }
 0x185   : > { %4562 = vmatpush.bf16.msra.mxu1 %v5694_v25  ;;  %v2647_v25 = vld [vmem:[%s7954_s0 + $0x20] sm:$0xff]  ;;  %v5718_v41 = vor.u32 %v6391_v24, %v5717_v23 }
 0x186   : > { %4575 = vmatpush.bf16.msra.mxu2 %v5758_v26  ;;  %v5790_v26 = vor.u32 %v6409_v15, %v5789_v14  ;;  %v2958_v45 = vunpack.c.h.b16 %v2647_v25  ;;  %v6013_v14 = vld [vmem:[%s7246_s30 + $0x750] sm:$0xf]  ;;  %v6465_v15 = vld [vmem:[%s7246_s30 + $0x754] sm:$0xf0]  ;;  %v5941_v23 = vld [vmem:[%s7246_s30 + $0x6c0] sm:$0xf] }
 0x187   : > { %4588 = vmatpush.bf16.msra.mxu3 %v5822_v30  ;;  %v5901_v30 = vld [vmem:[%s7246_s30 + $0x670] sm:$0xf] }
 0x188   : > { %4550 = vmatpush.bf16.msra.mxu0 %v5622_v37  ;;  %v6469_v37 = vld [vmem:[%s7246_s30 + $0x774] sm:$0xf0]  ;;  %v5902_v47 = vor.u32 %v6437_v31, %v5901_v30  ;;  %v7500_v62 = vpack.c.b16 %v2958_v45, %v2958_v45 }
 0x189   : > { %4563 = vmatpush.bf16.msra.mxu1 %v5686_v39  ;;  %v2957_v39 = vunpack.c.l.b16 %v2647_v25  ;;  %v6447_v25 = vld [vmem:[%s7246_s30 + $0x6c4] sm:$0xf0] }
 0x18a   : > { %4576 = vmatpush.bf16.msra.mxu2 %v5750_v40  ;;  %v5654_v40 = vor.u32 %v6375_v20, %v5653_v19  ;;  %v5950_v19 = vor.u32 %v6449_v13, %v5949_v8  ;;  %v6014_v20 = vor.u32 %v6465_v15, %v6013_v14  ;;  %v5942_v31 = vor.u32 %v6447_v25, %v5941_v23  ;;  %v6457_v8 = vld [vmem:[%s7246_s30 + $0x714] sm:$0xf0]  ;;  %v5845_v14 = vld [vmem:[%s7246_s30 + $0x600] sm:$0xf]  ;;  %v2649_v23 = vld [vmem:[%s7954_s0 + $0x30] sm:$0xff] }
 0x18b   : > { %4589 = vmatpush.bf16.msra.mxu3 %v5814_v44  ;;  %v2959_v44 = vunpack.c.l.b16 %v2648_v29  ;;  %v7493_v57 = vpack.c.b16 %v2957_v39, %v2957_v39  ;;  %v6479_v29 = vld [vmem:[%s7246_s30 + $0x7c4] sm:$0xf0]  ;;  %v6445_v39 = vld [vmem:[%s7246_s30 + $0x6b4] sm:$0xf0]  ;;  %v6037_v25 = vld [vmem:[%s7246_s30 + $0x780] sm:$0xf] }
 0x18c   : > { %4551 = vmatpush.bf16.msra.mxu0 %v5614_v50  ;;  %v6030_v50 = vor.u32 %v6469_v37, %v6029_v35  ;;  %v5933_v35 = vld [vmem:[%s7246_s30 + $0x6b0] sm:$0xf]  ;;  %v6070_v37 = vor.u32 %v6479_v29, %v6069_v28  ;;  %v6473_v13 = vld [vmem:[%s7246_s30 + $0x794] sm:$0xf0] }
 0x18d   : > { %4564 = vmatpush.bf16.msra.mxu1 %v5678_v51  ;;  %v5893_v51 = vld [vmem:[%s7246_s30 + $0x660] sm:$0xf]  ;;  %v7498_v61 = vpack.c.b16 %v2959_v44, %v2959_v44  ;;  %v5934_v45 = vor.u32 %v6445_v39, %v5933_v35  ;;  %v6157_v28 = vld [vmem:[%s7246_s30 + $0x870] sm:$0xf]  ;;  %v6501_v29 = vld [vmem:[%s7246_s30 + $0x874] sm:$0xf0]  ;;  %v2961_v35 = vunpack.c.l.b16 %v2649_v23 }
 0x18e   : > { %4577 = vmatpush.bf16.msra.mxu2 %v5742_v54  ;;  %v6435_v54 = vld [vmem:[%s7246_s30 + $0x664] sm:$0xf0] }
 0x18f   : > { %4590 = vmatpush.bf16.msra.mxu3 %v5806_v58  ;;  %v6451_v58 = vld [vmem:[%s7246_s30 + $0x6e4] sm:$0xf0] }
 0x190   : > { %4552 = vmatpush.bf16.msra.mxu0 %v5606_v0  ;;  %v6483_v0 = vld [vmem:[%s7246_s30 + $0x7e4] sm:$0xf0]  ;;  %v5958_v3 = vor.u32 %v6451_v58, %v5957_v55 }
 0x191   : > { %4565 = vmatpush.bf16.msra.mxu1 %v5670_v1  ;;  %v7504_v1 = vpack.c.b16 %v2960_v48, %v2960_v48  ;;  %v6086_v11 = vor.u32 %v6483_v0, %v6085_v63  ;;  %v6427_v48 = vld [vmem:[%s7246_s30 + $0x624] sm:$0xf0]  ;;  %v5853_v0 = vld [vmem:[%s7246_s30 + $0x610] sm:$0xf] }
 0x192   : > { %4578 = vmatpush.bf16.msra.mxu2 %v5734_v2  ;;  %v5894_v2 = vor.u32 %v6435_v54, %v5893_v51  ;;  %v6443_v51 = vld [vmem:[%s7246_s30 + $0x6a4] sm:$0xf0]  ;;  %v5989_v54 = vld [vmem:[%s7246_s30 + $0x720] sm:$0xf] }
 0x193   : > { %4591 = vmatpush.bf16.msra.mxu3 %v5798_v7  ;;  %v6433_v7 = vld [vmem:[%s7246_s30 + $0x654] sm:$0xf0]  ;;  %v6459_v55 = vld [vmem:[%s7246_s30 + $0x724] sm:$0xf0] }
 0x194   : > { %4553 = vmatpush.bf16.msra.mxu0 %v5598_v17  ;;  %v6481_v17 = vld [vmem:[%s7246_s30 + $0x7d4] sm:$0xf0]  ;;  %v5886_v18 = vor.u32 %v6433_v7, %v5885_v5  ;;  %v6475_v58 = vld [vmem:[%s7246_s30 + $0x7a4] sm:$0xf0]  ;;  %v5990_v63 = vor.u32 %v6459_v55, %v5989_v54  ;;  %v5981_v7 = vld [vmem:[%s7246_s30 + $0x710] sm:$0xf]  ;;  %v7575_v55 = vpack.c.b16 %v2961_v35, %v2961_v35 }
 0x195   : > { %4566 = vmatpush.bf16.msra.mxu1 %v5662_v21  ;;  %v5877_v21 = vld [vmem:[%s7246_s30 + $0x640] sm:$0xf]  ;;  %v6078_v24 = vor.u32 %v6481_v17, %v6077_v16  ;;  %v6441_v5 = vld [vmem:[%s7246_s30 + $0x694] sm:$0xf0]  ;;  %v6423_v16 = vld [vmem:[%s7246_s30 + $0x604] sm:$0xf0] }
 0x196   : > { %4579 = vmatpush.bf16.msra.mxu2 %v5726_v22  ;;  %v6431_v22 = vld [vmem:[%s7246_s30 + $0x644] sm:$0xf0]  ;;  %v5909_v17 = vld [vmem:[%s7246_s30 + $0x680] sm:$0xf]  ;;  %v6125_v35 = vld [vmem:[%s7246_s30 + $0x830] sm:$0xf] }
 0x197   : > { %4592 = vmatpush.bf16.msra.mxu3 %v5790_v26  ;;  %v6005_v26 = vld [vmem:[%s7246_s30 + $0x740] sm:$0xf]  ;;  %v5878_v30 = vor.u32 %v6431_v22, %v5877_v21  ;;  %v6455_v22 = vld [vmem:[%s7246_s30 + $0x704] sm:$0xf0] }
 0x198   : > { %4554 = vmatpush.bf16.msra.mxu0 %v5590_v33  ;;  %v6006_v32 = vor.u32 %v6463_v27, %v6005_v26  ;;  %v5869_v33 = vld [vmem:[%s7246_s30 + $0x630] sm:$0xf]  ;;  %v5973_v21 = vld [vmem:[%s7246_s30 + $0x700] sm:$0xf]  ;;  %v6471_v26 = vld [vmem:[%s7246_s30 + $0x784] sm:$0xf0] }
 0x199   : > { %4567 = vmatpush.bf16.msra.mxu1 %v5654_v40  ;;  %v5997_v40 = vld [vmem:[%s7246_s30 + $0x730] sm:$0xf]  ;;  %v5870_v44 = vor.u32 %v6429_v34, %v5869_v33  ;;  %v2650_v27 = vld [vmem:[%s7954_s0 + $0x38] sm:$0xff]  ;;  %v6244_v33 = vld [vmem:[%s7246_s30 + $0x74] sm:$0xf]  ;;  %v5974_v39 = vor.u32 %v6455_v22, %v5973_v21 }
 0x19a   : > { %4580 = vmatpush.bf16.msra.mxu2 %v5718_v41  ;;  %v6461_v41 = vld [vmem:[%s7246_s30 + $0x734] sm:$0xf0]  ;;  %v5135_v34 = vld [vmem:[%s7246_s30 + $0x78] sm:$0xf0] }
 0x19b   : > { %4593 = vmatpush.bf16.msra.mxu3 %v5782_v46  ;;  %4555 = vmatmul.bf16.vlgmr.msra.gmra.mxu0 %v7493_v57  ;;  %v5998_v46 = vor.u32 %v6461_v41, %v5997_v40  ;;  %v6260_v40 = vld [vmem:[%s7246_s30 + $0xf4] sm:$0xf]  ;;  %v5199_v41 = vld [vmem:[%s7246_s30 + $0xf8] sm:$0xf0] }
 0x19c   : > { %4599 = vmatpush.bf16.msrb.mxu0 %v5902_v47  ;;  %4568 = vmatmul.bf16.vlgmr.msra.gmra.mxu1 %v7500_v62  ;;  %v5861_v47 = vld [vmem:[%s7246_s30 + $0x620] sm:$0xf]  ;;  %v5202_v54 = vor.u32 %v6260_v40, %v5199_v41  ;;  %v6509_v41 = vld [vmem:[%s7246_s30 + $0x8b4] sm:$0xf0] }
 0x19d   : > { %4612 = vmatpush.bf16.msrb.mxu1 %v5966_v49  ;;  %4581 = vmatmul.bf16.vlgmr.msra.gmra.mxu2 %v7498_v61  ;;  %v5925_v49 = vld [vmem:[%s7246_s30 + $0x6a0] sm:$0xf]  ;;  %v5862_v59 = vor.u32 %v6427_v48, %v5861_v47  ;;  %v5138_v48 = vor.u32 %v6244_v33, %v5135_v34 }
 0x19e   : > { %4625 = vmatpush.bf16.msrb.mxu2 %v6030_v50  ;;  %4594 = vmatmul.bf16.vlgmr.msra.gmra.mxu3 %v7504_v1  ;;  %v6062_v50 = vor.u32 %v6477_v43, %v6061_v42  ;;  %v5926_v60 = vor.u32 %v6443_v51, %v5925_v49  ;;  %v2963_v42 = vunpack.c.l.b16 %v2650_v27  ;;  %v2962_v43 = vunpack.c.h.b16 %v2649_v23  ;;  %v6149_v49 = vld [vmem:[%s7246_s30 + $0x860] sm:$0xf] }
 0x19f   : > { %4638 = vmatpush.bf16.msrb.mxu3 %v6094_v56  ;;  %v6053_v56 = vld [vmem:[%s7246_s30 + $0x7a0] sm:$0xf] }
 0x1a0   : > { %4600 = vmatpush.bf16.msrb.mxu0 %v5894_v2  ;;  %v6425_v2 = vld [vmem:[%s7246_s30 + $0x614] sm:$0xf0]  ;;  %v6213_v51 = vld [vmem:[%s7246_s30 + $0x8e0] sm:$0xf] }
 0x1a1   : > { %4613 = vmatpush.bf16.msrb.mxu1 %v5958_v3  ;;  %v5917_v3 = vld [vmem:[%s7246_s30 + $0x690] sm:$0xf]  ;;  %v5854_v15 = vor.u32 %v6425_v2, %v5853_v0  ;;  %v6258_v0 = vld [vmem:[%s7246_s30 + $0xe4] sm:$0xf]  ;;  %v5191_v2 = vld [vmem:[%s7246_s30 + $0xe8] sm:$0xf0] }
 0x1a2   : > { %4626 = vmatpush.bf16.msrb.mxu2 %v6022_v4  ;;  %v6054_v4 = vor.u32 %v6475_v58, %v6053_v56  ;;  %v6515_v56 = vld [vmem:[%s7246_s30 + $0x8e4] sm:$0xf0]  ;;  %v6242_v58 = vld [vmem:[%s7246_s30 + $0x64] sm:$0xf]  ;;  %v6133_v23 = vld [vmem:[%s7246_s30 + $0x840] sm:$0xf] }
 0x1a3   : > { %4639 = vmatpush.bf16.msrb.mxu3 %v6086_v11  ;;  %v6045_v11 = vld [vmem:[%s7246_s30 + $0x790] sm:$0xf] }
 0x1a4   : > { %4601 = vmatpush.bf16.msrb.mxu0 %v5886_v18  ;;  %v6439_v18 = vld [vmem:[%s7246_s30 + $0x684] sm:$0xf0] }
 0x1a5   : > { %4614 = vmatpush.bf16.msrb.mxu1 %v5950_v19  ;;  %v5918_v19 = vor.u32 %v6441_v5, %v5917_v3  ;;  %v6214_v5 = vor.u32 %v6515_v56, %v6213_v51  ;;  %v6181_v51 = vld [vmem:[%s7246_s30 + $0x8a0] sm:$0xf]  ;;  %v6507_v56 = vld [vmem:[%s7246_s30 + $0x8a4] sm:$0xf0] }
 0x1a6   : > { %4627 = vmatpush.bf16.msrb.mxu2 %v6014_v20  ;;  %v5982_v20 = vor.u32 %v6457_v8, %v5981_v7  ;;  %v6141_v8 = vld [vmem:[%s7246_s30 + $0x850] sm:$0xf] }
 0x1a7   : > { %4640 = vmatpush.bf16.msrb.mxu3 %v6078_v24  ;;  %v6046_v24 = vor.u32 %v6473_v13, %v6045_v11  ;;  %v6497_v11 = vld [vmem:[%s7246_s30 + $0x854] sm:$0xf0]  ;;  %v6205_v13 = vld [vmem:[%s7246_s30 + $0x8d0] sm:$0xf] }
 0x1a8   : > { %4602 = vmatpush.bf16.msrb.mxu0 %v5878_v30  ;;  %v6221_v30 = vld [vmem:[%s7246_s30 + $0x8f0] sm:$0xf] }
 0x1a9   : > { %4615 = vmatpush.bf16.msrb.mxu1 %v5942_v31  ;;  %v5846_v31 = vor.u32 %v6423_v16, %v5845_v14  ;;  %v5194_v14 = vor.u32 %v6258_v0, %v5191_v2  ;;  %v6240_v16 = vld [vmem:[%s7246_s30 + $0x54] sm:$0xf]  ;;  %v6250_v0 = vld [vmem:[%s7246_s30 + $0xa4] sm:$0xf]  ;;  %v5159_v2 = vld [vmem:[%s7246_s30 + $0xa8] sm:$0xf0] }
 0x1aa   : > { %4628 = vmatpush.bf16.msrb.mxu2 %v6006_v32  ;;  %v6517_v32 = vld [vmem:[%s7246_s30 + $0x8f4] sm:$0xf0] }
 0x1ab   : > { %4641 = vmatpush.bf16.msrb.mxu3 %v6070_v37  ;;  %v5910_v37 = vor.u32 %v6439_v18, %v5909_v17  ;;  %v6222_v47 = vor.u32 %v6517_v32, %v6221_v30  ;;  %v5119_v17 = vld [vmem:[%s7246_s30 + $0x58] sm:$0xf0]  ;;  %v6256_v18 = vld [vmem:[%s7246_s30 + $0xd4] sm:$0xf]  ;;  %v6254_v30 = vld [vmem:[%s7246_s30 + $0xc4] sm:$0xf] }
 0x1ac   : > { %4603 = vmatpush.bf16.msrb.mxu0 %v5870_v44  ;;  %v6038_v44 = vor.u32 %v6471_v26, %v6037_v25  ;;  %v5122_v22 = vor.u32 %v6240_v16, %v5119_v17  ;;  %v6197_v25 = vld [vmem:[%s7246_s30 + $0x8c0] sm:$0xf]  ;;  %v6232_v16 = vld [vmem:[%s7246_s30 + $0x14] sm:$0xf]  ;;  %v5087_v17 = vld [vmem:[%s7246_s30 + $0x18] sm:$0xf0] }
 0x1ad   : > { %4616 = vmatpush.bf16.msrb.mxu1 %v5934_v45  ;;  %v6158_v45 = vor.u32 %v6501_v29, %v6157_v28  ;;  %v6238_v28 = vld [vmem:[%s7246_s30 + $0x44] sm:$0xf]  ;;  %v5111_v29 = vld [vmem:[%s7246_s30 + $0x48] sm:$0xf0] }
 0x1ae   : > { %4629 = vmatpush.bf16.msrb.mxu2 %v5998_v46  ;;  %v2964_v46 = vunpack.c.h.b16 %v2650_v27  ;;  %v6511_v27 = vld [vmem:[%s7246_s30 + $0x8c4] sm:$0xf0]  ;;  %v5114_v34 = vor.u32 %v6238_v28, %v5111_v29  ;;  %v2651_v28 = vld [vmem:[%s7954_s0 + $0x40] sm:$0xff] }
 0x1af   : > { %4642 = vmatpush.bf16.msrb.mxu3 %v6062_v50  ;;  %v6499_v50 = vld [vmem:[%s7246_s30 + $0x864] sm:$0xf0]  ;;  %v6198_v33 = vor.u32 %v6511_v27, %v6197_v25  ;;  %v5090_v25 = vor.u32 %v6232_v16, %v5087_v17  ;;  %v6230_v27 = vld [vmem:[%s7246_s30 + $0x4] sm:$0xf]  ;;  %v6272_v16 = vld [vmem:[%s7246_s30 + $0x154] sm:$0xf] }
 0x1b0   : > { %4604 = vmatpush.bf16.msrb.mxu0 %v5862_v59  ;;  %v5127_v59 = vld [vmem:[%s7246_s30 + $0x68] sm:$0xf0]  ;;  %v7586_v3 = vpack.c.b16 %v2964_v46, %v2964_v46  ;;  %v5247_v17 = vld [vmem:[%s7246_s30 + $0x158] sm:$0xf0] }
 0x1b1   : > { %4617 = vmatpush.bf16.msrb.mxu1 %v5926_v60  ;;  %v7580_v60 = vpack.c.b16 %v2963_v42, %v2963_v42  ;;  %v5130_v7 = vor.u32 %v6242_v58, %v5127_v59  ;;  %v6236_v42 = vld [vmem:[%s7246_s30 + $0x34] sm:$0xf]  ;;  %v6234_v58 = vld [vmem:[%s7246_s30 + $0x24] sm:$0xf]  ;;  %v5095_v59 = vld [vmem:[%s7246_s30 + $0x28] sm:$0xf0] }
 0x1b2   : > { %4630 = vmatpush.bf16.msrb.mxu2 %v5990_v63  ;;  %v7582_v63 = vpack.c.b16 %v2962_v43, %v2962_v43  ;;  %v5103_v43 = vld [vmem:[%s7246_s30 + $0x38] sm:$0xf0] }
 0x1b3   : > { %4643 = vmatpush.bf16.msrb.mxu3 %v6054_v4  ;;  %v6150_v4 = vor.u32 %v6499_v50, %v6149_v49  ;;  %v6117_v49 = vld [vmem:[%s7246_s30 + $0x820] sm:$0xf]  ;;  %v6491_v50 = vld [vmem:[%s7246_s30 + $0x824] sm:$0xf0] }
 0x1b4   : > { %4605 = vmatpush.bf16.msrb.mxu0 %v5854_v15  ;;  %v6513_v15 = vld [vmem:[%s7246_s30 + $0x8d4] sm:$0xf0] }
 0x1b5   : > { %4618 = vmatpush.bf16.msrb.mxu1 %v5918_v19  ;;  %v5183_v19 = vld [vmem:[%s7246_s30 + $0xd8] sm:$0xf0]  ;;  %v6206_v21 = vor.u32 %v6513_v15, %v6205_v13  ;;  %v6173_v13 = vld [vmem:[%s7246_s30 + $0x890] sm:$0xf]  ;;  %v6505_v15 = vld [vmem:[%s7246_s30 + $0x894] sm:$0xf0] }
 0x1b6   : > { %4631 = vmatpush.bf16.msrb.mxu2 %v5982_v20  ;;  %v6142_v20 = vor.u32 %v6497_v11, %v6141_v8  ;;  %v5186_v26 = vor.u32 %v6256_v18, %v5183_v19  ;;  %v6109_v8 = vld [vmem:[%s7246_s30 + $0x810] sm:$0xf]  ;;  %v6489_v11 = vld [vmem:[%s7246_s30 + $0x814] sm:$0xf0]  ;;  %v6248_v18 = vld [vmem:[%s7246_s30 + $0x94] sm:$0xf] }
 0x1b7   : > { %4644 = vmatpush.bf16.msrb.mxu3 %v6046_v24  ;;  %v6495_v24 = vld [vmem:[%s7246_s30 + $0x844] sm:$0xf0]  ;;  %v5151_v19 = vld [vmem:[%s7246_s30 + $0x98] sm:$0xf0] }
 0x1b8   : > { %4606 = vmatpush.bf16.msrb.mxu0 %v5846_v31  ;;  %v5175_v31 = vld [vmem:[%s7246_s30 + $0xc8] sm:$0xf0]  ;;  %v6134_v32 = vor.u32 %v6495_v24, %v6133_v23  ;;  %v6165_v23 = vld [vmem:[%s7246_s30 + $0x880] sm:$0xf]  ;;  %v6174_v24 = vor.u32 %v6505_v15, %v6173_v13  ;;  %v5154_v29 = vor.u32 %v6248_v18, %v5151_v19  ;;  %v6288_v18 = vld [vmem:[%s7246_s30 + $0x1d4] sm:$0xf] }
 0x1b9   : > { %4619 = vmatpush.bf16.msrb.mxu1 %v5910_v37  ;;  %v6493_v37 = vld [vmem:[%s7246_s30 + $0x834] sm:$0xf0]  ;;  %v5178_v40 = vor.u32 %v6254_v30, %v5175_v31  ;;  %v5079_v30 = vld [vmem:[%s7246_s30 + $0x8] sm:$0xf0]  ;;  %v6246_v31 = vld [vmem:[%s7246_s30 + $0x84] sm:$0xf] }
 0x1ba   : > { %4632 = vmatpush.bf16.msrb.mxu2 %v5974_v39  ;;  %v6189_v39 = vld [vmem:[%s7246_s30 + $0x8b0] sm:$0xf]  ;;  %v6126_v46 = vor.u32 %v6493_v37, %v6125_v35  ;;  %v6292_v35 = vld [vmem:[%s7246_s30 + $0x1f4] sm:$0xf] }
 0x1bb   : > { %4645 = vmatpush.bf16.msrb.mxu3 %v6038_v44  ;;  %4607 = vmatmul.bf16.vlgmr.msrb.gmra.mxu0 %v7575_v55  ;;  %v6252_v44 = vld [vmem:[%s7246_s30 + $0xb4] sm:$0xf] }
 0x1bc   : > { %4651 = vmatpush.bf16.msra.mxu0 %v6158_v45  ;;  %4620 = vmatmul.bf16.vlgmr.msrb.gmra.mxu1 %v7582_v63  ;;  %v5167_v45 = vld [vmem:[%s7246_s30 + $0xb8] sm:$0xf0] }
 0x1bd   : > { %4664 = vmatpush.bf16.msra.mxu1 %v6222_v47  ;;  %4633 = vmatmul.bf16.vlgmr.msrb.gmra.mxu2 %v7580_v60  ;;  %v6190_v47 = vor.u32 %v6509_v41, %v6189_v39  ;;  %v5327_v39 = vld [vmem:[%s7246_s30 + $0x1f8] sm:$0xf0] }
 0x1be   : > { %4677 = vmatpush.bf16.msra.mxu2 %v5138_v48  ;;  %4646 = vmatmul.bf16.vlgmr.msrb.gmra.mxu3 %v7586_v3  ;;  %v5106_v48 = vor.u32 %v6236_v42, %v5103_v43  ;;  %v5391_v41 = vld [vmem:[%s7246_s30 + $0x278] sm:$0xf0]  ;;  %v2965_v42 = vunpack.c.l.b16 %v2651_v28 }
 0x1bf   : > { %4690 = vmatpush.bf16.msra.mxu3 %v5202_v54  ;;  %v5170_v54 = vor.u32 %v6252_v44, %v5167_v45  ;;  %v5082_v44 = vor.u32 %v6230_v27, %v5079_v30  ;;  %v6324_v45 = vld [vmem:[%s7246_s30 + $0x2f4] sm:$0xf]  ;;  %v6286_v30 = vld [vmem:[%s7246_s30 + $0x1c4] sm:$0xf] }
 0x1c0   : > { %4652 = vmatpush.bf16.msra.mxu0 %v6150_v4  ;;  %v6118_v4 = vor.u32 %v6491_v50, %v6117_v49  ;;  %v5330_v50 = vor.u32 %v6292_v35, %v5327_v39 }
 0x1c1   : > { %4665 = vmatpush.bf16.msra.mxu1 %v6214_v5  ;;  %v6182_v5 = vor.u32 %v6507_v56, %v6181_v51  ;;  %v5255_v56 = vld [vmem:[%s7246_s30 + $0x168] sm:$0xf0] }
 0x1c2   : > { %4678 = vmatpush.bf16.msra.mxu2 %v5130_v7  ;;  %v5098_v7 = vor.u32 %v6234_v58, %v5095_v59  ;;  %v6290_v58 = vld [vmem:[%s7246_s30 + $0x1e4] sm:$0xf] }
 0x1c3   : > { %4691 = vmatpush.bf16.msra.mxu3 %v5194_v14  ;;  %v5162_v14 = vor.u32 %v6250_v0, %v5159_v2  ;;  %v7654_v0 = vpack.c.b16 %v2965_v42, %v2965_v42  ;;  %v5319_v2 = vld [vmem:[%s7246_s30 + $0x1e8] sm:$0xf0]  ;;  %v6284_v42 = vld [vmem:[%s7246_s30 + $0x1b4] sm:$0xf] }
 0x1c4   : > { %4653 = vmatpush.bf16.msra.mxu0 %v6142_v20  ;;  %v6110_v20 = vor.u32 %v6489_v11, %v6109_v8  ;;  %v6322_v8 = vld [vmem:[%s7246_s30 + $0x2e4] sm:$0xf]  ;;  %v5447_v11 = vld [vmem:[%s7246_s30 + $0x2e8] sm:$0xf0] }
 0x1c5   : > { %4666 = vmatpush.bf16.msra.mxu1 %v6206_v21  ;;  %v6101_v21 = vld [vmem:[%s7246_s30 + $0x800] sm:$0xf]  ;;  %v5450_v19 = vor.u32 %v6322_v8, %v5447_v11  ;;  %v6314_v8 = vld [vmem:[%s7246_s30 + $0x2a4] sm:$0xf]  ;;  %v5415_v11 = vld [vmem:[%s7246_s30 + $0x2a8] sm:$0xf0] }
 0x1c6   : > { %4679 = vmatpush.bf16.msra.mxu2 %v5122_v22  ;;  %v6487_v22 = vld [vmem:[%s7246_s30 + $0x804] sm:$0xf0] }
 0x1c7   : > { %4692 = vmatpush.bf16.msra.mxu3 %v5186_v26  ;;  %v6503_v26 = vld [vmem:[%s7246_s30 + $0x884] sm:$0xf0]  ;;  %v6102_v37 = vor.u32 %v6487_v22, %v6101_v21  ;;  %v6304_v21 = vld [vmem:[%s7246_s30 + $0x254] sm:$0xf]  ;;  %v5375_v22 = vld [vmem:[%s7246_s30 + $0x258] sm:$0xf0] }
 0x1c8   : > { %4654 = vmatpush.bf16.msra.mxu0 %v6134_v32  ;;  %v5143_v32 = vld [vmem:[%s7246_s30 + $0x88] sm:$0xf0]  ;;  %v6166_v43 = vor.u32 %v6503_v26, %v6165_v23  ;;  %v6320_v23 = vld [vmem:[%s7246_s30 + $0x2d4] sm:$0xf]  ;;  %v5378_v27 = vor.u32 %v6304_v21, %v5375_v22 }
 0x1c9   : > { %4667 = vmatpush.bf16.msra.mxu1 %v6198_v33  ;;  %v6276_v33 = vld [vmem:[%s7246_s30 + $0x174] sm:$0xf] }
 0x1ca   : > { %4680 = vmatpush.bf16.msra.mxu2 %v5114_v34  ;;  %v5263_v34 = vld [vmem:[%s7246_s30 + $0x178] sm:$0xf0] }
 0x1cb   : > { %4693 = vmatpush.bf16.msra.mxu3 %v5178_v40  ;;  %v6308_v40 = vld [vmem:[%s7246_s30 + $0x274] sm:$0xf]  ;;  %v5266_v49 = vor.u32 %v6276_v33, %v5263_v34  ;;  %v5367_v33 = vld [vmem:[%s7246_s30 + $0x248] sm:$0xf0]  ;;  %v6318_v34 = vld [vmem:[%s7246_s30 + $0x2c4] sm:$0xf] }
 0x1cc   : > { %4655 = vmatpush.bf16.msra.mxu0 %v6126_v46  ;;  %v5455_v46 = vld [vmem:[%s7246_s30 + $0x2f8] sm:$0xf0]  ;;  %v5394_v51 = vor.u32 %v6308_v40, %v5391_v41  ;;  %v6268_v40 = vld [vmem:[%s7246_s30 + $0x134] sm:$0xf] }
 0x1cd   : > { %4668 = vmatpush.bf16.msra.mxu1 %v6190_v47  ;;  %v2966_v47 = vunpack.c.h.b16 %v2651_v28  ;;  %v5458_v59 = vor.u32 %v6324_v45, %v5455_v46  ;;  %v6270_v28 = vld [vmem:[%s7246_s30 + $0x144] sm:$0xf]  ;;  %v5231_v41 = vld [vmem:[%s7246_s30 + $0x138] sm:$0xf0]  ;;  %v6300_v45 = vld [vmem:[%s7246_s30 + $0x234] sm:$0xf] }
 0x1ce   : > { %4681 = vmatpush.bf16.msra.mxu2 %v5106_v48  ;;  %v5146_v48 = vor.u32 %v6246_v31, %v5143_v32  ;;  %v5303_v32 = vld [vmem:[%s7246_s30 + $0x1c8] sm:$0xf0]  ;;  %v5359_v46 = vld [vmem:[%s7246_s30 + $0x238] sm:$0xf0] }
 0x1cf   : > { %4694 = vmatpush.bf16.msra.mxu3 %v5170_v54  ;;  %v6274_v54 = vld [vmem:[%s7246_s30 + $0x164] sm:$0xf] }
 0x1d0   : > { %4656 = vmatpush.bf16.msra.mxu0 %v6118_v4  ;;  %v6306_v4 = vld [vmem:[%s7246_s30 + $0x264] sm:$0xf]  ;;  %v5258_v13 = vor.u32 %v6274_v54, %v5255_v56  ;;  %v5223_v56 = vld [vmem:[%s7246_s30 + $0x128] sm:$0xf0] }
 0x1d1   : > { %4669 = vmatpush.bf16.msra.mxu1 %v6182_v5  ;;  %v5383_v5 = vld [vmem:[%s7246_s30 + $0x268] sm:$0xf0]  ;;  %v6266_v54 = vld [vmem:[%s7246_s30 + $0x124] sm:$0xf] }
 0x1d2   : > { %4682 = vmatpush.bf16.msra.mxu2 %v5098_v7  ;;  %v7659_v7 = vpack.c.b16 %v2966_v47, %v2966_v47  ;;  %v5386_v15 = vor.u32 %v6306_v4, %v5383_v5  ;;  %v6316_v47 = vld [vmem:[%s7246_s30 + $0x2b4] sm:$0xf]  ;;  %v6298_v4 = vld [vmem:[%s7246_s30 + $0x224] sm:$0xf]  ;;  %v5351_v5 = vld [vmem:[%s7246_s30 + $0x228] sm:$0xf0] }
 0x1d3   : > { %4695 = vmatpush.bf16.msra.mxu3 %v5162_v14  ;;  %v5322_v14 = vor.u32 %v6290_v58, %v5319_v2  ;;  %v6282_v58 = vld [vmem:[%s7246_s30 + $0x1a4] sm:$0xf]  ;;  %v5287_v2 = vld [vmem:[%s7246_s30 + $0x1a8] sm:$0xf0] }
 0x1d4   : > { %4657 = vmatpush.bf16.msra.mxu0 %v6110_v20  ;;  %v5311_v20 = vld [vmem:[%s7246_s30 + $0x1d8] sm:$0xf0] }
 0x1d5   : > { %4670 = vmatpush.bf16.msra.mxu1 %v6174_v24  ;;  %v5439_v24 = vld [vmem:[%s7246_s30 + $0x2d8] sm:$0xf0]  ;;  %v5314_v26 = vor.u32 %v6288_v18, %v5311_v20  ;;  %v6264_v18 = vld [vmem:[%s7246_s30 + $0x114] sm:$0xf] }
 0x1d6   : > { %4683 = vmatpush.bf16.msra.mxu2 %v5090_v25  ;;  %v5250_v25 = vor.u32 %v6272_v16, %v5247_v17  ;;  %v5442_v31 = vor.u32 %v6320_v23, %v5439_v24  ;;  %v5290_v16 = vor.u32 %v6282_v58, %v5287_v2  ;;  %v5354_v17 = vor.u32 %v6298_v4, %v5351_v5  ;;  %v6280_v20 = vld [vmem:[%s7246_s30 + $0x194] sm:$0xf]  ;;  %v5279_v24 = vld [vmem:[%s7246_s30 + $0x198] sm:$0xf0] }
 0x1d7   : > { %4696 = vmatpush.bf16.msra.mxu3 %v5154_v29  ;;  %v5239_v29 = vld [vmem:[%s7246_s30 + $0x148] sm:$0xf0]  ;;  %v5418_v23 = vor.u32 %v6314_v8, %v5415_v11  ;;  %v5711_v2 = vld [vmem:[%s7246_s30 + $0x4f8] sm:$0xf0] }
 0x1d8   : > { %4658 = vmatpush.bf16.msra.mxu0 %v6102_v37  ;;  %v5242_v35 = vor.u32 %v6270_v28, %v5239_v29  ;;  %v5306_v37 = vor.u32 %v6286_v30, %v5303_v32  ;;  %v6312_v28 = vld [vmem:[%s7246_s30 + $0x294] sm:$0xf]  ;;  %v5407_v29 = vld [vmem:[%s7246_s30 + $0x298] sm:$0xf0]  ;;  %v6262_v32 = vld [vmem:[%s7246_s30 + $0x104] sm:$0xf] }
 0x1d9   : > { %4671 = vmatpush.bf16.msra.mxu1 %v6166_v43 }
 0x1da   : > { %4684 = vmatpush.bf16.msra.mxu2 %v5082_v44  ;;  %v5295_v44 = vld [vmem:[%s7246_s30 + $0x1b8] sm:$0xf0] }
 0x1db   : > { %4697 = vmatpush.bf16.msra.mxu3 %v5146_v48  ;;  %4659 = vmatmul.bf16.vlgmr.msra.gmra.mxu0 %v7654_v0  ;;  %v5423_v48 = vld [vmem:[%s7246_s30 + $0x2b8] sm:$0xf0] }
 0x1dc   : > { %4703 = vmatpush.bf16.msrb.mxu0 %v5266_v49  ;;  %4672 = vmatmul.bf16.vlgmr.msra.gmra.mxu1 %v7659_v7  ;;  %v5234_v49 = vor.u32 %v6268_v40, %v5231_v41  ;;  %v5410_v40 = vor.u32 %v6312_v28, %v5407_v29  ;;  %v5335_v41 = vld [vmem:[%s7246_s30 + $0x208] sm:$0xf0]  ;;  %v5503_v28 = vld [vmem:[%s7246_s30 + $0x358] sm:$0xf0]  ;;  %v6352_v29 = vld [vmem:[%s7246_s30 + $0x3d4] sm:$0xf] }
 0x1dd   : > { %4716 = vmatpush.bf16.msrb.mxu1 %v5330_v50  ;;  %4685 = vmatmul.bf16.vlgmr.msra.gmra.mxu2 %v7355_v52  ;;  %v6302_v52 = vld [vmem:[%s7246_s30 + $0x244] sm:$0xf]  ;;  %v5298_v50 = vor.u32 %v6284_v42, %v5295_v44  ;;  %v6340_v44 = vld [vmem:[%s7246_s30 + $0x374] sm:$0xf] }
 0x1de   : > { %4729 = vmatpush.bf16.msrb.mxu2 %v5394_v51  ;;  %4698 = vmatmul.bf16.vlgmr.msra.gmra.mxu3 %v7358_v53  ;;  %v5431_v53 = vld [vmem:[%s7246_s30 + $0x2c8] sm:$0xf0]  ;;  %v5370_v39 = vor.u32 %v6302_v52, %v5367_v33  ;;  %v5362_v51 = vor.u32 %v6300_v45, %v5359_v46  ;;  %v5282_v33 = vor.u32 %v6280_v20, %v5279_v24  ;;  %v6310_v42 = vld [vmem:[%s7246_s30 + $0x284] sm:$0xf]  ;;  %v5519_v45 = vld [vmem:[%s7246_s30 + $0x378] sm:$0xf0] }
 0x1df   : > { %4742 = vmatpush.bf16.msrb.mxu3 %v5458_v59  ;;  %v5434_v43 = vor.u32 %v6318_v34, %v5431_v53  ;;  %v5426_v59 = vor.u32 %v6316_v47, %v5423_v48  ;;  %v5207_v52 = vld [vmem:[%s7246_s30 + $0x108] sm:$0xf0]  ;;  %v6278_v53 = vld [vmem:[%s7246_s30 + $0x184] sm:$0xf]  ;;  %v6356_v46 = vld [vmem:[%s7246_s30 + $0x3f4] sm:$0xf]  ;;  %v5522_v8 = vor.u32 %v6340_v44, %v5519_v45 }
 0x1e0   : > { %4704 = vmatpush.bf16.msrb.mxu0 %v5258_v13  ;;  %v4452_v13 = vpop.f32.mrf.mxu0  ;;  %v4478_v22 = vpop.f32.mrf.mxu2  ;;  %v5210_v48 = vor.u32 %v6262_v32, %v5207_v52  ;;  %v6370_v20 = vld [vmem:[%s7246_s30 + $0x464] sm:$0xf]  ;;  %v6368_v32 = vld [vmem:[%s7246_s30 + $0x454] sm:$0xf]  ;;  %v5631_v52 = vld [vmem:[%s7246_s30 + $0x458] sm:$0xf0] }
 0x1e1   : > { %4717 = vmatpush.bf16.msrb.mxu1 %v5322_v14  ;;  %v5226_v14 = vor.u32 %v6266_v54, %v5223_v56  ;;  %v6382_v44 = vld [vmem:[%s7246_s30 + $0x4c4] sm:$0xf]  ;;  %v5687_v45 = vld [vmem:[%s7246_s30 + $0x4c8] sm:$0xf0] }
 0x1e2   : > { %4730 = vmatpush.bf16.msrb.mxu2 %v5386_v15  ;;  %v4465_v15 = vpop.f32.mrf.mxu1 }
 0x1e3   : > { %4743 = vmatpush.bf16.msrb.mxu3 %v5450_v19  ;;  %v5215_v19 = vld [vmem:[%s7246_s30 + $0x118] sm:$0xf0]  ;;  %v4466_v21 = vadd.f32 %v4465_v15, %v4452_v13  ;;  %v6338_v15 = vld [vmem:[%s7246_s30 + $0x364] sm:$0xf] }
 0x1e4   : > { %4705 = vmatpush.bf16.msrb.mxu0 %v5250_v25  ;;  %v6296_v25 = vld [vmem:[%s7246_s30 + $0x214] sm:$0xf] }
 0x1e5   : > { %4718 = vmatpush.bf16.msrb.mxu1 %v5314_v26  ;;  %v5343_v26 = vld [vmem:[%s7246_s30 + $0x218] sm:$0xf0]  ;;  %v4479_v30 = vadd.f32 %v4478_v22, %v4466_v21  ;;  %v5639_v21 = vld [vmem:[%s7246_s30 + $0x468] sm:$0xf0]  ;;  %v6386_v22 = vld [vmem:[%s7246_s30 + $0x4e4] sm:$0xf] }
 0x1e6   : > { %4731 = vmatpush.bf16.msrb.mxu2 %v5378_v27  ;;  %v4491_v27 = vpop.f32.mrf.mxu3  ;;  %v5346_v34 = vor.u32 %v6296_v25, %v5343_v26  ;;  %v5642_v26 = vor.u32 %v6370_v20, %v5639_v21  ;;  %v5543_v20 = vld [vmem:[%s7246_s30 + $0x3a8] sm:$0xf0]  ;;  %v6362_v21 = vld [vmem:[%s7246_s30 + $0x424] sm:$0xf] }
 0x1e7   : > { %4744 = vmatpush.bf16.msrb.mxu3 %v5442_v31  ;;  %v5218_v31 = vor.u32 %v6264_v18, %v5215_v19  ;;  %v5575_v19 = vld [vmem:[%s7246_s30 + $0x3e8] sm:$0xf0] }
 0x1e8   : > { %4706 = vmatpush.bf16.msrb.mxu0 %v5242_v35  ;;  %v5271_v35 = vld [vmem:[%s7246_s30 + $0x188] sm:$0xf0]  ;;  %v4454_v47 = vpop.f32.mrf.mxu0  ;;  %v4480_v4 = vpop.f32.mrf.mxu2 }
 0x1e9   : > { %4719 = vmatpush.bf16.msrb.mxu1 %v5306_v37  ;;  %v6294_v37 = vld [vmem:[%s7246_s30 + $0x204] sm:$0xf]  ;;  %v5274_v56 = vor.u32 %v6278_v53, %v5271_v35  ;;  %v5634_v35 = vor.u32 %v6368_v32, %v5631_v52  ;;  %v5615_v4 = vld [vmem:[%s7246_s30 + $0x438] sm:$0xf0]  ;;  %v6328_v32 = vld [vmem:[%s7246_s30 + $0x314] sm:$0xf] }
 0x1ea   : > { %4732 = vmatpush.bf16.msrb.mxu2 %v5370_v39  ;;  %v7712_v39 = vadd.f32 %v4491_v27, %v4479_v30  ;;  %v4467_v54 = vpop.f32.mrf.mxu1  ;;  %v5338_v58 = vor.u32 %v6294_v37, %v5335_v41  ;;  %v6336_v27 = vld [vmem:[%s7246_s30 + $0x354] sm:$0xf]  ;;  %v6334_v37 = vld [vmem:[%s7246_s30 + $0x344] sm:$0xf]  ;;  %v5559_v41 = vld [vmem:[%s7246_s30 + $0x3c8] sm:$0xf0] }
 0x1eb   : > { %4745 = vmatpush.bf16.msrb.mxu3 %v5434_v43  ;;  %v5399_v43 = vld [vmem:[%s7246_s30 + $0x288] sm:$0xf0]  ;;  %v5506_v53 = vor.u32 %v6336_v27, %v5503_v28  ;;  %v5471_v52 = vld [vmem:[%s7246_s30 + $0x318] sm:$0xf0] }
 0x1ec   : > { %4707 = vmatpush.bf16.msrb.mxu0 %v5234_v49  ;;  %v5583_v49 = vld [vmem:[%s7246_s30 + $0x3f8] sm:$0xf0]  ;;  %v5402_v5 = vor.u32 %v6310_v42, %v5399_v43  ;;  %v6366_v42 = vld [vmem:[%s7246_s30 + $0x444] sm:$0xf]  ;;  %v5623_v43 = vld [vmem:[%s7246_s30 + $0x448] sm:$0xf0] }
 0x1ed   : > { %4720 = vmatpush.bf16.msrb.mxu1 %v5298_v50  ;;  %v6372_v50 = vld [vmem:[%s7246_s30 + $0x474] sm:$0xf]  ;;  %v5586_v13 = vor.u32 %v6356_v46, %v5583_v49 }
 0x1ee   : > { %4733 = vmatpush.bf16.msrb.mxu2 %v5362_v51  ;;  %v5647_v51 = vld [vmem:[%s7246_s30 + $0x478] sm:$0xf0]  ;;  %v4493_v11 = vpop.f32.mrf.mxu3  ;;  %v6332_v49 = vld [vmem:[%s7246_s30 + $0x334] sm:$0xf] }
 0x1ef   : > { %4746 = vmatpush.bf16.msrb.mxu3 %v5426_v59  ;;  %v6388_v59 = vld [vmem:[%s7246_s30 + $0x4f4] sm:$0xf] }
 0x1f0   : > { %4708 = vmatpush.bf16.msrb.mxu0 %v5226_v14  ;;  %v5650_v14 = vor.u32 %v6372_v50, %v5647_v51  ;;  %v5714_v18 = vor.u32 %v6388_v59, %v5711_v2  ;;  %v5487_v50 = vld [vmem:[%s7246_s30 + $0x338] sm:$0xf0]  ;;  %v6348_v51 = vld [vmem:[%s7246_s30 + $0x3b4] sm:$0xf] }
 0x1f1   : > { %4721 = vmatpush.bf16.msrb.mxu1 %v5290_v16  ;;  %v5511_v16 = vld [vmem:[%s7246_s30 + $0x368] sm:$0xf0]  ;;  %v5551_v59 = vld [vmem:[%s7246_s30 + $0x3b8] sm:$0xf0]  ;;  %v6364_v2 = vld [vmem:[%s7246_s30 + $0x434] sm:$0xf] }
 0x1f2   : > { %4734 = vmatpush.bf16.msrb.mxu2 %v5354_v17  ;;  %v6354_v17 = vld [vmem:[%s7246_s30 + $0x3e4] sm:$0xf]  ;;  %v5514_v24 = vor.u32 %v6338_v15, %v5511_v16  ;;  %v5479_v16 = vld [vmem:[%s7246_s30 + $0x328] sm:$0xf0] }
 0x1f3   : > { %4747 = vmatpush.bf16.msrb.mxu3 %v5418_v23  ;;  %v5703_v23 = vld [vmem:[%s7246_s30 + $0x4e8] sm:$0xf0]  ;;  %v5578_v25 = vor.u32 %v6354_v17, %v5575_v19  ;;  %v6330_v15 = vld [vmem:[%s7246_s30 + $0x324] sm:$0xf] }
 0x1f4   : > { %4709 = vmatpush.bf16.msrb.mxu0 %v5218_v31  ;;  %v5706_v30 = vor.u32 %v6386_v22, %v5703_v23  ;;  %v5567_v31 = vld [vmem:[%s7246_s30 + $0x3d8] sm:$0xf0]  ;;  %v6346_v17 = vld [vmem:[%s7246_s30 + $0x3a4] sm:$0xf]  ;;  %v5607_v22 = vld [vmem:[%s7246_s30 + $0x428] sm:$0xf0]  ;;  %v5482_v27 = vor.u32 %v6330_v15, %v5479_v16 }
 0x1f5   : > { %4722 = vmatpush.bf16.msrb.mxu1 %v5282_v33  ;;  %v6384_v33 = vld [vmem:[%s7246_s30 + $0x4d4] sm:$0xf] }
 0x1f6   : > { %4735 = vmatpush.bf16.msrb.mxu2 %v5346_v34  ;;  %v5695_v34 = vld [vmem:[%s7246_s30 + $0x4d8] sm:$0xf0] }
 0x1f7   : > { %4748 = vmatpush.bf16.msrb.mxu3 %v5410_v40  ;;  %v5495_v40 = vld [vmem:[%s7246_s30 + $0x348] sm:$0xf0] }
 0x1f8   : > { %4710 = vmatpush.bf16.msrb.mxu0 %v5210_v48  ;;  %v4504_v46 = vpop.f32.mrf.mxu0  ;;  %v5626_v48 = vor.u32 %v6366_v42, %v5623_v43  ;;  %v5463_v42 = vld [vmem:[%s7246_s30 + $0x308] sm:$0xf0] }
 0x1f9   : > { %4723 = vmatpush.bf16.msrb.mxu1 %v5274_v56  ;;  %v4505_v54 = vadd.f32 %v4504_v46, %v7712_v39  ;;  %v4517_v56 = vpop.f32.mrf.mxu1  ;;  %v5554_v39 = vor.u32 %v6348_v51, %v5551_v59  ;;  %v6358_v46 = vld [vmem:[%s7246_s30 + $0x404] sm:$0xf]  ;;  %v5655_v51 = vld [vmem:[%s7246_s30 + $0x488] sm:$0xf0]  ;;  %v6420_v59 = vld [vmem:[%s7246_s30 + $0x5f4] sm:$0xf] }
 0x1fa   : > { %4736 = vmatpush.bf16.msrb.mxu2 %v5338_v58  ;;  %v5690_v58 = vor.u32 %v6382_v44, %v5687_v45  ;;  %v6342_v45 = vld [vmem:[%s7246_s30 + $0x384] sm:$0xf] }
 0x1fb   : > { %4749 = vmatpush.bf16.msrb.mxu3 %v5402_v5  ;;  %4711 = vmatmul.bf16.vlgmr.msrb.gmra.mxu0 %v7339_v36  ;;  %v6350_v36 = vld [vmem:[%s7246_s30 + $0x3c4] sm:$0xf]  ;;  %v6380_v5 = vld [vmem:[%s7246_s30 + $0x4b4] sm:$0xf]  ;;  %v4518_v11 = vadd.f32 %v4517_v56, %v4505_v54 }
 0x1fc   : > { %4755 = vmatpush.bf16.msra.mxu0 %v5522_v8  ;;  %4724 = vmatmul.bf16.vlgmr.msrb.gmra.mxu1 %v7344_v38  ;;  %v5498_v38 = vor.u32 %v6334_v37, %v5495_v40  ;;  %v5562_v47 = vor.u32 %v6350_v36, %v5559_v41  ;;  %v5679_v8 = vld [vmem:[%s7246_s30 + $0x4b8] sm:$0xf0]  ;;  %v6376_v40 = vld [vmem:[%s7246_s30 + $0x494] sm:$0xf]  ;;  %v6326_v41 = vld [vmem:[%s7246_s30 + $0x304] sm:$0xf] }
 0x1fd   : > { %4768 = vmatpush.bf16.msra.mxu1 %v5586_v13  ;;  %4737 = vmatmul.bf16.vlgmr.msrb.gmra.mxu2 %v7418_v9  ;;  %v5570_v9 = vor.u32 %v6352_v29, %v5567_v31  ;;  %v5490_v13 = vor.u32 %v6332_v49, %v5487_v50  ;;  %v5682_v19 = vor.u32 %v6380_v5, %v5679_v8  ;;  %v5599_v37 = vld [vmem:[%s7246_s30 + $0x418] sm:$0xf0]  ;;  %v5591_v49 = vld [vmem:[%s7246_s30 + $0x408] sm:$0xf0]  ;;  %v6374_v50 = vld [vmem:[%s7246_s30 + $0x484] sm:$0xf] }
 0x1fe   : > { %4781 = vmatpush.bf16.msra.mxu2 %v5650_v14  ;;  %4750 = vmatmul.bf16.vlgmr.msrb.gmra.mxu3 %v7422_v12  ;;  %v5698_v12 = vor.u32 %v6384_v33, %v5695_v34  ;;  %v5618_v14 = vor.u32 %v6364_v2, %v5615_v4  ;;  %v5610_v31 = vor.u32 %v6362_v21, %v5607_v22  ;;  %v6344_v33 = vld [vmem:[%s7246_s30 + $0x394] sm:$0xf]  ;;  %v5663_v36 = vld [vmem:[%s7246_s30 + $0x498] sm:$0xf0]  ;;  %v6418_v21 = vld [vmem:[%s7246_s30 + $0x5e4] sm:$0xf] }
 0x1ff   : > { %4794 = vmatpush.bf16.msra.mxu3 %v5714_v18  ;;  %v6404_v56 = vld [vmem:[%s7246_s30 + $0x574] sm:$0xf]  ;;  %v5466_v2 = vor.u32 %v6326_v41, %v5463_v42  ;;  %v5839_v4 = vld [vmem:[%s7246_s30 + $0x5f8] sm:$0xf0]  ;;  %v5658_v15 = vor.u32 %v6374_v50, %v5655_v51  ;;  %v6398_v41 = vld [vmem:[%s7246_s30 + $0x544] sm:$0xf] }
 0x200   : > { %4756 = vmatpush.bf16.msra.mxu0 %v5514_v24  ;;  %v4530_v18 = vpop.f32.mrf.mxu2  ;;  %v4506_v29 = vpop.f32.mrf.mxu0  ;;  %v6436_v5 = vld [vmem:[%s7246_s30 + $0x674] sm:$0xf]  ;;  %v5903_v8 = vld [vmem:[%s7246_s30 + $0x678] sm:$0xf0]  ;;  %v5751_v42 = vld [vmem:[%s7246_s30 + $0x548] sm:$0xf0] }
 0x201   : > { %4769 = vmatpush.bf16.msra.mxu1 %v5578_v25  ;;  %v4531_v23 = vadd.f32 %v4530_v18, %v4518_v11  ;;  %v4543_v24 = vpop.f32.mrf.mxu3  ;;  %v6378_v25 = vld [vmem:[%s7246_s30 + $0x4a4] sm:$0xf]  ;;  %v4519_v34 = vpop.f32.mrf.mxu1  ;;  %v5906_v18 = vor.u32 %v6436_v5, %v5903_v8  ;;  %v6428_v5 = vld [vmem:[%s7246_s30 + $0x634] sm:$0xf] }
 0x202   : > { %4782 = vmatpush.bf16.msra.mxu2 %v5642_v26  ;;  %v5671_v26 = vld [vmem:[%s7246_s30 + $0x4a8] sm:$0xf0]  ;;  %v6444_v8 = vld [vmem:[%s7246_s30 + $0x6b4] sm:$0xf] }
 0x203   : > { %4795 = vmatpush.bf16.msra.mxu3 %v5706_v30  ;;  %v7770_v28 = vadd.f32 %v4543_v24, %v4531_v23  ;;  %v5546_v30 = vor.u32 %v6346_v17, %v5543_v20  ;;  %v5842_v17 = vor.u32 %v6420_v59, %v5839_v4  ;;  %v5767_v20 = vld [vmem:[%s7246_s30 + $0x568] sm:$0xf0]  ;;  %v6434_v24 = vld [vmem:[%s7246_s30 + $0x664] sm:$0xf]  ;;  %v5807_v4 = vld [vmem:[%s7246_s30 + $0x5b8] sm:$0xf0] }
 0x204   : > { %4757 = vmatpush.bf16.msra.mxu0 %v5506_v53  ;;  %v5674_v53 = vor.u32 %v6378_v25, %v5671_v26  ;;  %v5831_v23 = vld [vmem:[%s7246_s30 + $0x5e8] sm:$0xf0]  ;;  %v6450_v26 = vld [vmem:[%s7246_s30 + $0x6e4] sm:$0xf] }
 0x205   : > { %4770 = vmatpush.bf16.msra.mxu1 %v5570_v9  ;;  %v5535_v9 = vld [vmem:[%s7246_s30 + $0x398] sm:$0xf0]  ;;  %v5895_v25 = vld [vmem:[%s7246_s30 + $0x668] sm:$0xf0] }
 0x206   : > { %4783 = vmatpush.bf16.msra.mxu2 %v5634_v35  ;;  %v6360_v35 = vld [vmem:[%s7246_s30 + $0x414] sm:$0xf]  ;;  %v5538_v43 = vor.u32 %v6344_v33, %v5535_v9 }
 0x207   : > { %4796 = vmatpush.bf16.msra.mxu3 %v5698_v12  ;;  %v5474_v12 = vor.u32 %v6328_v32, %v5471_v52  ;;  %v5602_v44 = vor.u32 %v6360_v35, %v5599_v37  ;;  %v6400_v32 = vld [vmem:[%s7246_s30 + $0x554] sm:$0xf]  ;;  %v5759_v52 = vld [vmem:[%s7246_s30 + $0x558] sm:$0xf0] }
 0x208   : > { %4758 = vmatpush.bf16.msra.mxu0 %v5498_v38  ;;  %v5527_v38 = vld [vmem:[%s7246_s30 + $0x388] sm:$0xf0]  ;;  %v6416_v33 = vld [vmem:[%s7246_s30 + $0x5d4] sm:$0xf]  ;;  %v5887_v35 = vld [vmem:[%s7246_s30 + $0x658] sm:$0xf0] }
 0x209   : > { %4771 = vmatpush.bf16.msra.mxu1 %v5562_v47  ;;  %v4532_v47 = vpop.f32.mrf.mxu2  ;;  %v4545_v54 = vpop.f32.mrf.mxu3  ;;  %v5530_v11 = vor.u32 %v6342_v45, %v5527_v38  ;;  %v6432_v9 = vld [vmem:[%s7246_s30 + $0x654] sm:$0xf]  ;;  %v5879_v45 = vld [vmem:[%s7246_s30 + $0x648] sm:$0xf0]  ;;  %v6446_v38 = vld [vmem:[%s7246_s30 + $0x6c4] sm:$0xf] }
 0x20a   : > { %4784 = vmatpush.bf16.msra.mxu2 %v5626_v48  ;;  %v5666_v48 = vor.u32 %v6376_v40, %v5663_v36  ;;  %v6448_v37 = vld [vmem:[%s7246_s30 + $0x6d4] sm:$0xf]  ;;  %v5951_v40 = vld [vmem:[%s7246_s30 + $0x6d8] sm:$0xf0] }
 0x20b   : > { %4797 = vmatpush.bf16.msra.mxu3 %v5690_v58  ;;  %v5775_v58 = vld [vmem:[%s7246_s30 + $0x578] sm:$0xf0]  ;;  %v6396_v54 = vld [vmem:[%s7246_s30 + $0x534] sm:$0xf] }
 0x20c   : > { %4759 = vmatpush.bf16.msra.mxu0 %v5490_v13  ;;  %v5594_v13 = vor.u32 %v6358_v46, %v5591_v49  ;;  %v5778_v16 = vor.u32 %v6404_v56, %v5775_v58  ;;  %v5943_v46 = vld [vmem:[%s7246_s30 + $0x6c8] sm:$0xf0]  ;;  %v5743_v56 = vld [vmem:[%s7246_s30 + $0x538] sm:$0xf0]  ;;  %v6412_v58 = vld [vmem:[%s7246_s30 + $0x5b4] sm:$0xf] }
 0x20d   : > { %4772 = vmatpush.bf16.msra.mxu1 %v5554_v39  ;;  %v6452_v39 = vld [vmem:[%s7246_s30 + $0x6f4] sm:$0xf]  ;;  %v5946_v59 = vor.u32 %v6446_v38, %v5943_v46  ;;  %v5847_v38 = vld [vmem:[%s7246_s30 + $0x608] sm:$0xf0]  ;;  %v6438_v46 = vld [vmem:[%s7246_s30 + $0x684] sm:$0xf] }
 0x20e   : > { %4785 = vmatpush.bf16.msra.mxu2 %v5618_v14  ;;  %v5967_v14 = vld [vmem:[%s7246_s30 + $0x6f8] sm:$0xf0] }
 0x20f   : > { %4798 = vmatpush.bf16.msra.mxu3 %v5682_v19  ;;  %v6402_v19 = vld [vmem:[%s7246_s30 + $0x564] sm:$0xf]  ;;  %v5970_v22 = vor.u32 %v6452_v39, %v5967_v14  ;;  %v5810_v39 = vor.u32 %v6412_v58, %v5807_v4  ;;  %v6095_v58 = vld [vmem:[%s7246_s30 + $0x7f8] sm:$0xf0] }
 0x210   : > { %4760 = vmatpush.bf16.msra.mxu0 %v5482_v27  ;;  %v5959_v27 = vld [vmem:[%s7246_s30 + $0x6e8] sm:$0xf0]  ;;  %v5770_v29 = vor.u32 %v6402_v19, %v5767_v20 }
 0x211   : > { %4773 = vmatpush.bf16.msra.mxu1 %v5546_v30  ;;  %v5834_v30 = vor.u32 %v6418_v21, %v5831_v23  ;;  %v5962_v34 = vor.u32 %v6450_v26, %v5959_v27  ;;  %v5799_v20 = vld [vmem:[%s7246_s30 + $0x5a8] sm:$0xf0]  ;;  %v6426_v21 = vld [vmem:[%s7246_s30 + $0x624] sm:$0xf] }
 0x212   : > { %4786 = vmatpush.bf16.msra.mxu2 %v5610_v31  ;;  %v5898_v31 = vor.u32 %v6434_v24, %v5895_v25  ;;  %v6442_v25 = vld [vmem:[%s7246_s30 + $0x6a4] sm:$0xf]  ;;  %v5927_v26 = vld [vmem:[%s7246_s30 + $0x6a8] sm:$0xf0] }
 0x213   : > { %4799 = vmatpush.bf16.msra.mxu3 %v5674_v53  ;;  %v5823_v53 = vld [vmem:[%s7246_s30 + $0x5d8] sm:$0xf0] }
 0x214   : > { %4761 = vmatpush.bf16.msra.mxu0 %v5474_v12  ;;  %v5826_v36 = vor.u32 %v6416_v33, %v5823_v53  ;;  %v5890_v12 = vor.u32 %v6432_v9, %v5887_v35  ;;  %v6392_v33 = vld [vmem:[%s7246_s30 + $0x514] sm:$0xf]  ;;  %v5930_v9 = vor.u32 %v6442_v25, %v5927_v26  ;;  %v5791_v35 = vld [vmem:[%s7246_s30 + $0x598] sm:$0xf0] }
 0x215   : > { %4774 = vmatpush.bf16.msra.mxu1 %v5538_v43  ;;  %v5815_v43 = vld [vmem:[%s7246_s30 + $0x5c8] sm:$0xf0]  ;;  %v6408_v53 = vld [vmem:[%s7246_s30 + $0x594] sm:$0xf] }
 0x216   : > { %4787 = vmatpush.bf16.msra.mxu2 %v5602_v44  ;;  %v6430_v44 = vld [vmem:[%s7246_s30 + $0x644] sm:$0xf] }
 0x217   : > { %4800 = vmatpush.bf16.msra.mxu3 %v5666_v48  ;;  %v5754_v48 = vor.u32 %v6398_v41, %v5751_v42  ;;  %v5882_v51 = vor.u32 %v6430_v44, %v5879_v45  ;;  %v6390_v41 = vld [vmem:[%s7246_s30 + $0x504] sm:$0xf]  ;;  %v5719_v42 = vld [vmem:[%s7246_s30 + $0x508] sm:$0xf0] }
 0x218   : > { %4762 = vmatpush.bf16.msra.mxu0 %v5466_v2  ;;  %v5783_v44 = vld [vmem:[%s7246_s30 + $0x588] sm:$0xf0]  ;;  %v6422_v45 = vld [vmem:[%s7246_s30 + $0x604] sm:$0xf] }
 0x219   : > { %4775 = vmatpush.bf16.msra.mxu1 %v5530_v11  ;;  %v4569_v49 = vpop.f32.mrf.mxu1  ;;  %v5935_v11 = vld [vmem:[%s7246_s30 + $0x6b8] sm:$0xf0] }
 0x21a   : > { %4788 = vmatpush.bf16.msra.mxu2 %v5594_v13  ;;  %v5746_v13 = vor.u32 %v6396_v54, %v5743_v56  ;;  %v5722_v56 = vor.u32 %v6390_v41, %v5719_v42  ;;  %v6135_v41 = vld [vmem:[%s7246_s30 + $0x848] sm:$0xf0]  ;;  %v6510_v42 = vld [vmem:[%s7246_s30 + $0x8c4] sm:$0xf] }
 0x21b   : > { %4801 = vmatpush.bf16.msra.mxu3 %v5658_v15  ;;  %4763 = vmatmul.bf16.vlgmr.msra.gmra.mxu0 %v7414_v6  ;;  %v5762_v6 = vor.u32 %v6400_v32, %v5759_v52  ;;  %v6394_v15 = vld [vmem:[%s7246_s30 + $0x524] sm:$0xf] }
 0x21c   : > { %4807 = vmatpush.bf16.msrb.mxu0 %v5778_v16  ;;  %4776 = vmatmul.bf16.vlgmr.msra.gmra.mxu1 %v7420_v10  ;;  %v5954_v10 = vor.u32 %v6448_v37, %v5951_v40  ;;  %v5735_v16 = vld [vmem:[%s7246_s30 + $0x528] sm:$0xf0]  ;;  %v6424_v37 = vld [vmem:[%s7246_s30 + $0x614] sm:$0xf]  ;;  %v5855_v40 = vld [vmem:[%s7246_s30 + $0x618] sm:$0xf0] }
 0x21d   : > { %4820 = vmatpush.bf16.msrb.mxu1 %v5842_v17  ;;  %4789 = vmatmul.bf16.vlgmr.msra.gmra.mxu2 %v7493_v57  ;;  %v6414_v57 = vld [vmem:[%s7246_s30 + $0x5c4] sm:$0xf] }
 0x21e   : > { %4833 = vmatpush.bf16.msrb.mxu2 %v5906_v18  ;;  %4802 = vmatmul.bf16.vlgmr.msra.gmra.mxu3 %v7500_v62  ;;  %v4556_v62 = vpop.f32.mrf.mxu0  ;;  %v5818_v50 = vor.u32 %v6414_v57, %v5815_v43  ;;  %v6410_v17 = vld [vmem:[%s7246_s30 + $0x5a4] sm:$0xf]  ;;  %v5938_v18 = vor.u32 %v6444_v8, %v5935_v11  ;;  %v5794_v57 = vor.u32 %v6408_v53, %v5791_v35  ;;  %v6223_v8 = vld [vmem:[%s7246_s30 + $0x8f8] sm:$0xf0]  ;;  %v6512_v53 = vld [vmem:[%s7246_s30 + $0x8d4] sm:$0xf] }
 0x21f   : > { %4846 = vmatpush.bf16.msrb.mxu3 %v5970_v22  ;;  %v4557_v47 = vadd.f32 %v4556_v62, %v7770_v28  ;;  %v5871_v28 = vld [vmem:[%s7246_s30 + $0x638] sm:$0xf0]  ;;  %v5863_v22 = vld [vmem:[%s7246_s30 + $0x628] sm:$0xf0]  ;;  %v5802_v32 = vor.u32 %v6410_v17, %v5799_v20  ;;  %v6406_v43 = vld [vmem:[%s7246_s30 + $0x584] sm:$0xf] }
 0x220   : > { %4808 = vmatpush.bf16.msrb.mxu0 %v5770_v29  ;;  %v5874_v14 = vor.u32 %v6428_v5, %v5871_v28  ;;  %v4582_v19 = vpop.f32.mrf.mxu2  ;;  %v5738_v29 = vor.u32 %v6394_v15, %v5735_v16  ;;  %v5866_v52 = vor.u32 %v6426_v21, %v5863_v22  ;;  %v5786_v4 = vor.u32 %v6406_v43, %v5783_v44  ;;  %v6516_v28 = vld [vmem:[%s7246_s30 + $0x8f4] sm:$0xf]  ;;  %v6466_v15 = vld [vmem:[%s7246_s30 + $0x764] sm:$0xf]  ;;  %v6023_v16 = vld [vmem:[%s7246_s30 + $0x768] sm:$0xf0] }
 0x221   : > { %4821 = vmatpush.bf16.msrb.mxu1 %v5834_v30  ;;  %v4570_v2 = vadd.f32 %v4569_v49, %v4557_v47  ;;  %v4595_v24 = vpop.f32.mrf.mxu3  ;;  %v4571_v30 = vpop.f32.mrf.mxu1  ;;  %v5911_v47 = vld [vmem:[%s7246_s30 + $0x688] sm:$0xf0]  ;;  %v6468_v49 = vld [vmem:[%s7246_s30 + $0x774] sm:$0xf]  ;;  %v5850_v5 = vor.u32 %v6422_v45, %v5847_v38  ;;  %v6482_v17 = vld [vmem:[%s7246_s30 + $0x7e4] sm:$0xf] }
 0x222   : > { %4834 = vmatpush.bf16.msrb.mxu2 %v5898_v31  ;;  %v5914_v11 = vor.u32 %v6438_v46, %v5911_v47  ;;  %v6498_v20 = vld [vmem:[%s7246_s30 + $0x864] sm:$0xf]  ;;  %v6151_v21 = vld [vmem:[%s7246_s30 + $0x868] sm:$0xf0]  ;;  %v6480_v30 = vld [vmem:[%s7246_s30 + $0x7d4] sm:$0xf] }
 0x223   : > { %4847 = vmatpush.bf16.msrb.mxu3 %v5962_v34  ;;  %v4583_v23 = vadd.f32 %v4582_v19, %v4570_v2  ;;  %v5727_v34 = vld [vmem:[%s7246_s30 + $0x518] sm:$0xf0]  ;;  %v6087_v19 = vld [vmem:[%s7246_s30 + $0x7e8] sm:$0xf0]  ;;  %v6514_v22 = vld [vmem:[%s7246_s30 + $0x8e4] sm:$0xf]  ;;  %v6154_v26 = vor.u32 %v6498_v20, %v6151_v21 }
 0x224   : > { %4809 = vmatpush.bf16.msrb.mxu0 %v5762_v6  ;;  %v6440_v6 = vld [vmem:[%s7246_s30 + $0x694] sm:$0xf]  ;;  %v6159_v2 = vld [vmem:[%s7246_s30 + $0x878] sm:$0xf0]  ;;  %v6090_v25 = vor.u32 %v6482_v17, %v6087_v19  ;;  %v6506_v17 = vld [vmem:[%s7246_s30 + $0x8a4] sm:$0xf] }
 0x225   : > { %4822 = vmatpush.bf16.msrb.mxu1 %v5826_v36  ;;  %v7841_v31 = vadd.f32 %v4595_v24, %v4583_v23  ;;  %v5919_v36 = vld [vmem:[%s7246_s30 + $0x698] sm:$0xf0]  ;;  %v6215_v23 = vld [vmem:[%s7246_s30 + $0x8e8] sm:$0xf0]  ;;  %v6026_v24 = vor.u32 %v6466_v15, %v6023_v16  ;;  %v6460_v38 = vld [vmem:[%s7246_s30 + $0x734] sm:$0xf] }
 0x226   : > { %4835 = vmatpush.bf16.msrb.mxu2 %v5890_v12  ;;  %v4558_v27 = vpop.f32.mrf.mxu0  ;;  %v5730_v12 = vor.u32 %v6392_v33, %v5727_v34  ;;  %v5922_v62 = vor.u32 %v6440_v6, %v5919_v36  ;;  %v6496_v33 = vld [vmem:[%s7246_s30 + $0x854] sm:$0xf]  ;;  %v6143_v34 = vld [vmem:[%s7246_s30 + $0x858] sm:$0xf0]  ;;  %v6007_v6 = vld [vmem:[%s7246_s30 + $0x748] sm:$0xf0] }
 0x227   : > { %4848 = vmatpush.bf16.msrb.mxu3 %v5954_v10  ;;  %v5858_v10 = vor.u32 %v6424_v37, %v5855_v40  ;;  %v6464_v27 = vld [vmem:[%s7246_s30 + $0x754] sm:$0xf]  ;;  %v6146_v37 = vor.u32 %v6496_v33, %v6143_v34  ;;  %v6462_v40 = vld [vmem:[%s7246_s30 + $0x744] sm:$0xf]  ;;  %v6071_v36 = vld [vmem:[%s7246_s30 + $0x7c8] sm:$0xf0] }
 0x228   : > { %4810 = vmatpush.bf16.msrb.mxu0 %v5754_v48  ;;  %v4584_v48 = vpop.f32.mrf.mxu2  ;;  %v6010_v43 = vor.u32 %v6462_v40, %v6007_v6  ;;  %v5999_v46 = vld [vmem:[%s7246_s30 + $0x738] sm:$0xf0]  ;;  %v6476_v47 = vld [vmem:[%s7246_s30 + $0x7b4] sm:$0xf]  ;;  %v6470_v40 = vld [vmem:[%s7246_s30 + $0x784] sm:$0xf] }
 0x229   : > { %4823 = vmatpush.bf16.msrb.mxu1 %v5818_v50  ;;  %v6031_v50 = vld [vmem:[%s7246_s30 + $0x778] sm:$0xf0]  ;;  %v4597_v54 = vpop.f32.mrf.mxu3  ;;  %v6504_v33 = vld [vmem:[%s7246_s30 + $0x894] sm:$0xf] }
 0x22a   : > { %4836 = vmatpush.bf16.msrb.mxu2 %v5882_v51  ;;  %v6484_v51 = vld [vmem:[%s7246_s30 + $0x7f4] sm:$0xf]  ;;  %v6175_v34 = vld [vmem:[%s7246_s30 + $0x898] sm:$0xf0] }
 0x22b   : > { %4849 = vmatpush.bf16.msrb.mxu3 %v5946_v59  ;;  %v6500_v59 = vld [vmem:[%s7246_s30 + $0x874] sm:$0xf]  ;;  %v6178_v6 = vor.u32 %v6504_v33, %v6175_v34 }
 0x22c   : > { %4811 = vmatpush.bf16.msrb.mxu0 %v5746_v13  ;;  %v6034_v13 = vor.u32 %v6468_v49, %v6031_v50  ;;  %v6063_v50 = vld [vmem:[%s7246_s30 + $0x7b8] sm:$0xf0]  ;;  %v6508_v54 = vld [vmem:[%s7246_s30 + $0x8b4] sm:$0xf] }
 0x22d   : > { %4824 = vmatpush.bf16.msrb.mxu1 %v5810_v39  ;;  %v6098_v39 = vor.u32 %v6484_v51, %v6095_v58  ;;  %v6492_v51 = vld [vmem:[%s7246_s30 + $0x834] sm:$0xf]  ;;  %v6002_v58 = vor.u32 %v6460_v38, %v5999_v46 }
 0x22e   : > { %4837 = vmatpush.bf16.msrb.mxu2 %v5874_v14  ;;  %v6162_v14 = vor.u32 %v6500_v59, %v6159_v2  ;;  %v6066_v59 = vor.u32 %v6476_v47, %v6063_v50 }
 0x22f   : > { %4850 = vmatpush.bf16.msrb.mxu3 %v5938_v18  ;;  %v6226_v18 = vor.u32 %v6516_v28, %v6223_v8  ;;  %v6474_v28 = vld [vmem:[%s7246_s30 + $0x7a4] sm:$0xf] }
 0x230   : > { %4812 = vmatpush.bf16.msrb.mxu0 %v5738_v29  ;;  %v6015_v29 = vld [vmem:[%s7246_s30 + $0x758] sm:$0xf0] }
 0x231   : > { %4825 = vmatpush.bf16.msrb.mxu1 %v5802_v32  ;;  %v6218_v32 = vor.u32 %v6514_v22, %v6215_v23 }
 0x232   : > { %4838 = vmatpush.bf16.msrb.mxu2 %v5866_v52  ;;  %v6079_v52 = vld [vmem:[%s7246_s30 + $0x7d8] sm:$0xf0] }
 0x233   : > { %4851 = vmatpush.bf16.msrb.mxu3 %v5930_v9  ;;  %v6207_v9 = vld [vmem:[%s7246_s30 + $0x8d8] sm:$0xf0]  ;;  %v6082_v35 = vor.u32 %v6480_v30, %v6079_v52 }
 0x234   : > { %4813 = vmatpush.bf16.msrb.mxu0 %v5730_v12  ;;  %v6494_v12 = vld [vmem:[%s7246_s30 + $0x844] sm:$0xf]  ;;  %v6047_v30 = vld [vmem:[%s7246_s30 + $0x798] sm:$0xf0] }
 0x235   : > { %4826 = vmatpush.bf16.msrb.mxu1 %v5794_v57  ;;  %v6199_v57 = vld [vmem:[%s7246_s30 + $0x8c8] sm:$0xf0]  ;;  %v6111_v52 = vld [vmem:[%s7246_s30 + $0x818] sm:$0xf0] }
 0x236   : > { %4839 = vmatpush.bf16.msrb.mxu2 %v5858_v10  ;;  %v6202_v48 = vor.u32 %v6510_v42, %v6199_v57 }
 0x237   : > { %4852 = vmatpush.bf16.msrb.mxu3 %v5922_v62  ;;  %v6138_v62 = vor.u32 %v6494_v12, %v6135_v41  ;;  %v6502_v41 = vld [vmem:[%s7246_s30 + $0x884] sm:$0xf] }
 0x238   : > { %4814 = vmatpush.bf16.msrb.mxu0 %v5722_v56  ;;  %v6191_v56 = vld [vmem:[%s7246_s30 + $0x8b8] sm:$0xf0] }
 0x239   : > { %4827 = vmatpush.bf16.msrb.mxu1 %v5786_v4  ;;  %v4621_v44 = vpop.f32.mrf.mxu1  ;;  %v6458_v4 = vld [vmem:[%s7246_s30 + $0x724] sm:$0xf]  ;;  %v6194_v8 = vor.u32 %v6508_v54, %v6191_v56 }
 0x23a   : > { %4840 = vmatpush.bf16.msrb.mxu2 %v5850_v5  ;;  %v5991_v5 = vld [vmem:[%s7246_s30 + $0x728] sm:$0xf0] }
 0x23b   : > { %4853 = vmatpush.bf16.msrb.mxu3 %v5914_v11  ;;  %4815 = vmatmul.bf16.vlgmr.msrb.gmra.mxu0 %v7498_v61  ;;  %v6018_v61 = vor.u32 %v6464_v27, %v6015_v29  ;;  %v5994_v20 = vor.u32 %v6458_v4, %v5991_v5  ;;  %v6472_v27 = vld [vmem:[%s7246_s30 + $0x794] sm:$0xf] }
 0x23c   : > { %4859 = vmatpush.bf16.msra.mxu0 %v6034_v13  ;;  %4828 = vmatmul.bf16.vlgmr.msrb.gmra.mxu1 %v7504_v1  ;;  %v6210_v1 = vor.u32 %v6512_v53, %v6207_v9  ;;  %v6055_v13 = vld [vmem:[%s7246_s30 + $0x7a8] sm:$0xf0]  ;;  %v6050_v9 = vor.u32 %v6472_v27, %v6047_v30 }
 0x23d   : > { %4872 = vmatpush.bf16.msra.mxu1 %v6098_v39  ;;  %4841 = vmatmul.bf16.vlgmr.msrb.gmra.mxu2 %v7575_v55  ;;  %v6478_v55 = vld [vmem:[%s7246_s30 + $0x7c4] sm:$0xf]  ;;  %v6058_v23 = vor.u32 %v6474_v28, %v6055_v13 }
 0x23e   : > { %4885 = vmatpush.bf16.msra.mxu2 %v6162_v14  ;;  %4854 = vmatmul.bf16.vlgmr.msrb.gmra.mxu3 %v7582_v63  ;;  %v4608_v63 = vpop.f32.mrf.mxu0  ;;  %v6074_v45 = vor.u32 %v6478_v55, %v6071_v36  ;;  %v6490_v39 = vld [vmem:[%s7246_s30 + $0x824] sm:$0xf]  ;;  %v6119_v14 = vld [vmem:[%s7246_s30 + $0x828] sm:$0xf0] }
 0x23f   : > { %4898 = vmatpush.bf16.msra.mxu3 %v6226_v18  ;;  %v4609_v10 = vadd.f32 %v4608_v63, %v7841_v31  ;;  %v6127_v31 = vld [vmem:[%s7246_s30 + $0x838] sm:$0xf0]  ;;  %v6183_v18 = vld [vmem:[%s7246_s30 + $0x8a8] sm:$0xf0] }
 0x240   : > { %4860 = vmatpush.bf16.msra.mxu0 %v6026_v24  ;;  %v6130_v2 = vor.u32 %v6492_v51, %v6127_v31  ;;  %v4634_v11 = vpop.f32.mrf.mxu2  ;;  %v6122_v24 = vor.u32 %v6490_v39, %v6119_v14  ;;  %v6186_v29 = vor.u32 %v6506_v17, %v6183_v18  ;;  %v6039_v55 = vld [vmem:[%s7246_s30 + $0x788] sm:$0xf0] }
 0x241   : > { %4873 = vmatpush.bf16.msra.mxu1 %v6090_v25  ;;  %v4622_v49 = vadd.f32 %v4621_v44, %v4609_v10  ;;  %v4647_v16 = vpop.f32.mrf.mxu3  ;;  %v4623_v21 = vpop.f32.mrf.mxu1  ;;  %v6456_v25 = vld [vmem:[%s7246_s30 + $0x714] sm:$0xf]  ;;  %v6103_v36 = vld [vmem:[%s7246_s30 + $0x808] sm:$0xf0]  ;;  %v6042_v10 = vor.u32 %v6470_v40, %v6039_v55 }
 0x242   : > { %4886 = vmatpush.bf16.msra.mxu2 %v6154_v26  ;;  %v5983_v26 = vld [vmem:[%s7246_s30 + $0x718] sm:$0xf0]  ;;  %v6167_v63 = vld [vmem:[%s7246_s30 + $0x888] sm:$0xf0] }
 0x243   : > { %4899 = vmatpush.bf16.msra.mxu3 %v6218_v32  ;;  %v4635_v15 = vadd.f32 %v4634_v11, %v4622_v49  ;;  %v6488_v32 = vld [vmem:[%s7246_s30 + $0x814] sm:$0xf]  ;;  %v5986_v53 = vor.u32 %v6456_v25, %v5983_v26  ;;  %v6170_v44 = vor.u32 %v6502_v41, %v6167_v63 }
 0x244   : > { %4861 = vmatpush.bf16.msra.mxu0 %v6018_v61  ;;  %v6114_v61 = vor.u32 %v6488_v32, %v6111_v52 }
 0x245   : > { %4874 = vmatpush.bf16.msra.mxu1 %v6082_v35  ;;  %v4648_v22 = vadd.f32 %v4647_v16, %v4635_v15  ;;  %v6454_v35 = vld [vmem:[%s7246_s30 + $0x704] sm:$0xf] }
 0x246   : > { %4887 = vmatpush.bf16.msra.mxu2 %v6146_v37  ;;  %v4610_v19 = vpop.f32.mrf.mxu0  ;;  %v5975_v37 = vld [vmem:[%s7246_s30 + $0x708] sm:$0xf0] }
 0x247   : > { %4900 = vmatpush.bf16.msra.mxu3 %v6210_v1  ;;  %v6486_v1 = vld [vmem:[%s7246_s30 + $0x804] sm:$0xf]  ;;  %v5978_v57 = vor.u32 %v6454_v35, %v5975_v37  ;;  %v4920_v37 = vld [vmem:[%s2623_s4] sm:$0x3] }
 0x248   : > { %4862 = vmatpush.bf16.msra.mxu0 %v6010_v43  ;;  %v4636_v12 = vpop.f32.mrf.mxu2  ;;  %v6106_v43 = vor.u32 %v6486_v1, %v6103_v36  ;;  %v4922_v40 = vperm.slane %v4920_v37, 0 }
 0x249   : > { %4875 = vmatpush.bf16.msra.mxu1 %v6074_v45  ;;  %v4649_v42 = vpop.f32.mrf.mxu3  ;;  %v4923_v12 = vperm.slane %v4920_v37, 1 }
 0x24a   : > { %4888 = vmatpush.bf16.msra.mxu2 %v6138_v62 }
 0x24b   : > { %4901 = vmatpush.bf16.msra.mxu3 %v6202_v48 }
 0x24c   : > { %4863 = vmatpush.bf16.msra.mxu0 %v6002_v58 }
 0x24d   : > { %4876 = vmatpush.bf16.msra.mxu1 %v6066_v59 }
 0x24e   : > { %4889 = vmatpush.bf16.msra.mxu2 %v6130_v2 }
 0x24f   : > { %4902 = vmatpush.bf16.msra.mxu3 %v6194_v8 }
 0x250   : > { %4864 = vmatpush.bf16.msra.mxu0 %v5994_v20 }
 0x251   : > { %4877 = vmatpush.bf16.msra.mxu1 %v6058_v23 }
 0x252   : > { %4890 = vmatpush.bf16.msra.mxu2 %v6122_v24 }
 0x253   : > { %4903 = vmatpush.bf16.msra.mxu3 %v6186_v29 }
 0x254   : > { %4865 = vmatpush.bf16.msra.mxu0 %v5986_v53 }
 0x255   : > { %4878 = vmatpush.bf16.msra.mxu1 %v6050_v9 }
 0x256   : > { %4891 = vmatpush.bf16.msra.mxu2 %v6114_v61 }
 0x257   : > { %4904 = vmatpush.bf16.msra.mxu3 %v6178_v6 }
 0x258   : > { %4866 = vmatpush.bf16.msra.mxu0 %v5978_v57  ;;  %v4660_v45 = vpop.f32.mrf.mxu0 }
 0x259   : > { %4879 = vmatpush.bf16.msra.mxu1 %v6042_v10  ;;  %v4661_v62 = vadd.f32 %v4660_v45, %v4648_v22  ;;  %v4673_v38 = vpop.f32.mrf.mxu1 }
 0x25a   : > { %4892 = vmatpush.bf16.msra.mxu2 %v6106_v43 }
 0x25b   : > { %4905 = vmatpush.bf16.msra.mxu3 %v6170_v44  ;;  %4867 = vmatmul.bf16.vlgmr.msra.gmra.mxu0 %v7580_v60  ;;  %v4674_v46 = vadd.f32 %v4673_v38, %v4661_v62 }
 0x25c   : > { %4880 = vmatmul.bf16.vlgmr.msra.gmra.mxu1 %v7586_v3 }
 0x25d   : > { %4893 = vmatmul.bf16.vlgmr.msra.gmra.mxu2 %v7654_v0  ;;  %v4926_v42 = vadd.f32 %v4922_v40, %v4674_v46 }
 0x25e   : > { %4906 = vmatmul.bf16.vlgmr.msra.gmra.mxu3 %v7659_v7 }
 0x25f   : > { %v4928_v43 = vmax.f32 %v4926_v42, 0.0 }
 0x260   : > { %v4686_v47 = vpop.f32.mrf.mxu2  ;;  %v4662_v49 = vpop.f32.mrf.mxu0 }
 0x261   : > { %v4699_v48 = vpop.f32.mrf.mxu3  ;;  %v4675_v51 = vpop.f32.mrf.mxu1 }
 0x262   : > { %v4700_v50 = vadd.f32 %v4699_v48, %v4686_v47 }
 0x268   : > { %v4688_v31 = vpop.f32.mrf.mxu2 }
 0x269   : > { %v4701_v54 = vpop.f32.mrf.mxu3 }
 0x278   : > { %v4712_v56 = vpop.f32.mrf.mxu0 }
 0x279   : > { %v4713_v58 = vadd.f32 %v4712_v56, %v4700_v50  ;;  %v4725_v60 = vpop.f32.mrf.mxu1 }
 0x27b   : > { %v4726_v59 = vadd.f32 %v4725_v60, %v4713_v58 }
 0x280   : > { %v4738_v3 = vpop.f32.mrf.mxu2  ;;  %v4714_v7 = vpop.f32.mrf.mxu0 }
 0x281   : > { %v4739_v2 = vadd.f32 %v4738_v3, %v4726_v59  ;;  %v4751_v0 = vpop.f32.mrf.mxu3  ;;  %v4727_v5 = vpop.f32.mrf.mxu1 }
 0x283   : > { %v4752_v4 = vadd.f32 %v4751_v0, %v4739_v2 }
 0x288   : > { %v4740_v28 = vpop.f32.mrf.mxu2 }
 0x289   : > { %v4753_v8 = vpop.f32.mrf.mxu3 }
 0x298   : > { %v4764_v11 = vpop.f32.mrf.mxu0 }
 0x299   : > { %v4777_v13 = vpop.f32.mrf.mxu1  ;;  %v4765_v21 = vadd.f32 %v4764_v11, %v4752_v4 }
 0x29b   : > { %v4778_v26 = vadd.f32 %v4777_v13, %v4765_v21 }
 0x2a0   : > { %v4790_v39 = vpop.f32.mrf.mxu2  ;;  %v4766_v15 = vpop.f32.mrf.mxu0 }
 0x2a1   : > { %v4803_v14 = vpop.f32.mrf.mxu3  ;;  %v4779_v16 = vpop.f32.mrf.mxu1  ;;  %v4791_v27 = vadd.f32 %v4790_v39, %v4778_v26 }
 0x2a3   : > { %v4804_v32 = vadd.f32 %v4803_v14, %v4791_v27 }
 0x2a8   : > { %v4792_v17 = vpop.f32.mrf.mxu2 }
 0x2a9   : > { %v4805_v18 = vpop.f32.mrf.mxu3 }
 0x2b8   : > { %v4816_v19 = vpop.f32.mrf.mxu0 }
 0x2b9   : > { %v4829_v20 = vpop.f32.mrf.mxu1  ;;  %v4817_v52 = vadd.f32 %v4816_v19, %v4804_v32 }
 0x2bb   : > { %v4830_v33 = vadd.f32 %v4829_v20, %v4817_v52 }
 0x2c0   : > { %v4842_v22 = vpop.f32.mrf.mxu2  ;;  %v4818_v24 = vpop.f32.mrf.mxu0 }
 0x2c1   : > { %v4855_v23 = vpop.f32.mrf.mxu3  ;;  %v4831_v25 = vpop.f32.mrf.mxu1  ;;  %v4843_v34 = vadd.f32 %v4842_v22, %v4830_v33 }
 0x2c3   : > { %v4856_v53 = vadd.f32 %v4855_v23, %v4843_v34 }
 0x2c8   : > { %v4844_v29 = vpop.f32.mrf.mxu2 }
 0x2c9   : > { %v4857_v30 = vpop.f32.mrf.mxu3 }
 0x2d8   : > { %v4868_v9 = vpop.f32.mrf.mxu0 }
 0x2d9   : > { %v4881_v61 = vpop.f32.mrf.mxu1  ;;  %v4869_v35 = vadd.f32 %v4868_v9, %v4856_v53 }
 0x2db   : > { %v4882_v6 = vadd.f32 %v4881_v61, %v4869_v35 }
 0x2e0   : > { %v4894_v55 = vpop.f32.mrf.mxu2  ;;  %v4870_v41 = vpop.f32.mrf.mxu0 }
 0x2e1   : > { %v4895_v1 = vadd.f32 %v4894_v55, %v4882_v6  ;;  %v4907_v36 = vpop.f32.mrf.mxu3  ;;  %v4883_v63 = vpop.f32.mrf.mxu1 }
 0x2e3   : > { %v4908_v57 = vadd.f32 %v4907_v36, %v4895_v1 }
 0x2e5   : > { %v4927_v10 = vadd.f32 %v4923_v12, %v4908_v57 }
 0x2e7   : > { %v4929_v44 = vmax.f32 %v4927_v10, 0.0 }
 0x2e8   : > { %v4896_v45 = vpop.f32.mrf.mxu2 }
 0x2e9   : > { %v4930_v62 = vpack.c.bf16 %v4929_v44, %v4928_v43  ;;  %v4909_v38 = vpop.f32.mrf.mxu3 }
 0x2eb   : > { %4931 = vst [vmem:[%s2633_s7] sm:$0xff] %v4930_v62 }
 0x2ec PF: > { %s13_s16 = sadd.s32 1, %s6598_s16   ;;  %s7958_s12 = smov %s6586_s13 }
 0x2ed   : > { %p10_p10 = scmp.ge.s32.totalorder %s13_s16, 4   ;;  %s7959_s13 = smov %s6655_s20 }
 0x2ee   : > { %s7960_s14 = smov %s6594_s15  ;;  %s7961_s15 = smov %s7963_s17 }
 0x2ef   :  { %12 = sbr.rel (!%p10_p10) target bundleno = 3 (0x3), region = 139 }

// kernel: rgbd_forward.14
= control target key start
LH: loop header
LB: loop body
LE: loop exit
PB: predicated region body
PF: predicated region fallthrough
CT: control target
= control target key end

     0   :  { %s113_s0 = inlined_call_operand.vmem [shape: bf16[4,8,512], index: 0, kind: input, shape index: {}]   ;;  %s114_s1 = inlined_call_operand.vmem [shape: bf16[8,512], index: 1, kind: output, shape index: {}]  }
   0x1   :  { %v8_v0 = vld [vmem:[%s113_s0] sm:$0xff]  ;;  %v67_v1 = vld [vmem:[%s113_s0 + $0x10] sm:$0xff]  ;;  %v9_v8 = vld [vmem:[%s113_s0 + $0x8] sm:$0xff] }
   0x2   :  { %v69_v2 = vld [vmem:[%s113_s0 + $0x20] sm:$0xff]  ;;  %v13_v3 = vunpack.c.l.bf16 %v8_v0  ;;  %v14_v4 = vunpack.c.h.bf16 %v8_v0  ;;  %v17_v5 = vunpack.c.l.bf16 %v67_v1  ;;  %v18_v6 = vunpack.c.h.bf16 %v67_v1  ;;  %v71_v7 = vld [vmem:[%s113_s0 + $0x30] sm:$0xff]  ;;  %v68_v9 = vld [vmem:[%s113_s0 + $0x18] sm:$0xff] }
   0x3   :  { %v34_v10 = vunpack.c.l.bf16 %v69_v2  ;;  %v35_v11 = vunpack.c.h.bf16 %v69_v2  ;;  %v51_v12 = vunpack.c.l.bf16 %v71_v7  ;;  %v52_v13 = vunpack.c.h.bf16 %v71_v7  ;;  %v70_v14 = vld [vmem:[%s113_s0 + $0x28] sm:$0xff]  ;;  %v72_v19 = vld [vmem:[%s113_s0 + $0x38] sm:$0xff] }
   0x4   :  { %v21_v15 = vmax.f32 %v13_v3, %v17_v5  ;;  %v22_v16 = vmax.f32 %v14_v4, %v18_v6  ;;  %v15_v17 = vunpack.c.l.bf16 %v9_v8  ;;  %v16_v18 = vunpack.c.h.bf16 %v9_v8 }
   0x5   :  { %v19_v20 = vunpack.c.l.bf16 %v68_v9  ;;  %v20_v21 = vunpack.c.h.bf16 %v68_v9  ;;  %v36_v22 = vunpack.c.l.bf16 %v70_v14  ;;  %v37_v23 = vunpack.c.h.bf16 %v70_v14 }
   0x6   :  { %v38_v24 = vmax.f32 %v21_v15, %v34_v10  ;;  %v39_v25 = vmax.f32 %v22_v16, %v35_v11  ;;  %v53_v28 = vunpack.c.l.bf16 %v72_v19  ;;  %v54_v29 = vunpack.c.h.bf16 %v72_v19 }
   0x7   :  { %v23_v26 = vmax.f32 %v15_v17, %v19_v20  ;;  %v24_v27 = vmax.f32 %v16_v18, %v20_v21 }
   0x8   :  { %v55_v30 = vmax.f32 %v38_v24, %v51_v12  ;;  %v56_v31 = vmax.f32 %v39_v25, %v52_v13 }
   0x9   :  { %v40_v32 = vmax.f32 %v23_v26, %v36_v22  ;;  %v41_v33 = vmax.f32 %v24_v27, %v37_v23 }
   0xa   :  { %v59_v34 = vpack.c.bf16 %v56_v31, %v55_v30 }
   0xb   :  { %v57_v35 = vmax.f32 %v40_v32, %v53_v28  ;;  %v58_v36 = vmax.f32 %v41_v33, %v54_v29 }
   0xc   :  { %61 = vst [vmem:[%s114_s1] sm:$0xff] %v59_v34 }
   0xd   :  { %v60_v37 = vpack.c.bf16 %v58_v36, %v57_v35 }
   0xf   :  { %62 = vst [vmem:[%s114_s1 + $0x8] sm:$0xff] %v60_v37 }

// kernel: rgbd_forward.15
= control target key start
LH: loop header
LB: loop body
LE: loop exit
PB: predicated region body
PF: predicated region fallthrough
CT: control target
= control target key end

     0   :  { %vm4365_vm0 = vcmask 523264   ;;  %s10473_s1 = inlined_call_operand.vmem [shape: bf16[512,1024], index: 1, kind: input, shape index: {}]   ;;  %s10474_s0 = inlined_call_operand.vmem [shape: bf16[8,512], index: 0, kind: input, shape index: {}]   ;;  %s10475_s3 = inlined_call_operand.vmem [shape: bf16[1024,512], index: 3, kind: input, shape index: {}]   ;;  %s10476_s2 = inlined_call_operand.vmem [shape: f32[1,1024], index: 2, kind: input, shape index: {}]   ;;  %s10477_s4 = inlined_call_operand.vmem [shape: f32[1,512], index: 4, kind: input, shape index: {}]   ;;  %s10478_s5 = inlined_call_operand.vmem [shape: bf16[512,64], index: 5, kind: input, shape index: {}]   ;;  %s10479_s6 = inlined_call_operand.vmem [shape: f32[1,64], index: 6, kind: input, shape index: {}]   ;;  %s10480_s7 = inlined_call_operand.vmem [shape: f32[8,64], index: 7, kind: output, shape index: {}]  }
   0x1   :  { %v4597_v0 = vld [vmem:[%s10473_s1 + $0x1c0] sm:$0xf] }
   0x2   :  { %v6607_v1 = vld [vmem:[%s10473_s1 + $0x1dc] sm:$0xf0] }
   0x3   :  { %v4853_v2 = vld [vmem:[%s10473_s1 + $0x3c0] sm:$0xf]  ;;  %v4598_v3 = vor.u32 %v6607_v1, %v4597_v0 }
   0x4   :  { %v6671_v4 = vld [vmem:[%s10473_s1 + $0x3dc] sm:$0xf0] }
   0x5   :  { %v5109_v5 = vld [vmem:[%s10473_s1 + $0x5c0] sm:$0xf]  ;;  %v4854_v7 = vor.u32 %v6671_v4, %v4853_v2  ;;  %1598 = vmatpush.bf16.msra.mxu0 %v4598_v3 }
   0x6   :  { %v6735_v6 = vld [vmem:[%s10473_s1 + $0x5dc] sm:$0xf0] }
   0x7   :  { %v5110_v8 = vor.u32 %v6735_v6, %v5109_v5  ;;  %v5365_v9 = vld [vmem:[%s10473_s1 + $0x7c0] sm:$0xf]  ;;  %1611 = vmatpush.bf16.msra.mxu1 %v4854_v7 }
   0x8   :  { %v6799_v10 = vld [vmem:[%s10473_s1 + $0x7dc] sm:$0xf0] }
   0x9   :  { %v4565_v11 = vld [vmem:[%s10473_s1 + $0x180] sm:$0xf]  ;;  %v5366_v12 = vor.u32 %v6799_v10, %v5365_v9  ;;  %1624 = vmatpush.bf16.msra.mxu2 %v5110_v8 }
   0xa   :  { %v6599_v13 = vld [vmem:[%s10473_s1 + $0x19c] sm:$0xf0] }
   0xb   :  { %v4821_v14 = vld [vmem:[%s10473_s1 + $0x380] sm:$0xf]  ;;  %v4566_v16 = vor.u32 %v6599_v13, %v4565_v11  ;;  %1637 = vmatpush.bf16.msra.mxu3 %v5366_v12 }
   0xc   :  { %v6663_v15 = vld [vmem:[%s10473_s1 + $0x39c] sm:$0xf0] }
   0xd   :  { %v4822_v17 = vor.u32 %v6663_v15, %v4821_v14  ;;  %v5077_v18 = vld [vmem:[%s10473_s1 + $0x580] sm:$0xf]  ;;  %1599 = vmatpush.bf16.msra.mxu0 %v4566_v16 }
   0xe   :  { %v6727_v19 = vld [vmem:[%s10473_s1 + $0x59c] sm:$0xf0] }
   0xf   :  { %v5333_v20 = vld [vmem:[%s10473_s1 + $0x780] sm:$0xf]  ;;  %v5078_v21 = vor.u32 %v6727_v19, %v5077_v18  ;;  %1612 = vmatpush.bf16.msra.mxu1 %v4822_v17 }
  0x10   :  { %v6791_v22 = vld [vmem:[%s10473_s1 + $0x79c] sm:$0xf0] }
  0x11   :  { %v4533_v23 = vld [vmem:[%s10473_s1 + $0x140] sm:$0xf]  ;;  %v5334_v25 = vor.u32 %v6791_v22, %v5333_v20  ;;  %1625 = vmatpush.bf16.msra.mxu2 %v5078_v21 }
  0x12   :  { %v6591_v24 = vld [vmem:[%s10473_s1 + $0x15c] sm:$0xf0] }
  0x13   :  { %v4789_v26 = vld [vmem:[%s10473_s1 + $0x340] sm:$0xf]  ;;  %v4534_v29 = vor.u32 %v6591_v24, %v4533_v23  ;;  %1638 = vmatpush.bf16.msra.mxu3 %v5334_v25 }
  0x14   :  { %v6655_v27 = vld [vmem:[%s10473_s1 + $0x35c] sm:$0xf0] }
  0x15   :  { %v5045_v28 = vld [vmem:[%s10473_s1 + $0x540] sm:$0xf]  ;;  %v4790_v33 = vor.u32 %v6655_v27, %v4789_v26  ;;  %1600 = vmatpush.bf16.msra.mxu0 %v4534_v29  ;;  %v4599_v29 = vld [vmem:[%s10473_s1 + $0x1e0] sm:$0xf0] }
  0x16   :  { %v6719_v30 = vld [vmem:[%s10473_s1 + $0x55c] sm:$0xf0] }
  0x17   :  { %v5301_v31 = vld [vmem:[%s10473_s1 + $0x740] sm:$0xf]  ;;  %v5046_v34 = vor.u32 %v6719_v30, %v5045_v28  ;;  %1613 = vmatpush.bf16.msra.mxu1 %v4790_v33  ;;  %v6603_v28 = vld [vmem:[%s10473_s1 + $0x1c4] sm:$0xf] }
  0x18   :  { %v6783_v32 = vld [vmem:[%s10473_s1 + $0x75c] sm:$0xf0]  ;;  %v6667_v30 = vld [vmem:[%s10473_s1 + $0x3c4] sm:$0xf] }
  0x19   :  { %v4501_v35 = vld [vmem:[%s10473_s1 + $0x100] sm:$0xf]  ;;  %v5302_v38 = vor.u32 %v6783_v32, %v5301_v31  ;;  %1626 = vmatpush.bf16.msra.mxu2 %v5046_v34  ;;  %v4855_v32 = vld [vmem:[%s10473_s1 + $0x3e0] sm:$0xf0] }
  0x1a   :  { %v6583_v36 = vld [vmem:[%s10473_s1 + $0x11c] sm:$0xf0]  ;;  %v6731_v33 = vld [vmem:[%s10473_s1 + $0x5c4] sm:$0xf] }
  0x1b   :  { %v4757_v37 = vld [vmem:[%s10473_s1 + $0x300] sm:$0xf]  ;;  %v4502_v44 = vor.u32 %v6583_v36, %v4501_v35  ;;  %1639 = vmatpush.bf16.msra.mxu3 %v5302_v38  ;;  %v5111_v34 = vld [vmem:[%s10473_s1 + $0x5e0] sm:$0xf0] }
  0x1c   :  { %v6647_v39 = vld [vmem:[%s10473_s1 + $0x31c] sm:$0xf0]  ;;  %v5367_v38 = vld [vmem:[%s10473_s1 + $0x7e0] sm:$0xf0] }
  0x1d   :  { %v5013_v40 = vld [vmem:[%s10473_s1 + $0x500] sm:$0xf]  ;;  %v4758_v45 = vor.u32 %v6647_v39, %v4757_v37  ;;  %1601 = vmatpush.bf16.msra.mxu0 %v4502_v44  ;;  %v6795_v37 = vld [vmem:[%s10473_s1 + $0x7c4] sm:$0xf] }
  0x1e   :  { %v6711_v41 = vld [vmem:[%s10473_s1 + $0x51c] sm:$0xf0]  ;;  %v4567_v44 = vld [vmem:[%s10473_s1 + $0x1a0] sm:$0xf0] }
  0x1f   :  { %v5269_v42 = vld [vmem:[%s10473_s1 + $0x700] sm:$0xf]  ;;  %v5014_v46 = vor.u32 %v6711_v41, %v5013_v40  ;;  %1614 = vmatpush.bf16.msra.mxu1 %v4758_v45  ;;  %v4602_v40 = vor.u32 %v6603_v28, %v4599_v29  ;;  %v4858_v41 = vor.u32 %v6667_v30, %v4855_v32  ;;  %v6659_v45 = vld [vmem:[%s10473_s1 + $0x384] sm:$0xf] }
  0x20   :  { %v6775_v43 = vld [vmem:[%s10473_s1 + $0x71c] sm:$0xf0]  ;;  %v6699_v28 = vld [vmem:[%s10473_s1 + $0x4c4] sm:$0xf] }
  0x21   :  { %v4469_v47 = vld [vmem:[%s10473_s1 + $0xc0] sm:$0xf]  ;;  %v5270_v50 = vor.u32 %v6775_v43, %v5269_v42  ;;  %1627 = vmatpush.bf16.msra.mxu2 %v5014_v46  ;;  %v5114_v42 = vor.u32 %v6731_v33, %v5111_v34  ;;  %v6595_v43 = vld [vmem:[%s10473_s1 + $0x184] sm:$0xf]  ;;  %v5370_v46 = vor.u32 %v6795_v37, %v5367_v38 }
  0x22   :  { %v6575_v48 = vld [vmem:[%s10473_s1 + $0xdc] sm:$0xf0]  ;;  %v4983_v29 = vld [vmem:[%s10473_s1 + $0x4e0] sm:$0xf0] }
  0x23   :  { %v4725_v49 = vld [vmem:[%s10473_s1 + $0x2c0] sm:$0xf]  ;;  %v4470_v56 = vor.u32 %v6575_v48, %v4469_v47  ;;  %1640 = vmatpush.bf16.msra.mxu3 %v5270_v50  ;;  %v4823_v47 = vld [vmem:[%s10473_s1 + $0x3a0] sm:$0xf0] }
  0x24   :  { %v6639_v51 = vld [vmem:[%s10473_s1 + $0x2dc] sm:$0xf0]  ;;  %v6723_v48 = vld [vmem:[%s10473_s1 + $0x584] sm:$0xf] }
  0x25   :  { %v4981_v52 = vld [vmem:[%s10473_s1 + $0x4c0] sm:$0xf]  ;;  %v4726_v57 = vor.u32 %v6639_v51, %v4725_v49  ;;  %1602 = vmatpush.bf16.msra.mxu0 %v4470_v56  ;;  %v5079_v49 = vld [vmem:[%s10473_s1 + $0x5a0] sm:$0xf0] }
  0x26   :  { %v6703_v53 = vld [vmem:[%s10473_s1 + $0x4dc] sm:$0xf0]  ;;  %v6787_v50 = vld [vmem:[%s10473_s1 + $0x784] sm:$0xf] }
  0x27   :  { %v5237_v54 = vld [vmem:[%s10473_s1 + $0x6c0] sm:$0xf]  ;;  %v4982_v58 = vor.u32 %v6703_v53, %v4981_v52  ;;  %1615 = vmatpush.bf16.msra.mxu1 %v4726_v57  ;;  %v5335_v51 = vld [vmem:[%s10473_s1 + $0x7a0] sm:$0xf0]  ;;  %v4570_v52 = vor.u32 %v6595_v43, %v4567_v44  ;;  %v4826_v53 = vor.u32 %v6659_v45, %v4823_v47 }
  0x28   :  { %v6767_v55 = vld [vmem:[%s10473_s1 + $0x6dc] sm:$0xf0]  ;;  %v4535_v56 = vld [vmem:[%s10473_s1 + $0x160] sm:$0xf0] }
  0x29   :  { %v4437_v59 = vld [vmem:[%s10473_s1 + $0x80] sm:$0xf]  ;;  %v5238_v62 = vor.u32 %v6767_v55, %v5237_v54  ;;  %1628 = vmatpush.bf16.msra.mxu2 %v4982_v58  ;;  %v5082_v54 = vor.u32 %v6723_v48, %v5079_v49  ;;  %v6587_v55 = vld [vmem:[%s10473_s1 + $0x144] sm:$0xf]  ;;  %v5338_v58 = vor.u32 %v6787_v50, %v5335_v51 }
  0x2a   :  { %v6567_v60 = vld [vmem:[%s10473_s1 + $0x9c] sm:$0xf0]  ;;  %v6651_v57 = vld [vmem:[%s10473_s1 + $0x344] sm:$0xf] }
  0x2b   :  { %v4693_v61 = vld [vmem:[%s10473_s1 + $0x280] sm:$0xf]  ;;  %v4438_v4 = vor.u32 %v6567_v60, %v4437_v59  ;;  %1641 = vmatpush.bf16.msra.mxu3 %v5238_v62  ;;  %v4791_v59 = vld [vmem:[%s10473_s1 + $0x360] sm:$0xf0] }
  0x2c   :  { %v6631_v63 = vld [vmem:[%s10473_s1 + $0x29c] sm:$0xf0]  ;;  %v6715_v60 = vld [vmem:[%s10473_s1 + $0x544] sm:$0xf] }
  0x2d   :  { %v4949_v0 = vld [vmem:[%s10473_s1 + $0x480] sm:$0xf]  ;;  %v4694_v5 = vor.u32 %v6631_v63, %v4693_v61  ;;  %1603 = vmatpush.bf16.msra.mxu0 %v4438_v4  ;;  %v5047_v61 = vld [vmem:[%s10473_s1 + $0x560] sm:$0xf0] }
  0x2e   :  { %v6695_v1 = vld [vmem:[%s10473_s1 + $0x49c] sm:$0xf0]  ;;  %v6779_v62 = vld [vmem:[%s10473_s1 + $0x744] sm:$0xf] }
  0x2f   :  { %v5205_v2 = vld [vmem:[%s10473_s1 + $0x680] sm:$0xf]  ;;  %v4950_v6 = vor.u32 %v6695_v1, %v4949_v0  ;;  %1616 = vmatpush.bf16.msra.mxu1 %v4694_v5  ;;  %v5303_v63 = vld [vmem:[%s10473_s1 + $0x760] sm:$0xf0]  ;;  %v4538_v0 = vor.u32 %v6587_v55, %v4535_v56  ;;  %v47_v1 = vld [vmem:[%s10474_s0 + $0x8] sm:$0xff] }
  0x30   :  { %v6759_v3 = vld [vmem:[%s10473_s1 + $0x69c] sm:$0xf0]  ;;  %v6579_v4 = vld [vmem:[%s10473_s1 + $0x104] sm:$0xf] }
  0x31   :  { %v4405_v7 = vld [vmem:[%s10473_s1 + $0x40] sm:$0xf]  ;;  %v5206_v10 = vor.u32 %v6759_v3, %v5205_v2  ;;  %1629 = vmatpush.bf16.msra.mxu2 %v4950_v6  ;;  %v4794_v2 = vor.u32 %v6651_v57, %v4791_v59  ;;  %v5050_v3 = vor.u32 %v6715_v60, %v5047_v61  ;;  %v4503_v5 = vld [vmem:[%s10473_s1 + $0x120] sm:$0xf0] }
  0x32   :  { %v6559_v8 = vld [vmem:[%s10473_s1 + $0x5c] sm:$0xf0]  ;;  %v6643_v6 = vld [vmem:[%s10473_s1 + $0x304] sm:$0xf] }
  0x33   :  { %v4661_v9 = vld [vmem:[%s10473_s1 + $0x240] sm:$0xf]  ;;  %v4406_v16 = vor.u32 %v6559_v8, %v4405_v7  ;;  %1642 = vmatpush.bf16.msra.mxu3 %v5206_v10  ;;  %v308_v7 = vunpack.c.l.b16 %v47_v1  ;;  %v309_v8 = vunpack.c.h.b16 %v47_v1  ;;  %v4759_v10 = vld [vmem:[%s10473_s1 + $0x320] sm:$0xf0] }
  0x34   :  { %v6623_v11 = vld [vmem:[%s10473_s1 + $0x25c] sm:$0xf0]  ;;  %v6763_v32 = vld [vmem:[%s10473_s1 + $0x6c4] sm:$0xf] }
  0x35   :  { %v4917_v12 = vld [vmem:[%s10473_s1 + $0x440] sm:$0xf]  ;;  %v4662_v19 = vor.u32 %v6623_v11, %v4661_v9  ;;  %1604 = vmatpush.bf16.msra.mxu0 %v4406_v16  ;;  %v5306_v9 = vor.u32 %v6779_v62, %v5303_v63  ;;  %v6707_v11 = vld [vmem:[%s10473_s1 + $0x504] sm:$0xf]  ;;  %v7427_v16 = vpack.c.b16 %v309_v8, %v309_v8  ;;  %v4861_v8 = vld [vmem:[%s10473_s1 + $0x3c8] sm:$0xf] }
  0x36   :  { %v6687_v13 = vld [vmem:[%s10473_s1 + $0x45c] sm:$0xf0]  ;;  %v5239_v33 = vld [vmem:[%s10473_s1 + $0x6e0] sm:$0xf0] }
  0x37   :  { %v5173_v14 = vld [vmem:[%s10473_s1 + $0x640] sm:$0xf]  ;;  %v4918_v20 = vor.u32 %v6687_v13, %v4917_v12  ;;  %1617 = vmatpush.bf16.msra.mxu1 %v4662_v19  ;;  %v5015_v12 = vld [vmem:[%s10473_s1 + $0x520] sm:$0xf0] }
  0x38   :  { %v6751_v15 = vld [vmem:[%s10473_s1 + $0x65c] sm:$0xf0]  ;;  %v6771_v13 = vld [vmem:[%s10473_s1 + $0x704] sm:$0xf] }
  0x39   :  { %v4373_v17 = vld [vmem:[%s10473_s1] sm:$0xf]  ;;  %v5174_v24 = vor.u32 %v6751_v15, %v5173_v14  ;;  %1630 = vmatpush.bf16.msra.mxu2 %v4918_v20  ;;  %v5271_v14 = vld [vmem:[%s10473_s1 + $0x720] sm:$0xf0]  ;;  %v7425_v15 = vpack.c.b16 %v308_v7, %v308_v7  ;;  %v6608_v7 = vld [vmem:[%s10473_s1 + $0x1e4] sm:$0xf0] }
  0x3a   :  { %v6551_v18 = vld [vmem:[%s10473_s1 + $0x1c] sm:$0xf0]  ;;  %v6563_v37 = vld [vmem:[%s10473_s1 + $0x84] sm:$0xf] }
  0x3b   :  { %v4629_v21 = vld [vmem:[%s10473_s1 + $0x200] sm:$0xf]  ;;  %v4374_v31 = vor.u32 %v6551_v18, %v4373_v17  ;;  %1643 = vmatpush.bf16.msra.mxu3 %v5174_v24  ;;  %v4506_v18 = vor.u32 %v6579_v4, %v4503_v5  ;;  %v4471_v24 = vld [vmem:[%s10473_s1 + $0xe0] sm:$0xf0] }
  0x3c   :  { %v6615_v22 = vld [vmem:[%s10473_s1 + $0x21c] sm:$0xf0]  ;;  %v4439_v38 = vld [vmem:[%s10473_s1 + $0xa0] sm:$0xf0] }
  0x3d   :  { %v4885_v23 = vld [vmem:[%s10473_s1 + $0x400] sm:$0xf]  ;;  %v4630_v35 = vor.u32 %v6615_v22, %v4629_v21  ;;  %1605 = vmatpush.bf16.msra.mxu0 %v4374_v31  ;;  %v4762_v21 = vor.u32 %v6643_v6, %v4759_v10  ;;  %v5018_v22 = vor.u32 %v6707_v11, %v5015_v12  ;;  %v4951_v43 = vld [vmem:[%s10473_s1 + $0x4a0] sm:$0xf0]  ;;  %v4605_v6 = vld [vmem:[%s10473_s1 + $0x1c8] sm:$0xf] }
  0x3e   :  { %v6679_v25 = vld [vmem:[%s10473_s1 + $0x41c] sm:$0xf0]  ;;  %v6755_v44 = vld [vmem:[%s10473_s1 + $0x684] sm:$0xf]  ;;  %v6672_v10 = vld [vmem:[%s10473_s1 + $0x3e4] sm:$0xf0] }
  0x3f   :  { %v5141_v26 = vld [vmem:[%s10473_s1 + $0x600] sm:$0xf]  ;;  %v4886_v36 = vor.u32 %v6679_v25, %v4885_v23  ;;  %1618 = vmatpush.bf16.msra.mxu1 %v4630_v35  ;;  %v6571_v23 = vld [vmem:[%s10473_s1 + $0xc4] sm:$0xf]  ;;  %v5117_v11 = vld [vmem:[%s10473_s1 + $0x5c8] sm:$0xf] }
  0x40   :  { %v6743_v27 = vld [vmem:[%s10473_s1 + $0x61c] sm:$0xf0]  ;;  %v6635_v25 = vld [vmem:[%s10473_s1 + $0x2c4] sm:$0xf]  ;;  %v4474_v34 = vor.u32 %v6571_v23, %v4471_v24  ;;  %v6736_v12 = vld [vmem:[%s10473_s1 + $0x5e4] sm:$0xf0] }
  0x41   :  { %v5142_v39 = vor.u32 %v6743_v27, %v5141_v26  ;;  %1631 = vmatpush.bf16.msra.mxu2 %v4886_v36  ;;  %1650 = vmatpush.bf16.msrb.mxu0 %v4602_v40  ;;  %v46_v17 = vld [vmem:[%s10474_s0] sm:$0xff]  ;;  %v5274_v26 = vor.u32 %v6771_v13, %v5271_v14  ;;  %v4986_v36 = vor.u32 %v6699_v28, %v4983_v29  ;;  %v4573_v23 = vld [vmem:[%s10473_s1 + $0x188] sm:$0xf] }
  0x42   :  { %v306_v19 = vunpack.c.l.b16 %v46_v17  ;;  %v307_v20 = vunpack.c.h.b16 %v46_v17  ;;  %v4727_v27 = vld [vmem:[%s10473_s1 + $0x2e0] sm:$0xf0]  ;;  %v5242_v40 = vor.u32 %v6763_v32, %v5239_v33  ;;  %v5373_v17 = vld [vmem:[%s10473_s1 + $0x7c8] sm:$0xf] }
  0x43   :  { %1644 = vmatpush.bf16.msra.mxu3 %v5142_v39  ;;  %1663 = vmatpush.bf16.msrb.mxu1 %v4858_v41  ;;  %v4730_v35 = vor.u32 %v6635_v25, %v4727_v27  ;;  %v6627_v39 = vld [vmem:[%s10473_s1 + $0x284] sm:$0xf]  ;;  %v6600_v24 = vld [vmem:[%s10473_s1 + $0x1a4] sm:$0xf0] }
  0x44   :  { %1632 = vmatmul.bf16.vlgmr.msra.gmra.mxu2 %v7425_v15  ;;  %v7451_v30 = vpack.c.b16 %v306_v19, %v306_v19  ;;  %v7453_v31 = vpack.c.b16 %v307_v20, %v307_v20  ;;  %v4695_v41 = vld [vmem:[%s10473_s1 + $0x2a0] sm:$0xf0]  ;;  %v4606_v20 = vor.u32 %v6608_v7, %v4605_v6  ;;  %v4829_v25 = vld [vmem:[%s10473_s1 + $0x388] sm:$0xf] }
  0x45   :  { %1676 = vmatpush.bf16.msrb.mxu2 %v5114_v42  ;;  %1651 = vmatpush.bf16.msrb.mxu0 %v4570_v52  ;;  %v6691_v42 = vld [vmem:[%s10473_s1 + $0x484] sm:$0xf]  ;;  %v4698_v47 = vor.u32 %v6627_v39, %v4695_v41  ;;  %v6664_v27 = vld [vmem:[%s10473_s1 + $0x3a4] sm:$0xf0] }
  0x46   :  { %1645 = vmatmul.bf16.vlgmr.msra.gmra.mxu3 %v7427_v16  ;;  %1619 = vmatmul.bf16.vlgmr.msra.gmra.mxu1 %v7453_v31  ;;  %v5207_v45 = vld [vmem:[%s10473_s1 + $0x6a0] sm:$0xf0]  ;;  %v4954_v48 = vor.u32 %v6691_v42, %v4951_v43  ;;  %v5085_v28 = vld [vmem:[%s10473_s1 + $0x588] sm:$0xf] }
  0x47   :  { %1689 = vmatpush.bf16.msrb.mxu3 %v5370_v46  ;;  %1664 = vmatpush.bf16.msrb.mxu1 %v4826_v53  ;;  %v4442_v46 = vor.u32 %v6563_v37, %v4439_v38  ;;  %v6555_v49 = vld [vmem:[%s10473_s1 + $0x44] sm:$0xf]  ;;  %v5210_v52 = vor.u32 %v6755_v44, %v5207_v45  ;;  %v6728_v29 = vld [vmem:[%s10473_s1 + $0x5a4] sm:$0xf0] }
  0x48   :  { %1606 = vmatmul.bf16.vlgmr.msra.gmra.mxu0 %v7451_v30  ;;  %v4407_v50 = vld [vmem:[%s10473_s1 + $0x60] sm:$0xf0]  ;;  %v5341_v32 = vld [vmem:[%s10473_s1 + $0x788] sm:$0xf] }
  0x49   :  { %1677 = vmatpush.bf16.msrb.mxu2 %v5082_v54  ;;  %1652 = vmatpush.bf16.msrb.mxu0 %v4538_v0  ;;  %v6619_v51 = vld [vmem:[%s10473_s1 + $0x244] sm:$0xf]  ;;  %v6792_v33 = vld [vmem:[%s10473_s1 + $0x7a4] sm:$0xf0] }
  0x4a   :  { %v4663_v53 = vld [vmem:[%s10473_s1 + $0x260] sm:$0xf0]  ;;  %v4541_v37 = vld [vmem:[%s10473_s1 + $0x148] sm:$0xf] }
  0x4b   :  { %1690 = vmatpush.bf16.msrb.mxu3 %v5338_v58  ;;  %1665 = vmatpush.bf16.msrb.mxu1 %v4794_v2  ;;  %v6683_v54 = vld [vmem:[%s10473_s1 + $0x444] sm:$0xf]  ;;  %v4410_v58 = vor.u32 %v6555_v49, %v4407_v50  ;;  %v4666_v61 = vor.u32 %v6619_v51, %v4663_v53  ;;  %v6592_v38 = vld [vmem:[%s10473_s1 + $0x164] sm:$0xf0] }
  0x4c   :  { %v4919_v55 = vld [vmem:[%s10473_s1 + $0x460] sm:$0xf0]  ;;  %v4797_v39 = vld [vmem:[%s10473_s1 + $0x348] sm:$0xf] }
  0x4d   :  { %1678 = vmatpush.bf16.msrb.mxu2 %v5050_v3  ;;  %1653 = vmatpush.bf16.msrb.mxu0 %v4506_v18  ;;  %v6747_v56 = vld [vmem:[%s10473_s1 + $0x644] sm:$0xf]  ;;  %v4922_v62 = vor.u32 %v6683_v54, %v4919_v55  ;;  %v6800_v18 = vld [vmem:[%s10473_s1 + $0x7e4] sm:$0xf0] }
  0x4e   :  { %v5175_v57 = vld [vmem:[%s10473_s1 + $0x660] sm:$0xf0]  ;;  %v6656_v41 = vld [vmem:[%s10473_s1 + $0x364] sm:$0xf0] }
  0x4f   :  { %1691 = vmatpush.bf16.msrb.mxu3 %v5306_v9  ;;  %1666 = vmatpush.bf16.msrb.mxu1 %v4762_v21  ;;  %v6547_v59 = vld [vmem:[%s10473_s1 + $0x4] sm:$0xf]  ;;  %v5178_v2 = vor.u32 %v6747_v56, %v5175_v57  ;;  %v4862_v21 = vor.u32 %v6672_v10, %v4861_v8  ;;  %v5053_v42 = vld [vmem:[%s10473_s1 + $0x548] sm:$0xf] }
  0x50   :  { %v4375_v60 = vld [vmem:[%s10473_s1 + $0x20] sm:$0xf0]  ;;  %v6720_v43 = vld [vmem:[%s10473_s1 + $0x564] sm:$0xf0] }
  0x51   :  { %1679 = vmatpush.bf16.msrb.mxu2 %v5018_v22  ;;  %1654 = vmatpush.bf16.msrb.mxu0 %v4474_v34  ;;  %v6611_v63 = vld [vmem:[%s10473_s1 + $0x204] sm:$0xf]  ;;  %v4378_v9 = vor.u32 %v6547_v59, %v4375_v60  ;;  %v5118_v22 = vor.u32 %v6736_v12, %v5117_v11  ;;  %v4574_v34 = vor.u32 %v6600_v24, %v4573_v23  ;;  %v5309_v44 = vld [vmem:[%s10473_s1 + $0x748] sm:$0xf] }
  0x52   :  { %v4631_v0 = vld [vmem:[%s10473_s1 + $0x220] sm:$0xf0]  ;;  %v6784_v45 = vld [vmem:[%s10473_s1 + $0x764] sm:$0xf0] }
  0x53   :  { %1692 = vmatpush.bf16.msrb.mxu3 %v5274_v26  ;;  %1667 = vmatpush.bf16.msrb.mxu1 %v4730_v35  ;;  %v6675_v1 = vld [vmem:[%s10473_s1 + $0x404] sm:$0xf]  ;;  %v4634_v13 = vor.u32 %v6611_v63, %v4631_v0  ;;  %v5374_v26 = vor.u32 %v6800_v18, %v5373_v17  ;;  %v4830_v35 = vor.u32 %v6664_v27, %v4829_v25  ;;  %v4509_v49 = vld [vmem:[%s10473_s1 + $0x108] sm:$0xf] }
  0x54   :  { %v4887_v3 = vld [vmem:[%s10473_s1 + $0x420] sm:$0xf0]  ;;  %v6584_v50 = vld [vmem:[%s10473_s1 + $0x124] sm:$0xf0] }
  0x55   :  { %1680 = vmatpush.bf16.msrb.mxu2 %v4986_v36  ;;  %1655 = vmatpush.bf16.msrb.mxu0 %v4442_v46  ;;  %v6739_v4 = vld [vmem:[%s10473_s1 + $0x604] sm:$0xf]  ;;  %v4890_v14 = vor.u32 %v6675_v1, %v4887_v3  ;;  %v5086_v36 = vor.u32 %v6728_v29, %v5085_v28  ;;  %v4542_v46 = vor.u32 %v6592_v38, %v4541_v37  ;;  %v4765_v51 = vld [vmem:[%s10473_s1 + $0x308] sm:$0xf] }
  0x56   :  { %v5143_v5 = vld [vmem:[%s10473_s1 + $0x620] sm:$0xf0]  ;;  %v6648_v53 = vld [vmem:[%s10473_s1 + $0x324] sm:$0xf0] }
  0x57   :  { %1693 = vmatpush.bf16.msrb.mxu3 %v5242_v40  ;;  %1668 = vmatpush.bf16.msrb.mxu1 %v4698_v47  ;;  %v5146_v19 = vor.u32 %v6739_v4, %v5143_v5  ;;  %v5342_v40 = vor.u32 %v6792_v33, %v5341_v32  ;;  %v4798_v47 = vor.u32 %v6656_v41, %v4797_v39  ;;  %v5021_v54 = vld [vmem:[%s10473_s1 + $0x508] sm:$0xf] }
  0x58   :  { %v6712_v55 = vld [vmem:[%s10473_s1 + $0x524] sm:$0xf0]  ;;  %v4766_v59 = vor.u32 %v6648_v53, %v4765_v51  ;;  %v6732_v51 = vld [vmem:[%s10473_s1 + $0x5cc] sm:$0xf] }
  0x59   :  { %1681 = vmatpush.bf16.msrb.mxu2 %v4954_v48  ;;  %1656 = vmatpush.bf16.msrb.mxu0 %v4410_v58  ;;  %v5054_v48 = vor.u32 %v6720_v43, %v5053_v42  ;;  %v5277_v56 = vld [vmem:[%s10473_s1 + $0x708] sm:$0xf]  ;;  %v4510_v58 = vor.u32 %v6584_v50, %v4509_v49  ;;  %v5022_v60 = vor.u32 %v6712_v55, %v5021_v54  ;;  %v4863_v50 = vld [vmem:[%s10473_s1 + $0x3e8] sm:$0xf0] }
  0x5a   :  { %v6776_v57 = vld [vmem:[%s10473_s1 + $0x724] sm:$0xf0]  ;;  %v6796_v55 = vld [vmem:[%s10473_s1 + $0x7cc] sm:$0xf] }
  0x5b   :  { %1694 = vmatpush.bf16.msrb.mxu3 %v5210_v52  ;;  %1669 = vmatpush.bf16.msrb.mxu1 %v4666_v61  ;;  %v5310_v52 = vor.u32 %v6784_v45, %v5309_v44  ;;  %v4477_v61 = vld [vmem:[%s10473_s1 + $0xc8] sm:$0xf]  ;;  %v5278_v0 = vor.u32 %v6776_v57, %v5277_v56  ;;  %v5375_v56 = vld [vmem:[%s10473_s1 + $0x7e8] sm:$0xf0] }
  0x5c   :  { %v4733_v63 = vld [vmem:[%s10473_s1 + $0x2c8] sm:$0xf] }
  0x5d   :  { %1682 = vmatpush.bf16.msrb.mxu2 %v4922_v62  ;;  %1657 = vmatpush.bf16.msrb.mxu0 %v4378_v9  ;;  %v6576_v62 = vld [vmem:[%s10473_s1 + $0xe4] sm:$0xf0] }
  0x5e   :  { %v6640_v1 = vld [vmem:[%s10473_s1 + $0x2e4] sm:$0xf0]  ;;  %v4478_v6 = vor.u32 %v6576_v62, %v4477_v61  ;;  %v6596_v61 = vld [vmem:[%s10473_s1 + $0x18c] sm:$0xf] }
  0x5f   :  { %1695 = vmatpush.bf16.msrb.mxu3 %v5178_v2  ;;  %1670 = vmatpush.bf16.msrb.mxu1 %v4634_v13  ;;  %v4989_v2 = vld [vmem:[%s10473_s1 + $0x4c8] sm:$0xf]  ;;  %v4734_v7 = vor.u32 %v6640_v1, %v4733_v63  ;;  %v4575_v62 = vld [vmem:[%s10473_s1 + $0x1a8] sm:$0xf0] }
  0x60   :  { %1658 = vmatmul.bf16.vlgmr.msrb.gmra.mxu0 %v7451_v30  ;;  %v6704_v3 = vld [vmem:[%s10473_s1 + $0x4e4] sm:$0xf0]  ;;  %v6660_v63 = vld [vmem:[%s10473_s1 + $0x38c] sm:$0xf] }
  0x61   :  { %1683 = vmatpush.bf16.msrb.mxu2 %v4890_v14  ;;  %1702 = vmatpush.bf16.msra.mxu0 %v4606_v20  ;;  %v5245_v4 = vld [vmem:[%s10473_s1 + $0x6c8] sm:$0xf]  ;;  %v4990_v8 = vor.u32 %v6704_v3, %v4989_v2  ;;  %v4831_v1 = vld [vmem:[%s10473_s1 + $0x3a8] sm:$0xf0] }
  0x62   :  { %1671 = vmatmul.bf16.vlgmr.msrb.gmra.mxu1 %v7453_v31  ;;  %v6768_v5 = vld [vmem:[%s10473_s1 + $0x6e4] sm:$0xf0]  ;;  %v6724_v2 = vld [vmem:[%s10473_s1 + $0x58c] sm:$0xf] }
  0x63   :  { %1696 = vmatpush.bf16.msrb.mxu3 %v5146_v19  ;;  %1715 = vmatpush.bf16.msra.mxu1 %v4862_v21  ;;  %v4445_v9 = vld [vmem:[%s10473_s1 + $0x88] sm:$0xf]  ;;  %v5246_v12 = vor.u32 %v6768_v5, %v5245_v4  ;;  %v5087_v3 = vld [vmem:[%s10473_s1 + $0x5a8] sm:$0xf0] }
  0x64   :  { %1684 = vmatmul.bf16.vlgmr.msrb.gmra.mxu2 %v7425_v15  ;;  %v6568_v10 = vld [vmem:[%s10473_s1 + $0xa4] sm:$0xf0]  ;;  %v6788_v4 = vld [vmem:[%s10473_s1 + $0x78c] sm:$0xf] }
  0x65   :  { %1728 = vmatpush.bf16.msra.mxu2 %v5118_v22  ;;  %1703 = vmatpush.bf16.msra.mxu0 %v4574_v34  ;;  %v4701_v11 = vld [vmem:[%s10473_s1 + $0x288] sm:$0xf]  ;;  %v4446_v20 = vor.u32 %v6568_v10, %v4445_v9  ;;  %v5343_v5 = vld [vmem:[%s10473_s1 + $0x7a8] sm:$0xf0] }
  0x66   :  { %1697 = vmatmul.bf16.vlgmr.msrb.gmra.mxu3 %v7427_v16  ;;  %v6632_v13 = vld [vmem:[%s10473_s1 + $0x2a4] sm:$0xf0]  ;;  %v6588_v9 = vld [vmem:[%s10473_s1 + $0x14c] sm:$0xf] }
  0x67   :  { %1741 = vmatpush.bf16.msra.mxu3 %v5374_v26  ;;  %1716 = vmatpush.bf16.msra.mxu1 %v4830_v35  ;;  %v4957_v14 = vld [vmem:[%s10473_s1 + $0x488] sm:$0xf]  ;;  %v4702_v21 = vor.u32 %v6632_v13, %v4701_v11  ;;  %v4543_v10 = vld [vmem:[%s10473_s1 + $0x168] sm:$0xf0] }
  0x68   :  { %v6696_v17 = vld [vmem:[%s10473_s1 + $0x4a4] sm:$0xf0]  ;;  %v6652_v11 = vld [vmem:[%s10473_s1 + $0x34c] sm:$0xf] }
  0x69   :  { %1729 = vmatpush.bf16.msra.mxu2 %v5086_v36  ;;  %1704 = vmatpush.bf16.msra.mxu0 %v4542_v46  ;;  %v5213_v18 = vld [vmem:[%s10473_s1 + $0x688] sm:$0xf]  ;;  %v4958_v22 = vor.u32 %v6696_v17, %v4957_v14  ;;  %v6604_v46 = vld [vmem:[%s10473_s1 + $0x1cc] sm:$0xf] }
  0x6a   :  { %v6760_v19 = vld [vmem:[%s10473_s1 + $0x6a4] sm:$0xf0]  ;;  %v4799_v13 = vld [vmem:[%s10473_s1 + $0x368] sm:$0xf0] }
  0x6b   :  { %1742 = vmatpush.bf16.msra.mxu3 %v5342_v40  ;;  %1717 = vmatpush.bf16.msra.mxu1 %v4798_v47  ;;  %v4413_v23 = vld [vmem:[%s10473_s1 + $0x48] sm:$0xf]  ;;  %v5214_v26 = vor.u32 %v6760_v19, %v5213_v18  ;;  %v4607_v47 = vld [vmem:[%s10473_s1 + $0x1e8] sm:$0xf0] }
  0x6c   :  { %v6560_v24 = vld [vmem:[%s10473_s1 + $0x64] sm:$0xf0]  ;;  %v6716_v14 = vld [vmem:[%s10473_s1 + $0x54c] sm:$0xf] }
  0x6d   :  { %1730 = vmatpush.bf16.msra.mxu2 %v5054_v48  ;;  %1705 = vmatpush.bf16.msra.mxu0 %v4510_v58  ;;  %v4669_v25 = vld [vmem:[%s10473_s1 + $0x248] sm:$0xf]  ;;  %v4414_v34 = vor.u32 %v6560_v24, %v4413_v23  ;;  %v6668_v48 = vld [vmem:[%s10473_s1 + $0x3cc] sm:$0xf]  ;;  %v4610_v58 = vor.u32 %v6604_v46, %v4607_v47 }
  0x6e   :  { %v6624_v27 = vld [vmem:[%s10473_s1 + $0x264] sm:$0xf0]  ;;  %v5055_v17 = vld [vmem:[%s10473_s1 + $0x568] sm:$0xf0] }
  0x6f   :  { %1743 = vmatpush.bf16.msra.mxu3 %v5310_v52  ;;  %1718 = vmatpush.bf16.msra.mxu1 %v4766_v59  ;;  %v4925_v28 = vld [vmem:[%s10473_s1 + $0x448] sm:$0xf]  ;;  %v4670_v37 = vor.u32 %v6624_v27, %v4669_v25  ;;  %v5119_v52 = vld [vmem:[%s10473_s1 + $0x5e8] sm:$0xf0]  ;;  %v4866_v59 = vor.u32 %v6668_v48, %v4863_v50 }
  0x70   :  { %v6688_v29 = vld [vmem:[%s10473_s1 + $0x464] sm:$0xf0]  ;;  %v6780_v18 = vld [vmem:[%s10473_s1 + $0x74c] sm:$0xf] }
  0x71   :  { %1731 = vmatpush.bf16.msra.mxu2 %v5022_v60  ;;  %1706 = vmatpush.bf16.msra.mxu0 %v4478_v6  ;;  %v5181_v32 = vld [vmem:[%s10473_s1 + $0x648] sm:$0xf]  ;;  %v4926_v38 = vor.u32 %v6688_v29, %v4925_v28  ;;  %v5122_v60 = vor.u32 %v6732_v51, %v5119_v52  ;;  %v4578_v6 = vor.u32 %v6596_v61, %v4575_v62  ;;  %v5311_v19 = vld [vmem:[%s10473_s1 + $0x768] sm:$0xf0] }
  0x72   :  { %v6752_v33 = vld [vmem:[%s10473_s1 + $0x664] sm:$0xf0]  ;;  %v6580_v23 = vld [vmem:[%s10473_s1 + $0x10c] sm:$0xf] }
  0x73   :  { %1744 = vmatpush.bf16.msra.mxu3 %v5278_v0  ;;  %1719 = vmatpush.bf16.msra.mxu1 %v4734_v7  ;;  %v4381_v35 = vld [vmem:[%s10473_s1 + $0x8] sm:$0xf]  ;;  %v5182_v42 = vor.u32 %v6752_v33, %v5181_v32  ;;  %v5378_v0 = vor.u32 %v6796_v55, %v5375_v56  ;;  %v4834_v7 = vor.u32 %v6660_v63, %v4831_v1  ;;  %v4511_v24 = vld [vmem:[%s10473_s1 + $0x128] sm:$0xf0] }
  0x74   :  { %v6552_v36 = vld [vmem:[%s10473_s1 + $0x24] sm:$0xf0]  ;;  %v6644_v25 = vld [vmem:[%s10473_s1 + $0x30c] sm:$0xf] }
  0x75   :  { %1732 = vmatpush.bf16.msra.mxu2 %v4990_v8  ;;  %1707 = vmatpush.bf16.msra.mxu0 %v4446_v20  ;;  %v4637_v39 = vld [vmem:[%s10473_s1 + $0x208] sm:$0xf]  ;;  %v4382_v49 = vor.u32 %v6552_v36, %v4381_v35  ;;  %v5090_v8 = vor.u32 %v6724_v2, %v5087_v3  ;;  %v4546_v20 = vor.u32 %v6588_v9, %v4543_v10  ;;  %v4767_v27 = vld [vmem:[%s10473_s1 + $0x328] sm:$0xf0] }
  0x76   :  { %v6616_v40 = vld [vmem:[%s10473_s1 + $0x224] sm:$0xf0]  ;;  %v6708_v28 = vld [vmem:[%s10473_s1 + $0x50c] sm:$0xf]  ;;  %v4770_v35 = vor.u32 %v6644_v25, %v4767_v27  ;;  %v5125_v25 = vld [vmem:[%s10473_s1 + $0x5d0] sm:$0xf] }
  0x77   :  { %1745 = vmatpush.bf16.msra.mxu3 %v5246_v12  ;;  %1720 = vmatpush.bf16.msra.mxu1 %v4702_v21  ;;  %v4893_v41 = vld [vmem:[%s10473_s1 + $0x408] sm:$0xf]  ;;  %v4638_v53 = vor.u32 %v6616_v40, %v4637_v39  ;;  %v5346_v12 = vor.u32 %v6788_v4, %v5343_v5  ;;  %v4802_v21 = vor.u32 %v6652_v11, %v4799_v13  ;;  %v5023_v29 = vld [vmem:[%s10473_s1 + $0x528] sm:$0xf0] }
  0x78   :  { %v6680_v43 = vld [vmem:[%s10473_s1 + $0x424] sm:$0xf0]  ;;  %v6772_v32 = vld [vmem:[%s10473_s1 + $0x70c] sm:$0xf]  ;;  %v5026_v36 = vor.u32 %v6708_v28, %v5023_v29  ;;  %v5381_v29 = vld [vmem:[%s10473_s1 + $0x7d0] sm:$0xf] }
  0x79   :  { %1733 = vmatpush.bf16.msra.mxu2 %v4958_v22  ;;  %v5149_v44 = vld [vmem:[%s10473_s1 + $0x608] sm:$0xf]  ;;  %1708 = vmatpush.bf16.msra.mxu0 %v4414_v34  ;;  %v4894_v54 = vor.u32 %v6680_v43, %v4893_v41  ;;  %v5058_v22 = vor.u32 %v6716_v14, %v5055_v17  ;;  %v5279_v33 = vld [vmem:[%s10473_s1 + $0x728] sm:$0xf0]  ;;  %v4514_v34 = vor.u32 %v6580_v23, %v4511_v24  ;;  %v6673_v24 = vld [vmem:[%s10473_s1 + $0x3ec] sm:$0xf0] }
  0x7a   :  { %v6744_v45 = vld [vmem:[%s10473_s1 + $0x624] sm:$0xf0]  ;;  %v6636_v39 = vld [vmem:[%s10473_s1 + $0x2cc] sm:$0xf]  ;;  %v5282_v40 = vor.u32 %v6772_v32, %v5279_v33  ;;  %v6801_v32 = vld [vmem:[%s10473_s1 + $0x7ec] sm:$0xf0] }
  0x7b   :  { %1746 = vmatpush.bf16.msra.mxu3 %v5214_v26  ;;  %1721 = vmatpush.bf16.msra.mxu1 %v4670_v37  ;;  %v5150_v57 = vor.u32 %v6744_v45, %v5149_v44  ;;  %v5314_v26 = vor.u32 %v6780_v18, %v5311_v19  ;;  %v6572_v37 = vld [vmem:[%s10473_s1 + $0xcc] sm:$0xf] }
  0x7c   :  { %v4735_v41 = vld [vmem:[%s10473_s1 + $0x2e8] sm:$0xf0] }
  0x7d   :  { %1734 = vmatpush.bf16.msra.mxu2 %v4926_v38  ;;  %1709 = vmatpush.bf16.msra.mxu0 %v4382_v49  ;;  %v4479_v38 = vld [vmem:[%s10473_s1 + $0xe8] sm:$0xf0]  ;;  %v4738_v47 = vor.u32 %v6636_v39, %v4735_v41  ;;  %v4837_v39 = vld [vmem:[%s10473_s1 + $0x390] sm:$0xf] }
  0x7e   :  { %v4991_v43 = vld [vmem:[%s10473_s1 + $0x4e8] sm:$0xf0]  ;;  %v4482_v46 = vor.u32 %v6572_v37, %v4479_v38  ;;  %v4581_v37 = vld [vmem:[%s10473_s1 + $0x190] sm:$0xf] }
  0x7f   :  { %1747 = vmatpush.bf16.msra.mxu3 %v5182_v42  ;;  %1722 = vmatpush.bf16.msra.mxu1 %v4638_v53  ;;  %v6700_v42 = vld [vmem:[%s10473_s1 + $0x4cc] sm:$0xf]  ;;  %v6601_v38 = vld [vmem:[%s10473_s1 + $0x1ac] sm:$0xf0] }
  0x80   :  { %1710 = vmatmul.bf16.vlgmr.msra.gmra.mxu0 %v7451_v30  ;;  %v6764_v44 = vld [vmem:[%s10473_s1 + $0x6cc] sm:$0xf]  ;;  %v4994_v48 = vor.u32 %v6700_v42, %v4991_v43  ;;  %v6665_v41 = vld [vmem:[%s10473_s1 + $0x3ac] sm:$0xf0] }
  0x81   :  { %1735 = vmatpush.bf16.msra.mxu2 %v4894_v54  ;;  %1754 = vmatpush.bf16.msrb.mxu0 %v4610_v58  ;;  %v5247_v45 = vld [vmem:[%s10473_s1 + $0x6e8] sm:$0xf0]  ;;  %v5093_v42 = vld [vmem:[%s10473_s1 + $0x590] sm:$0xf] }
  0x82   :  { %1723 = vmatmul.bf16.vlgmr.msra.gmra.mxu1 %v7453_v31  ;;  %v6564_v49 = vld [vmem:[%s10473_s1 + $0x8c] sm:$0xf]  ;;  %v5250_v52 = vor.u32 %v6764_v44, %v5247_v45  ;;  %v6729_v43 = vld [vmem:[%s10473_s1 + $0x5ac] sm:$0xf0] }
  0x83   :  { %1748 = vmatpush.bf16.msra.mxu3 %v5150_v57  ;;  %1767 = vmatpush.bf16.msrb.mxu1 %v4866_v59  ;;  %v4447_v50 = vld [vmem:[%s10473_s1 + $0xa8] sm:$0xf0]  ;;  %v5349_v44 = vld [vmem:[%s10473_s1 + $0x790] sm:$0xf] }
  0x84   :  { %1736 = vmatmul.bf16.vlgmr.msra.gmra.mxu2 %v7425_v15  ;;  %v6628_v51 = vld [vmem:[%s10473_s1 + $0x28c] sm:$0xf]  ;;  %v4450_v58 = vor.u32 %v6564_v49, %v4447_v50  ;;  %v6793_v45 = vld [vmem:[%s10473_s1 + $0x7ac] sm:$0xf0] }
  0x85   :  { %1780 = vmatpush.bf16.msrb.mxu2 %v5122_v60  ;;  %1755 = vmatpush.bf16.msrb.mxu0 %v4578_v6  ;;  %v4703_v53 = vld [vmem:[%s10473_s1 + $0x2a8] sm:$0xf0]  ;;  %v4549_v49 = vld [vmem:[%s10473_s1 + $0x150] sm:$0xf] }
  0x86   :  { %1749 = vmatmul.bf16.vlgmr.msra.gmra.mxu3 %v7427_v16  ;;  %v6692_v54 = vld [vmem:[%s10473_s1 + $0x48c] sm:$0xf]  ;;  %v4706_v59 = vor.u32 %v6628_v51, %v4703_v53  ;;  %v6593_v50 = vld [vmem:[%s10473_s1 + $0x16c] sm:$0xf0] }
  0x87   :  { %1793 = vmatpush.bf16.msrb.mxu3 %v5378_v0  ;;  %1768 = vmatpush.bf16.msrb.mxu1 %v4834_v7  ;;  %v4959_v55 = vld [vmem:[%s10473_s1 + $0x4a8] sm:$0xf0]  ;;  %v4805_v51 = vld [vmem:[%s10473_s1 + $0x350] sm:$0xf] }
  0x88   :  { %v6756_v56 = vld [vmem:[%s10473_s1 + $0x68c] sm:$0xf]  ;;  %v4962_v60 = vor.u32 %v6692_v54, %v4959_v55  ;;  %v6657_v53 = vld [vmem:[%s10473_s1 + $0x36c] sm:$0xf0] }
  0x89   :  { %1781 = vmatpush.bf16.msrb.mxu2 %v5090_v8  ;;  %1756 = vmatpush.bf16.msrb.mxu0 %v4546_v20  ;;  %v5215_v57 = vld [vmem:[%s10473_s1 + $0x6a8] sm:$0xf0]  ;;  %v4613_v20 = vld [vmem:[%s10473_s1 + $0x1d0] sm:$0xf] }
  0x8a   :  { %v6556_v61 = vld [vmem:[%s10473_s1 + $0x4c] sm:$0xf]  ;;  %v5218_v0 = vor.u32 %v6756_v56, %v5215_v57  ;;  %v5061_v54 = vld [vmem:[%s10473_s1 + $0x550] sm:$0xf] }
  0x8b   :  { %1794 = vmatpush.bf16.msrb.mxu3 %v5346_v12  ;;  %1769 = vmatpush.bf16.msrb.mxu1 %v4802_v21  ;;  %v4415_v62 = vld [vmem:[%s10473_s1 + $0x68] sm:$0xf0]  ;;  %v6609_v21 = vld [vmem:[%s10473_s1 + $0x1ec] sm:$0xf0] }
  0x8c   :  { %v6620_v63 = vld [vmem:[%s10473_s1 + $0x24c] sm:$0xf]  ;;  %v4418_v6 = vor.u32 %v6556_v61, %v4415_v62  ;;  %v6721_v55 = vld [vmem:[%s10473_s1 + $0x56c] sm:$0xf0] }
  0x8d   :  { %1782 = vmatpush.bf16.msrb.mxu2 %v5058_v22  ;;  %1757 = vmatpush.bf16.msrb.mxu0 %v4514_v34  ;;  %v4671_v1 = vld [vmem:[%s10473_s1 + $0x268] sm:$0xf0]  ;;  %v4869_v22 = vld [vmem:[%s10473_s1 + $0x3d0] sm:$0xf]  ;;  %v4614_v34 = vor.u32 %v6609_v21, %v4613_v20 }
  0x8e   :  { %v6684_v2 = vld [vmem:[%s10473_s1 + $0x44c] sm:$0xf]  ;;  %v4674_v9 = vor.u32 %v6620_v63, %v4671_v1  ;;  %v5317_v56 = vld [vmem:[%s10473_s1 + $0x750] sm:$0xf] }
  0x8f   :  { %1795 = vmatpush.bf16.msrb.mxu3 %v5314_v26  ;;  %1770 = vmatpush.bf16.msrb.mxu1 %v4770_v35  ;;  %v4927_v3 = vld [vmem:[%s10473_s1 + $0x468] sm:$0xf0]  ;;  %v6737_v26 = vld [vmem:[%s10473_s1 + $0x5ec] sm:$0xf0]  ;;  %v4870_v35 = vor.u32 %v6673_v24, %v4869_v22 }
  0x90   :  { %v6748_v4 = vld [vmem:[%s10473_s1 + $0x64c] sm:$0xf]  ;;  %v4930_v10 = vor.u32 %v6684_v2, %v4927_v3  ;;  %v6785_v57 = vld [vmem:[%s10473_s1 + $0x76c] sm:$0xf0] }
  0x91   :  { %1783 = vmatpush.bf16.msrb.mxu2 %v5026_v36  ;;  %1758 = vmatpush.bf16.msrb.mxu0 %v4482_v46  ;;  %v5183_v5 = vld [vmem:[%s10473_s1 + $0x668] sm:$0xf0]  ;;  %v5126_v36 = vor.u32 %v6737_v26, %v5125_v25  ;;  %v4582_v46 = vor.u32 %v6601_v38, %v4581_v37  ;;  %v4517_v61 = vld [vmem:[%s10473_s1 + $0x110] sm:$0xf] }
  0x92   :  { %v6548_v7 = vld [vmem:[%s10473_s1 + $0xc] sm:$0xf]  ;;  %v5186_v14 = vor.u32 %v6748_v4, %v5183_v5  ;;  %v6585_v62 = vld [vmem:[%s10473_s1 + $0x12c] sm:$0xf0] }
  0x93   :  { %1796 = vmatpush.bf16.msrb.mxu3 %v5282_v40  ;;  %1771 = vmatpush.bf16.msrb.mxu1 %v4738_v47  ;;  %v4383_v8 = vld [vmem:[%s10473_s1 + $0x28] sm:$0xf0]  ;;  %v5382_v40 = vor.u32 %v6801_v32, %v5381_v29  ;;  %v4838_v47 = vor.u32 %v6665_v41, %v4837_v39  ;;  %v4773_v63 = vld [vmem:[%s10473_s1 + $0x310] sm:$0xf] }
  0x94   :  { %v6612_v11 = vld [vmem:[%s10473_s1 + $0x20c] sm:$0xf]  ;;  %v4386_v23 = vor.u32 %v6548_v7, %v4383_v8  ;;  %v6649_v1 = vld [vmem:[%s10473_s1 + $0x32c] sm:$0xf0] }
  0x95   :  { %1784 = vmatpush.bf16.msrb.mxu2 %v4994_v48  ;;  %1759 = vmatpush.bf16.msrb.mxu0 %v4450_v58  ;;  %v4639_v12 = vld [vmem:[%s10473_s1 + $0x228] sm:$0xf0]  ;;  %v5094_v48 = vor.u32 %v6729_v43, %v5093_v42  ;;  %v4550_v58 = vor.u32 %v6593_v50, %v4549_v49  ;;  %v5029_v2 = vld [vmem:[%s10473_s1 + $0x510] sm:$0xf]  ;;  %v4774_v7 = vor.u32 %v6649_v1, %v4773_v63  ;;  %v6733_v63 = vld [vmem:[%s10473_s1 + $0x5d4] sm:$0xf] }
  0x96   :  { %v6676_v13 = vld [vmem:[%s10473_s1 + $0x40c] sm:$0xf]  ;;  %v4642_v27 = vor.u32 %v6612_v11, %v4639_v12  ;;  %v6713_v3 = vld [vmem:[%s10473_s1 + $0x52c] sm:$0xf0] }
  0x97   :  { %1797 = vmatpush.bf16.msrb.mxu3 %v5250_v52  ;;  %1772 = vmatpush.bf16.msrb.mxu1 %v4706_v59  ;;  %v4895_v17 = vld [vmem:[%s10473_s1 + $0x428] sm:$0xf0]  ;;  %v5350_v52 = vor.u32 %v6793_v45, %v5349_v44  ;;  %v4806_v59 = vor.u32 %v6657_v53, %v4805_v51  ;;  %v5285_v4 = vld [vmem:[%s10473_s1 + $0x710] sm:$0xf]  ;;  %v5030_v8 = vor.u32 %v6713_v3, %v5029_v2  ;;  %v6797_v3 = vld [vmem:[%s10473_s1 + $0x7d4] sm:$0xf] }
  0x98   :  { %v6740_v18 = vld [vmem:[%s10473_s1 + $0x60c] sm:$0xf]  ;;  %v4898_v28 = vor.u32 %v6676_v13, %v4895_v17  ;;  %v6777_v5 = vld [vmem:[%s10473_s1 + $0x72c] sm:$0xf0] }
  0x99   :  { %1785 = vmatpush.bf16.msrb.mxu2 %v4962_v60  ;;  %v5151_v19 = vld [vmem:[%s10473_s1 + $0x628] sm:$0xf0]  ;;  %1760 = vmatpush.bf16.msrb.mxu0 %v4418_v6  ;;  %v5062_v60 = vor.u32 %v6721_v55, %v5061_v54  ;;  %v4518_v6 = vor.u32 %v6585_v62, %v4517_v61  ;;  %v4741_v11 = vld [vmem:[%s10473_s1 + $0x2d0] sm:$0xf]  ;;  %v5286_v12 = vor.u32 %v6777_v5, %v5285_v4  ;;  %v4871_v62 = vld [vmem:[%s10473_s1 + $0x3f0] sm:$0xf0] }
  0x9a   :  { %v5154_v33 = vor.u32 %v6740_v18, %v5151_v19  ;;  %v6641_v13 = vld [vmem:[%s10473_s1 + $0x2ec] sm:$0xf0]  ;;  %v5383_v4 = vld [vmem:[%s10473_s1 + $0x7f0] sm:$0xf0] }
  0x9b   :  { %1798 = vmatpush.bf16.msrb.mxu3 %v5218_v0  ;;  %1773 = vmatpush.bf16.msrb.mxu1 %v4674_v9  ;;  %v5318_v0 = vor.u32 %v6785_v57, %v5317_v56  ;;  %v4485_v9 = vld [vmem:[%s10473_s1 + $0xd0] sm:$0xf]  ;;  %v4742_v21 = vor.u32 %v6641_v13, %v4741_v11  ;;  %v6661_v11 = vld [vmem:[%s10473_s1 + $0x394] sm:$0xf] }
  0x9c   :  { %v6705_v17 = vld [vmem:[%s10473_s1 + $0x4ec] sm:$0xf0]  ;;  %v4839_v13 = vld [vmem:[%s10473_s1 + $0x3b0] sm:$0xf0] }
  0x9d   :  { %1786 = vmatpush.bf16.msrb.mxu2 %v4930_v10  ;;  %1761 = vmatpush.bf16.msrb.mxu0 %v4386_v23  ;;  %v6577_v10 = vld [vmem:[%s10473_s1 + $0xec] sm:$0xf0] }
  0x9e   :  { %v5253_v18 = vld [vmem:[%s10473_s1 + $0x6d0] sm:$0xf]  ;;  %v4486_v20 = vor.u32 %v6577_v10, %v4485_v9  ;;  %v6597_v9 = vld [vmem:[%s10473_s1 + $0x194] sm:$0xf] }
  0x9f   :  { %1799 = vmatpush.bf16.msrb.mxu3 %v5186_v14  ;;  %1774 = vmatpush.bf16.msrb.mxu1 %v4642_v27  ;;  %v4997_v14 = vld [vmem:[%s10473_s1 + $0x4d0] sm:$0xf]  ;;  %v4583_v10 = vld [vmem:[%s10473_s1 + $0x1b0] sm:$0xf0] }
  0xa0   :  { %1762 = vmatmul.bf16.vlgmr.msrb.gmra.mxu0 %v7451_v30  ;;  %v6769_v19 = vld [vmem:[%s10473_s1 + $0x6ec] sm:$0xf0]  ;;  %v4998_v22 = vor.u32 %v6705_v17, %v4997_v14  ;;  %v6725_v14 = vld [vmem:[%s10473_s1 + $0x594] sm:$0xf] }
  0xa1   :  { %1787 = vmatpush.bf16.msrb.mxu2 %v4898_v28  ;;  %1806 = vmatpush.bf16.msra.mxu0 %v4614_v34  ;;  %v4453_v23 = vld [vmem:[%s10473_s1 + $0x90] sm:$0xf]  ;;  %v5254_v26 = vor.u32 %v6769_v19, %v5253_v18  ;;  %v5095_v17 = vld [vmem:[%s10473_s1 + $0x5b0] sm:$0xf0] }
  0xa2   :  { %1775 = vmatmul.bf16.vlgmr.msrb.gmra.mxu1 %v7453_v31  ;;  %v6569_v24 = vld [vmem:[%s10473_s1 + $0xac] sm:$0xf0]  ;;  %v6789_v18 = vld [vmem:[%s10473_s1 + $0x794] sm:$0xf] }
  0xa3   :  { %1800 = vmatpush.bf16.msrb.mxu3 %v5154_v33  ;;  %1819 = vmatpush.bf16.msra.mxu1 %v4870_v35  ;;  %v4709_v25 = vld [vmem:[%s10473_s1 + $0x290] sm:$0xf]  ;;  %v4454_v34 = vor.u32 %v6569_v24, %v4453_v23  ;;  %v5351_v19 = vld [vmem:[%s10473_s1 + $0x7b0] sm:$0xf0] }
  0xa4   :  { %1788 = vmatmul.bf16.vlgmr.msrb.gmra.mxu2 %v7425_v15  ;;  %v6633_v27 = vld [vmem:[%s10473_s1 + $0x2ac] sm:$0xf0]  ;;  %v6589_v23 = vld [vmem:[%s10473_s1 + $0x154] sm:$0xf] }
  0xa5   :  { %1832 = vmatpush.bf16.msra.mxu2 %v5126_v36  ;;  %1807 = vmatpush.bf16.msra.mxu0 %v4582_v46  ;;  %v4965_v28 = vld [vmem:[%s10473_s1 + $0x490] sm:$0xf]  ;;  %v4710_v35 = vor.u32 %v6633_v27, %v4709_v25  ;;  %v4551_v24 = vld [vmem:[%s10473_s1 + $0x170] sm:$0xf0] }
  0xa6   :  { %1801 = vmatmul.bf16.vlgmr.msrb.gmra.mxu3 %v7427_v16  ;;  %v6697_v29 = vld [vmem:[%s10473_s1 + $0x4ac] sm:$0xf0]  ;;  %v6653_v25 = vld [vmem:[%s10473_s1 + $0x354] sm:$0xf] }
  0xa7   :  { %1845 = vmatpush.bf16.msra.mxu3 %v5382_v40  ;;  %1820 = vmatpush.bf16.msra.mxu1 %v4838_v47  ;;  %v5221_v32 = vld [vmem:[%s10473_s1 + $0x690] sm:$0xf]  ;;  %v4966_v36 = vor.u32 %v6697_v29, %v4965_v28  ;;  %v4807_v27 = vld [vmem:[%s10473_s1 + $0x370] sm:$0xf0] }
  0xa8   :  { %v6761_v33 = vld [vmem:[%s10473_s1 + $0x6ac] sm:$0xf0]  ;;  %v6717_v28 = vld [vmem:[%s10473_s1 + $0x554] sm:$0xf] }
  0xa9   :  { %1833 = vmatpush.bf16.msra.mxu2 %v5094_v48  ;;  %1808 = vmatpush.bf16.msra.mxu0 %v4550_v58  ;;  %v4421_v37 = vld [vmem:[%s10473_s1 + $0x50] sm:$0xf]  ;;  %v5222_v40 = vor.u32 %v6761_v33, %v5221_v32  ;;  %v6605_v58 = vld [vmem:[%s10473_s1 + $0x1d4] sm:$0xf] }
  0xaa   :  { %v6561_v38 = vld [vmem:[%s10473_s1 + $0x6c] sm:$0xf0]  ;;  %v5063_v29 = vld [vmem:[%s10473_s1 + $0x570] sm:$0xf0] }
  0xab   :  { %1846 = vmatpush.bf16.msra.mxu3 %v5350_v52  ;;  %1821 = vmatpush.bf16.msra.mxu1 %v4806_v59  ;;  %v4677_v39 = vld [vmem:[%s10473_s1 + $0x250] sm:$0xf]  ;;  %v4422_v46 = vor.u32 %v6561_v38, %v4421_v37  ;;  %v4615_v59 = vld [vmem:[%s10473_s1 + $0x1f0] sm:$0xf0] }
  0xac   :  { %v6625_v41 = vld [vmem:[%s10473_s1 + $0x26c] sm:$0xf0]  ;;  %v6781_v32 = vld [vmem:[%s10473_s1 + $0x754] sm:$0xf] }
  0xad   :  { %1834 = vmatpush.bf16.msra.mxu2 %v5062_v60  ;;  %1809 = vmatpush.bf16.msra.mxu0 %v4518_v6  ;;  %v4933_v42 = vld [vmem:[%s10473_s1 + $0x450] sm:$0xf]  ;;  %v4678_v49 = vor.u32 %v6625_v41, %v4677_v39  ;;  %v6669_v60 = vld [vmem:[%s10473_s1 + $0x3d4] sm:$0xf]  ;;  %v4618_v6 = vor.u32 %v6605_v58, %v4615_v59 }
  0xae   :  { %v6689_v43 = vld [vmem:[%s10473_s1 + $0x46c] sm:$0xf0]  ;;  %v5319_v33 = vld [vmem:[%s10473_s1 + $0x770] sm:$0xf0] }
  0xaf   :  { %1847 = vmatpush.bf16.msra.mxu3 %v5318_v0  ;;  %1822 = vmatpush.bf16.msra.mxu1 %v4774_v7  ;;  %v5189_v44 = vld [vmem:[%s10473_s1 + $0x650] sm:$0xf]  ;;  %v4934_v50 = vor.u32 %v6689_v43, %v4933_v42  ;;  %v5127_v0 = vld [vmem:[%s10473_s1 + $0x5f0] sm:$0xf0]  ;;  %v4874_v7 = vor.u32 %v6669_v60, %v4871_v62 }
  0xb0   :  { %v6753_v45 = vld [vmem:[%s10473_s1 + $0x66c] sm:$0xf0]  ;;  %v6581_v37 = vld [vmem:[%s10473_s1 + $0x114] sm:$0xf] }
  0xb1   :  { %1835 = vmatpush.bf16.msra.mxu2 %v5030_v8  ;;  %1810 = vmatpush.bf16.msra.mxu0 %v4486_v20  ;;  %v4389_v47 = vld [vmem:[%s10473_s1 + $0x10] sm:$0xf]  ;;  %v5190_v54 = vor.u32 %v6753_v45, %v5189_v44  ;;  %v5130_v8 = vor.u32 %v6733_v63, %v5127_v0  ;;  %v4586_v20 = vor.u32 %v6597_v9, %v4583_v10  ;;  %v4519_v38 = vld [vmem:[%s10473_s1 + $0x130] sm:$0xf0] }
  0xb2   :  { %v6553_v48 = vld [vmem:[%s10473_s1 + $0x2c] sm:$0xf0]  ;;  %v6645_v39 = vld [vmem:[%s10473_s1 + $0x314] sm:$0xf] }
  0xb3   :  { %1848 = vmatpush.bf16.msra.mxu3 %v5286_v12  ;;  %1823 = vmatpush.bf16.msra.mxu1 %v4742_v21  ;;  %v4645_v51 = vld [vmem:[%s10473_s1 + $0x210] sm:$0xf]  ;;  %v4390_v61 = vor.u32 %v6553_v48, %v4389_v47  ;;  %v5386_v12 = vor.u32 %v6797_v3, %v5383_v4  ;;  %v4842_v21 = vor.u32 %v6661_v11, %v4839_v13  ;;  %v4775_v41 = vld [vmem:[%s10473_s1 + $0x330] sm:$0xf0] }
  0xb4   :  { %v6617_v52 = vld [vmem:[%s10473_s1 + $0x22c] sm:$0xf0]  ;;  %v6709_v42 = vld [vmem:[%s10473_s1 + $0x514] sm:$0xf]  ;;  %v4778_v47 = vor.u32 %v6645_v39, %v4775_v41  ;;  %v6610_v41 = vld [vmem:[%s10473_s1 + $0x1f4] sm:$0xf0] }
  0xb5   :  { %1836 = vmatpush.bf16.msra.mxu2 %v4998_v22  ;;  %1811 = vmatpush.bf16.msra.mxu0 %v4454_v34  ;;  %v4901_v53 = vld [vmem:[%s10473_s1 + $0x410] sm:$0xf]  ;;  %v4646_v1 = vor.u32 %v6617_v52, %v4645_v51  ;;  %v5098_v22 = vor.u32 %v6725_v14, %v5095_v17  ;;  %v4554_v34 = vor.u32 %v6589_v23, %v4551_v24  ;;  %v5031_v43 = vld [vmem:[%s10473_s1 + $0x530] sm:$0xf0] }
  0xb6   :  { %v6681_v55 = vld [vmem:[%s10473_s1 + $0x42c] sm:$0xf0]  ;;  %v6773_v44 = vld [vmem:[%s10473_s1 + $0x714] sm:$0xf]  ;;  %v5034_v48 = vor.u32 %v6709_v42, %v5031_v43  ;;  %v4877_v42 = vld [vmem:[%s10473_s1 + $0x3d8] sm:$0xf] }
  0xb7   :  { %1849 = vmatpush.bf16.msra.mxu3 %v5254_v26  ;;  %1824 = vmatpush.bf16.msra.mxu1 %v4710_v35  ;;  %v5157_v56 = vld [vmem:[%s10473_s1 + $0x610] sm:$0xf]  ;;  %v4902_v2 = vor.u32 %v6681_v55, %v4901_v53  ;;  %v5354_v26 = vor.u32 %v6789_v18, %v5351_v19  ;;  %v4810_v35 = vor.u32 %v6653_v25, %v4807_v27  ;;  %v5287_v45 = vld [vmem:[%s10473_s1 + $0x730] sm:$0xf0] }
  0xb8   :  { %v6745_v57 = vld [vmem:[%s10473_s1 + $0x62c] sm:$0xf0]  ;;  %v6637_v51 = vld [vmem:[%s10473_s1 + $0x2d4] sm:$0xf]  ;;  %v5290_v52 = vor.u32 %v6773_v44, %v5287_v45  ;;  %v6674_v44 = vld [vmem:[%s10473_s1 + $0x3f4] sm:$0xf0] }
  0xb9   :  { %1837 = vmatpush.bf16.msra.mxu2 %v4966_v36  ;;  %1812 = vmatpush.bf16.msra.mxu0 %v4422_v46  ;;  %v5158_v5 = vor.u32 %v6745_v57, %v5157_v56  ;;  %v5066_v36 = vor.u32 %v6717_v28, %v5063_v29  ;;  %v4522_v46 = vor.u32 %v6581_v37, %v4519_v38  ;;  %v4743_v53 = vld [vmem:[%s10473_s1 + $0x2f0] sm:$0xf0]  ;;  %v5133_v45 = vld [vmem:[%s10473_s1 + $0x5d8] sm:$0xf] }
  0xba   :  { %v4999_v55 = vld [vmem:[%s10473_s1 + $0x4f0] sm:$0xf0]  ;;  %v4746_v59 = vor.u32 %v6637_v51, %v4743_v53  ;;  %v6802_v51 = vld [vmem:[%s10473_s1 + $0x7f4] sm:$0xf0] }
  0xbb   :  { %1850 = vmatpush.bf16.msra.mxu3 %v5222_v40  ;;  %1825 = vmatpush.bf16.msra.mxu1 %v4678_v49  ;;  %v5322_v40 = vor.u32 %v6781_v32, %v5319_v33  ;;  %v6573_v49 = vld [vmem:[%s10473_s1 + $0xd4] sm:$0xf] }
  0xbc   :  { %v6765_v56 = vld [vmem:[%s10473_s1 + $0x6d4] sm:$0xf] }
  0xbd   :  { %1838 = vmatpush.bf16.msra.mxu2 %v4934_v50  ;;  %1813 = vmatpush.bf16.msra.mxu0 %v4390_v61  ;;  %v4487_v50 = vld [vmem:[%s10473_s1 + $0xf0] sm:$0xf0] }
  0xbe   :  { %v5255_v57 = vld [vmem:[%s10473_s1 + $0x6f0] sm:$0xf0]  ;;  %v4490_v58 = vor.u32 %v6573_v49, %v4487_v50  ;;  %v5389_v50 = vld [vmem:[%s10473_s1 + $0x7d8] sm:$0xf] }
  0xbf   :  { %1851 = vmatpush.bf16.msra.mxu3 %v5190_v54  ;;  %1826 = vmatpush.bf16.msra.mxu1 %v4646_v1  ;;  %v6701_v54 = vld [vmem:[%s10473_s1 + $0x4d4] sm:$0xf]  ;;  %v5258_v0 = vor.u32 %v6765_v56, %v5255_v57  ;;  %v4589_v57 = vld [vmem:[%s10473_s1 + $0x198] sm:$0xf] }
  0xc0   :  { %1814 = vmatmul.bf16.vlgmr.msra.gmra.mxu0 %v7451_v30  ;;  %v5002_v60 = vor.u32 %v6701_v54, %v4999_v55  ;;  %v6565_v61 = vld [vmem:[%s10473_s1 + $0x94] sm:$0xf]  ;;  %v4878_v55 = vor.u32 %v6674_v44, %v4877_v42  ;;  %v6642_v42 = vld [vmem:[%s10473_s1 + $0x2f4] sm:$0xf0] }
  0xc1   :  { %1839 = vmatpush.bf16.msra.mxu2 %v4902_v2  ;;  %1858 = vmatpush.bf16.msrb.mxu0 %v4618_v6  ;;  %v4455_v62 = vld [vmem:[%s10473_s1 + $0xb0] sm:$0xf0]  ;;  %v6706_v44 = vld [vmem:[%s10473_s1 + $0x4f4] sm:$0xf0] }
  0xc2   :  { %1827 = vmatmul.bf16.vlgmr.msra.gmra.mxu1 %v7453_v31  ;;  %v6629_v63 = vld [vmem:[%s10473_s1 + $0x294] sm:$0xf]  ;;  %v4458_v6 = vor.u32 %v6565_v61, %v4455_v62  ;;  %v5390_v61 = vor.u32 %v6802_v51, %v5389_v50  ;;  %v6666_v62 = vld [vmem:[%s10473_s1 + $0x3b4] sm:$0xf0] }
  0xc3   :  { %1852 = vmatpush.bf16.msra.mxu3 %v5158_v5  ;;  %1871 = vmatpush.bf16.msrb.mxu1 %v4874_v7  ;;  %v4711_v1 = vld [vmem:[%s10473_s1 + $0x2b0] sm:$0xf0] }
  0xc4   :  { %1840 = vmatmul.bf16.vlgmr.msra.gmra.mxu2 %v7425_v15  ;;  %v6693_v2 = vld [vmem:[%s10473_s1 + $0x494] sm:$0xf]  ;;  %v4714_v7 = vor.u32 %v6629_v63, %v4711_v1  ;;  %v5101_v63 = vld [vmem:[%s10473_s1 + $0x598] sm:$0xf] }
  0xc5   :  { %1884 = vmatpush.bf16.msrb.mxu2 %v5130_v8  ;;  %1859 = vmatpush.bf16.msrb.mxu0 %v4586_v20  ;;  %v4967_v3 = vld [vmem:[%s10473_s1 + $0x4b0] sm:$0xf0]  ;;  %v5357_v1 = vld [vmem:[%s10473_s1 + $0x798] sm:$0xf] }
  0xc6   :  { %1853 = vmatmul.bf16.vlgmr.msra.gmra.mxu3 %v7427_v16  ;;  %v6757_v4 = vld [vmem:[%s10473_s1 + $0x694] sm:$0xf]  ;;  %v4970_v8 = vor.u32 %v6693_v2, %v4967_v3  ;;  %v6794_v2 = vld [vmem:[%s10473_s1 + $0x7b4] sm:$0xf0] }
  0xc7   :  { %1897 = vmatpush.bf16.msrb.mxu3 %v5386_v12  ;;  %1872 = vmatpush.bf16.msrb.mxu1 %v4842_v21  ;;  %v5223_v5 = vld [vmem:[%s10473_s1 + $0x6b0] sm:$0xf0]  ;;  %v1620_v12 = vpop.f32.mrf.mxu1  ;;  %v1607_v21 = vpop.f32.mrf.mxu0 }
  0xc8   :  { %v6557_v9 = vld [vmem:[%s10473_s1 + $0x54] sm:$0xf]  ;;  %v5226_v13 = vor.u32 %v6757_v4, %v5223_v5  ;;  %v1621_v25 = vadd.f32 %v1620_v12, %v1607_v21  ;;  %v1633_v33 = vpop.f32.mrf.mxu2  ;;  %v6658_v12 = vld [vmem:[%s10473_s1 + $0x374] sm:$0xf0] }
  0xc9   :  { %1885 = vmatpush.bf16.msrb.mxu2 %v5098_v22  ;;  %1860 = vmatpush.bf16.msrb.mxu0 %v4554_v34  ;;  %v4423_v10 = vld [vmem:[%s10473_s1 + $0x70] sm:$0xf0]  ;;  %v1646_v39 = vpop.f32.mrf.mxu3 }
  0xca   :  { %v6621_v11 = vld [vmem:[%s10473_s1 + $0x254] sm:$0xf]  ;;  %v4426_v22 = vor.u32 %v6557_v9, %v4423_v10  ;;  %v1634_v38 = vadd.f32 %v1633_v33, %v1621_v25  ;;  %v6594_v9 = vld [vmem:[%s10473_s1 + $0x174] sm:$0xf0] }
  0xcb   :  { %1898 = vmatpush.bf16.msrb.mxu3 %v5354_v26  ;;  %1873 = vmatpush.bf16.msrb.mxu1 %v4810_v35  ;;  %v4679_v14 = vld [vmem:[%s10473_s1 + $0x270] sm:$0xf0]  ;;  %v4813_v10 = vld [vmem:[%s10473_s1 + $0x358] sm:$0xf] }
  0xcc   :  { %v6685_v17 = vld [vmem:[%s10473_s1 + $0x454] sm:$0xf]  ;;  %v4682_v26 = vor.u32 %v6621_v11, %v4679_v14  ;;  %v5358_v11 = vor.u32 %v6794_v2, %v5357_v1  ;;  %v6722_v14 = vld [vmem:[%s10473_s1 + $0x574] sm:$0xf0] }
  0xcd   :  { %1886 = vmatpush.bf16.msrb.mxu2 %v5066_v36  ;;  %1861 = vmatpush.bf16.msrb.mxu0 %v4522_v46  ;;  %v4935_v18 = vld [vmem:[%s10473_s1 + $0x470] sm:$0xf0]  ;;  %v6738_v46 = vld [vmem:[%s10473_s1 + $0x5f4] sm:$0xf0] }
  0xce   :  { %v6749_v19 = vld [vmem:[%s10473_s1 + $0x654] sm:$0xf]  ;;  %v4938_v27 = vor.u32 %v6685_v17, %v4935_v18  ;;  %v5134_v56 = vor.u32 %v6738_v46, %v5133_v45  ;;  %v5325_v17 = vld [vmem:[%s10473_s1 + $0x758] sm:$0xf] }
  0xcf   :  { %1899 = vmatpush.bf16.msrb.mxu3 %v5322_v40  ;;  %1874 = vmatpush.bf16.msrb.mxu1 %v4778_v47  ;;  %v5191_v20 = vld [vmem:[%s10473_s1 + $0x670] sm:$0xf0]  ;;  %v4621_v40 = vld [vmem:[%s10473_s1 + $0x1d8] sm:$0xf]  ;;  %v8338_v47 = vadd.f32 %v1646_v39, %v1634_v38 }
  0xd0   :  { %v6549_v23 = vld [vmem:[%s10473_s1 + $0x14] sm:$0xf]  ;;  %v5194_v34 = vor.u32 %v6749_v19, %v5191_v20  ;;  %v4622_v54 = vor.u32 %v6610_v41, %v4621_v40  ;;  %v1635_v3 = vpop.f32.mrf.mxu2  ;;  %v6786_v18 = vld [vmem:[%s10473_s1 + $0x774] sm:$0xf0]  ;;  %v4814_v20 = vor.u32 %v6658_v12, %v4813_v10 }
  0xd1   :  { %1887 = vmatpush.bf16.msrb.mxu2 %v5034_v48  ;;  %1862 = vmatpush.bf16.msrb.mxu0 %v4490_v58  ;;  %v4391_v24 = vld [vmem:[%s10473_s1 + $0x30] sm:$0xf0]  ;;  %v6602_v58 = vld [vmem:[%s10473_s1 + $0x1b4] sm:$0xf0]  ;;  %v1648_v5 = vpop.f32.mrf.mxu3  ;;  %v5326_v25 = vor.u32 %v6786_v18, %v5325_v17 }
  0xd2   :  { %v6613_v28 = vld [vmem:[%s10473_s1 + $0x214] sm:$0xf]  ;;  %v4394_v43 = vor.u32 %v6549_v23, %v4391_v24  ;;  %v4590_v4 = vor.u32 %v6602_v58, %v4589_v57  ;;  %v6586_v23 = vld [vmem:[%s10473_s1 + $0x134] sm:$0xf0] }
  0xd3   :  { %1900 = vmatpush.bf16.msrb.mxu3 %v5290_v52  ;;  %1875 = vmatpush.bf16.msrb.mxu1 %v4746_v59  ;;  %v4647_v29 = vld [vmem:[%s10473_s1 + $0x230] sm:$0xf0]  ;;  %v1622_v52 = vpop.f32.mrf.mxu1  ;;  %v4845_v59 = vld [vmem:[%s10473_s1 + $0x398] sm:$0xf] }
  0xd4   :  { %v6677_v32 = vld [vmem:[%s10473_s1 + $0x414] sm:$0xf]  ;;  %v4650_v48 = vor.u32 %v6613_v28, %v4647_v29  ;;  %v4781_v24 = vld [vmem:[%s10473_s1 + $0x318] sm:$0xf] }
  0xd5   :  { %1888 = vmatpush.bf16.msrb.mxu2 %v5002_v60  ;;  %1863 = vmatpush.bf16.msrb.mxu0 %v4458_v6  ;;  %v4903_v35 = vld [vmem:[%s10473_s1 + $0x430] sm:$0xf0]  ;;  %v1609_v60 = vpop.f32.mrf.mxu0  ;;  %v4846_v6 = vor.u32 %v6666_v62, %v4845_v59  ;;  %v6714_v28 = vld [vmem:[%s10473_s1 + $0x534] sm:$0xf0] }
  0xd6   :  { %v6741_v36 = vld [vmem:[%s10473_s1 + $0x614] sm:$0xf]  ;;  %v4906_v49 = vor.u32 %v6677_v32, %v4903_v35  ;;  %v5293_v29 = vld [vmem:[%s10473_s1 + $0x718] sm:$0xf] }
  0xd7   :  { %1901 = vmatpush.bf16.msrb.mxu3 %v5258_v0  ;;  %1876 = vmatpush.bf16.msrb.mxu1 %v4714_v7  ;;  %v5159_v37 = vld [vmem:[%s10473_s1 + $0x630] sm:$0xf0]  ;;  %v6730_v0 = vld [vmem:[%s10473_s1 + $0x5b4] sm:$0xf0] }
  0xd8   :  { %v5162_v53 = vor.u32 %v6741_v36, %v5159_v37  ;;  %v5102_v7 = vor.u32 %v6730_v0, %v5101_v63  ;;  %v6778_v32 = vld [vmem:[%s10473_s1 + $0x734] sm:$0xf0] }
  0xd9   :  { %1889 = vmatpush.bf16.msrb.mxu2 %v4970_v8  ;;  %1864 = vmatpush.bf16.msrb.mxu0 %v4426_v22  ;;  %v4557_v8 = vld [vmem:[%s10473_s1 + $0x158] sm:$0xf]  ;;  %v5294_v41 = vor.u32 %v6778_v32, %v5293_v29 }
  0xda   :  { %v4558_v19 = vor.u32 %v6594_v9, %v4557_v8  ;;  %v4525_v22 = vld [vmem:[%s10473_s1 + $0x118] sm:$0xf] }
  0xdb   :  { %1902 = vmatpush.bf16.msrb.mxu3 %v5226_v13  ;;  %1877 = vmatpush.bf16.msrb.mxu1 %v4682_v26  ;;  %v5069_v13 = vld [vmem:[%s10473_s1 + $0x558] sm:$0xf]  ;;  %v4526_v33 = vor.u32 %v6586_v23, %v4525_v22 }
  0xdc   :  { %v5070_v21 = vor.u32 %v6722_v14, %v5069_v13  ;;  %v6650_v26 = vld [vmem:[%s10473_s1 + $0x334] sm:$0xf0] }
  0xdd   :  { %1890 = vmatpush.bf16.msrb.mxu2 %v4938_v27  ;;  %1865 = vmatpush.bf16.msrb.mxu0 %v4394_v43  ;;  %v5037_v27 = vld [vmem:[%s10473_s1 + $0x518] sm:$0xf]  ;;  %v4782_v35 = vor.u32 %v6650_v26, %v4781_v24 }
  0xde   :  { %v5038_v36 = vor.u32 %v6714_v28, %v5037_v27  ;;  %v4493_v37 = vld [vmem:[%s10473_s1 + $0xd8] sm:$0xf] }
  0xdf   :  { %1903 = vmatpush.bf16.msrb.mxu3 %v5194_v34  ;;  %1878 = vmatpush.bf16.msrb.mxu1 %v4650_v48  ;;  %v1659_v34 = vpop.f32.mrf.mxu0  ;;  %v6578_v38 = vld [vmem:[%s10473_s1 + $0xf4] sm:$0xf0]  ;;  %v1672_v40 = vpop.f32.mrf.mxu1 }
  0xe0   :  { %1866 = vmatmul.bf16.vlgmr.msrb.gmra.mxu0 %v7451_v30  ;;  %v4749_v39 = vld [vmem:[%s10473_s1 + $0x2d8] sm:$0xf]  ;;  %v1673_v45 = vadd.f32 %v1672_v40, %v1659_v34  ;;  %v4623_v34 = vld [vmem:[%s10473_s1 + $0x1f8] sm:$0xf0] }
  0xe1   :  { %1891 = vmatpush.bf16.msrb.mxu2 %v4906_v49  ;;  %1910 = vmatpush.bf16.msra.mxu0 %v4622_v54  ;;  %v5005_v43 = vld [vmem:[%s10473_s1 + $0x4d8] sm:$0xf]  ;;  %v4494_v49 = vor.u32 %v6578_v38, %v4493_v37  ;;  %v4750_v50 = vor.u32 %v6642_v42, %v4749_v39  ;;  %v4879_v37 = vld [vmem:[%s10473_s1 + $0x3f8] sm:$0xf0] }
  0xe2   :  { %1879 = vmatmul.bf16.vlgmr.msrb.gmra.mxu1 %v7453_v31  ;;  %v5261_v46 = vld [vmem:[%s10473_s1 + $0x6d8] sm:$0xf]  ;;  %v5006_v51 = vor.u32 %v6706_v44, %v5005_v43  ;;  %v6734_v38 = vld [vmem:[%s10473_s1 + $0x5dc] sm:$0xf] }
  0xe3   :  { %1904 = vmatpush.bf16.msrb.mxu3 %v5162_v53  ;;  %1923 = vmatpush.bf16.msra.mxu1 %v4878_v55  ;;  %v6770_v48 = vld [vmem:[%s10473_s1 + $0x6f4] sm:$0xf0]  ;;  %v5135_v39 = vld [vmem:[%s10473_s1 + $0x5f8] sm:$0xf0] }
  0xe4   :  { %1892 = vmatmul.bf16.vlgmr.msrb.gmra.mxu2 %v7425_v15  ;;  %v4461_v52 = vld [vmem:[%s10473_s1 + $0x98] sm:$0xf]  ;;  %v6798_v42 = vld [vmem:[%s10473_s1 + $0x7dc] sm:$0xf] }
  0xe5   :  { %1936 = vmatpush.bf16.msra.mxu2 %v5134_v56  ;;  %1911 = vmatpush.bf16.msra.mxu0 %v4590_v4  ;;  %v6570_v53 = vld [vmem:[%s10473_s1 + $0xb4] sm:$0xf0]  ;;  %v5262_v56 = vor.u32 %v6770_v48, %v5261_v46  ;;  %v5391_v43 = vld [vmem:[%s10473_s1 + $0x7f8] sm:$0xf0]  ;;  %v5138_v48 = vor.u32 %v6734_v38, %v5135_v39 }
  0xe6   :  { %1905 = vmatmul.bf16.vlgmr.msrb.gmra.mxu3 %v7427_v16  ;;  %v4717_v54 = vld [vmem:[%s10473_s1 + $0x298] sm:$0xf]  ;;  %v4462_v0 = vor.u32 %v6570_v53, %v4461_v52  ;;  %v5394_v52 = vor.u32 %v6798_v42, %v5391_v43  ;;  %v4847_v53 = vld [vmem:[%s10473_s1 + $0x3b8] sm:$0xf0] }
  0xe7   :  { %1949 = vmatpush.bf16.msra.mxu3 %v5390_v61  ;;  %1924 = vmatpush.bf16.msra.mxu1 %v4846_v6  ;;  %v1685_v55 = vpop.f32.mrf.mxu2  ;;  %v6634_v57 = vld [vmem:[%s10473_s1 + $0x2b4] sm:$0xf0]  ;;  %v1661_v2 = vpop.f32.mrf.mxu0  ;;  %v6630_v42 = vld [vmem:[%s10473_s1 + $0x29c] sm:$0xf] }
  0xe8   :  { %v4973_v58 = vld [vmem:[%s10473_s1 + $0x498] sm:$0xf]  ;;  %v1686_v60 = vadd.f32 %v1685_v55, %v1673_v45  ;;  %v4718_v3 = vor.u32 %v6634_v57, %v4717_v54  ;;  %v1674_v8 = vpop.f32.mrf.mxu1  ;;  %v6726_v54 = vld [vmem:[%s10473_s1 + $0x59c] sm:$0xf] }
  0xe9   :  { %1937 = vmatpush.bf16.msra.mxu2 %v5102_v7  ;;  %1912 = vmatpush.bf16.msra.mxu0 %v4558_v19  ;;  %v6698_v59 = vld [vmem:[%s10473_s1 + $0x4b4] sm:$0xf0]  ;;  %v1698_v61 = vpop.f32.mrf.mxu3  ;;  %v5103_v55 = vld [vmem:[%s10473_s1 + $0x5b8] sm:$0xf0] }
  0xea   :  { %v5229_v62 = vld [vmem:[%s10473_s1 + $0x698] sm:$0xf]  ;;  %v8470_v1 = vadd.f32 %v1698_v61, %v1686_v60  ;;  %v4974_v4 = vor.u32 %v6698_v59, %v4973_v58  ;;  %v5359_v57 = vld [vmem:[%s10473_s1 + $0x7b8] sm:$0xf0]  ;;  %v5106_v60 = vor.u32 %v6726_v54, %v5103_v55 }
  0xeb   :  { %1950 = vmatpush.bf16.msra.mxu3 %v5358_v11  ;;  %1925 = vmatpush.bf16.msra.mxu1 %v4814_v20  ;;  %v6762_v63 = vld [vmem:[%s10473_s1 + $0x6b4] sm:$0xf0]  ;;  %v6590_v61 = vld [vmem:[%s10473_s1 + $0x15c] sm:$0xf] }
  0xec   :  { %v4429_v5 = vld [vmem:[%s10473_s1 + $0x58] sm:$0xf]  ;;  %v5230_v9 = vor.u32 %v6762_v63, %v5229_v62  ;;  %v4559_v62 = vld [vmem:[%s10473_s1 + $0x178] sm:$0xf0] }
  0xed   :  { %1938 = vmatpush.bf16.msra.mxu2 %v5070_v21  ;;  %1913 = vmatpush.bf16.msra.mxu0 %v4526_v33  ;;  %v6562_v6 = vld [vmem:[%s10473_s1 + $0x74] sm:$0xf0]  ;;  %v6606_v33 = vld [vmem:[%s10473_s1 + $0x1dc] sm:$0xf] }
  0xee   :  { %v4685_v7 = vld [vmem:[%s10473_s1 + $0x258] sm:$0xf]  ;;  %v4430_v17 = vor.u32 %v6562_v6, %v4429_v5  ;;  %v4626_v45 = vor.u32 %v6606_v33, %v4623_v34  ;;  %v6654_v63 = vld [vmem:[%s10473_s1 + $0x35c] sm:$0xf] }
  0xef   :  { %1951 = vmatpush.bf16.msra.mxu3 %v5326_v25  ;;  %1926 = vmatpush.bf16.msra.mxu1 %v4782_v35  ;;  %v6626_v10 = vld [vmem:[%s10473_s1 + $0x274] sm:$0xf0]  ;;  %v1687_v25 = vpop.f32.mrf.mxu2  ;;  %v6670_v35 = vld [vmem:[%s10473_s1 + $0x3dc] sm:$0xf] }
  0xf0   :  { %v4941_v11 = vld [vmem:[%s10473_s1 + $0x458] sm:$0xf]  ;;  %v4686_v20 = vor.u32 %v6626_v10, %v4685_v7  ;;  %v4882_v46 = vor.u32 %v6670_v35, %v4879_v37  ;;  %v4815_v2 = vld [vmem:[%s10473_s1 + $0x378] sm:$0xf0]  ;;  %v4562_v7 = vor.u32 %v6590_v61, %v4559_v62 }
  0xf1   :  { %1939 = vmatpush.bf16.msra.mxu2 %v5038_v36  ;;  %1914 = vmatpush.bf16.msra.mxu0 %v4494_v49  ;;  %v6690_v12 = vld [vmem:[%s10473_s1 + $0x474] sm:$0xf0]  ;;  %v1700_v32 = vpop.f32.mrf.mxu3  ;;  %v6598_v49 = vld [vmem:[%s10473_s1 + $0x19c] sm:$0xf]  ;;  %v4818_v8 = vor.u32 %v6654_v63, %v4815_v2 }
  0xf2   :  { %v5197_v13 = vld [vmem:[%s10473_s1 + $0x658] sm:$0xf]  ;;  %v4942_v21 = vor.u32 %v6690_v12, %v4941_v11  ;;  %v6782_v5 = vld [vmem:[%s10473_s1 + $0x75c] sm:$0xf] }
  0xf3   :  { %1952 = vmatpush.bf16.msra.mxu3 %v5294_v41  ;;  %1927 = vmatpush.bf16.msra.mxu1 %v4750_v50  ;;  %v6754_v14 = vld [vmem:[%s10473_s1 + $0x674] sm:$0xf0]  ;;  %v4591_v50 = vld [vmem:[%s10473_s1 + $0x1b8] sm:$0xf0] }
  0xf4   :  { %v4397_v18 = vld [vmem:[%s10473_s1 + $0x18] sm:$0xf]  ;;  %v5198_v26 = vor.u32 %v6754_v14, %v5197_v13  ;;  %v4594_v58 = vor.u32 %v6598_v49, %v4591_v50  ;;  %v5327_v6 = vld [vmem:[%s10473_s1 + $0x778] sm:$0xf0] }
  0xf5   :  { %1940 = vmatpush.bf16.msra.mxu2 %v5006_v51  ;;  %1915 = vmatpush.bf16.msra.mxu0 %v4462_v0  ;;  %v6554_v19 = vld [vmem:[%s10473_s1 + $0x34] sm:$0xf0]  ;;  %v6662_v51 = vld [vmem:[%s10473_s1 + $0x39c] sm:$0xf]  ;;  %v5330_v13 = vor.u32 %v6782_v5, %v5327_v6 }
  0xf6   :  { %v4653_v22 = vld [vmem:[%s10473_s1 + $0x218] sm:$0xf]  ;;  %v4398_v36 = vor.u32 %v6554_v19, %v4397_v18  ;;  %v4850_v59 = vor.u32 %v6662_v51, %v4847_v53  ;;  %v6582_v10 = vld [vmem:[%s10473_s1 + $0x11c] sm:$0xf] }
  0xf7   :  { %1953 = vmatpush.bf16.msra.mxu3 %v5262_v56  ;;  %1928 = vmatpush.bf16.msra.mxu1 %v4718_v3  ;;  %v6618_v23 = vld [vmem:[%s10473_s1 + $0x234] sm:$0xf0]  ;;  %v6790_v56 = vld [vmem:[%s10473_s1 + $0x79c] sm:$0xf] }
  0xf8   :  { %v4909_v24 = vld [vmem:[%s10473_s1 + $0x418] sm:$0xf]  ;;  %v4654_v40 = vor.u32 %v6618_v23, %v4653_v22  ;;  %v5362_v0 = vor.u32 %v6790_v56, %v5359_v57  ;;  %v6718_v3 = vld [vmem:[%s10473_s1 + $0x55c] sm:$0xf] }
  0xf9   :  { %1941 = vmatpush.bf16.msra.mxu2 %v4974_v4  ;;  %v6682_v27 = vld [vmem:[%s10473_s1 + $0x434] sm:$0xf0]  ;;  %1916 = vmatpush.bf16.msra.mxu0 %v4430_v17  ;;  %v5071_v4 = vld [vmem:[%s10473_s1 + $0x578] sm:$0xf0] }
  0xfa   :  { %v5165_v28 = vld [vmem:[%s10473_s1 + $0x618] sm:$0xf]  ;;  %v4910_v41 = vor.u32 %v6682_v27, %v4909_v24  ;;  %v4527_v11 = vld [vmem:[%s10473_s1 + $0x138] sm:$0xf0] }
  0xfb   :  { %1954 = vmatpush.bf16.msra.mxu3 %v5230_v9  ;;  %v6746_v29 = vld [vmem:[%s10473_s1 + $0x634] sm:$0xf0]  ;;  %1929 = vmatpush.bf16.msra.mxu1 %v4686_v20  ;;  %v5074_v9 = vor.u32 %v6718_v3, %v5071_v4  ;;  %v6646_v12 = vld [vmem:[%s10473_s1 + $0x31c] sm:$0xf] }
  0xfc   :  { %v5166_v44 = vor.u32 %v6746_v29, %v5165_v28  ;;  %v4783_v14 = vld [vmem:[%s10473_s1 + $0x338] sm:$0xf0] }
  0xfd   :  { %1942 = vmatpush.bf16.msra.mxu2 %v4942_v21  ;;  %1917 = vmatpush.bf16.msra.mxu0 %v4398_v36  ;;  %v6710_v17 = vld [vmem:[%s10473_s1 + $0x51c] sm:$0xf]  ;;  %v4530_v21 = vor.u32 %v6582_v10, %v4527_v11  ;;  %v8620_v22 = vpop.f32.mrf.mxu0  ;;  %v4786_v23 = vor.u32 %v6646_v12, %v4783_v14 }
  0xfe   :  { %v5039_v18 = vld [vmem:[%s10473_s1 + $0x538] sm:$0xf0] }
  0xff   :  { %1955 = vmatpush.bf16.msra.mxu3 %v5198_v26  ;;  %1930 = vmatpush.bf16.msra.mxu1 %v4654_v40  ;;  %v6774_v19 = vld [vmem:[%s10473_s1 + $0x71c] sm:$0xf]  ;;  %v5042_v24 = vor.u32 %v6710_v17, %v5039_v18  ;;  %v8631_v28 = vpop.f32.mrf.mxu1 }
 0x100   :  { %1918 = vmatmul.bf16.vlgmr.msra.gmra.mxu0 %v7451_v30  ;;  %v5295_v20 = vld [vmem:[%s10473_s1 + $0x738] sm:$0xf0] }
 0x101   :  { %1943 = vmatpush.bf16.msra.mxu2 %v4910_v41  ;;  %1962 = vmatpush.bf16.msrb.mxu0 %v4626_v45  ;;  %v6574_v25 = vld [vmem:[%s10473_s1 + $0xdc] sm:$0xf]  ;;  %v5298_v29 = vor.u32 %v6774_v19, %v5295_v20  ;;  %v5509_v19 = vld [vmem:[%s10475_s3 + $0xe0] sm:$0xf]  ;;  %v6833_v20 = vld [vmem:[%s10475_s3 + $0xec] sm:$0xf0] }
 0x102   :  { %1931 = vmatmul.bf16.vlgmr.msra.gmra.mxu1 %v7453_v31  ;;  %v4495_v26 = vld [vmem:[%s10473_s1 + $0xf8] sm:$0xf0] }
 0x103   :  { %1956 = vmatpush.bf16.msra.mxu3 %v5166_v44  ;;  %1975 = vmatpush.bf16.msrb.mxu1 %v4882_v46  ;;  %v6638_v27 = vld [vmem:[%s10473_s1 + $0x2dc] sm:$0xf]  ;;  %v4498_v37 = vor.u32 %v6574_v25, %v4495_v26  ;;  %v5765_v25 = vld [vmem:[%s10475_s3 + $0x2e0] sm:$0xf]  ;;  %v6897_v26 = vld [vmem:[%s10475_s3 + $0x2ec] sm:$0xf0] }
 0x104   :  { %1944 = vmatmul.bf16.vlgmr.msra.gmra.mxu2 %v7425_v15  ;;  %v4751_v32 = vld [vmem:[%s10473_s1 + $0x2f8] sm:$0xf0] }
 0x105   :  { %1988 = vmatpush.bf16.msrb.mxu2 %v5138_v48  ;;  %1963 = vmatpush.bf16.msrb.mxu0 %v4594_v58  ;;  %v6702_v33 = vld [vmem:[%s10473_s1 + $0x4dc] sm:$0xf]  ;;  %v4754_v38 = vor.u32 %v6638_v27, %v4751_v32  ;;  %v1713_v53 = vpop.f32.mrf.mxu0 }
 0x106   :  { %1957 = vmatmul.bf16.vlgmr.msra.gmra.mxu3 %v7427_v16  ;;  %v5007_v34 = vld [vmem:[%s10473_s1 + $0x4f8] sm:$0xf0]  ;;  %v5477_v53 = vld [vmem:[%s10475_s3 + $0xa0] sm:$0xf] }
 0x107   :  { %2001 = vmatpush.bf16.msrb.mxu3 %v5394_v52  ;;  %1976 = vmatpush.bf16.msrb.mxu1 %v4850_v59  ;;  %v6766_v35 = vld [vmem:[%s10473_s1 + $0x6dc] sm:$0xf]  ;;  %v5010_v39 = vor.u32 %v6702_v33, %v5007_v34  ;;  %v8657_v43 = vpop.f32.mrf.mxu2  ;;  %v1726_v59 = vpop.f32.mrf.mxu1  ;;  %v5510_v33 = vor.u32 %v6833_v20, %v5509_v19  ;;  %v5893_v34 = vld [vmem:[%s10475_s3 + $0x3e0] sm:$0xf]  ;;  %v6881_v19 = vld [vmem:[%s10475_s3 + $0x26c] sm:$0xf0]  ;;  %v1725_v20 = vadd.f32 %v8631_v28, %v8620_v22 }
 0x108   :  { %v5263_v36 = vld [vmem:[%s10473_s1 + $0x6f8] sm:$0xf0]  ;;  %v5861_v59 = vld [vmem:[%s10475_s3 + $0x3a0] sm:$0xf] }
 0x109   :  { %1989 = vmatpush.bf16.msrb.mxu2 %v5106_v60  ;;  %1964 = vmatpush.bf16.msrb.mxu0 %v4562_v7  ;;  %v6566_v40 = vld [vmem:[%s10473_s1 + $0x9c] sm:$0xf]  ;;  %v5266_v44 = vor.u32 %v6766_v35, %v5263_v36  ;;  %v8668_v49 = vpop.f32.mrf.mxu3  ;;  %v6929_v35 = vld [vmem:[%s10475_s3 + $0x3ec] sm:$0xf0] }
 0x10a   :  { %v4463_v41 = vld [vmem:[%s10473_s1 + $0xb8] sm:$0xf0] }
 0x10b   :  { %2002 = vmatpush.bf16.msrb.mxu3 %v5362_v0  ;;  %1977 = vmatpush.bf16.msrb.mxu1 %v4818_v8  ;;  %v4719_v45 = vld [vmem:[%s10473_s1 + $0x2b8] sm:$0xf0]  ;;  %v4466_v52 = vor.u32 %v6566_v40, %v4463_v41  ;;  %v5621_v40 = vld [vmem:[%s10475_s3 + $0x1c0] sm:$0xf]  ;;  %v6861_v41 = vld [vmem:[%s10475_s3 + $0x1cc] sm:$0xf0] }
 0x10c   :  { %v6694_v46 = vld [vmem:[%s10473_s1 + $0x49c] sm:$0xf]  ;;  %v4722_v54 = vor.u32 %v6630_v42, %v4719_v45  ;;  %v5749_v42 = vld [vmem:[%s10475_s3 + $0x2c0] sm:$0xf]  ;;  %v5894_v45 = vor.u32 %v6929_v35, %v5893_v34  ;;  %v6845_v35 = vld [vmem:[%s10475_s3 + $0x14c] sm:$0xf0] }
 0x10d   :  { %1990 = vmatpush.bf16.msrb.mxu2 %v5074_v9  ;;  %1965 = vmatpush.bf16.msrb.mxu0 %v4530_v21  ;;  %v4975_v48 = vld [vmem:[%s10473_s1 + $0x4b8] sm:$0xf0]  ;;  %v5637_v21 = vld [vmem:[%s10475_s3 + $0x1e0] sm:$0xf] }
 0x10e   :  { %v6758_v50 = vld [vmem:[%s10473_s1 + $0x69c] sm:$0xf]  ;;  %v4978_v55 = vor.u32 %v6694_v46, %v4975_v48  ;;  %v5877_v48 = vld [vmem:[%s10475_s3 + $0x3c0] sm:$0xf] }
 0x10f   :  { %2003 = vmatpush.bf16.msrb.mxu3 %v5330_v13  ;;  %1978 = vmatpush.bf16.msrb.mxu1 %v4786_v23  ;;  %v5231_v51 = vld [vmem:[%s10473_s1 + $0x6b8] sm:$0xf0]  ;;  %v1739_v11 = vpop.f32.mrf.mxu2 }
 0x110   :  { %v6558_v56 = vld [vmem:[%s10473_s1 + $0x5c] sm:$0xf]  ;;  %v5234_v60 = vor.u32 %v6758_v50, %v5231_v51  ;;  %v6925_v50 = vld [vmem:[%s10475_s3 + $0x3cc] sm:$0xf0]  ;;  %v5622_v51 = vor.u32 %v6861_v41, %v5621_v40  ;;  %v5445_v11 = vld [vmem:[%s10475_s3 + $0x60] sm:$0xf] }
 0x111   :  { %1991 = vmatpush.bf16.msrb.mxu2 %v5042_v24  ;;  %1966 = vmatpush.bf16.msrb.mxu0 %v4498_v37  ;;  %v4431_v57 = vld [vmem:[%s10473_s1 + $0x78] sm:$0xf0]  ;;  %v1752_v18 = vpop.f32.mrf.mxu3  ;;  %v6865_v24 = vld [vmem:[%s10475_s3 + $0x1ec] sm:$0xf0]  ;;  %v5766_v37 = vor.u32 %v6897_v26, %v5765_v25  ;;  %v5829_v26 = vld [vmem:[%s10475_s3 + $0x360] sm:$0xf] }
 0x112   :  { %v6622_v58 = vld [vmem:[%s10473_s1 + $0x25c] sm:$0xf]  ;;  %v4434_v3 = vor.u32 %v6558_v56, %v4431_v57  ;;  %v5638_v36 = vor.u32 %v6865_v24, %v5637_v21  ;;  %v6857_v56 = vld [vmem:[%s10475_s3 + $0x1ac] sm:$0xf0]  ;;  %v5733_v57 = vld [vmem:[%s10475_s3 + $0x2a0] sm:$0xf] }
 0x113   :  { %2004 = vmatpush.bf16.msrb.mxu3 %v5298_v29  ;;  %1979 = vmatpush.bf16.msrb.mxu1 %v4754_v38  ;;  %v4687_v61 = vld [vmem:[%s10473_s1 + $0x278] sm:$0xf0]  ;;  %v5493_v38 = vld [vmem:[%s10475_s3 + $0xc0] sm:$0xf] }
 0x114   :  { %v6686_v62 = vld [vmem:[%s10473_s1 + $0x45c] sm:$0xf]  ;;  %v4690_v6 = vor.u32 %v6622_v58, %v4687_v61  ;;  %v6889_v58 = vld [vmem:[%s10475_s3 + $0x2ac] sm:$0xf0]  ;;  %v5701_v18 = vld [vmem:[%s10475_s3 + $0x260] sm:$0xf] }
 0x115   :  { %1992 = vmatpush.bf16.msrb.mxu2 %v5010_v39  ;;  %v4943_v63 = vld [vmem:[%s10473_s1 + $0x478] sm:$0xf0]  ;;  %1967 = vmatpush.bf16.msrb.mxu0 %v4466_v52  ;;  %v6829_v39 = vld [vmem:[%s10475_s3 + $0xcc] sm:$0xf0]  ;;  %v5702_v28 = vor.u32 %v6881_v19, %v5701_v18 }
 0x116   :  { %v6750_v0 = vld [vmem:[%s10473_s1 + $0x65c] sm:$0xf]  ;;  %v4946_v7 = vor.u32 %v6686_v62, %v4943_v63  ;;  %v5494_v46 = vor.u32 %v6829_v39, %v5493_v38  ;;  %v5734_v62 = vor.u32 %v6889_v58, %v5733_v57  ;;  %v5589_v63 = vld [vmem:[%s10475_s3 + $0x180] sm:$0xf]  ;;  %v1738_v39 = vadd.f32 %v8657_v43, %v1725_v20  ;;  %v6873_v58 = vld [vmem:[%s10475_s3 + $0x22c] sm:$0xf0] }
 0x117   :  { %2005 = vmatpush.bf16.msrb.mxu3 %v5266_v44  ;;  %v5199_v2 = vld [vmem:[%s10473_s1 + $0x678] sm:$0xf0]  ;;  %1980 = vmatpush.bf16.msrb.mxu1 %v4722_v54  ;;  %v6893_v44 = vld [vmem:[%s10475_s3 + $0x2cc] sm:$0xf0]  ;;  %v5669_v57 = vld [vmem:[%s10475_s3 + $0x220] sm:$0xf] }
 0x118   :  { %v6550_v4 = vld [vmem:[%s10473_s1 + $0x1c] sm:$0xf]  ;;  %v5202_v12 = vor.u32 %v6750_v0, %v5199_v2  ;;  %v5750_v52 = vor.u32 %v6893_v44, %v5749_v42  ;;  %v6825_v54 = vld [vmem:[%s10475_s3 + $0xac] sm:$0xf0]  ;;  %v5717_v2 = vld [vmem:[%s10475_s3 + $0x280] sm:$0xf] }
 0x119   :  { %v4399_v5 = vld [vmem:[%s10473_s1 + $0x38] sm:$0xf0]  ;;  %1993 = vmatpush.bf16.msrb.mxu2 %v4978_v55  ;;  %1968 = vmatpush.bf16.msrb.mxu0 %v4434_v3  ;;  %v5605_v55 = vld [vmem:[%s10475_s3 + $0x1a0] sm:$0xf]  ;;  %v6853_v0 = vld [vmem:[%s10475_s3 + $0x18c] sm:$0xf0] }
 0x11a   :  { %v6614_v8 = vld [vmem:[%s10473_s1 + $0x21c] sm:$0xf]  ;;  %v4402_v23 = vor.u32 %v6550_v4, %v4399_v5  ;;  %v5606_v61 = vor.u32 %v6857_v56, %v5605_v55  ;;  %v6885_v3 = vld [vmem:[%s10475_s3 + $0x28c] sm:$0xf0]  ;;  %v6277_v20 = vld [vmem:[%s10475_s3 + $0x6e0] sm:$0xf] }
 0x11b   :  { %v4655_v9 = vld [vmem:[%s10473_s1 + $0x238] sm:$0xf0]  ;;  %2006 = vmatpush.bf16.msrb.mxu3 %v5234_v60  ;;  %1981 = vmatpush.bf16.msrb.mxu1 %v4690_v6  ;;  %v6921_v60 = vld [vmem:[%s10475_s3 + $0x3ac] sm:$0xf0]  ;;  %v5845_v6 = vld [vmem:[%s10475_s3 + $0x380] sm:$0xf] }
 0x11c   :  { %v6678_v10 = vld [vmem:[%s10473_s1 + $0x41c] sm:$0xf]  ;;  %v4658_v27 = vor.u32 %v6614_v8, %v4655_v9  ;;  %v5862_v4 = vor.u32 %v6921_v60, %v5861_v59  ;;  %v5590_v9 = vor.u32 %v6853_v0, %v5589_v63  ;;  %v6841_v56 = vld [vmem:[%s10475_s3 + $0x12c] sm:$0xf0] }
 0x11d   :  { %v4911_v13 = vld [vmem:[%s10473_s1 + $0x438] sm:$0xf0]  ;;  %1994 = vmatpush.bf16.msrb.mxu2 %v4946_v7  ;;  %1969 = vmatpush.bf16.msrb.mxu0 %v4402_v23  ;;  %v6917_v7 = vld [vmem:[%s10475_s3 + $0x38c] sm:$0xf0]  ;;  %v1763_v8 = vpop.f32.mrf.mxu0  ;;  %v8847_v23 = vld [vmem:[%s10476_s2] sm:$0xff] }
 0x11e   :  { %v6742_v14 = vld [vmem:[%s10473_s1 + $0x61c] sm:$0xf]  ;;  %v4914_v29 = vor.u32 %v6678_v10, %v4911_v13  ;;  %v5718_v10 = vor.u32 %v6885_v3, %v5717_v2  ;;  %v5573_v13 = vld [vmem:[%s10475_s3 + $0x160] sm:$0xf]  ;;  %v5846_v24 = vor.u32 %v6917_v7, %v5845_v6  ;;  %v2043_v41 = vperm.slane %v8847_v23, 0 }
 0x11f   :  { %v5167_v17 = vld [vmem:[%s10473_s1 + $0x638] sm:$0xf0]  ;;  %2007 = vmatpush.bf16.msrb.mxu3 %v5202_v12  ;;  %1982 = vmatpush.bf16.msrb.mxu1 %v4658_v27  ;;  %v6817_v12 = vld [vmem:[%s10475_s3 + $0x6c] sm:$0xf0]  ;;  %v2044_v42 = vperm.slane %v8847_v23, 1  ;;  %v2046_v60 = vperm.slane %v8847_v23, 3 }
 0x120   :  { %v5170_v32 = vor.u32 %v6742_v14, %v5167_v17  ;;  %1970 = vmatmul.bf16.vlgmr.msrb.gmra.mxu0 %v7451_v30  ;;  %v5878_v30 = vor.u32 %v6925_v50, %v5877_v48  ;;  %v1776_v14 = vpop.f32.mrf.mxu1  ;;  %v6849_v17 = vld [vmem:[%s10475_s3 + $0x16c] sm:$0xf0]  ;;  %v5446_v25 = vor.u32 %v6817_v12, %v5445_v11  ;;  %v5525_v3 = vld [vmem:[%s10475_s3 + $0x100] sm:$0xf] }
 0x121   :  { %1995 = vmatpush.bf16.msrb.mxu2 %v4914_v29  ;;  %3629 = vmatpush.bf16.msra.mxu0 %v5510_v33  ;;  %v1777_v21 = vadd.f32 %v1776_v14, %v1763_v8  ;;  %v6913_v27 = vld [vmem:[%s10475_s3 + $0x36c] sm:$0xf0]  ;;  %v5574_v22 = vor.u32 %v6849_v17, %v5573_v13  ;;  %v5429_v29 = vld [vmem:[%s10475_s3 + $0x40] sm:$0xf]  ;;  %v2060_v6 = vadd.f32 %v2044_v42, %v8470_v1 }
 0x122   :  { %1983 = vmatmul.bf16.vlgmr.msrb.gmra.mxu1 %v7453_v31  ;;  %v5478_v31 = vor.u32 %v6825_v54, %v5477_v53  ;;  %v5557_v33 = vld [vmem:[%s10475_s3 + $0x140] sm:$0xf]  ;;  %v5830_v44 = vor.u32 %v6913_v27, %v5829_v26  ;;  %v6909_v48 = vld [vmem:[%s10475_s3 + $0x34c] sm:$0xf0] }
 0x123   :  { %2008 = vmatpush.bf16.msrb.mxu3 %v5170_v32  ;;  %3642 = vmatpush.bf16.msra.mxu1 %v5638_v36  ;;  %v6813_v32 = vld [vmem:[%s10475_s3 + $0x4c] sm:$0xf0]  ;;  %v5685_v36 = vld [vmem:[%s10475_s3 + $0x240] sm:$0xf]  ;;  %v5558_v43 = vor.u32 %v6845_v35, %v5557_v33 }
 0x124   :  { %1996 = vmatmul.bf16.vlgmr.msrb.gmra.mxu2 %v7425_v15  ;;  %v5461_v15 = vld [vmem:[%s10475_s3 + $0x80] sm:$0xf]  ;;  %v6809_v53 = vld [vmem:[%s10475_s3 + $0x2c] sm:$0xf0] }
 0x125   :  { %3655 = vmatpush.bf16.msra.mxu2 %v5766_v37  ;;  %3630 = vmatpush.bf16.msra.mxu0 %v5494_v46  ;;  %v6877_v37 = vld [vmem:[%s10475_s3 + $0x24c] sm:$0xf0]  ;;  %v5813_v46 = vld [vmem:[%s10475_s3 + $0x340] sm:$0xf]  ;;  %v1765_v50 = vpop.f32.mrf.mxu0 }
 0x126   :  { %2009 = vmatmul.bf16.vlgmr.msrb.gmra.mxu3 %v7427_v16  ;;  %v6821_v16 = vld [vmem:[%s10475_s3 + $0x8c] sm:$0xf0]  ;;  %v5541_v54 = vld [vmem:[%s10475_s3 + $0x120] sm:$0xf] }
 0x127   :  { %3668 = vmatpush.bf16.msra.mxu3 %v5894_v45  ;;  %3643 = vmatpush.bf16.msra.mxu1 %v5622_v51  ;;  %v5462_v5 = vor.u32 %v6821_v16, %v5461_v15  ;;  %v1789_v34 = vpop.f32.mrf.mxu2  ;;  %v5430_v45 = vor.u32 %v6813_v32, %v5429_v29  ;;  %v5686_v51 = vor.u32 %v6877_v37, %v5685_v36  ;;  %v5797_v16 = vld [vmem:[%s10475_s3 + $0x320] sm:$0xf]  ;;  %v6905_v63 = vld [vmem:[%s10475_s3 + $0x32c] sm:$0xf0] }
 0x128   :  { %v1790_v40 = vadd.f32 %v1789_v34, %v1777_v21  ;;  %v1778_v55 = vpop.f32.mrf.mxu1  ;;  %v5542_v0 = vor.u32 %v6841_v56, %v5541_v54  ;;  %v6805_v2 = vld [vmem:[%s10475_s3 + $0xc] sm:$0xf0]  ;;  %v5653_v7 = vld [vmem:[%s10475_s3 + $0x200] sm:$0xf]  ;;  %v5798_v18 = vor.u32 %v6905_v63, %v5797_v16 }
 0x129   :  { %3656 = vmatpush.bf16.msra.mxu2 %v5750_v52  ;;  %3631 = vmatpush.bf16.msra.mxu0 %v5478_v31  ;;  %v1802_v38 = vpop.f32.mrf.mxu3  ;;  %v5413_v52 = vld [vmem:[%s10475_s3 + $0x20] sm:$0xf]  ;;  %v2045_v31 = vperm.slane %v8847_v23, 2  ;;  %v6869_v8 = vld [vmem:[%s10475_s3 + $0x20c] sm:$0xf0] }
 0x12a   :  { %v1803_v59 = vadd.f32 %v1802_v38, %v1790_v40  ;;  %v5414_v15 = vor.u32 %v6809_v53, %v5413_v52  ;;  %v6961_v13 = vld [vmem:[%s10475_s3 + $0x4ec] sm:$0xf0]  ;;  %v6149_v1 = vld [vmem:[%s10475_s3 + $0x5e0] sm:$0xf] }
 0x12b   :  { %3669 = vmatpush.bf16.msra.mxu3 %v5878_v30  ;;  %3644 = vmatpush.bf16.msra.mxu1 %v5606_v61  ;;  %v1751_v30 = vadd.f32 %v8668_v49, %v1738_v39  ;;  %v2059_v61 = vadd.f32 %v2043_v41, %v8338_v47  ;;  %v5397_v49 = vld [vmem:[%s10475_s3] sm:$0xf]  ;;  %v5670_v47 = vor.u32 %v6873_v58, %v5669_v57  ;;  %v6993_v14 = vld [vmem:[%s10475_s3 + $0x5ec] sm:$0xf0] }
 0x12c   :  { %v2062_v12 = vadd.f32 %v2046_v60, %v1803_v59  ;;  %v5398_v19 = vor.u32 %v6805_v2, %v5397_v49  ;;  %v6901_v26 = vld [vmem:[%s10475_s3 + $0x30c] sm:$0xf0]  ;;  %v6150_v29 = vor.u32 %v6993_v14, %v6149_v1  ;;  %v6005_v32 = vld [vmem:[%s10475_s3 + $0x4c0] sm:$0xf] }
 0x12d   :  { %3657 = vmatpush.bf16.msra.mxu2 %v5734_v62  ;;  %3632 = vmatpush.bf16.msra.mxu0 %v5462_v5  ;;  %v5814_v62 = vor.u32 %v6909_v48, %v5813_v46  ;;  %v2061_v11 = vadd.f32 %v2045_v31, %v1751_v30  ;;  %v2067_v17 = vmax.f32 %v2059_v61, 0.0  ;;  %v7025_v27 = vld [vmem:[%s10475_s3 + $0x6ec] sm:$0xf0]  ;;  %v6133_v36 = vld [vmem:[%s10475_s3 + $0x5c0] sm:$0xf] }
 0x12e   :  { %v6957_v33 = vld [vmem:[%s10475_s3 + $0x4cc] sm:$0xf0]  ;;  %v2070_v35 = vmax.f32 %v2062_v12, 0.0  ;;  %v6278_v38 = vor.u32 %v7025_v27, %v6277_v20  ;;  %v6261_v40 = vld [vmem:[%s10475_s3 + $0x6c0] sm:$0xf] }
 0x12f   :  { %3670 = vmatpush.bf16.msra.mxu3 %v5862_v4  ;;  %3645 = vmatpush.bf16.msra.mxu1 %v5590_v9  ;;  %v6837_v4 = vld [vmem:[%s10475_s3 + $0x10c] sm:$0xf0]  ;;  %v1791_v5 = vpop.f32.mrf.mxu2  ;;  %v6021_v9 = vld [vmem:[%s10475_s3 + $0x4e0] sm:$0xf]  ;;  %v2069_v34 = vmax.f32 %v2061_v11, 0.0  ;;  %v8971_v42 = vpack.c.bf16 %v2067_v17, %v2067_v17 }
 0x130   :  { %v5526_v21 = vor.u32 %v6837_v4, %v5525_v3  ;;  %v6989_v37 = vld [vmem:[%s10475_s3 + $0x5cc] sm:$0xf0]  ;;  %v5989_v48 = vld [vmem:[%s10475_s3 + $0x4a0] sm:$0xf] }
 0x131   :  { %3658 = vmatpush.bf16.msra.mxu2 %v5718_v10  ;;  %3633 = vmatpush.bf16.msra.mxu0 %v5446_v25  ;;  %v1804_v10 = vpop.f32.mrf.mxu3  ;;  %v5781_v25 = vld [vmem:[%s10475_s3 + $0x300] sm:$0xf]  ;;  %v7021_v41 = vld [vmem:[%s10475_s3 + $0x6cc] sm:$0xf0]  ;;  %v6134_v46 = vor.u32 %v6989_v37, %v6133_v36  ;;  %v8978_v50 = vpack.c.bf16 %v2069_v34, %v2069_v34 }
 0x132   :  { %v5782_v39 = vor.u32 %v6901_v26, %v5781_v25  ;;  %v6117_v52 = vld [vmem:[%s10475_s3 + $0x5a0] sm:$0xf]  ;;  %v6985_v53 = vld [vmem:[%s10475_s3 + $0x5ac] sm:$0xf0]  ;;  %v6262_v54 = vor.u32 %v7021_v41, %v6261_v40 }
 0x133   :  { %3671 = vmatpush.bf16.msra.mxu3 %v5846_v24  ;;  %3646 = vmatpush.bf16.msra.mxu1 %v5574_v22  ;;  %v5654_v24 = vor.u32 %v6869_v8, %v5653_v7  ;;  %v2068_v22 = vmax.f32 %v2060_v6, 0.0  ;;  %v6245_v55 = vld [vmem:[%s10475_s3 + $0x6a0] sm:$0xf]  ;;  %v7017_v56 = vld [vmem:[%s10475_s3 + $0x6ac] sm:$0xf0]  ;;  %v6118_v58 = vor.u32 %v6985_v53, %v6117_v52 }
 0x134   :  { %v5973_v30 = vld [vmem:[%s10475_s3 + $0x480] sm:$0xf]  ;;  %v6949_v31 = vld [vmem:[%s10475_s3 + $0x48c] sm:$0xf0]  ;;  %v6246_v61 = vor.u32 %v7017_v56, %v6245_v55  ;;  %v5511_v52 = vld [vmem:[%s10475_s3 + $0xf0] sm:$0xf0] }
 0x135   :  { %3659 = vmatpush.bf16.msra.mxu2 %v5702_v28  ;;  %3634 = vmatpush.bf16.msra.mxu0 %v5430_v45  ;;  %v6022_v28 = vor.u32 %v6961_v13, %v6021_v9  ;;  %v6006_v45 = vor.u32 %v6957_v33, %v6005_v32  ;;  %v6101_v59 = vld [vmem:[%s10475_s3 + $0x580] sm:$0xf]  ;;  %v6981_v60 = vld [vmem:[%s10475_s3 + $0x58c] sm:$0xf0]  ;;  %v5974_v16 = vor.u32 %v6949_v31, %v5973_v30  ;;  %v6863_v53 = vld [vmem:[%s10475_s3 + $0x1e4] sm:$0xf] }
 0x136   :  { %v6102_v63 = vor.u32 %v6981_v60, %v6101_v59  ;;  %v5957_v49 = vld [vmem:[%s10475_s3 + $0x460] sm:$0xf]  ;;  %v6977_v3 = vld [vmem:[%s10475_s3 + $0x56c] sm:$0xf0]  ;;  %v5639_v56 = vld [vmem:[%s10475_s3 + $0x1f0] sm:$0xf0] }
 0x137   :  { %3672 = vmatpush.bf16.msra.mxu3 %v5830_v44  ;;  %3647 = vmatpush.bf16.msra.mxu1 %v5558_v43  ;;  %v8973_v44 = vpack.c.bf16 %v2068_v22, %v2068_v22  ;;  %v8980_v43 = vpack.c.bf16 %v2070_v35, %v2070_v35  ;;  %v6085_v2 = vld [vmem:[%s10475_s3 + $0x560] sm:$0xf]  ;;  %v7009_v8 = vld [vmem:[%s10475_s3 + $0x66c] sm:$0xf0] }
 0x138   :  { %v6213_v7 = vld [vmem:[%s10475_s3 + $0x660] sm:$0xf]  ;;  %v6086_v10 = vor.u32 %v6977_v3, %v6085_v2  ;;  %v6941_v13 = vld [vmem:[%s10475_s3 + $0x44c] sm:$0xf0]  ;;  %v5495_v2 = vld [vmem:[%s10475_s3 + $0xd0] sm:$0xf0] }
 0x139   :  { %3660 = vmatpush.bf16.msra.mxu2 %v5686_v51  ;;  %3635 = vmatpush.bf16.msra.mxu0 %v5414_v15  ;;  %v6953_v51 = vld [vmem:[%s10475_s3 + $0x4ac] sm:$0xf0]  ;;  %v5941_v11 = vld [vmem:[%s10475_s3 + $0x440] sm:$0xf]  ;;  %v6214_v17 = vor.u32 %v7009_v8, %v6213_v7  ;;  %v6859_v3 = vld [vmem:[%s10475_s3 + $0x1c4] sm:$0xf] }
 0x13a   :  { %v5990_v57 = vor.u32 %v6953_v51, %v5989_v48  ;;  %v7013_v15 = vld [vmem:[%s10475_s3 + $0x68c] sm:$0xf0]  ;;  %v6069_v1 = vld [vmem:[%s10475_s3 + $0x540] sm:$0xf]  ;;  %v5942_v25 = vor.u32 %v6941_v13, %v5941_v11  ;;  %v6831_v51 = vld [vmem:[%s10475_s3 + $0xe4] sm:$0xf] }
 0x13b   :  { %3673 = vmatpush.bf16.msra.mxu3 %v5814_v62  ;;  %3648 = vmatpush.bf16.msra.mxu1 %v5542_v0  ;;  %v6229_v62 = vld [vmem:[%s10475_s3 + $0x680] sm:$0xf]  ;;  %v6973_v14 = vld [vmem:[%s10475_s3 + $0x54c] sm:$0xf0]  ;;  %v6891_v11 = vld [vmem:[%s10475_s3 + $0x2c4] sm:$0xf] }
 0x13c   :  { %v6230_v5 = vor.u32 %v7013_v15, %v6229_v62  ;;  %v6197_v20 = vld [vmem:[%s10475_s3 + $0x640] sm:$0xf]  ;;  %v6070_v26 = vor.u32 %v6973_v14, %v6069_v1  ;;  %v6969_v33 = vld [vmem:[%s10475_s3 + $0x52c] sm:$0xf0]  ;;  %v6823_v14 = vld [vmem:[%s10475_s3 + $0xa4] sm:$0xf] }
 0x13d   :  { %3661 = vmatpush.bf16.msra.mxu2 %v5670_v47  ;;  %3636 = vmatpush.bf16.msra.mxu0 %v5398_v19  ;;  %v1815_v0 = vpop.f32.mrf.mxu0  ;;  %v6945_v47 = vld [vmem:[%s10475_s3 + $0x46c] sm:$0xf0]  ;;  %v5925_v22 = vld [vmem:[%s10475_s3 + $0x420] sm:$0xf] }
 0x13e   :  { %v5958_v9 = vor.u32 %v6945_v47, %v5957_v49  ;;  %v6053_v32 = vld [vmem:[%s10475_s3 + $0x520] sm:$0xf]  ;;  %v7001_v37 = vld [vmem:[%s10475_s3 + $0x62c] sm:$0xf0]  ;;  %v5514_v49 = vor.u32 %v6831_v51, %v5511_v52  ;;  %v6827_v47 = vld [vmem:[%s10475_s3 + $0xc4] sm:$0xf] }
 0x13f   :  { %3674 = vmatpush.bf16.msra.mxu3 %v5798_v18  ;;  %3649 = vmatpush.bf16.msra.mxu1 %v5526_v21  ;;  %v1828_v4 = vpop.f32.mrf.mxu1  ;;  %v7005_v21 = vld [vmem:[%s10475_s3 + $0x64c] sm:$0xf0]  ;;  %v6181_v36 = vld [vmem:[%s10475_s3 + $0x620] sm:$0xf]  ;;  %v6054_v41 = vor.u32 %v6969_v33, %v6053_v32  ;;  %v5498_v13 = vor.u32 %v6827_v47, %v5495_v2  ;;  %v5463_v32 = vld [vmem:[%s10475_s3 + $0x90] sm:$0xf0] }
 0x140   :  { %3637 = vmatmul.bf16.vlgmr.msra.gmra.mxu0 %v8971_v42  ;;  %v1829_v6 = vadd.f32 %v1828_v4, %v1815_v0  ;;  %v6198_v35 = vor.u32 %v7005_v21, %v6197_v20  ;;  %v6965_v48 = vld [vmem:[%s10475_s3 + $0x50c] sm:$0xf0]  ;;  %v6182_v55 = vor.u32 %v7001_v37, %v6181_v36  ;;  %v6165_v59 = vld [vmem:[%s10475_s3 + $0x600] sm:$0xf]  ;;  %v5642_v0 = vor.u32 %v6863_v53, %v5639_v56  ;;  %v5623_v4 = vld [vmem:[%s10475_s3 + $0x1d0] sm:$0xf0] }
 0x141   :  { %3662 = vmatpush.bf16.msra.mxu2 %v5654_v24  ;;  %3681 = vmatpush.bf16.msrb.mxu0 %v6022_v28  ;;  %v2047_v24 = vperm.slane %v8847_v23, 4  ;;  %v7057_v30 = vld [vmem:[%s10475_s3 + $0x7ec] sm:$0xf0]  ;;  %v6389_v8 = vld [vmem:[%s10475_s3 + $0x7c0] sm:$0xf]  ;;  %v5626_v1 = vor.u32 %v6859_v3, %v5623_v4 }
 0x142   :  { %3650 = vmatmul.bf16.vlgmr.msra.gmra.mxu1 %v8973_v44  ;;  %v6997_v60 = vld [vmem:[%s10475_s3 + $0x60c] sm:$0xf0]  ;;  %v6373_v20 = vld [vmem:[%s10475_s3 + $0x7a0] sm:$0xf]  ;;  %v6851_v33 = vld [vmem:[%s10475_s3 + $0x184] sm:$0xf] }
 0x143   :  { %3694 = vmatpush.bf16.msrb.mxu1 %v6150_v29  ;;  %3675 = vmatpush.bf16.msra.mxu3 %v5782_v39  ;;  %v6937_v29 = vld [vmem:[%s10475_s3 + $0x42c] sm:$0xf0]  ;;  %v5909_v39 = vld [vmem:[%s10475_s3 + $0x400] sm:$0xf]  ;;  %v6847_v51 = vld [vmem:[%s10475_s3 + $0x164] sm:$0xf] }
 0x144   :  { %3663 = vmatmul.bf16.vlgmr.msra.gmra.mxu2 %v8978_v50  ;;  %v5926_v40 = vor.u32 %v6937_v29, %v5925_v22  ;;  %v7049_v21 = vld [vmem:[%s10475_s3 + $0x7ac] sm:$0xf0]  ;;  %v6819_v29 = vld [vmem:[%s10475_s3 + $0x84] sm:$0xf]  ;;  %v5575_v53 = vld [vmem:[%s10475_s3 + $0x170] sm:$0xf0] }
 0x145   :  { %3707 = vmatpush.bf16.msrb.mxu2 %v6278_v38  ;;  %3682 = vmatpush.bf16.msrb.mxu0 %v6006_v45  ;;  %v1817_v28 = vpop.f32.mrf.mxu0  ;;  %v6933_v45 = vld [vmem:[%s10475_s3 + $0x40c] sm:$0xf0]  ;;  %v6325_v47 = vld [vmem:[%s10475_s3 + $0x740] sm:$0xf] }
 0x146   :  { %3676 = vmatmul.bf16.vlgmr.msra.gmra.mxu3 %v8980_v43  ;;  %v5910_v62 = vor.u32 %v6933_v45, %v5909_v39  ;;  %v7045_v36 = vld [vmem:[%s10475_s3 + $0x78c] sm:$0xf0]  ;;  %v6883_v39 = vld [vmem:[%s10475_s3 + $0x284] sm:$0xf] }
 0x147   :  { %3695 = vmatpush.bf16.msrb.mxu1 %v6134_v46  ;;  %v1841_v12 = vpop.f32.mrf.mxu2  ;;  %v1830_v34 = vpop.f32.mrf.mxu1  ;;  %v6037_v46 = vld [vmem:[%s10475_s3 + $0x500] sm:$0xf]  ;;  %v7037_v2 = vld [vmem:[%s10475_s3 + $0x74c] sm:$0xf0] }
 0x148   :  { %v1842_v18 = vadd.f32 %v1841_v12, %v1829_v6  ;;  %v6038_v15 = vor.u32 %v6965_v48, %v6037_v46  ;;  %v5751_v12 = vld [vmem:[%s10475_s3 + $0x2d0] sm:$0xf0]  ;;  %v6815_v46 = vld [vmem:[%s10475_s3 + $0x64] sm:$0xf] }
 0x149   :  { %3708 = vmatpush.bf16.msrb.mxu2 %v6262_v54  ;;  %3683 = vmatpush.bf16.msrb.mxu0 %v5990_v57  ;;  %v1854_v19 = vpop.f32.mrf.mxu3  ;;  %v5591_v34 = vld [vmem:[%s10475_s3 + $0x190] sm:$0xf0] }
 0x14a   :  { %v1855_v27 = vadd.f32 %v1854_v19, %v1842_v18  ;;  %v6855_v18 = vld [vmem:[%s10475_s3 + $0x1a4] sm:$0xf]  ;;  %v5607_v19 = vld [vmem:[%s10475_s3 + $0x1b0] sm:$0xf0]  ;;  %v5594_v45 = vor.u32 %v6851_v33, %v5591_v34 }
 0x14b   :  { %3696 = vmatpush.bf16.msrb.mxu1 %v6118_v58  ;;  %v6405_v58 = vld [vmem:[%s10475_s3 + $0x7e0] sm:$0xf]  ;;  %v5610_v28 = vor.u32 %v6855_v18, %v5607_v19  ;;  %v5447_v48 = vld [vmem:[%s10475_s3 + $0x70] sm:$0xf0] }
 0x14c   :  { %v2063_v38 = vadd.f32 %v2047_v24, %v1855_v27  ;;  %v5754_v24 = vor.u32 %v6891_v11, %v5751_v12  ;;  %v5735_v27 = vld [vmem:[%s10475_s3 + $0x2b0] sm:$0xf0]  ;;  %v6807_v12 = vld [vmem:[%s10475_s3 + $0x24] sm:$0xf] }
 0x14d   :  { %3709 = vmatpush.bf16.msrb.mxu2 %v6246_v61  ;;  %3684 = vmatpush.bf16.msrb.mxu0 %v5974_v16  ;;  %v6406_v61 = vor.u32 %v7057_v30, %v6405_v58  ;;  %v6895_v16 = vld [vmem:[%s10475_s3 + $0x2e4] sm:$0xf] }
 0x14e   :  { %v2071_v31 = vmax.f32 %v2063_v38, 0.0 }
 0x14f   :  { %3697 = vmatpush.bf16.msrb.mxu1 %v6102_v63  ;;  %v1843_v54 = vpop.f32.mrf.mxu2  ;;  %v5767_v63 = vld [vmem:[%s10475_s3 + $0x2f0] sm:$0xf0]  ;;  %3720 = vmatpush.bf16.msrb.mxu3 %v6406_v61  ;;  %v5578_v61 = vor.u32 %v6847_v51, %v5575_v53 }
 0x150   :  { %v9128_v6 = vpack.c.bf16 %v2071_v31, %v2071_v31  ;;  %v5770_v7 = vor.u32 %v6895_v16, %v5767_v63  ;;  %v6341_v54 = vld [vmem:[%s10475_s3 + $0x760] sm:$0xf]  ;;  %v6879_v31 = vld [vmem:[%s10475_s3 + $0x264] sm:$0xf]  ;;  %v5559_v63 = vld [vmem:[%s10475_s3 + $0x150] sm:$0xf0] }
 0x151   :  { %3710 = vmatpush.bf16.msrb.mxu2 %v6230_v5  ;;  %3685 = vmatpush.bf16.msrb.mxu0 %v5958_v9  ;;  %v1856_v57 = vpop.f32.mrf.mxu3  ;;  %v6166_v5 = vor.u32 %v6997_v60, %v6165_v59  ;;  %v7053_v9 = vld [vmem:[%s10475_s3 + $0x7cc] sm:$0xf0]  ;;  %v5703_v59 = vld [vmem:[%s10475_s3 + $0x270] sm:$0xf0]  ;;  %v5450_v60 = vor.u32 %v6815_v46, %v5447_v48  ;;  %v6843_v16 = vld [vmem:[%s10475_s3 + $0x144] sm:$0xf] }
 0x152   :  { %v5562_v11 = vor.u32 %v6843_v16, %v5559_v63  ;;  %v6135_v16 = vld [vmem:[%s10475_s3 + $0x5d0] sm:$0xf0] }
 0x153   :  { %3698 = vmatpush.bf16.msrb.mxu1 %v6086_v10  ;;  %v6390_v10 = vor.u32 %v7053_v9, %v6389_v8  ;;  %v6875_v8 = vld [vmem:[%s10475_s3 + $0x244] sm:$0xf]  ;;  %v5687_v9 = vld [vmem:[%s10475_s3 + $0x250] sm:$0xf0] }
 0x155   :  { %3711 = vmatpush.bf16.msrb.mxu2 %v6214_v17  ;;  %3686 = vmatpush.bf16.msrb.mxu0 %v5942_v25  ;;  %v5479_v17 = vld [vmem:[%s10475_s3 + $0xb0] sm:$0xf0]  ;;  %v6374_v25 = vor.u32 %v7049_v21, %v6373_v20  ;;  %v5690_v20 = vor.u32 %v6875_v8, %v5687_v9  ;;  %v6309_v21 = vld [vmem:[%s10475_s3 + $0x720] sm:$0xf]  ;;  %v6919_v9 = vld [vmem:[%s10475_s3 + $0x3a4] sm:$0xf] }
 0x156   :  { %3721 = vmatpush.bf16.msrb.mxu3 %v6390_v10  ;;  %v5482_v22 = vor.u32 %v6823_v14, %v5479_v17  ;;  %v6839_v14 = vld [vmem:[%s10475_s3 + $0x124] sm:$0xf]  ;;  %v5543_v17 = vld [vmem:[%s10475_s3 + $0x130] sm:$0xf0] }
 0x157   :  { %3699 = vmatpush.bf16.msrb.mxu1 %v6070_v26  ;;  %v6887_v26 = vld [vmem:[%s10475_s3 + $0x2a4] sm:$0xf]  ;;  %v5546_v34 = vor.u32 %v6839_v14, %v5543_v17  ;;  %v6119_v8 = vld [vmem:[%s10475_s3 + $0x5b0] sm:$0xf0] }
 0x158   :  { %v5738_v37 = vor.u32 %v6887_v26, %v5735_v27  ;;  %v6803_v26 = vld [vmem:[%s10475_s3 + $0x4] sm:$0xf]  ;;  %v5399_v27 = vld [vmem:[%s10475_s3 + $0x10] sm:$0xf0] }
 0x159   :  { %3712 = vmatpush.bf16.msrb.mxu2 %v6198_v35  ;;  %3687 = vmatpush.bf16.msrb.mxu0 %v5926_v40  ;;  %v6357_v35 = vld [vmem:[%s10475_s3 + $0x780] sm:$0xf]  ;;  %v5719_v40 = vld [vmem:[%s10475_s3 + $0x290] sm:$0xf0]  ;;  %v6979_v17 = vld [vmem:[%s10475_s3 + $0x584] sm:$0xf] }
 0x15a   :  { %3722 = vmatpush.bf16.msrb.mxu3 %v6374_v25  ;;  %v6358_v38 = vor.u32 %v7045_v36, %v6357_v35  ;;  %v5722_v57 = vor.u32 %v6883_v39, %v5719_v40  ;;  %v5527_v35 = vld [vmem:[%s10475_s3 + $0x110] sm:$0xf0]  ;;  %v6959_v36 = vld [vmem:[%s10475_s3 + $0x4e4] sm:$0xf]  ;;  %v6293_v39 = vld [vmem:[%s10475_s3 + $0x700] sm:$0xf] }
 0x15b   :  { %3700 = vmatpush.bf16.msrb.mxu1 %v6054_v41  ;;  %v5466_v41 = vor.u32 %v6819_v29, %v5463_v32  ;;  %v6871_v29 = vld [vmem:[%s10475_s3 + $0x224] sm:$0xf]  ;;  %v5671_v32 = vld [vmem:[%s10475_s3 + $0x230] sm:$0xf0]  ;;  %v7029_v40 = vld [vmem:[%s10475_s3 + $0x70c] sm:$0xf0] }
 0x15c   :  { %v5674_v48 = vor.u32 %v6871_v29, %v5671_v32  ;;  %v6294_v51 = vor.u32 %v7029_v40, %v6293_v39  ;;  %v5975_v14 = vld [vmem:[%s10475_s3 + $0x490] sm:$0xf0]  ;;  %v6911_v32 = vld [vmem:[%s10475_s3 + $0x364] sm:$0xf] }
 0x15d   :  { %3713 = vmatpush.bf16.msrb.mxu2 %v6182_v55  ;;  %3688 = vmatpush.bf16.msrb.mxu0 %v5910_v62  ;;  %v1867_v52 = vpop.f32.mrf.mxu0  ;;  %v7041_v55 = vld [vmem:[%s10475_s3 + $0x76c] sm:$0xf0]  ;;  %v6811_v62 = vld [vmem:[%s10475_s3 + $0x44] sm:$0xf]  ;;  %v5943_v40 = vld [vmem:[%s10475_s3 + $0x450] sm:$0xf0] }
 0x15e   :  { %3723 = vmatpush.bf16.msrb.mxu3 %v6358_v38  ;;  %v6342_v58 = vor.u32 %v7041_v55, %v6341_v54  ;;  %v5655_v55 = vld [vmem:[%s10475_s3 + $0x210] sm:$0xf0]  ;;  %v6939_v39 = vld [vmem:[%s10475_s3 + $0x444] sm:$0xf] }
 0x15f   :  { %3701 = vmatpush.bf16.msrb.mxu1 %v6038_v15  ;;  %v1880_v56 = vpop.f32.mrf.mxu1  ;;  %v5431_v15 = vld [vmem:[%s10475_s3 + $0x50] sm:$0xf0] }
 0x160   :  { %3689 = vmatmul.bf16.vlgmr.msrb.gmra.mxu0 %v9128_v6  ;;  %v1881_v30 = vadd.f32 %v1880_v56, %v1867_v52  ;;  %v5434_v10 = vor.u32 %v6811_v62, %v5431_v15  ;;  %v6867_v52 = vld [vmem:[%s10475_s3 + $0x204] sm:$0xf]  ;;  %v6007_v62 = vld [vmem:[%s10475_s3 + $0x4d0] sm:$0xf0] }
 0x161   :  { %3733 = vmatpush.bf16.msra.mxu0 %v5514_v49  ;;  %3714 = vmatpush.bf16.msrb.mxu2 %v6166_v5  ;;  %v2048_v5 = vperm.slane %v8847_v23, 5  ;;  %v6927_v56 = vld [vmem:[%s10475_s3 + $0x3e4] sm:$0xf]  ;;  %v5658_v63 = vor.u32 %v6867_v52, %v5655_v55 }
 0x162   :  { %3724 = vmatpush.bf16.msrb.mxu3 %v6342_v58  ;;  %v5402_v58 = vor.u32 %v6803_v26, %v5399_v27  ;;  %v6987_v15 = vld [vmem:[%s10475_s3 + $0x5c4] sm:$0xf]  ;;  %v5959_v27 = vld [vmem:[%s10475_s3 + $0x470] sm:$0xf0] }
 0x163   :  { %3746 = vmatpush.bf16.msra.mxu1 %v5642_v0  ;;  %v5706_v0 = vor.u32 %v6879_v31, %v5703_v59  ;;  %v6943_v26 = vld [vmem:[%s10475_s3 + $0x464] sm:$0xf] }
 0x165   :  { %3759 = vmatpush.bf16.msra.mxu2 %v5770_v7  ;;  %3734 = vmatpush.bf16.msra.mxu0 %v5498_v13  ;;  %v6326_v7 = vor.u32 %v7037_v2, %v6325_v47  ;;  %v1869_v18 = vpop.f32.mrf.mxu0 }
 0x166   :  { %v6103_v18 = vld [vmem:[%s10475_s3 + $0x590] sm:$0xf0] }
 0x167   :  { %3747 = vmatpush.bf16.msra.mxu1 %v5626_v1  ;;  %v1893_v49 = vpop.f32.mrf.mxu2  ;;  %v5415_v1 = vld [vmem:[%s10475_s3 + $0x30] sm:$0xf0]  ;;  %3725 = vmatpush.bf16.msrb.mxu3 %v6326_v7  ;;  %v1882_v19 = vpop.f32.mrf.mxu1  ;;  %v6983_v7 = vld [vmem:[%s10475_s3 + $0x5a4] sm:$0xf] }
 0x168   :  { %v1894_v3 = vadd.f32 %v1893_v49, %v1881_v30  ;;  %v5418_v33 = vor.u32 %v6807_v12, %v5415_v1  ;;  %v6923_v49 = vld [vmem:[%s10475_s3 + $0x3c4] sm:$0xf] }
 0x169   :  { %3760 = vmatpush.bf16.msra.mxu2 %v5754_v24  ;;  %3735 = vmatpush.bf16.msra.mxu0 %v5482_v22  ;;  %v1906_v4 = vpop.f32.mrf.mxu3  ;;  %v7033_v24 = vld [vmem:[%s10475_s3 + $0x72c] sm:$0xf0]  ;;  %v6835_v22 = vld [vmem:[%s10475_s3 + $0x104] sm:$0xf] }
 0x16a   :  { %v1907_v13 = vadd.f32 %v1906_v4, %v1894_v3  ;;  %v5530_v30 = vor.u32 %v6835_v22, %v5527_v35  ;;  %v6138_v3 = vor.u32 %v6987_v15, %v6135_v16  ;;  %v6951_v4 = vld [vmem:[%s10475_s3 + $0x4a4] sm:$0xf]  ;;  %v5799_v15 = vld [vmem:[%s10475_s3 + $0x330] sm:$0xf0] }
 0x16b   :  { %3748 = vmatpush.bf16.msra.mxu1 %v5610_v28  ;;  %v6310_v28 = vor.u32 %v7033_v24, %v6309_v21  ;;  %v6947_v1 = vld [vmem:[%s10475_s3 + $0x484] sm:$0xf] }
 0x16c   :  { %v2064_v25 = vadd.f32 %v2048_v5, %v1907_v13  ;;  %v5991_v5 = vld [vmem:[%s10475_s3 + $0x4b0] sm:$0xf0]  ;;  %v6122_v13 = vor.u32 %v6983_v7, %v6119_v8  ;;  %v6915_v19 = vld [vmem:[%s10475_s3 + $0x384] sm:$0xf]  ;;  %v5978_v24 = vor.u32 %v6947_v1, %v5975_v14 }
 0x16d   :  { %3761 = vmatpush.bf16.msra.mxu2 %v5738_v37  ;;  %3736 = vmatpush.bf16.msra.mxu0 %v5466_v41  ;;  %v6023_v37 = vld [vmem:[%s10475_s3 + $0x4f0] sm:$0xf0]  ;;  %v6991_v41 = vld [vmem:[%s10475_s3 + $0x5e4] sm:$0xf]  ;;  %v5994_v12 = vor.u32 %v6951_v4, %v5991_v5 }
 0x16e   :  { %v2072_v38 = vmax.f32 %v2064_v25, 0.0  ;;  %3726 = vmatpush.bf16.msrb.mxu3 %v6310_v28  ;;  %v6026_v59 = vor.u32 %v6959_v36, %v6023_v37  ;;  %v6106_v25 = vor.u32 %v6979_v17, %v6103_v18  ;;  %v6975_v22 = vld [vmem:[%s10475_s3 + $0x564] sm:$0xf]  ;;  %v6087_v28 = vld [vmem:[%s10475_s3 + $0x570] sm:$0xf0]  ;;  %v5962_v37 = vor.u32 %v6943_v26, %v5959_v27 }
 0x16f   :  { %3749 = vmatpush.bf16.msra.mxu1 %v5594_v45  ;;  %v6151_v45 = vld [vmem:[%s10475_s3 + $0x5f0] sm:$0xf0]  ;;  %v1895_v46 = vpop.f32.mrf.mxu2  ;;  %v7023_v7 = vld [vmem:[%s10475_s3 + $0x6e4] sm:$0xf] }
 0x170   :  { %v9297_v53 = vpack.c.bf16 %v2072_v38, %v2072_v38  ;;  %v6090_v38 = vor.u32 %v6975_v22, %v6087_v28  ;;  %v6907_v46 = vld [vmem:[%s10475_s3 + $0x344] sm:$0xf]  ;;  %v6279_v8 = vld [vmem:[%s10475_s3 + $0x6f0] sm:$0xf0] }
 0x171   :  { %3762 = vmatpush.bf16.msra.mxu2 %v5722_v57  ;;  %3737 = vmatpush.bf16.msra.mxu0 %v5450_v60  ;;  %v1908_v54 = vpop.f32.mrf.mxu3  ;;  %v5895_v57 = vld [vmem:[%s10475_s3 + $0x3f0] sm:$0xf0]  ;;  %v6154_v60 = vor.u32 %v6991_v41, %v6151_v45  ;;  %v6971_v41 = vld [vmem:[%s10475_s3 + $0x544] sm:$0xf]  ;;  %v6282_v17 = vor.u32 %v7023_v7, %v6279_v8  ;;  %v5437_v7 = vld [vmem:[%s10475_s3 + $0x48] sm:$0xf] }
 0x172   :  { %v5898_v31 = vor.u32 %v6927_v56, %v5895_v57  ;;  %3702 = vmatmul.bf16.vlgmr.msrb.gmra.mxu1 %v9297_v53  ;;  %3727 = vmatpush.bf16.msrb.mxu3 %v6294_v51  ;;  %v6071_v45 = vld [vmem:[%s10475_s3 + $0x550] sm:$0xf0]  ;;  %v2049_v56 = vperm.slane %v8847_v23, 6  ;;  %v5946_v57 = vor.u32 %v6939_v39, %v5943_v40  ;;  %v6899_v1 = vld [vmem:[%s10475_s3 + $0x304] sm:$0xf] }
 0x173   :  { %3750 = vmatpush.bf16.msra.mxu1 %v5578_v61  ;;  %v6955_v61 = vld [vmem:[%s10475_s3 + $0x4c4] sm:$0xf]  ;;  %v5783_v14 = vld [vmem:[%s10475_s3 + $0x310] sm:$0xf0]  ;;  %v5485_v40 = vld [vmem:[%s10475_s3 + $0xa8] sm:$0xf] }
 0x174   :  { %v6010_v2 = vor.u32 %v6955_v61, %v6007_v62  ;;  %v6903_v62 = vld [vmem:[%s10475_s3 + $0x324] sm:$0xf]  ;;  %v6263_v28 = vld [vmem:[%s10475_s3 + $0x6d0] sm:$0xf0]  ;;  %v6814_v8 = vld [vmem:[%s10475_s3 + $0x54] sm:$0xf0] }
 0x175   :  { %3763 = vmatpush.bf16.msra.mxu2 %v5706_v0  ;;  %3738 = vmatpush.bf16.msra.mxu0 %v5434_v10  ;;  %v5879_v0 = vld [vmem:[%s10475_s3 + $0x3d0] sm:$0xf0]  ;;  %v7019_v22 = vld [vmem:[%s10475_s3 + $0x6c4] sm:$0xf] }
 0x176   :  { %3772 = vmatpush.bf16.msra.mxu3 %v5898_v31  ;;  %v5882_v47 = vor.u32 %v6923_v49, %v5879_v0  ;;  %v5863_v10 = vld [vmem:[%s10475_s3 + $0x3b0] sm:$0xf0]  ;;  %v6963_v0 = vld [vmem:[%s10475_s3 + $0x504] sm:$0xf] }
 0x177   :  { %3751 = vmatpush.bf16.msra.mxu1 %v5562_v11  ;;  %v5866_v11 = vor.u32 %v6919_v9, %v5863_v10  ;;  %v5927_v31 = vld [vmem:[%s10475_s3 + $0x430] sm:$0xf0]  ;;  %v5517_v9 = vld [vmem:[%s10475_s3 + $0xe8] sm:$0xf]  ;;  %v6834_v10 = vld [vmem:[%s10475_s3 + $0xf4] sm:$0xf0] }
 0x178   :  { %v5911_v49 = vld [vmem:[%s10475_s3 + $0x410] sm:$0xf0]  ;;  %v5518_v26 = vor.u32 %v6834_v10, %v5517_v9  ;;  %v5565_v9 = vld [vmem:[%s10475_s3 + $0x148] sm:$0xf]  ;;  %v6846_v10 = vld [vmem:[%s10475_s3 + $0x154] sm:$0xf0] }
 0x179   :  { %3764 = vmatpush.bf16.msra.mxu2 %v5690_v20  ;;  %3739 = vmatpush.bf16.msra.mxu0 %v5418_v33  ;;  %v5847_v20 = vld [vmem:[%s10475_s3 + $0x390] sm:$0xf0] }
 0x17a   :  { %3773 = vmatpush.bf16.msra.mxu3 %v5882_v47  ;;  %v5850_v21 = vor.u32 %v6915_v19, %v5847_v20  ;;  %v5831_v33 = vld [vmem:[%s10475_s3 + $0x370] sm:$0xf0]  ;;  %v5786_v19 = vor.u32 %v6899_v1, %v5783_v14  ;;  %v5566_v1 = vor.u32 %v6846_v10, %v5565_v9  ;;  %v6999_v14 = vld [vmem:[%s10475_s3 + $0x624] sm:$0xf] }
 0x17b   :  { %3752 = vmatpush.bf16.msra.mxu1 %v5546_v34  ;;  %v5834_v35 = vor.u32 %v6911_v32, %v5831_v33  ;;  %v6039_v47 = vld [vmem:[%s10475_s3 + $0x510] sm:$0xf0]  ;;  %v6830_v32 = vld [vmem:[%s10475_s3 + $0xd4] sm:$0xf0]  ;;  %v5629_v33 = vld [vmem:[%s10475_s3 + $0x1c8] sm:$0xf] }
 0x17c   :  { %v6247_v39 = vld [vmem:[%s10475_s3 + $0x6b0] sm:$0xf0] }
 0x17d   :  { %3765 = vmatpush.bf16.msra.mxu2 %v5674_v48  ;;  %3740 = vmatpush.bf16.msra.mxu0 %v5402_v58  ;;  %v1919_v29 = vpop.f32.mrf.mxu0  ;;  %v5815_v48 = vld [vmem:[%s10475_s3 + $0x350] sm:$0xf0]  ;;  %v6074_v58 = vor.u32 %v6971_v41, %v6071_v45  ;;  %v6826_v41 = vld [vmem:[%s10475_s3 + $0xb4] sm:$0xf0]  ;;  %v5613_v45 = vld [vmem:[%s10475_s3 + $0x1a8] sm:$0xf] }
 0x17e   :  { %3774 = vmatpush.bf16.msra.mxu3 %v5866_v11  ;;  %v5818_v52 = vor.u32 %v6907_v46, %v5815_v48  ;;  %v5645_v11 = vld [vmem:[%s10475_s3 + $0x1e8] sm:$0xf]  ;;  %v6858_v46 = vld [vmem:[%s10475_s3 + $0x1b4] sm:$0xf0] }
 0x17f   :  { %3753 = vmatpush.bf16.msra.mxu1 %v5530_v30  ;;  %v1932_v34 = vpop.f32.mrf.mxu1  ;;  %v6935_v30 = vld [vmem:[%s10475_s3 + $0x424] sm:$0xf] }
 0x180   :  { %3741 = vmatmul.bf16.vlgmr.msra.gmra.mxu0 %v8971_v42  ;;  %v1933_v36 = vadd.f32 %v1932_v34, %v1919_v29  ;;  %v5930_v4 = vor.u32 %v6935_v30, %v5927_v31  ;;  %v5501_v29 = vld [vmem:[%s10475_s3 + $0xc8] sm:$0xf]  ;;  %v6862_v34 = vld [vmem:[%s10475_s3 + $0x1d4] sm:$0xf0] }
 0x181   :  { %3785 = vmatpush.bf16.msrb.mxu0 %v6026_v59  ;;  %3766 = vmatpush.bf16.msra.mxu2 %v5658_v63  ;;  %v6967_v59 = vld [vmem:[%s10475_s3 + $0x524] sm:$0xf]  ;;  %v6854_v30 = vld [vmem:[%s10475_s3 + $0x194] sm:$0xf0] }
 0x182   :  { %3775 = vmatpush.bf16.msra.mxu3 %v5850_v21  ;;  %3754 = vmatmul.bf16.vlgmr.msra.gmra.mxu1 %v8973_v44  ;;  %v6931_v63 = vld [vmem:[%s10475_s3 + $0x404] sm:$0xf] }
 0x183   :  { %3798 = vmatpush.bf16.msrb.mxu1 %v6154_v60  ;;  %v6055_v60 = vld [vmem:[%s10475_s3 + $0x530] sm:$0xf0]  ;;  %v5914_v21 = vor.u32 %v6931_v63, %v5911_v49  ;;  %v6850_v63 = vld [vmem:[%s10475_s3 + $0x174] sm:$0xf0] }
 0x184   :  { %v6058_v5 = vor.u32 %v6967_v59, %v6055_v60 }
 0x185   :  { %3786 = vmatpush.bf16.msrb.mxu0 %v6010_v2  ;;  %v1921_v61 = vpop.f32.mrf.mxu0  ;;  %v5802_v2 = vor.u32 %v6903_v62, %v5799_v15  ;;  %v5453_v62 = vld [vmem:[%s10475_s3 + $0x68] sm:$0xf]  ;;  %v6818_v15 = vld [vmem:[%s10475_s3 + $0x74] sm:$0xf0] }
 0x186   :  { %3776 = vmatpush.bf16.msra.mxu3 %v5834_v35  ;;  %v6266_v35 = vor.u32 %v7019_v22, %v6263_v28  ;;  %v6215_v61 = vld [vmem:[%s10475_s3 + $0x670] sm:$0xf0]  ;;  %v7092_v22 = vld [vmem:[%s10476_s2] sm:$0xff] }
 0x187   :  { %3799 = vmatpush.bf16.msrb.mxu1 %v6138_v3  ;;  %v1945_v51 = vpop.f32.mrf.mxu2  ;;  %v1934_v16 = vpop.f32.mrf.mxu1  ;;  %v2050_v28 = vperm.slane %v7092_v22, 7 }
 0x188   :  { %v1946_v54 = vadd.f32 %v1945_v51, %v1933_v36  ;;  %v5502_v36 = vor.u32 %v6830_v32, %v5501_v29  ;;  %v5486_v51 = vor.u32 %v6826_v41, %v5485_v40  ;;  %v5581_v16 = vld [vmem:[%s10475_s3 + $0x168] sm:$0xf]  ;;  %v6407_v40 = vld [vmem:[%s10475_s3 + $0x7f0] sm:$0xf0] }
 0x189   :  { %3787 = vmatpush.bf16.msrb.mxu0 %v5994_v12  ;;  %v1958_v55 = vpop.f32.mrf.mxu3  ;;  %v6866_v12 = vld [vmem:[%s10475_s3 + $0x1f4] sm:$0xf0]  ;;  %v5405_v41 = vld [vmem:[%s10475_s3 + $0x8] sm:$0xf] }
 0x18a   :  { %3777 = vmatpush.bf16.msra.mxu3 %v5818_v52  ;;  %v1959_v23 = vadd.f32 %v1958_v55, %v1946_v54  ;;  %v5646_v27 = vor.u32 %v6866_v12, %v5645_v11  ;;  %v5614_v52 = vor.u32 %v6858_v46, %v5613_v45  ;;  %v7011_v54 = vld [vmem:[%s10475_s3 + $0x684] sm:$0xf]  ;;  %v6231_v55 = vld [vmem:[%s10475_s3 + $0x690] sm:$0xf0]  ;;  %v6806_v45 = vld [vmem:[%s10475_s3 + $0x14] sm:$0xf0] }
 0x18b   :  { %3800 = vmatpush.bf16.msrb.mxu1 %v6122_v13  ;;  %v6234_v31 = vor.u32 %v7011_v54, %v6231_v55  ;;  %v6898_v55 = vld [vmem:[%s10475_s3 + $0x2f4] sm:$0xf0] }
 0x18c   :  { %v2065_v3 = vadd.f32 %v2049_v56, %v1959_v23  ;;  %v5469_v56 = vld [vmem:[%s10475_s3 + $0x88] sm:$0xf]  ;;  %v7007_v23 = vld [vmem:[%s10475_s3 + $0x664] sm:$0xf] }
 0x18d   :  { %3788 = vmatpush.bf16.msrb.mxu0 %v5978_v24  ;;  %v6042_v24 = vor.u32 %v6963_v0, %v6039_v47  ;;  %v6218_v47 = vor.u32 %v7007_v23, %v6215_v61 }
 0x18e   :  { %3778 = vmatpush.bf16.msra.mxu3 %v5802_v2  ;;  %v2073_v13 = vmax.f32 %v2065_v3, 0.0  ;;  %v5454_v2 = vor.u32 %v6818_v15, %v5453_v62  ;;  %v5582_v3 = vor.u32 %v6850_v63, %v5581_v16 }
 0x18f   :  { %3801 = vmatpush.bf16.msrb.mxu1 %v6106_v25  ;;  %v1947_v18 = vpop.f32.mrf.mxu2 }
 0x190   :  { %v9456_v20 = vpack.c.bf16 %v2073_v13, %v2073_v13  ;;  %v5438_v13 = vor.u32 %v6814_v8, %v5437_v7  ;;  %v5421_v18 = vld [vmem:[%s10475_s3 + $0x28] sm:$0xf]  ;;  %v6990_v8 = vld [vmem:[%s10475_s3 + $0x5d4] sm:$0xf0] }
 0x191   :  { %3789 = vmatpush.bf16.msrb.mxu0 %v5962_v37  ;;  %v1960_v25 = vpop.f32.mrf.mxu3  ;;  %v5630_v37 = vor.u32 %v6862_v34, %v5629_v33  ;;  %v6141_v7 = vld [vmem:[%s10475_s3 + $0x5c8] sm:$0xf] }
 0x192   :  { %3779 = vmatpush.bf16.msra.mxu3 %v5786_v19  ;;  %3715 = vmatmul.bf16.vlgmr.msrb.gmra.mxu2 %v9456_v20  ;;  %v5549_v25 = vld [vmem:[%s10475_s3 + $0x128] sm:$0xf] }
 0x193   :  { %3802 = vmatpush.bf16.msrb.mxu1 %v6090_v38  ;;  %3811 = vmatpush.bf16.msrb.mxu2 %v6282_v17  ;;  %v7015_v38 = vld [vmem:[%s10475_s3 + $0x6a4] sm:$0xf]  ;;  %v6183_v17 = vld [vmem:[%s10475_s3 + $0x630] sm:$0xf0] }
 0x194   :  { %v6250_v48 = vor.u32 %v7015_v38, %v6247_v39  ;;  %v6186_v33 = vor.u32 %v6999_v14, %v6183_v17  ;;  %v6167_v38 = vld [vmem:[%s10475_s3 + $0x610] sm:$0xf0]  ;;  %v7055_v39 = vld [vmem:[%s10475_s3 + $0x7e4] sm:$0xf]  ;;  %v6142_v14 = vor.u32 %v6990_v8, %v6141_v7  ;;  %v6890_v17 = vld [vmem:[%s10475_s3 + $0x2b4] sm:$0xf0] }
 0x195   :  { %3790 = vmatpush.bf16.msrb.mxu0 %v5946_v57  ;;  %v6822_v57 = vld [vmem:[%s10475_s3 + $0x94] sm:$0xf0]  ;;  %v6410_v61 = vor.u32 %v7055_v39, %v6407_v40 }
 0x196   :  { %v5470_v59 = vor.u32 %v6822_v57, %v5469_v56  ;;  %v6029_v56 = vld [vmem:[%s10475_s3 + $0x4e8] sm:$0xf]  ;;  %v6962_v57 = vld [vmem:[%s10475_s3 + $0x4f4] sm:$0xf0] }
 0x197   :  { %3803 = vmatpush.bf16.msrb.mxu1 %v6074_v58  ;;  %3812 = vmatpush.bf16.msrb.mxu2 %v6266_v35  ;;  %v5597_v58 = vld [vmem:[%s10475_s3 + $0x188] sm:$0xf]  ;;  %v6030_v63 = vor.u32 %v6962_v57, %v6029_v56  ;;  %v6982_v39 = vld [vmem:[%s10475_s3 + $0x594] sm:$0xf0] }
 0x198   :  { %v5598_v60 = vor.u32 %v6854_v30, %v5597_v58  ;;  %v5406_v30 = vor.u32 %v6806_v45, %v5405_v41  ;;  %v5965_v56 = vld [vmem:[%s10475_s3 + $0x468] sm:$0xf]  ;;  %v6946_v57 = vld [vmem:[%s10475_s3 + $0x474] sm:$0xf0] }
 0x199   :  { %3791 = vmatpush.bf16.msrb.mxu0 %v5930_v4  ;;  %v7003_v4 = vld [vmem:[%s10475_s3 + $0x644] sm:$0xf] }
 0x19b   :  { %3804 = vmatpush.bf16.msrb.mxu1 %v6058_v5  ;;  %3813 = vmatpush.bf16.msrb.mxu2 %v6250_v48  ;;  %v6199_v5 = vld [vmem:[%s10475_s3 + $0x650] sm:$0xf0]  ;;  %v5533_v48 = vld [vmem:[%s10475_s3 + $0x108] sm:$0xf] }
 0x19c   :  { %v6202_v12 = vor.u32 %v7003_v4, %v6199_v5  ;;  %v6013_v4 = vld [vmem:[%s10475_s3 + $0x4c8] sm:$0xf]  ;;  %v6958_v5 = vld [vmem:[%s10475_s3 + $0x4d4] sm:$0xf0] }
 0x19d   :  { %3792 = vmatpush.bf16.msrb.mxu0 %v5914_v21  ;;  %v1971_v49 = vpop.f32.mrf.mxu0 }
 0x19f   :  { %3805 = vmatpush.bf16.msrb.mxu1 %v6042_v24  ;;  %v1984_v0 = vpop.f32.mrf.mxu1  ;;  %3814 = vmatpush.bf16.msrb.mxu2 %v6234_v31  ;;  %v6810_v24 = vld [vmem:[%s10475_s3 + $0x34] sm:$0xf0]  ;;  %v6157_v31 = vld [vmem:[%s10475_s3 + $0x5e8] sm:$0xf] }
 0x1a0   :  { %3793 = vmatmul.bf16.vlgmr.msrb.gmra.mxu0 %v9128_v6  ;;  %v1985_v11 = vadd.f32 %v1984_v0, %v1971_v49  ;;  %v5422_v35 = vor.u32 %v6810_v24, %v5421_v18  ;;  %v7051_v49 = vld [vmem:[%s10475_s3 + $0x7c4] sm:$0xf]  ;;  %v6391_v0 = vld [vmem:[%s10475_s3 + $0x7d0] sm:$0xf0]  ;;  %v5997_v18 = vld [vmem:[%s10475_s3 + $0x4a8] sm:$0xf] }
 0x1a1   :  { %3837 = vmatpush.bf16.msra.mxu0 %v5518_v26  ;;  %v6842_v26 = vld [vmem:[%s10475_s3 + $0x134] sm:$0xf0]  ;;  %v6394_v9 = vor.u32 %v7051_v49, %v6391_v0  ;;  %v5693_v49 = vld [vmem:[%s10475_s3 + $0x248] sm:$0xf] }
 0x1a2   :  { %3806 = vmatmul.bf16.vlgmr.msrb.gmra.mxu1 %v9297_v53  ;;  %3767 = vmatmul.bf16.vlgmr.msra.gmra.mxu2 %v8978_v50  ;;  %v6986_v24 = vld [vmem:[%s10475_s3 + $0x5b4] sm:$0xf0] }
 0x1a3   :  { %3850 = vmatpush.bf16.msra.mxu1 %v5646_v27  ;;  %3815 = vmatpush.bf16.msrb.mxu2 %v6218_v47  ;;  %v5757_v47 = vld [vmem:[%s10475_s3 + $0x2c8] sm:$0xf] }
 0x1a5   :  { %3838 = vmatpush.bf16.msra.mxu0 %v5502_v36  ;;  %v1973_v29 = vpop.f32.mrf.mxu0  ;;  %v5550_v36 = vor.u32 %v6842_v26, %v5549_v25  ;;  %v9672_v26 = vld [vmem:[%s10477_s4] sm:$0xf] }
 0x1a6   :  { %v6359_v29 = vld [vmem:[%s10475_s3 + $0x790] sm:$0xf0] }
 0x1a7   :  { %3851 = vmatpush.bf16.msra.mxu1 %v5630_v37  ;;  %v1997_v19 = vpop.f32.mrf.mxu2  ;;  %v1986_v32 = vpop.f32.mrf.mxu1  ;;  %3816 = vmatpush.bf16.msrb.mxu2 %v6202_v12  ;;  %v6995_v37 = vld [vmem:[%s10475_s3 + $0x604] sm:$0xf] }
 0x1a8   :  { %v1998_v27 = vadd.f32 %v1997_v19, %v1985_v11  ;;  %v6170_v54 = vor.u32 %v6995_v37, %v6167_v38  ;;  %v6014_v11 = vor.u32 %v6958_v5, %v6013_v4  ;;  %v7047_v12 = vld [vmem:[%s10475_s3 + $0x7a4] sm:$0xf]  ;;  %v6954_v19 = vld [vmem:[%s10475_s3 + $0x4b4] sm:$0xf0]  ;;  %v5725_v32 = vld [vmem:[%s10475_s3 + $0x288] sm:$0xf] }
 0x1a9   :  { %3839 = vmatpush.bf16.msra.mxu0 %v5486_v51  ;;  %v2010_v21 = vpop.f32.mrf.mxu3  ;;  %v6838_v51 = vld [vmem:[%s10475_s3 + $0x114] sm:$0xf0]  ;;  %v5998_v22 = vor.u32 %v6954_v19, %v5997_v18  ;;  %v2341_v37 = vperm.slane %v9672_v26, 0  ;;  %v6109_v38 = vld [vmem:[%s10475_s3 + $0x588] sm:$0xf] }
 0x1aa   :  { %v2011_v34 = vadd.f32 %v2010_v21, %v1998_v27  ;;  %v5534_v62 = vor.u32 %v6838_v51, %v5533_v48  ;;  %v6125_v21 = vld [vmem:[%s10475_s3 + $0x5a8] sm:$0xf]  ;;  %v6343_v48 = vld [vmem:[%s10475_s3 + $0x770] sm:$0xf0]  ;;  %v6974_v5 = vld [vmem:[%s10475_s3 + $0x554] sm:$0xf0] }
 0x1ab   :  { %3852 = vmatpush.bf16.msra.mxu1 %v5614_v52  ;;  %v5773_v52 = vld [vmem:[%s10475_s3 + $0x2e8] sm:$0xf]  ;;  %3817 = vmatpush.bf16.msrb.mxu2 %v6186_v33  ;;  %v6126_v33 = vor.u32 %v6986_v24, %v6125_v21  ;;  %v6938_v19 = vld [vmem:[%s10475_s3 + $0x434] sm:$0xf0] }
 0x1ac   :  { %v2066_v46 = vadd.f32 %v2050_v28, %v2011_v34  ;;  %v5774_v16 = vor.u32 %v6898_v55, %v5773_v52  ;;  %v7043_v28 = vld [vmem:[%s10475_s3 + $0x784] sm:$0xf]  ;;  %v6886_v34 = vld [vmem:[%s10475_s3 + $0x294] sm:$0xf0]  ;;  %v5709_v51 = vld [vmem:[%s10475_s3 + $0x268] sm:$0xf] }
 0x1ad   :  { %3840 = vmatpush.bf16.msra.mxu0 %v5470_v59  ;;  %v6994_v59 = vld [vmem:[%s10475_s3 + $0x5f4] sm:$0xf0]  ;;  %v6362_v40 = vor.u32 %v7043_v28, %v6359_v29  ;;  %v5726_v41 = vor.u32 %v6886_v34, %v5725_v32  ;;  %v6077_v4 = vld [vmem:[%s10475_s3 + $0x548] sm:$0xf]  ;;  %v7027_v29 = vld [vmem:[%s10475_s3 + $0x704] sm:$0xf] }
 0x1ae   :  { %v2074_v58 = vmax.f32 %v2066_v46, 0.0  ;;  %v7039_v46 = vld [vmem:[%s10475_s3 + $0x764] sm:$0xf]  ;;  %v6882_v55 = vld [vmem:[%s10475_s3 + $0x274] sm:$0xf0] }
 0x1af   :  { %3853 = vmatpush.bf16.msra.mxu1 %v5598_v60  ;;  %v1999_v60 = vpop.f32.mrf.mxu2  ;;  %3818 = vmatpush.bf16.msrb.mxu2 %v6170_v54  ;;  %v6110_v54 = vor.u32 %v6982_v39, %v6109_v38  ;;  %v5933_v18 = vld [vmem:[%s10475_s3 + $0x428] sm:$0xf]  ;;  %v6295_v32 = vld [vmem:[%s10475_s3 + $0x710] sm:$0xf0] }
 0x1b0   :  { %v9615_v15 = vpack.c.bf16 %v2074_v58, %v2074_v58  ;;  %v6346_v60 = vor.u32 %v7039_v46, %v6343_v48  ;;  %v5901_v38 = vld [vmem:[%s10475_s3 + $0x3e8] sm:$0xf]  ;;  %v6966_v48 = vld [vmem:[%s10475_s3 + $0x514] sm:$0xf0] }
 0x1b1   :  { %3841 = vmatpush.bf16.msra.mxu0 %v5454_v2  ;;  %v2012_v23 = vpop.f32.mrf.mxu3  ;;  %v6158_v2 = vor.u32 %v6994_v59, %v6157_v31  ;;  %v6093_v31 = vld [vmem:[%s10475_s3 + $0x568] sm:$0xf]  ;;  %v6978_v59 = vld [vmem:[%s10475_s3 + $0x574] sm:$0xf0] }
 0x1b2   :  { %3728 = vmatmul.bf16.vlgmr.msrb.gmra.mxu3 %v9615_v15  ;;  %3819 = vmatmul.bf16.vlgmr.msrb.gmra.mxu2 %v9456_v20  ;;  %v6094_v0 = vor.u32 %v6978_v59, %v6093_v31  ;;  %v6045_v46 = vld [vmem:[%s10475_s3 + $0x508] sm:$0xf]  ;;  %v5647_v31 = vld [vmem:[%s10475_s3 + $0x1f8] sm:$0xf0] }
 0x1b3   :  { %3854 = vmatpush.bf16.msra.mxu1 %v5582_v3  ;;  %v6894_v3 = vld [vmem:[%s10475_s3 + $0x2d4] sm:$0xf0]  ;;  %3824 = vmatpush.bf16.msrb.mxu3 %v6410_v61  ;;  %v5710_v61 = vor.u32 %v6882_v55, %v5709_v51  ;;  %v6285_v51 = vld [vmem:[%s10475_s3 + $0x6e8] sm:$0xf]  ;;  %v6832_v55 = vld [vmem:[%s10475_s3 + $0xec] sm:$0xf] }
 0x1b4   :  { %3863 = vmatpush.bf16.msra.mxu2 %v5774_v16  ;;  %v5758_v10 = vor.u32 %v6894_v3, %v5757_v47  ;;  %v7035_v16 = vld [vmem:[%s10475_s3 + $0x744] sm:$0xf]  ;;  %v6878_v47 = vld [vmem:[%s10475_s3 + $0x254] sm:$0xf0] }
 0x1b5   :  { %3842 = vmatpush.bf16.msra.mxu0 %v5438_v13  ;;  %v6375_v13 = vld [vmem:[%s10475_s3 + $0x7b0] sm:$0xf0]  ;;  %v6942_v3 = vld [vmem:[%s10475_s3 + $0x454] sm:$0xf0]  ;;  %v5694_v8 = vor.u32 %v6878_v47, %v5693_v49  ;;  %v6269_v49 = vld [vmem:[%s10475_s3 + $0x6c8] sm:$0xf] }
 0x1b6   :  { %v6378_v25 = vor.u32 %v7047_v12, %v6375_v13  ;;  %v5677_v12 = vld [vmem:[%s10475_s3 + $0x228] sm:$0xf]  ;;  %v7022_v47 = vld [vmem:[%s10475_s3 + $0x6d4] sm:$0xf0] }
 0x1b7   :  { %3855 = vmatpush.bf16.msra.mxu1 %v5566_v1  ;;  %v5741_v1 = vld [vmem:[%s10475_s3 + $0x2a8] sm:$0xf]  ;;  %3825 = vmatpush.bf16.msrb.mxu3 %v6394_v9 }
 0x1b8   :  { %3864 = vmatpush.bf16.msra.mxu2 %v5758_v10  ;;  %v5742_v27 = vor.u32 %v6890_v17, %v5741_v1  ;;  %v7031_v10 = vld [vmem:[%s10475_s3 + $0x724] sm:$0xf]  ;;  %v6874_v17 = vld [vmem:[%s10475_s3 + $0x234] sm:$0xf0] }
 0x1b9   :  { %3843 = vmatpush.bf16.msra.mxu0 %v5422_v35  ;;  %v5981_v35 = vld [vmem:[%s10475_s3 + $0x488] sm:$0xf]  ;;  %v5678_v34 = vor.u32 %v6874_v17, %v5677_v12  ;;  %v6922_v12 = vld [vmem:[%s10475_s3 + $0x3b4] sm:$0xf0]  ;;  %v6824_v17 = vld [vmem:[%s10475_s3 + $0xac] sm:$0xf] }
 0x1bb   :  { %3856 = vmatpush.bf16.msra.mxu1 %v5550_v36  ;;  %v6950_v36 = vld [vmem:[%s10475_s3 + $0x494] sm:$0xf0]  ;;  %3826 = vmatpush.bf16.msrb.mxu3 %v6378_v25  ;;  %v6061_v25 = vld [vmem:[%s10475_s3 + $0x528] sm:$0xf] }
 0x1bc   :  { %3865 = vmatpush.bf16.msra.mxu2 %v5742_v27  ;;  %v5982_v45 = vor.u32 %v6950_v36, %v5981_v35  ;;  %v6970_v27 = vld [vmem:[%s10475_s3 + $0x534] sm:$0xf0]  ;;  %v5934_v35 = vor.u32 %v6938_v19, %v5933_v18  ;;  %v5661_v36 = vld [vmem:[%s10475_s3 + $0x208] sm:$0xf]  ;;  %v5487_v18 = vld [vmem:[%s10475_s3 + $0xb8] sm:$0xf0] }
 0x1bd   :  { %3844 = vmatpush.bf16.msra.mxu0 %v5406_v30  ;;  %v3638_v52 = vpop.f32.mrf.mxu0  ;;  %v6062_v39 = vor.u32 %v6970_v27, %v6061_v25  ;;  %v6856_v19 = vld [vmem:[%s10475_s3 + $0x1ac] sm:$0xf]  ;;  %v5490_v27 = vor.u32 %v6824_v17, %v5487_v18  ;;  %v5789_v18 = vld [vmem:[%s10475_s3 + $0x308] sm:$0xf] }
 0x1be   :  { %v3639_v58 = vadd.f32 %v3638_v52, %v2341_v37  ;;  %v6870_v37 = vld [vmem:[%s10475_s3 + $0x214] sm:$0xf0]  ;;  %v6298_v52 = vor.u32 %v7027_v29, %v6295_v32  ;;  %v6237_v29 = vld [vmem:[%s10475_s3 + $0x688] sm:$0xf] }
 0x1bf   :  { %3857 = vmatpush.bf16.msra.mxu1 %v5534_v62  ;;  %v3651_v30 = vpop.f32.mrf.mxu1  ;;  %3827 = vmatpush.bf16.msrb.mxu3 %v6362_v40  ;;  %v5966_v62 = vor.u32 %v6946_v57, %v5965_v56  ;;  %v6930_v40 = vld [vmem:[%s10475_s3 + $0x3f4] sm:$0xf0]  ;;  %v5519_v56 = vld [vmem:[%s10475_s3 + $0xf8] sm:$0xf0]  ;;  %v5662_v57 = vor.u32 %v6870_v37, %v5661_v36  ;;  %v6852_v37 = vld [vmem:[%s10475_s3 + $0x18c] sm:$0xf] }
 0x1c0   :  { %3845 = vmatmul.bf16.vlgmr.msra.gmra.mxu0 %v8971_v42  ;;  %v3652_v23 = vadd.f32 %v3651_v30, %v3639_v58  ;;  %3866 = vmatpush.bf16.msra.mxu2 %v5726_v41  ;;  %v5917_v41 = vld [vmem:[%s10475_s3 + $0x408] sm:$0xf]  ;;  %v5902_v58 = vor.u32 %v6930_v40, %v5901_v38  ;;  %v6864_v30 = vld [vmem:[%s10475_s3 + $0x1ec] sm:$0xf]  ;;  %v5471_v36 = vld [vmem:[%s10475_s3 + $0x98] sm:$0xf0] }
 0x1c1   :  { %3889 = vmatpush.bf16.msrb.mxu0 %v6030_v63  ;;  %v6327_v63 = vld [vmem:[%s10475_s3 + $0x750] sm:$0xf0]  ;;  %v5599_v38 = vld [vmem:[%s10475_s3 + $0x198] sm:$0xf0] }
 0x1c2   :  { %3858 = vmatmul.bf16.vlgmr.msra.gmra.mxu1 %v8973_v44  ;;  %3780 = vmatmul.bf16.vlgmr.msra.gmra.mxu3 %v8980_v43  ;;  %v6330_v7 = vor.u32 %v7035_v16, %v6327_v63  ;;  %v5885_v16 = vld [vmem:[%s10475_s3 + $0x3c8] sm:$0xf]  ;;  %v6926_v63 = vld [vmem:[%s10475_s3 + $0x3d4] sm:$0xf0] }
 0x1c3   :  { %3902 = vmatpush.bf16.msrb.mxu1 %v6158_v2  ;;  %v5949_v2 = vld [vmem:[%s10475_s3 + $0x448] sm:$0xf]  ;;  %3828 = vmatpush.bf16.msrb.mxu3 %v6346_v60 }
 0x1c4   :  { %3867 = vmatpush.bf16.msra.mxu2 %v5710_v61  ;;  %v5950_v9 = vor.u32 %v6942_v3, %v5949_v2  ;;  %v6828_v2 = vld [vmem:[%s10475_s3 + $0xcc] sm:$0xf]  ;;  %v5503_v3 = vld [vmem:[%s10475_s3 + $0xd8] sm:$0xf0] }
 0x1c5   :  { %3890 = vmatpush.bf16.msrb.mxu0 %v6014_v11  ;;  %v6311_v11 = vld [vmem:[%s10475_s3 + $0x730] sm:$0xf0]  ;;  %v3640_v1 = vpop.f32.mrf.mxu0 }
 0x1c6   :  { %v6314_v28 = vor.u32 %v7031_v10, %v6311_v11  ;;  %v5506_v10 = vor.u32 %v6828_v2, %v5503_v3  ;;  %v5869_v11 = vld [vmem:[%s10475_s3 + $0x3a8] sm:$0xf] }
 0x1c7   :  { %3903 = vmatpush.bf16.msrb.mxu1 %v6142_v14  ;;  %v3664_v13 = vpop.f32.mrf.mxu2  ;;  %v6078_v14 = vor.u32 %v6974_v5, %v6077_v4  ;;  %v3653_v24 = vpop.f32.mrf.mxu1  ;;  %3829 = vmatpush.bf16.msrb.mxu3 %v6330_v7  ;;  %v6860_v5 = vld [vmem:[%s10475_s3 + $0x1cc] sm:$0xf]  ;;  %v5631_v7 = vld [vmem:[%s10475_s3 + $0x1d8] sm:$0xf0] }
 0x1c8   :  { %v3665_v21 = vadd.f32 %v3664_v13, %v3652_v23  ;;  %3868 = vmatpush.bf16.msra.mxu2 %v5694_v8  ;;  %v6046_v23 = vor.u32 %v6966_v48, %v6045_v46  ;;  %v5886_v8 = vor.u32 %v6926_v63, %v5885_v16  ;;  %v6253_v13 = vld [vmem:[%s10475_s3 + $0x6a8] sm:$0xf]  ;;  %v5634_v1 = vor.u32 %v6860_v5, %v5631_v7  ;;  %v6914_v46 = vld [vmem:[%s10475_s3 + $0x374] sm:$0xf0]  ;;  %v6812_v63 = vld [vmem:[%s10475_s3 + $0x4c] sm:$0xf] }
 0x1c9   :  { %3891 = vmatpush.bf16.msrb.mxu0 %v5998_v22  ;;  %v3677_v22 = vpop.f32.mrf.mxu3  ;;  %v5870_v24 = vor.u32 %v6922_v12, %v5869_v11  ;;  %v6221_v48 = vld [vmem:[%s10475_s3 + $0x668] sm:$0xf]  ;;  %v7006_v16 = vld [vmem:[%s10475_s3 + $0x654] sm:$0xf0]  ;;  %v6808_v11 = vld [vmem:[%s10475_s3 + $0x2c] sm:$0xf] }
 0x1ca   :  { %v5805_v5 = vld [vmem:[%s10475_s3 + $0x328] sm:$0xf]  ;;  %v6906_v7 = vld [vmem:[%s10475_s3 + $0x334] sm:$0xf0]  ;;  %v5423_v12 = vld [vmem:[%s10475_s3 + $0x38] sm:$0xf0] }
 0x1cb   :  { %3904 = vmatpush.bf16.msrb.mxu1 %v6126_v33  ;;  %v9778_v33 = vadd.f32 %v3677_v22, %v3665_v21  ;;  %3830 = vmatpush.bf16.msrb.mxu3 %v6314_v28  ;;  %v5615_v21 = vld [vmem:[%s10475_s3 + $0x1b8] sm:$0xf0]  ;;  %v5853_v22 = vld [vmem:[%s10475_s3 + $0x388] sm:$0xf]  ;;  %v6918_v28 = vld [vmem:[%s10475_s3 + $0x394] sm:$0xf0]  ;;  %v5806_v17 = vor.u32 %v6906_v7, %v5805_v5 }
 0x1cc   :  { %3869 = vmatpush.bf16.msra.mxu2 %v5678_v34  ;;  %v5618_v32 = vor.u32 %v6856_v19, %v5615_v21  ;;  %v7014_v34 = vld [vmem:[%s10475_s3 + $0x694] sm:$0xf0]  ;;  %v6952_v5 = vld [vmem:[%s10475_s3 + $0x4ac] sm:$0xf]  ;;  %v5999_v7 = vld [vmem:[%s10475_s3 + $0x4b8] sm:$0xf0] }
 0x1cd   :  { %3892 = vmatpush.bf16.msrb.mxu0 %v5982_v45  ;;  %v6934_v45 = vld [vmem:[%s10475_s3 + $0x414] sm:$0xf0]  ;;  %v6238_v40 = vor.u32 %v7014_v34, %v6237_v29  ;;  %v5407_v34 = vld [vmem:[%s10475_s3 + $0x18] sm:$0xf0] }
 0x1ce   :  { %v5918_v60 = vor.u32 %v6934_v45, %v5917_v41  ;;  %v5837_v45 = vld [vmem:[%s10475_s3 + $0x368] sm:$0xf]  ;;  %v6902_v19 = vld [vmem:[%s10475_s3 + $0x314] sm:$0xf0] }
 0x1cf   :  { %3905 = vmatpush.bf16.msrb.mxu1 %v6110_v54  ;;  %v7026_v54 = vld [vmem:[%s10475_s3 + $0x6f4] sm:$0xf0]  ;;  %v3666_v59 = vpop.f32.mrf.mxu2  ;;  %3831 = vmatpush.bf16.msrb.mxu3 %v6298_v52  ;;  %v5602_v52 = vor.u32 %v6852_v37, %v5599_v38  ;;  %v6896_v37 = vld [vmem:[%s10475_s3 + $0x2ec] sm:$0xf]  ;;  %v5790_v38 = vor.u32 %v6902_v19, %v5789_v18  ;;  %v5983_v19 = vld [vmem:[%s10475_s3 + $0x498] sm:$0xf0] }
 0x1d0   :  { %v6286_v61 = vor.u32 %v7026_v54, %v6285_v51  ;;  %3870 = vmatpush.bf16.msra.mxu2 %v5662_v57  ;;  %v7010_v54 = vld [vmem:[%s10475_s3 + $0x674] sm:$0xf0]  ;;  %v6948_v18 = vld [vmem:[%s10475_s3 + $0x48c] sm:$0xf] }
 0x1d1   :  { %3893 = vmatpush.bf16.msrb.mxu0 %v5966_v62  ;;  %v5522_v62 = vor.u32 %v6832_v55, %v5519_v56  ;;  %v3679_v4 = vpop.f32.mrf.mxu3  ;;  %v6816_v55 = vld [vmem:[%s10475_s3 + $0x6c] sm:$0xf]  ;;  %v5455_v56 = vld [vmem:[%s10475_s3 + $0x78] sm:$0xf0]  ;;  %v6222_v59 = vor.u32 %v7010_v54, %v6221_v48  ;;  %v7058_v29 = vld [vmem:[%s10475_s3 + $0x7f4] sm:$0xf0] }
 0x1d2   :  { %3832 = vmatmul.bf16.vlgmr.msrb.gmra.mxu3 %v9615_v15  ;;  %v6992_v48 = vld [vmem:[%s10475_s3 + $0x5ec] sm:$0xf] }
 0x1d3   :  { %3906 = vmatpush.bf16.msrb.mxu1 %v6094_v0  ;;  %v5650_v0 = vor.u32 %v6864_v30, %v5647_v31  ;;  %3876 = vmatpush.bf16.msra.mxu3 %v5902_v58  ;;  %v6848_v58 = vld [vmem:[%s10475_s3 + $0x16c] sm:$0xf]  ;;  %v5583_v30 = vld [vmem:[%s10475_s3 + $0x178] sm:$0xf0]  ;;  %v5838_v31 = vor.u32 %v6914_v46, %v5837_v45 }
 0x1d4   :  { %3915 = vmatpush.bf16.msrb.mxu2 %v6286_v61  ;;  %v6205_v61 = vld [vmem:[%s10475_s3 + $0x648] sm:$0xf] }
 0x1d5   :  { %3894 = vmatpush.bf16.msrb.mxu0 %v5950_v9  ;;  %v6270_v9 = vor.u32 %v7022_v47, %v6269_v49  ;;  %3871 = vmatmul.bf16.vlgmr.msra.gmra.mxu2 %v8978_v50  ;;  %v5439_v49 = vld [vmem:[%s10475_s3 + $0x58] sm:$0xf0]  ;;  %v6206_v3 = vor.u32 %v7006_v16, %v6205_v61  ;;  %v6988_v61 = vld [vmem:[%s10475_s3 + $0x5cc] sm:$0xf] }
 0x1d6   :  { %v5567_v47 = vld [vmem:[%s10475_s3 + $0x158] sm:$0xf0]  ;;  %v5442_v4 = vor.u32 %v6812_v63, %v5439_v49 }
 0x1d7   :  { %3907 = vmatpush.bf16.msrb.mxu1 %v6078_v14  ;;  %v7018_v14 = vld [vmem:[%s10475_s3 + $0x6b4] sm:$0xf0]  ;;  %3877 = vmatpush.bf16.msra.mxu3 %v5886_v8  ;;  %v6189_v8 = vld [vmem:[%s10475_s3 + $0x628] sm:$0xf] }
 0x1d8   :  { %3916 = vmatpush.bf16.msrb.mxu2 %v6270_v9  ;;  %v6254_v25 = vor.u32 %v7018_v14, %v6253_v13  ;;  %v5551_v14 = vld [vmem:[%s10475_s3 + $0x138] sm:$0xf0] }
 0x1d9   :  { %3895 = vmatpush.bf16.msrb.mxu0 %v5934_v35  ;;  %v6820_v35 = vld [vmem:[%s10475_s3 + $0x8c] sm:$0xf] }
 0x1da   :  { %v5474_v41 = vor.u32 %v6820_v35, %v5471_v36  ;;  %v6836_v35 = vld [vmem:[%s10475_s3 + $0x10c] sm:$0xf]  ;;  %v5535_v36 = vld [vmem:[%s10475_s3 + $0x118] sm:$0xf0] }
 0x1db   :  { %3908 = vmatpush.bf16.msrb.mxu1 %v6062_v39  ;;  %3878 = vmatpush.bf16.msra.mxu3 %v5870_v24  ;;  %v5854_v39 = vor.u32 %v6918_v28, %v5853_v22  ;;  %v5426_v24 = vor.u32 %v6808_v11, %v5423_v12  ;;  %v6413_v22 = vld [vmem:[%s10475_s3 + $0x7e8] sm:$0xf]  ;;  %v5538_v54 = vor.u32 %v6836_v35, %v5535_v36  ;;  %v5711_v36 = vld [vmem:[%s10475_s3 + $0x278] sm:$0xf0] }
 0x1dc   :  { %3917 = vmatpush.bf16.msrb.mxu2 %v6254_v25  ;;  %v6173_v25 = vld [vmem:[%s10475_s3 + $0x608] sm:$0xf]  ;;  %v6414_v46 = vor.u32 %v7058_v29, %v6413_v22 }
 0x1dd   :  { %3896 = vmatpush.bf16.msrb.mxu0 %v5918_v60  ;;  %v3690_v51 = vpop.f32.mrf.mxu0  ;;  %v5458_v60 = vor.u32 %v6816_v55, %v5455_v56  ;;  %v6349_v29 = vld [vmem:[%s10475_s3 + $0x768] sm:$0xf] }
 0x1de   :  { %v9917_v57 = vadd.f32 %v3690_v51, %v9778_v33  ;;  %v6910_v33 = vld [vmem:[%s10475_s3 + $0x354] sm:$0xf0]  ;;  %v6159_v51 = vld [vmem:[%s10475_s3 + $0x5f8] sm:$0xf0] }
 0x1df   :  { %3909 = vmatpush.bf16.msrb.mxu1 %v6046_v23  ;;  %3879 = vmatpush.bf16.msra.mxu3 %v5854_v39  ;;  %v5821_v23 = vld [vmem:[%s10475_s3 + $0x348] sm:$0xf]  ;;  %v5775_v39 = vld [vmem:[%s10475_s3 + $0x2f8] sm:$0xf0] }
 0x1e0   :  { %3897 = vmatmul.bf16.vlgmr.msrb.gmra.mxu0 %v9128_v6  ;;  %3918 = vmatpush.bf16.msrb.mxu2 %v6238_v40  ;;  %v5822_v2 = vor.u32 %v6910_v33, %v5821_v23  ;;  %v6960_v40 = vld [vmem:[%s10475_s3 + $0x4ec] sm:$0xf]  ;;  %v5778_v55 = vor.u32 %v6896_v37, %v5775_v39  ;;  %v6015_v33 = vld [vmem:[%s10475_s3 + $0x4d8] sm:$0xf0] }
 0x1e1   :  { %3941 = vmatpush.bf16.msra.mxu0 %v5522_v62  ;;  %v5586_v62 = vor.u32 %v6848_v58, %v5583_v30  ;;  %v6397_v58 = vld [vmem:[%s10475_s3 + $0x7c8] sm:$0xf]  ;;  %v7054_v30 = vld [vmem:[%s10475_s3 + $0x7d4] sm:$0xf0]  ;;  %v6956_v23 = vld [vmem:[%s10475_s3 + $0x4cc] sm:$0xf] }
 0x1e2   :  { %3910 = vmatmul.bf16.vlgmr.msrb.gmra.mxu1 %v9297_v53  ;;  %v6398_v16 = vor.u32 %v7054_v30, %v6397_v58  ;;  %v6018_v49 = vor.u32 %v6956_v23, %v6015_v33  ;;  %v6944_v37 = vld [vmem:[%s10475_s3 + $0x46c] sm:$0xf]  ;;  %v5951_v30 = vld [vmem:[%s10475_s3 + $0x458] sm:$0xf0] }
 0x1e3   :  { %3954 = vmatpush.bf16.msra.mxu1 %v5650_v0  ;;  %v6844_v0 = vld [vmem:[%s10475_s3 + $0x14c] sm:$0xf]  ;;  %3880 = vmatpush.bf16.msra.mxu3 %v5838_v31 }
 0x1e4   :  { %3919 = vmatpush.bf16.msrb.mxu2 %v6222_v59  ;;  %v5570_v9 = vor.u32 %v6844_v0, %v5567_v47  ;;  %v6892_v31 = vld [vmem:[%s10475_s3 + $0x2cc] sm:$0xf]  ;;  %v6162_v59 = vor.u32 %v6992_v48, %v6159_v51  ;;  %v6381_v0 = vld [vmem:[%s10475_s3 + $0x7a8] sm:$0xf]  ;;  %v7050_v47 = vld [vmem:[%s10475_s3 + $0x7b4] sm:$0xf0] }
 0x1e5   :  { %3942 = vmatpush.bf16.msra.mxu0 %v5506_v10  ;;  %v7002_v10 = vld [vmem:[%s10475_s3 + $0x634] sm:$0xf0]  ;;  %v3692_v13 = vpop.f32.mrf.mxu0  ;;  %v6382_v11 = vor.u32 %v7050_v47, %v6381_v0  ;;  %v6333_v51 = vld [vmem:[%s10475_s3 + $0x748] sm:$0xf]  ;;  %v6940_v58 = vld [vmem:[%s10475_s3 + $0x44c] sm:$0xf] }
 0x1e6   :  { %v6190_v21 = vor.u32 %v7002_v10, %v6189_v8  ;;  %v6127_v10 = vld [vmem:[%s10475_s3 + $0x5b8] sm:$0xf0]  ;;  %v6002_v13 = vor.u32 %v6952_v5, %v5999_v7  ;;  %v6968_v5 = vld [vmem:[%s10475_s3 + $0x52c] sm:$0xf] }
 0x1e7   :  { %3955 = vmatpush.bf16.msra.mxu1 %v5634_v1  ;;  %v6840_v1 = vld [vmem:[%s10475_s3 + $0x12c] sm:$0xf]  ;;  %3881 = vmatpush.bf16.msra.mxu3 %v5822_v2  ;;  %v5679_v47 = vld [vmem:[%s10475_s3 + $0x238] sm:$0xf0] }
 0x1e8   :  { %3920 = vmatpush.bf16.msrb.mxu2 %v6206_v3  ;;  %v5554_v28 = vor.u32 %v6840_v1, %v5551_v14  ;;  %v6888_v2 = vld [vmem:[%s10475_s3 + $0x2ac] sm:$0xf]  ;;  %v7046_v1 = vld [vmem:[%s10475_s3 + $0x794] sm:$0xf0]  ;;  %v6063_v7 = vld [vmem:[%s10475_s3 + $0x538] sm:$0xf0] }
 0x1e9   :  { %3943 = vmatpush.bf16.msra.mxu0 %v5490_v27  ;;  %v6998_v27 = vld [vmem:[%s10475_s3 + $0x614] sm:$0xf0]  ;;  %v6884_v14 = vld [vmem:[%s10475_s3 + $0x28c] sm:$0xf] }
 0x1ea   :  { %v6174_v45 = vor.u32 %v6998_v27, %v6173_v25 }
 0x1eb   :  { %3956 = vmatpush.bf16.msra.mxu1 %v5618_v32  ;;  %v6804_v32 = vld [vmem:[%s10475_s3 + $0xc] sm:$0xf]  ;;  %3882 = vmatpush.bf16.msra.mxu3 %v5806_v17  ;;  %v5727_v17 = vld [vmem:[%s10475_s3 + $0x298] sm:$0xf0] }
 0x1ec   :  { %3921 = vmatpush.bf16.msrb.mxu2 %v6190_v21  ;;  %v6980_v21 = vld [vmem:[%s10475_s3 + $0x58c] sm:$0xf]  ;;  %v5730_v22 = vor.u32 %v6884_v14, %v5727_v17  ;;  %v6066_v17 = vor.u32 %v6968_v5, %v6063_v7  ;;  %v5823_v7 = vld [vmem:[%s10475_s3 + $0x358] sm:$0xf0] }
 0x1ed   :  { %3944 = vmatpush.bf16.msra.mxu0 %v5474_v41  ;;  %v6031_v41 = vld [vmem:[%s10475_s3 + $0x4f8] sm:$0xf0]  ;;  %v6868_v14 = vld [vmem:[%s10475_s3 + $0x20c] sm:$0xf] }
 0x1ee   :  { %v6034_v56 = vor.u32 %v6960_v40, %v6031_v41  ;;  %v6976_v40 = vld [vmem:[%s10475_s3 + $0x56c] sm:$0xf]  ;;  %v6095_v41 = vld [vmem:[%s10475_s3 + $0x578] sm:$0xf0] }
 0x1ef   :  { %3957 = vmatpush.bf16.msra.mxu1 %v5602_v52  ;;  %v5410_v52 = vor.u32 %v6804_v32, %v5407_v34  ;;  %3883 = vmatpush.bf16.msra.mxu3 %v5790_v38  ;;  %v10066_v8 = vpop.f32.mrf.mxu1  ;;  %v7042_v32 = vld [vmem:[%s10475_s3 + $0x774] sm:$0xf0]  ;;  %v6880_v34 = vld [vmem:[%s10475_s3 + $0x26c] sm:$0xf]  ;;  %v5967_v38 = vld [vmem:[%s10475_s3 + $0x478] sm:$0xf0] }
 0x1f0   :  { %3922 = vmatpush.bf16.msrb.mxu2 %v6174_v45  ;;  %v6350_v45 = vor.u32 %v7042_v32, %v6349_v29  ;;  %v5970_v48 = vor.u32 %v6944_v37, %v5967_v38  ;;  %v6287_v29 = vld [vmem:[%s10475_s3 + $0x6f8] sm:$0xf0]  ;;  %v6924_v38 = vld [vmem:[%s10475_s3 + $0x3cc] sm:$0xf] }
 0x1f1   :  { %3945 = vmatpush.bf16.msra.mxu0 %v5458_v60  ;;  %v5759_v60 = vld [vmem:[%s10475_s3 + $0x2d8] sm:$0xf0]  ;;  %v6908_v5 = vld [vmem:[%s10475_s3 + $0x34c] sm:$0xf] }
 0x1f2   :  { %v5762_v63 = vor.u32 %v6892_v31, %v5759_v60  ;;  %3884 = vmatmul.bf16.vlgmr.msra.gmra.mxu3 %v8980_v43  ;;  %v2342_v31 = vperm.slane %v9672_v26, 1  ;;  %v6079_v60 = vld [vmem:[%s10475_s3 + $0x558] sm:$0xf0] }
 0x1f3   :  { %3958 = vmatpush.bf16.msra.mxu1 %v5586_v62  ;;  %3928 = vmatpush.bf16.msrb.mxu3 %v6414_v46  ;;  %v6143_v62 = vld [vmem:[%s10475_s3 + $0x5d8] sm:$0xf0]  ;;  %v5714_v46 = vor.u32 %v6880_v34, %v5711_v36 }
 0x1f4   :  { %3967 = vmatpush.bf16.msra.mxu2 %v5778_v55  ;;  %v6146_v3 = vor.u32 %v6988_v61, %v6143_v62  ;;  %v6098_v55 = vor.u32 %v6976_v40, %v6095_v41  ;;  %v5954_v62 = vor.u32 %v6940_v58, %v5951_v30  ;;  %v7020_v41 = vld [vmem:[%s10475_s3 + $0x6cc] sm:$0xf]  ;;  %v7065_v58 = vld [vmem:[%s10478_s5 + $0x30] sm:$0xff] }
 0x1f5   :  { %3946 = vmatpush.bf16.msra.mxu0 %v5442_v4  ;;  %v5743_v4 = vld [vmem:[%s10475_s3 + $0x2b8] sm:$0xf0]  ;;  %3923 = vmatmul.bf16.vlgmr.msrb.gmra.mxu2 %v9456_v20 }
 0x1f6   :  { %v5746_v12 = vor.u32 %v6888_v2, %v5743_v4  ;;  %v6936_v2 = vld [vmem:[%s10475_s3 + $0x42c] sm:$0xf] }
 0x1f7   :  { %3959 = vmatpush.bf16.msra.mxu1 %v5570_v9  ;;  %v6984_v9 = vld [vmem:[%s10475_s3 + $0x5ac] sm:$0xf]  ;;  %3929 = vmatpush.bf16.msrb.mxu3 %v6398_v16  ;;  %v3705_v39 = vpop.f32.mrf.mxu1  ;;  %v6317_v16 = vld [vmem:[%s10475_s3 + $0x728] sm:$0xf] }
 0x1f8   :  { %3968 = vmatpush.bf16.msra.mxu2 %v5762_v63  ;;  %v7034_v63 = vld [vmem:[%s10475_s3 + $0x734] sm:$0xf0]  ;;  %v5887_v39 = vld [vmem:[%s10475_s3 + $0x3d8] sm:$0xf0] }
 0x1f9   :  { %3947 = vmatpush.bf16.msra.mxu0 %v5426_v24  ;;  %v6111_v24 = vld [vmem:[%s10475_s3 + $0x598] sm:$0xf0] }
 0x1fa   :  { %v6114_v35 = vor.u32 %v6980_v21, %v6111_v24  ;;  %v6932_v21 = vld [vmem:[%s10475_s3 + $0x40c] sm:$0xf]  ;;  %v5919_v24 = vld [vmem:[%s10475_s3 + $0x418] sm:$0xf0] }
 0x1fb   :  { %3960 = vmatpush.bf16.msra.mxu1 %v5554_v28  ;;  %3930 = vmatpush.bf16.msrb.mxu3 %v6382_v11  ;;  %v5986_v28 = vor.u32 %v6948_v18, %v5983_v19  ;;  %v6301_v11 = vld [vmem:[%s10475_s3 + $0x708] sm:$0xf]  ;;  %v6928_v18 = vld [vmem:[%s10475_s3 + $0x3ec] sm:$0xf]  ;;  %v5903_v19 = vld [vmem:[%s10475_s3 + $0x3f8] sm:$0xf0] }
 0x1fc   :  { %3969 = vmatpush.bf16.msra.mxu2 %v5746_v12  ;;  %v5906_v34 = vor.u32 %v6928_v18, %v5903_v19  ;;  %v5807_v18 = vld [vmem:[%s10475_s3 + $0x338] sm:$0xf0] }
 0x1fd   :  { %3948 = vmatpush.bf16.msra.mxu0 %v5410_v52  ;;  %v3742_v27 = vpop.f32.mrf.mxu0  ;;  %v7038_v52 = vld [vmem:[%s10475_s3 + $0x754] sm:$0xf0] }
 0x1fe   :  { %v6334_v23 = vor.u32 %v7038_v52, %v6333_v51  ;;  %v3743_v4 = vadd.f32 %v3742_v27, %v2342_v31  ;;  %v6047_v27 = vld [vmem:[%s10475_s3 + $0x518] sm:$0xf0]  ;;  %v6920_v52 = vld [vmem:[%s10475_s3 + $0x3ac] sm:$0xf] }
 0x1ff   :  { %3961 = vmatpush.bf16.msra.mxu1 %v5538_v54  ;;  %v6876_v54 = vld [vmem:[%s10475_s3 + $0x24c] sm:$0xf]  ;;  %v7074_v19 = vld [vmem:[%s10478_s5 + $0x78] sm:$0xff] }
 0x200   :  { %3949 = vmatmul.bf16.vlgmr.msra.gmra.mxu0 %v8971_v42  ;;  %v6365_v42 = vld [vmem:[%s10475_s3 + $0x788] sm:$0xf]  ;;  %3970 = vmatpush.bf16.msra.mxu2 %v5730_v22  ;;  %v6916_v31 = vld [vmem:[%s10475_s3 + $0x38c] sm:$0xf] }
 0x201   :  { %3993 = vmatpush.bf16.msrb.mxu0 %v6034_v56  ;;  %v6366_v25 = vor.u32 %v7046_v1, %v6365_v42  ;;  %v5695_v56 = vld [vmem:[%s10475_s3 + $0x258] sm:$0xf0]  ;;  %v7030_v1 = vld [vmem:[%s10475_s3 + $0x714] sm:$0xf0] }
 0x202   :  { %3962 = vmatmul.bf16.vlgmr.msra.gmra.mxu1 %v8973_v44  ;;  %v6130_v44 = vor.u32 %v6984_v9, %v6127_v10  ;;  %v5698_v61 = vor.u32 %v6876_v54, %v5695_v56  ;;  %v6318_v9 = vor.u32 %v7034_v63, %v6317_v16  ;;  %v3755_v10 = vpop.f32.mrf.mxu1  ;;  %v6302_v22 = vor.u32 %v7030_v1, %v6301_v11  ;;  %v5871_v54 = vld [vmem:[%s10475_s3 + $0x3b8] sm:$0xf0]  ;;  %v6912_v63 = vld [vmem:[%s10475_s3 + $0x36c] sm:$0xf] }
 0x203   :  { %4006 = vmatpush.bf16.msrb.mxu1 %v6162_v59  ;;  %3931 = vmatpush.bf16.msrb.mxu3 %v6366_v25  ;;  %v6972_v59 = vld [vmem:[%s10475_s3 + $0x54c] sm:$0xf]  ;;  %v6255_v56 = vld [vmem:[%s10475_s3 + $0x6b8] sm:$0xf0]  ;;  %v5874_v30 = vor.u32 %v6920_v52, %v5871_v54  ;;  %v5826_v1 = vor.u32 %v6908_v5, %v5823_v7 }
 0x204   :  { %3971 = vmatpush.bf16.msra.mxu2 %v5714_v46  ;;  %v6082_v0 = vor.u32 %v6972_v59, %v6079_v60  ;;  %v6964_v25 = vld [vmem:[%s10475_s3 + $0x50c] sm:$0xf]  ;;  %v7066_v46 = vld [vmem:[%s10478_s5 + $0x38] sm:$0xff] }
 0x205   :  { %3994 = vmatpush.bf16.msrb.mxu0 %v6018_v49  ;;  %v3744_v33 = vpop.f32.mrf.mxu0  ;;  %v6872_v49 = vld [vmem:[%s10475_s3 + $0x22c] sm:$0xf]  ;;  %v6050_v36 = vor.u32 %v6964_v25, %v6047_v27  ;;  %v5855_v59 = vld [vmem:[%s10475_s3 + $0x398] sm:$0xf0]  ;;  %v7061_v25 = vld [vmem:[%s10478_s5 + $0x10] sm:$0xff] }
 0x206   :  { %v5682_v12 = vor.u32 %v6872_v49, %v5679_v47  ;;  %v7012_v60 = vld [vmem:[%s10475_s3 + $0x68c] sm:$0xf]  ;;  %v5839_v49 = vld [vmem:[%s10475_s3 + $0x378] sm:$0xf0] }
 0x207   :  { %4007 = vmatpush.bf16.msrb.mxu1 %v6146_v3  ;;  %3932 = vmatpush.bf16.msrb.mxu3 %v6350_v45  ;;  %v5935_v3 = vld [vmem:[%s10475_s3 + $0x438] sm:$0xf0]  ;;  %v7072_v52 = vld [vmem:[%s10478_s5 + $0x68] sm:$0xff] }
 0x208   :  { %3972 = vmatpush.bf16.msra.mxu2 %v5698_v61  ;;  %v5938_v42 = vor.u32 %v6936_v2, %v5935_v3  ;;  %v6271_v45 = vld [vmem:[%s10475_s3 + $0x6d8] sm:$0xf0]  ;;  %v5858_v61 = vor.u32 %v6916_v31, %v5855_v59  ;;  %v7063_v2 = vld [vmem:[%s10478_s5 + $0x20] sm:$0xff]  ;;  %v5842_v3 = vor.u32 %v6912_v63, %v5839_v49  ;;  %v7044_v31 = vld [vmem:[%s10475_s3 + $0x78c] sm:$0xf] }
 0x209   :  { %3995 = vmatpush.bf16.msrb.mxu0 %v6002_v13  ;;  %v10175_v13 = vadd.f32 %v3755_v10, %v3743_v4  ;;  %v6274_v51 = vor.u32 %v7020_v41, %v6271_v45  ;;  %v6223_v47 = vld [vmem:[%s10475_s3 + $0x678] sm:$0xf0] }
 0x20a   :  { %v3757_v40 = vpop.f32.mrf.mxu1  ;;  %v6207_v10 = vld [vmem:[%s10475_s3 + $0x658] sm:$0xf0] }
 0x20b   :  { %4008 = vmatpush.bf16.msrb.mxu1 %v6130_v44  ;;  %3933 = vmatpush.bf16.msrb.mxu3 %v6334_v23  ;;  %v5663_v44 = vld [vmem:[%s10475_s3 + $0x218] sm:$0xf0] }
 0x20c   :  { %3973 = vmatpush.bf16.msra.mxu2 %v5682_v12  ;;  %v5666_v32 = vor.u32 %v6868_v14, %v5663_v44  ;;  %v7062_v11 = vld [vmem:[%s10478_s5 + $0x18] sm:$0xff] }
 0x20d   :  { %3996 = vmatpush.bf16.msrb.mxu0 %v5986_v28  ;;  %v7024_v28 = vld [vmem:[%s10475_s3 + $0x6ec] sm:$0xf]  ;;  %v6367_v59 = vld [vmem:[%s10475_s3 + $0x798] sm:$0xf0] }
 0x20e   :  { %v6290_v37 = vor.u32 %v7024_v28, %v6287_v29  ;;  %v5791_v28 = vld [vmem:[%s10475_s3 + $0x318] sm:$0xf0] }
 0x20f   :  { %4009 = vmatpush.bf16.msrb.mxu1 %v6114_v35  ;;  %3934 = vmatpush.bf16.msrb.mxu3 %v6318_v9  ;;  %v5922_v35 = vor.u32 %v6932_v21, %v5919_v24  ;;  %v7004_v9 = vld [vmem:[%s10475_s3 + $0x64c] sm:$0xf]  ;;  %v6191_v24 = vld [vmem:[%s10475_s3 + $0x638] sm:$0xf0] }
 0x210   :  { %3974 = vmatpush.bf16.msra.mxu2 %v5666_v32  ;;  %v6210_v14 = vor.u32 %v7004_v9, %v6207_v10  ;;  %v7000_v21 = vld [vmem:[%s10475_s3 + $0x62c] sm:$0xf]  ;;  %v6351_v63 = vld [vmem:[%s10475_s3 + $0x778] sm:$0xf0] }
 0x211   :  { %3997 = vmatpush.bf16.msrb.mxu0 %v5970_v48  ;;  %v5890_v48 = vor.u32 %v6924_v38, %v5887_v39  ;;  %v6194_v29 = vor.u32 %v7000_v21, %v6191_v24  ;;  %v6996_v32 = vld [vmem:[%s10475_s3 + $0x60c] sm:$0xf] }
 0x212   :  { %v7060_v38 = vld [vmem:[%s10478_s5 + $0x8] sm:$0xff] }
 0x213   :  { %4010 = vmatpush.bf16.msrb.mxu1 %v6098_v55  ;;  %3935 = vmatpush.bf16.msrb.mxu3 %v6302_v22  ;;  %v7016_v55 = vld [vmem:[%s10475_s3 + $0x6ac] sm:$0xf] }
 0x214   :  { %4019 = vmatpush.bf16.msrb.mxu2 %v6290_v37  ;;  %v6900_v22 = vld [vmem:[%s10475_s3 + $0x30c] sm:$0xf]  ;;  %v6415_v37 = vld [vmem:[%s10475_s3 + $0x7f8] sm:$0xf0] }
 0x215   :  { %3998 = vmatpush.bf16.msrb.mxu0 %v5954_v62  ;;  %3975 = vmatmul.bf16.vlgmr.msra.gmra.mxu2 %v8978_v50  ;;  %v6258_v50 = vor.u32 %v7016_v55, %v6255_v56  ;;  %v10263_v16 = vpop.f32.mrf.mxu2  ;;  %v5794_v39 = vor.u32 %v6900_v22, %v5791_v28  ;;  %v7048_v55 = vld [vmem:[%s10475_s3 + $0x7ac] sm:$0xf]  ;;  %v6383_v56 = vld [vmem:[%s10475_s3 + $0x7b8] sm:$0xf0] }
 0x216   :  { %3936 = vmatmul.bf16.vlgmr.msrb.gmra.mxu3 %v9615_v15 }
 0x217   :  { %4011 = vmatpush.bf16.msrb.mxu1 %v6082_v0  ;;  %3980 = vmatpush.bf16.msra.mxu3 %v5906_v34  ;;  %v7008_v0 = vld [vmem:[%s10475_s3 + $0x66c] sm:$0xf]  ;;  %v6175_v34 = vld [vmem:[%s10475_s3 + $0x618] sm:$0xf0] }
 0x218   :  { %4020 = vmatpush.bf16.msrb.mxu2 %v6274_v51  ;;  %v6226_v4 = vor.u32 %v7008_v0, %v6223_v47  ;;  %v6178_v40 = vor.u32 %v6996_v32, %v6175_v34  ;;  %v7059_v51 = vld [vmem:[%s10478_s5] sm:$0xff] }
 0x219   :  { %3999 = vmatpush.bf16.msrb.mxu0 %v5938_v42 }
 0x21b   :  { %4012 = vmatpush.bf16.msrb.mxu1 %v6066_v17  ;;  %3981 = vmatpush.bf16.msra.mxu3 %v5890_v48  ;;  %v6904_v17 = vld [vmem:[%s10475_s3 + $0x32c] sm:$0xf]  ;;  %v6399_v48 = vld [vmem:[%s10475_s3 + $0x7d8] sm:$0xf0] }
 0x21c   :  { %4021 = vmatpush.bf16.msrb.mxu2 %v6258_v50  ;;  %v5810_v27 = vor.u32 %v6904_v17, %v5807_v18  ;;  %v7028_v18 = vld [vmem:[%s10475_s3 + $0x70c] sm:$0xf] }
 0x21d   :  { %4000 = vmatpush.bf16.msrb.mxu0 %v5922_v35  ;;  %v10259_v23 = vpop.f32.mrf.mxu0  ;;  %v3718_v44 = vpop.f32.mrf.mxu2  ;;  %v7073_v35 = vld [vmem:[%s10478_s5 + $0x70] sm:$0xff] }
 0x21f   :  { %4013 = vmatpush.bf16.msrb.mxu1 %v6050_v36  ;;  %3982 = vmatpush.bf16.msra.mxu3 %v5874_v30  ;;  %v10261_v33 = vpop.f32.mrf.mxu1  ;;  %v7056_v36 = vld [vmem:[%s10475_s3 + $0x7ec] sm:$0xf]  ;;  %v6386_v30 = vor.u32 %v7048_v55, %v6383_v56  ;;  %v7077_v56 = vld [vmem:[%s10478_s5 + $0x90] sm:$0xff] }
 0x220   :  { %4001 = vmatmul.bf16.vlgmr.msrb.gmra.mxu0 %v9128_v6  ;;  %v6239_v6 = vld [vmem:[%s10475_s3 + $0x698] sm:$0xf0]  ;;  %v6418_v41 = vor.u32 %v7056_v36, %v6415_v37 }
 0x221   :  { %4313 = vmatpush.bf16.msra.mxu0 %v7066_v46  ;;  %v6242_v62 = vor.u32 %v7012_v60, %v6239_v6  ;;  %v7052_v46 = vld [vmem:[%s10475_s3 + $0x7cc] sm:$0xf]  ;;  %v7070_v60 = vld [vmem:[%s10478_s5 + $0x58] sm:$0xff]  ;;  %v6370_v6 = vor.u32 %v7044_v31, %v6367_v59 }
 0x222   :  { %4014 = vmatmul.bf16.vlgmr.msrb.gmra.mxu1 %v9297_v53  ;;  %v7064_v53 = vld [vmem:[%s10478_s5 + $0x28] sm:$0xff]  ;;  %v6402_v54 = vor.u32 %v7052_v46, %v6399_v48 }
 0x223   :  { %3983 = vmatpush.bf16.msra.mxu3 %v5858_v61  ;;  %4022 = vmatpush.bf16.msrb.mxu2 %v6242_v62  ;;  %v7040_v62 = vld [vmem:[%s10475_s3 + $0x76c] sm:$0xf] }
 0x224   :  { %4326 = vmatpush.bf16.msra.mxu1 %v7074_v19  ;;  %v6303_v19 = vld [vmem:[%s10475_s3 + $0x718] sm:$0xf0]  ;;  %v7080_v48 = vld [vmem:[%s10478_s5 + $0xa8] sm:$0xff] }
 0x225   :  { %4314 = vmatpush.bf16.msra.mxu0 %v7065_v58  ;;  %v3796_v12 = vpop.f32.mrf.mxu0  ;;  %v10337_v45 = vpop.f32.mrf.mxu2  ;;  %v7071_v58 = vld [vmem:[%s10478_s5 + $0x60] sm:$0xff]  ;;  %v6306_v24 = vor.u32 %v7028_v18, %v6303_v19  ;;  %v7076_v31 = vld [vmem:[%s10478_s5 + $0x88] sm:$0xff] }
 0x226   :  { %v7084_v18 = vld [vmem:[%s10478_s5 + $0xc8] sm:$0xff] }
 0x227   :  { %3984 = vmatpush.bf16.msra.mxu3 %v5842_v3  ;;  %v3809_v42 = vpop.f32.mrf.mxu1  ;;  %4023 = vmatpush.bf16.msrb.mxu2 %v6226_v4  ;;  %v7036_v3 = vld [vmem:[%s10475_s3 + $0x74c] sm:$0xf]  ;;  %v6335_v4 = vld [vmem:[%s10475_s3 + $0x758] sm:$0xf0] }
 0x228   :  { %4327 = vmatpush.bf16.msra.mxu1 %v7073_v35  ;;  %v6338_v10 = vor.u32 %v7036_v3, %v6335_v4  ;;  %v7032_v42 = vld [vmem:[%s10475_s3 + $0x72c] sm:$0xf] }
 0x229   :  { %4315 = vmatpush.bf16.msra.mxu0 %v7064_v53 }
 0x22b   :  { %3985 = vmatpush.bf16.msra.mxu3 %v5826_v1  ;;  %4024 = vmatpush.bf16.msrb.mxu2 %v6210_v14  ;;  %v6319_v1 = vld [vmem:[%s10475_s3 + $0x738] sm:$0xf0]  ;;  %v7067_v14 = vld [vmem:[%s10478_s5 + $0x40] sm:$0xff] }
 0x22c   :  { %4328 = vmatpush.bf16.msra.mxu1 %v7072_v52  ;;  %v6322_v17 = vor.u32 %v7032_v42, %v6319_v1  ;;  %v7078_v52 = vld [vmem:[%s10478_s5 + $0x98] sm:$0xff]  ;;  %v7088_v42 = vld [vmem:[%s10478_s5 + $0xe8] sm:$0xff] }
 0x22d   :  { %4316 = vmatpush.bf16.msra.mxu0 %v7063_v2  ;;  %v3770_v50 = vpop.f32.mrf.mxu2  ;;  %v6354_v2 = vor.u32 %v7040_v62, %v6351_v63 }
 0x22f   :  { %3986 = vmatpush.bf16.msra.mxu3 %v5810_v27  ;;  %4025 = vmatpush.bf16.msrb.mxu2 %v6194_v29  ;;  %v3769_v27 = vadd.f32 %v10337_v45, %v10175_v13 }
 0x230   :  { %4329 = vmatpush.bf16.msra.mxu1 %v7071_v58 }
 0x231   :  { %4317 = vmatpush.bf16.msra.mxu0 %v7062_v11 }
 0x233   :  { %3987 = vmatpush.bf16.msra.mxu3 %v5794_v39  ;;  %4026 = vmatpush.bf16.msrb.mxu2 %v6178_v40 }
 0x234   :  { %4330 = vmatpush.bf16.msra.mxu1 %v7070_v60 }
 0x235   :  { %4318 = vmatpush.bf16.msra.mxu0 %v7061_v25  ;;  %v3820_v7 = vpop.f32.mrf.mxu2 }
 0x236   :  { %3988 = vmatmul.bf16.vlgmr.msra.gmra.mxu3 %v8980_v43  ;;  %4027 = vmatmul.bf16.vlgmr.msrb.gmra.mxu2 %v9456_v20  ;;  %v2343_v43 = vperm.slane %v9672_v26, 2  ;;  %v3704_v20 = vadd.f32 %v10066_v8, %v9917_v57  ;;  %v7069_v26 = vld [vmem:[%s10478_s5 + $0x50] sm:$0xff]  ;;  %v3729_v8 = vpop.f32.mrf.mxu3 }
 0x237   :  { %4032 = vmatpush.bf16.msrb.mxu3 %v6418_v41  ;;  %v7082_v41 = vld [vmem:[%s10478_s5 + $0xb8] sm:$0xff] }
 0x238   :  { %v3717_v49 = vadd.f32 %v10263_v16, %v3704_v20  ;;  %4331 = vmatpush.bf16.msra.mxu1 %v7069_v26  ;;  %v7068_v16 = vld [vmem:[%s10478_s5 + $0x48] sm:$0xff]  ;;  %4339 = vmatpush.bf16.msra.mxu2 %v7082_v41  ;;  %v7075_v20 = vld [vmem:[%s10478_s5 + $0x80] sm:$0xff] }
 0x239   :  { %4319 = vmatpush.bf16.msra.mxu0 %v7060_v38 }
 0x23a   :  { %v3730_v47 = vadd.f32 %v3729_v8, %v3717_v49 }
 0x23b   :  { %4033 = vmatpush.bf16.msrb.mxu3 %v6402_v54  ;;  %v7093_v54 = vld [vmem:[%s10477_s4] sm:$0xf] }
 0x23c   :  { %v4045_v5 = vmax.f32 %v3730_v47, 0.0  ;;  %4332 = vmatpush.bf16.msra.mxu1 %v7068_v16  ;;  %v2344_v55 = vperm.slane %v7093_v54, 3 }
 0x23d   :  { %4320 = vmatpush.bf16.msra.mxu0 %v7059_v51  ;;  %v3846_v53 = vpop.f32.mrf.mxu0  ;;  %v3822_v21 = vpop.f32.mrf.mxu2  ;;  %v7079_v51 = vld [vmem:[%s10478_s5 + $0xa0] sm:$0xff] }
 0x23e   :  { %v3847_v57 = vadd.f32 %v3846_v53, %v2343_v43  ;;  %v4049_v9 = vpack.c.bf16 %v4045_v5, %v4045_v5  ;;  %v3731_v44 = vpop.f32.mrf.mxu3  ;;  %v7083_v21 = vld [vmem:[%s10478_s5 + $0xc0] sm:$0xff] }
 0x23f   :  { %4034 = vmatpush.bf16.msrb.mxu3 %v6386_v30  ;;  %v3859_v61 = vpop.f32.mrf.mxu1  ;;  %v7086_v44 = vld [vmem:[%s10478_s5 + $0xd8] sm:$0xff] }
 0x240   :  { %v10384_v0 = vadd.f32 %v3859_v61, %v3847_v57  ;;  %4321 = vmatmul.bf16.vlgmr.msra.gmra.mxu0 %v4049_v9  ;;  %4333 = vmatpush.bf16.msra.mxu1 %v7067_v14  ;;  %v7087_v14 = vld [vmem:[%s10478_s5 + $0xe0] sm:$0xff] }
 0x243   :  { %4035 = vmatpush.bf16.msrb.mxu3 %v6370_v6 }
 0x245   :  { %v3848_v11 = vpop.f32.mrf.mxu0 }
 0x246   :  { %v3781_v25 = vpop.f32.mrf.mxu3 }
 0x247   :  { %4036 = vmatpush.bf16.msrb.mxu3 %v6354_v2  ;;  %v3861_v12 = vpop.f32.mrf.mxu1  ;;  %v3782_v22 = vadd.f32 %v3781_v25, %v3769_v27 }
 0x249   :  { %v3795_v29 = vadd.f32 %v10259_v23, %v3782_v22  ;;  %v7081_v23 = vld [vmem:[%s10478_s5 + $0xb0] sm:$0xff] }
 0x24a   :  { %4340 = vmatpush.bf16.msra.mxu2 %v7081_v23 }
 0x24b   :  { %4037 = vmatpush.bf16.msrb.mxu3 %v6338_v10  ;;  %v3808_v35 = vadd.f32 %v10261_v33, %v3795_v29 }
 0x24d   :  { %v3821_v37 = vadd.f32 %v3820_v7, %v3808_v35  ;;  %v7090_v7 = vld [vmem:[%s10478_s5 + $0xf8] sm:$0xff] }
 0x24e   :  { %v3783_v28 = vpop.f32.mrf.mxu3  ;;  %4341 = vmatpush.bf16.msra.mxu2 %v7080_v48 }
 0x24f   :  { %4038 = vmatpush.bf16.msrb.mxu3 %v6322_v17  ;;  %v7085_v17 = vld [vmem:[%s10478_s5 + $0xd0] sm:$0xff] }
 0x252   :  { %4342 = vmatpush.bf16.msra.mxu2 %v7079_v51 }
 0x253   :  { %4039 = vmatpush.bf16.msrb.mxu3 %v6306_v24 }
 0x256   :  { %4040 = vmatmul.bf16.vlgmr.msrb.gmra.mxu3 %v9615_v15  ;;  %v3833_v38 = vpop.f32.mrf.mxu3  ;;  %4343 = vmatpush.bf16.msra.mxu2 %v7078_v52 }
 0x257   :  { %v3834_v39 = vadd.f32 %v3833_v38, %v3821_v37  ;;  %4352 = vmatpush.bf16.msra.mxu3 %v7090_v7 }
 0x258   :  { %v3872_v36 = vpop.f32.mrf.mxu2 }
 0x259   :  { %v4046_v13 = vmax.f32 %v3834_v39, 0.0  ;;  %v3873_v63 = vadd.f32 %v3872_v36, %v10384_v0  ;;  %v7089_v0 = vld [vmem:[%s10478_s5 + $0xf0] sm:$0xff] }
 0x25a   :  { %4344 = vmatpush.bf16.msra.mxu2 %v7077_v56 }
 0x25b   :  { %v4050_v15 = vpack.c.bf16 %v4046_v13, %v4046_v13  ;;  %4353 = vmatpush.bf16.msra.mxu3 %v7089_v0  ;;  %v7091_v13 = vld [vmem:[%s10479_s6] ss:$0 sm:$0xff] }
 0x25d   :  { %v3898_v32 = vpop.f32.mrf.mxu0  ;;  %4334 = vmatmul.bf16.vlgmr.msra.gmra.mxu1 %v4050_v15 }
 0x25e   :  { %v3835_v33 = vpop.f32.mrf.mxu3  ;;  %4345 = vmatpush.bf16.msra.mxu2 %v7076_v31 }
 0x25f   :  { %v3911_v34 = vpop.f32.mrf.mxu1  ;;  %4354 = vmatpush.bf16.msra.mxu3 %v7088_v42 }
 0x260   :  { %v3874_v46 = vpop.f32.mrf.mxu2 }
 0x262   :  { %4346 = vmatpush.bf16.msra.mxu2 %v7075_v20 }
 0x263   :  { %4355 = vmatpush.bf16.msra.mxu3 %v7087_v14 }
 0x265   :  { %v3900_v40 = vpop.f32.mrf.mxu0 }
 0x267   :  { %v3913_v45 = vpop.f32.mrf.mxu1  ;;  %4356 = vmatpush.bf16.msra.mxu3 %v7086_v44 }
 0x26b   :  { %4357 = vmatpush.bf16.msra.mxu3 %v7085_v17 }
 0x26f   :  { %4358 = vmatpush.bf16.msra.mxu3 %v7084_v18 }
 0x273   :  { %4359 = vmatpush.bf16.msra.mxu3 %v7083_v21 }
 0x275   :  { %v3885_v60 = vpop.f32.mrf.mxu3 }
 0x276   :  { %v3886_v26 = vadd.f32 %v3885_v60, %v3873_v63 }
 0x278   :  { %v3924_v43 = vpop.f32.mrf.mxu2  ;;  %v3899_v49 = vadd.f32 %v3898_v32, %v3886_v26 }
 0x27a   :  { %v3912_v57 = vadd.f32 %v3911_v34, %v3899_v49 }
 0x27c   :  { %v3925_v2 = vadd.f32 %v3924_v43, %v3912_v57 }
 0x27d   :  { %v3950_v58 = vpop.f32.mrf.mxu0  ;;  %v3887_v61 = vpop.f32.mrf.mxu3 }
 0x27e   :  { %v3951_v30 = vadd.f32 %v3950_v58, %v2344_v55 }
 0x27f   :  { %v3963_v50 = vpop.f32.mrf.mxu1 }
 0x280   :  { %v3964_v59 = vadd.f32 %v3963_v50, %v3951_v30  ;;  %v3926_v62 = vpop.f32.mrf.mxu2 }
 0x285   :  { %v3952_v6 = vpop.f32.mrf.mxu0 }
 0x287   :  { %v3965_v53 = vpop.f32.mrf.mxu1 }
 0x298   :  { %v3976_v5 = vpop.f32.mrf.mxu2 }
 0x299   :  { %v3937_v3 = vpop.f32.mrf.mxu3  ;;  %v3977_v28 = vadd.f32 %v3976_v5, %v3964_v59 }
 0x29a   :  { %v3938_v4 = vadd.f32 %v3937_v3, %v3925_v2 }
 0x29c   :  { %v4047_v16 = vmax.f32 %v3938_v4, 0.0 }
 0x29d   :  { %v4002_v8 = vpop.f32.mrf.mxu0 }
 0x29e   :  { %v4051_v11 = vpack.c.bf16 %v4047_v16, %v4047_v16 }
 0x29f   :  { %v4015_v47 = vpop.f32.mrf.mxu1 }
 0x2a0   :  { %4347 = vmatmul.bf16.vlgmr.msra.gmra.mxu2 %v4051_v11  ;;  %v3978_v1 = vpop.f32.mrf.mxu2 }
 0x2a1   :  { %v3939_v12 = vpop.f32.mrf.mxu3 }
 0x2a5   :  { %v4004_v9 = vpop.f32.mrf.mxu0 }
 0x2a7   :  { %v4017_v10 = vpop.f32.mrf.mxu1 }
 0x2b9   :  { %v3989_v19 = vpop.f32.mrf.mxu3  ;;  %v4028_v24 = vpop.f32.mrf.mxu2 }
 0x2ba   :  { %v3990_v29 = vadd.f32 %v3989_v19, %v3977_v28 }
 0x2bc   :  { %v4003_v34 = vadd.f32 %v4002_v8, %v3990_v29 }
 0x2bd   :  { %v4322_v22 = vpop.f32.mrf.mxu0 }
 0x2be   :  { %v4016_v35 = vadd.f32 %v4015_v47, %v4003_v34  ;;  %v4323_v45 = vadd.f32 %v7091_v13, %v4322_v22 }
 0x2c0   :  { %v4029_v36 = vadd.f32 %v4028_v24, %v4016_v35 }
 0x2c1   :  { %v3991_v25 = vpop.f32.mrf.mxu3  ;;  %v4030_v27 = vpop.f32.mrf.mxu2 }
 0x2c5   :  { %v4324_v32 = vpop.f32.mrf.mxu0 }
 0x2d9   :  { %v4041_v37 = vpop.f32.mrf.mxu3 }
 0x2da   :  { %v4042_v38 = vadd.f32 %v4041_v37, %v4029_v36  ;;  %v4335_v15 = vpop.f32.mrf.mxu1 }
 0x2db   :  { %v4336_v23 = vadd.f32 %v4335_v15, %v4323_v45 }
 0x2dc   :  { %v4048_v39 = vmax.f32 %v4042_v38, 0.0 }
 0x2de   :  { %v4052_v40 = vpack.c.bf16 %v4048_v39, %v4048_v39 }
 0x2e0   :  { %4360 = vmatmul.bf16.vlgmr.msra.gmra.mxu3 %v4052_v40 }
 0x2e1   :  { %v4043_v41 = vpop.f32.mrf.mxu3 }
 0x2e2   :  { %v4337_v46 = vpop.f32.mrf.mxu1 }
 0x323   :  { %v4348_v33 = vpop.f32.mrf.mxu2 }
 0x324   :  { %v4349_v51 = vadd.f32 %v4348_v33, %v4336_v23 }
 0x32b   :  { %v4350_v48 = vpop.f32.mrf.mxu2 }
 0x363   :  { %v4361_v52 = vpop.f32.mrf.mxu3 }
 0x364   :  { %v4362_v54 = vadd.f32 %v4361_v52, %v4349_v51 }
 0x366   :  { %4366 = vst.msk [vmem:[%s10480_s7] sm:$0xff] %vm4365_vm0, %v4362_v54 }
 0x36b   :  { %v4363_v55 = vpop.f32.mrf.mxu3 }

</bundles_post_ra>
